<compile_context>
chip_gen: v7x
topology: tpu7x:2x2x1
jax: 0.10.0
libtpu: 0.0.40
codegen_flags: <defaults>
</compile_context>

<pallas_src>
import functools

import jax
import jax.numpy as jnp
from jax.experimental import pallas as pl
from jax.experimental.pallas import tpu as pltpu


# ----------------------------------------------------------------------------
# Pallas kernels
# ----------------------------------------------------------------------------
def _gemm_bias_relu_kernel(x_ref, w_ref, b_ref, o_ref):
    """o = relu(x @ w + b); full-array blocks (conv GEMMs are small, fit VMEM)."""
    acc = jnp.dot(x_ref[...], w_ref[...], preferred_element_type=jnp.float32)
    o_ref[...] = jnp.maximum(acc + b_ref[...], 0.0).astype(o_ref.dtype)


def gemm_bias_relu(x, w, b_row):
    M, K = x.shape
    K2, N = w.shape
    assert K == K2, (K, K2)
    return pl.pallas_call(
        _gemm_bias_relu_kernel,
        out_shape=jax.ShapeDtypeStruct((M, N), jnp.float32),
        in_specs=[pl.BlockSpec(memory_space=pltpu.MemorySpace.VMEM)] * 3,
        out_specs=pl.BlockSpec(memory_space=pltpu.MemorySpace.VMEM),
    )(x, w, b_row)


def _fused_head_kernel(f_ref, w1_ref, b1_ref, w2_ref, b2_ref, out_ref):
    """One dueling branch per grid step (step 0 = value, step 1 = advantage).

    Streams its bf16 half of the fused [wv1|wa1] weight, does
    relu(f @ W1_half + b1_half) @ W2_half + b2_half in f32.  The V-broadcast
    and the per-row advantage-mean subtraction are pre-folded into W2/b2, so
    q = out[0] + out[1].
    """
    f = f_ref[...].astype(jnp.bfloat16)                               # (B, 3136)
    h = jnp.dot(f, w1_ref[...], preferred_element_type=jnp.float32)   # bf16 MXU, f32 acc
    h = jnp.maximum(h + b1_ref[...], 0.0)                             # f32 epilogue
    r = jnp.dot(h, w2_ref[0], preferred_element_type=jnp.float32) + b2_ref[0]
    out_ref[0] = r.astype(out_ref.dtype)


def dueling_heads_pallas(features, w1, b1, w2s, b2s):
    B, K = features.shape
    H = w1.shape[1] // 2          # 512 per branch
    A = w2s.shape[-1]
    parts = pl.pallas_call(
        _fused_head_kernel,
        out_shape=jax.ShapeDtypeStruct((2, B, A), jnp.float32),
        grid=(2,),
        in_specs=[
            pl.BlockSpec((B, K), lambda i: (0, 0)),        # features (shared)
            pl.BlockSpec((K, H), lambda i: (0, i)),        # half of fused [wv1|wa1] (bf16)
            pl.BlockSpec((1, H), lambda i: (0, i)),        # half of fused [bv1|ba1]
            pl.BlockSpec((1, H, A), lambda i: (i, 0, 0)),  # per-head second-layer weight
            pl.BlockSpec((1, 1, A), lambda i: (i, 0, 0)),  # per-head second-layer bias
        ],
        out_specs=pl.BlockSpec((1, B, A), lambda i: (i, 0, 0)),
        compiler_params=pltpu.CompilerParams(
            dimension_semantics=("parallel",)),            # v7x: one branch per TensorCore
    )(features, w1, b1, w2s, b2s)
    return parts[0] + parts[1]                             # q = V + (A - mean(A, dim=1))


# ----------------------------------------------------------------------------
# im2col glue (plain JAX; data movement only, no arithmetic)
# ----------------------------------------------------------------------------
# TODO(synk): the patch gather stays as XLA slicing glue; an in-kernel strided
# gather (fusing the convs' im2col into the GEMM kernels) would cut launch/glue
# overhead further but needs careful strided-DMA handling.
def im2col(x_nhwc, kh, kw, stride, pad):
    B, H, W, C = x_nhwc.shape
    if pad:
        x_nhwc = jnp.pad(x_nhwc, ((0, 0), (pad, pad), (pad, pad), (0, 0)))
    Hp, Wp = H + 2 * pad, W + 2 * pad
    oh = (Hp - kh) // stride + 1
    ow = (Wp - kw) // stride + 1
    cols = []
    for i in range(kh):
        for j in range(kw):
            patch = jax.lax.slice(
                x_nhwc,
                (0, i, j, 0),
                (B, i + stride * (oh - 1) + 1, j + stride * (ow - 1) + 1, C),
                (1, stride, stride, 1))
            cols.append(patch)                       # (B, oh, ow, C)
    patches = jnp.stack(cols, axis=3)                # (B, oh, ow, kh*kw, C)
    return patches.reshape(B, oh, ow, kh * kw * C), oh, ow


def conv2d_relu(x_nhwc, wm, b_row, kh, kw, stride, pad):
    B, _, _, ic = x_nhwc.shape
    oc = wm.shape[1]
    patches, oh, ow = im2col(x_nhwc, kh, kw, stride, pad)
    xm = patches.reshape(B * oh * ow, kh * kw * ic)
    y = gemm_bias_relu(xm, wm, b_row)
    return y.reshape(B, oh, ow, oc)


# ----------------------------------------------------------------------------
# Parameters
# ----------------------------------------------------------------------------
def init_params(key, input_dim=4, output_dim=4, hidden_dim=512):
    feat = 64 * 7 * 7

    def uni(k, shape, fan_in):
        bound = 1.0 / jnp.sqrt(jnp.float32(fan_in))
        return jax.random.uniform(k, shape, jnp.float32, -bound, bound)

    ks = jax.random.split(key, 14)
    return {
        # conv weights in PyTorch OIHW layout
        "cw1": uni(ks[0], (32, input_dim, 8, 8), input_dim * 8 * 8),
        "cb1": uni(ks[1], (32,), input_dim * 8 * 8),
        "cw2": uni(ks[2], (64, 32, 4, 4), 32 * 4 * 4),
        "cb2": uni(ks[3], (64,), 32 * 4 * 4),
        "cw3": uni(ks[4], (64, 64, 3, 3), 64 * 3 * 3),
        "cb3": uni(ks[5], (64,), 64 * 3 * 3),
        # first Linear of each stream, stored (in, out)
        "wv1": uni(ks[6], (feat, hidden_dim), feat),
        "bv1": uni(ks[7], (hidden_dim,), feat),
        "wa1": uni(ks[8], (feat, hidden_dim), feat),
        "ba1": uni(ks[9], (hidden_dim,), feat),
        # NoisyLinear second layers: mu ~ U(+-1/sqrt(in)), sigma = 0.017
        "wv2_mu": uni(ks[10], (hidden_dim, 1), hidden_dim),
        "bv2_mu": uni(ks[11], (1,), hidden_dim),
        "wa2_mu": uni(ks[12], (hidden_dim, output_dim), hidden_dim),
        "ba2_mu": uni(ks[13], (output_dim,), hidden_dim),
        "wv2_sigma": jnp.full((hidden_dim, 1), 0.017, jnp.float32),
        "bv2_sigma": jnp.full((1,), 0.017, jnp.float32),
        "wa2_sigma": jnp.full((hidden_dim, output_dim), 0.017, jnp.float32),
        "ba2_sigma": jnp.full((output_dim,), 0.017, jnp.float32),
    }


def sample_noisy_weights(params, key):
    """One epsilon draw for the NoisyLinear layers (torch resamples per forward)."""
    k = jax.random.split(key, 4)
    return {
        "wv2": params["wv2_mu"] + params["wv2_sigma"] * jax.random.normal(k[0], params["wv2_mu"].shape),
        "bv2": params["bv2_mu"] + params["bv2_sigma"] * jax.random.normal(k[1], params["bv2_mu"].shape),
        "wa2": params["wa2_mu"] + params["wa2_sigma"] * jax.random.normal(k[2], params["wa2_mu"].shape),
        "ba2": params["ba2_mu"] + params["ba2_sigma"] * jax.random.normal(k[3], params["ba2_mu"].shape),
    }


def prepare_pallas_params(params, eff):
    """Build kernel-ready weights once (outside the jitted forward)."""
    A = params["wa2_mu"].shape[1]

    def conv_wm(w):  # OIHW -> (kh*kw*ic, oc), matching im2col (kh, kw, c) patch order
        return jnp.transpose(w, (2, 3, 1, 0)).reshape(-1, w.shape[0])

    # Row permutation so NHWC-flattened conv features hit the same weight rows
    # as PyTorch's NCHW flatten -> no activation transpose on the hot path.
    C3, S = 64, 7
    p = jnp.arange(C3 * S * S)
    c, w_, h = p % C3, (p // C3) % S, p // (C3 * S)
    perm = c * (S * S) + h * S + w_

    w1 = jnp.concatenate([params["wv1"][perm], params["wa1"][perm]], axis=1)  # (3136, 1024)
    b1 = jnp.concatenate([params["bv1"], params["ba1"]]).reshape(1, -1)       # (1, 1024)

    # Second layer, one (hidden, A) slab per branch:
    #   branch 0: V broadcast to every action column
    #   branch 1: advantage with the per-row mean folded in  (A - mean(A, dim=1))
    w2_v = jnp.tile(eff["wv2"], (1, A))
    b2_v = jnp.tile(eff["bv2"].reshape(1, 1), (1, A))
    w2_a = eff["wa2"] - eff["wa2"].mean(axis=1, keepdims=True)
    b2_a = (eff["ba2"] - eff["ba2"].mean()).reshape(1, A)

    return {
        "wm1": conv_wm(params["cw1"]), "cb1": params["cb1"].reshape(1, -1),
        "wm2": conv_wm(params["cw2"]), "cb2": params["cb2"].reshape(1, -1),
        "wm3": conv_wm(params["cw3"]), "cb3": params["cb3"].reshape(1, -1),
        "w1": w1.astype(jnp.bfloat16),     # dominant HBM payload -> bf16 (f32 accumulate)
        "b1": b1,
        "w2s": jnp.stack([w2_v, w2_a]),    # (2, hidden, A) f32
        "b2s": jnp.stack([b2_v, b2_a]),    # (2, 1, A) f32
    }


# ----------------------------------------------------------------------------
# Forward passes
# ----------------------------------------------------------------------------
def dueling_dqn_forward_pallas(state_nchw, prep):
    x = jnp.transpose(state_nchw, (0, 2, 3, 1)).astype(jnp.float32)      # NCHW -> NHWC once
    x = conv2d_relu(x, prep["wm1"], prep["cb1"], kh=8, kw=8, stride=4, pad=1)
    x = conv2d_relu(x, prep["wm2"], prep["cb2"], kh=4, kw=4, stride=2, pad=0)
    x = conv2d_relu(x, prep["wm3"], prep["cb3"], kh=3, kw=3, stride=1, pad=0)
    features = x.reshape(x.shape[0], -1)          # NHWC flatten (weights pre-permuted)
    return dueling_heads_pallas(features, prep["w1"], prep["b1"], prep["w2s"], prep["b2s"])


def dueling_dqn_forward_ref(state_nchw, params, eff):
    """Pure-JAX, PyTorch-faithful reference (f32 weights, lax.conv, NCHW flatten)."""
    def conv(x, w, b, s, p):
        y = jax.lax.conv_general_dilated(
            x, w, (s, s), [(p, p), (p, p)],
            dimension_numbers=("NCHW", "OIHW", "NCHW"))
        return jnp.maximum(y + b.reshape(1, -1, 1, 1), 0.0)

    x = state_nchw.astype(jnp.float32)
    x = conv(x, params["cw1"], params["cb1"], 4, 1)
    x = conv(x, params["cw2"], params["cb2"], 2, 0)
    x = conv(x, params["cw3"], params["cb3"], 1, 0)
    f = x.reshape(x.shape[0], -1)                     # PyTorch NCHW flatten
    hv = jnp.maximum(f @ params["wv1"] + params["bv1"], 0.0)
    v = hv @ eff["wv2"] + eff["bv2"]
    ha = jnp.maximum(f @ params["wa1"] + params["ba1"], 0.0)
    a = ha @ eff["wa2"] + eff["ba2"]
    return v + (a - a.mean(axis=1, keepdims=True))


if __name__ == "__main__":
    key = jax.random.PRNGKey(0)
    pkey, nkey, xkey = jax.random.split(key, 3)

    params = init_params(pkey, input_dim=4, output_dim=4, hidden_dim=512)
    eff = sample_noisy_weights(params, nkey)       # NoisyLinear epsilon for this forward
    prep = prepare_pallas_params(params, eff)

    # Spatial size must be 84 so the conv stack yields the hard-coded 64*7*7 features.
    state = jax.random.normal(xkey, (2, 4, 84, 84), dtype=jnp.float32)

    qvals = jax.block_until_ready(jax.jit(dueling_dqn_forward_pallas)(state, prep))
    ref = jax.block_until_ready(jax.jit(dueling_dqn_forward_ref)(state, params, eff))

    assert qvals.shape == (2, 4), qvals.shape
    # Tolerance covers the bf16 quantization of the fused first-layer head weights.
    assert jnp.allclose(qvals, ref, rtol=1e-2, atol=2e-3), (
        qvals, ref, jnp.max(jnp.abs(qvals - ref)))
    print("KERNEL_OK")
</pallas_src>

<mosaic_0001>
module attributes {stable_mosaic.version = 11 : i64} {
  func.func @_gemm_bias_relu_kernel(%arg0: memref<800x256xf32, #tpu.memory_space<vmem>>, %arg1: memref<256x32xf32, #tpu.memory_space<vmem>>, %arg2: memref<1x32xf32, #tpu.memory_space<vmem>>, %arg3: memref<800x32xf32, #tpu.memory_space<vmem>>) attributes {dimension_semantics = [], scalar_prefetch = 0 : i64, scratch_operands = 0 : i64, tpu.core_type = #tpu.core_type<tc>} {
    %c0 = arith.constant 0 : index
    %c0_0 = arith.constant 0 : index
    %0 = vector.load %arg0[%c0, %c0_0] : memref<800x256xf32, #tpu.memory_space<vmem>>, vector<800x256xf32>
    %c0_1 = arith.constant 0 : index
    %c0_2 = arith.constant 0 : index
    %1 = vector.load %arg1[%c0_1, %c0_2] : memref<256x32xf32, #tpu.memory_space<vmem>>, vector<256x32xf32>
    %cst = arith.constant dense<0.000000e+00> : vector<800x32xf32>
    %2 = tpu.matmul %0, %1, %cst {dimension_numbers = #tpu.dot_dimension_numbers<[1], [0], [0], [1], [0, 0, 1, 1], [], []>} : vector<800x256xf32>, vector<256x32xf32>, vector<800x32xf32> -> vector<800x32xf32>
    %c0_3 = arith.constant 0 : index
    %c0_4 = arith.constant 0 : index
    %3 = vector.load %arg2[%c0_3, %c0_4] : memref<1x32xf32, #tpu.memory_space<vmem>>, vector<1x32xf32>
    %4 = vector.broadcast %3 : vector<1x32xf32> to vector<800x32xf32>
    %5 = arith.addf %2, %4 : vector<800x32xf32>
    %cst_5 = arith.constant 0.000000e+00 : f32
    %6 = vector.broadcast %cst_5 : f32 to vector<800x32xf32>
    %7 = arith.maximumf %5, %6 : vector<800x32xf32>
    %c0_6 = arith.constant 0 : index
    %c0_7 = arith.constant 0 : index
    %8 = vector.load %arg3[%c0_6, %c0_7] : memref<800x32xf32, #tpu.memory_space<vmem>>, vector<800x32xf32>
    tpu.vector_store %arg3[%c0_6, %c0_7], %7 {strides = array<i32>} : memref<800x32xf32, #tpu.memory_space<vmem>>, vector<800x32xf32>,
    return
  }
}

module attributes {stable_mosaic.version = 11 : i64} {
  func.func @_gemm_bias_relu_kernel(%arg0: memref<162x512xf32, #tpu.memory_space<vmem>>, %arg1: memref<512x64xf32, #tpu.memory_space<vmem>>, %arg2: memref<1x64xf32, #tpu.memory_space<vmem>>, %arg3: memref<162x64xf32, #tpu.memory_space<vmem>>) attributes {dimension_semantics = [], scalar_prefetch = 0 : i64, scratch_operands = 0 : i64, tpu.core_type = #tpu.core_type<tc>} {
    %c0 = arith.constant 0 : index
    %c0_0 = arith.constant 0 : index
    %0 = vector.load %arg0[%c0, %c0_0] : memref<162x512xf32, #tpu.memory_space<vmem>>, vector<162x512xf32>
    %c0_1 = arith.constant 0 : index
    %c0_2 = arith.constant 0 : index
    %1 = vector.load %arg1[%c0_1, %c0_2] : memref<512x64xf32, #tpu.memory_space<vmem>>, vector<512x64xf32>
    %cst = arith.constant dense<0.000000e+00> : vector<162x64xf32>
    %2 = tpu.matmul %0, %1, %cst {dimension_numbers = #tpu.dot_dimension_numbers<[1], [0], [0], [1], [0, 0, 1, 1], [], []>} : vector<162x512xf32>, vector<512x64xf32>, vector<162x64xf32> -> vector<162x64xf32>
    %c0_3 = arith.constant 0 : index
    %c0_4 = arith.constant 0 : index
    %3 = vector.load %arg2[%c0_3, %c0_4] : memref<1x64xf32, #tpu.memory_space<vmem>>, vector<1x64xf32>
    %4 = vector.broadcast %3 : vector<1x64xf32> to vector<162x64xf32>
    %5 = arith.addf %2, %4 : vector<162x64xf32>
    %cst_5 = arith.constant 0.000000e+00 : f32
    %6 = vector.broadcast %cst_5 : f32 to vector<162x64xf32>
    %7 = arith.maximumf %5, %6 : vector<162x64xf32>
    %c0_6 = arith.constant 0 : index
    %c0_7 = arith.constant 0 : index
    %8 = vector.load %arg3[%c0_6, %c0_7] : memref<162x64xf32, #tpu.memory_space<vmem>>, vector<162x64xf32>
    tpu.vector_store %arg3[%c0_6, %c0_7], %7 {strides = array<i32>} : memref<162x64xf32, #tpu.memory_space<vmem>>, vector<162x64xf32>,
    return
  }
}

module attributes {stable_mosaic.version = 11 : i64} {
  func.func @_gemm_bias_relu_kernel(%arg0: memref<98x576xf32, #tpu.memory_space<vmem>>, %arg1: memref<576x64xf32, #tpu.memory_space<vmem>>, %arg2: memref<1x64xf32, #tpu.memory_space<vmem>>, %arg3: memref<98x64xf32, #tpu.memory_space<vmem>>) attributes {dimension_semantics = [], scalar_prefetch = 0 : i64, scratch_operands = 0 : i64, tpu.core_type = #tpu.core_type<tc>} {
    %c0 = arith.constant 0 : index
    %c0_0 = arith.constant 0 : index
    %0 = vector.load %arg0[%c0, %c0_0] : memref<98x576xf32, #tpu.memory_space<vmem>>, vector<98x576xf32>
    %c0_1 = arith.constant 0 : index
    %c0_2 = arith.constant 0 : index
    %1 = vector.load %arg1[%c0_1, %c0_2] : memref<576x64xf32, #tpu.memory_space<vmem>>, vector<576x64xf32>
    %cst = arith.constant dense<0.000000e+00> : vector<98x64xf32>
    %2 = tpu.matmul %0, %1, %cst {dimension_numbers = #tpu.dot_dimension_numbers<[1], [0], [0], [1], [0, 0, 1, 1], [], []>} : vector<98x576xf32>, vector<576x64xf32>, vector<98x64xf32> -> vector<98x64xf32>
    %c0_3 = arith.constant 0 : index
    %c0_4 = arith.constant 0 : index
    %3 = vector.load %arg2[%c0_3, %c0_4] : memref<1x64xf32, #tpu.memory_space<vmem>>, vector<1x64xf32>
    %4 = vector.broadcast %3 : vector<1x64xf32> to vector<98x64xf32>
    %5 = arith.addf %2, %4 : vector<98x64xf32>
    %cst_5 = arith.constant 0.000000e+00 : f32
    %6 = vector.broadcast %cst_5 : f32 to vector<98x64xf32>
    %7 = arith.maximumf %5, %6 : vector<98x64xf32>
    %c0_6 = arith.constant 0 : index
    %c0_7 = arith.constant 0 : index
    %8 = vector.load %arg3[%c0_6, %c0_7] : memref<98x64xf32, #tpu.memory_space<vmem>>, vector<98x64xf32>
    tpu.vector_store %arg3[%c0_6, %c0_7], %7 {strides = array<i32>} : memref<98x64xf32, #tpu.memory_space<vmem>>, vector<98x64xf32>,
    return
  }
}

module attributes {stable_mosaic.version = 11 : i64} {
  func.func @_fused_head_kernel(%arg0: i32, %arg1: memref<2x3136xf32, #tpu.memory_space<vmem>>, %arg2: memref<3136x512xbf16, #tpu.memory_space<vmem>>, %arg3: memref<1x512xf32, #tpu.memory_space<vmem>>, %arg4: memref<1x512x4xf32, #tpu.memory_space<vmem>>, %arg5: memref<1x1x4xf32, #tpu.memory_space<vmem>>, %arg6: memref<1x2x4xf32, #tpu.memory_space<vmem>>) attributes {dimension_semantics = [#tpu.dimension_semantics<parallel>], iteration_bounds = array<i64: 2>, scalar_prefetch = 0 : i64, scratch_operands = 0 : i64, tpu.core_type = #tpu.core_type<tc>, window_params = [{pipeline_mode = #tpu.pipeline_mode<synchronous>, transform_indices = @transform_0, window_bounds = array<i64: 2, 3136>}, {transform_indices = @transform_1, window_bounds = array<i64: 3136, 512>}, {transform_indices = @transform_2, window_bounds = array<i64: 1, 512>}, {transform_indices = @transform_3, window_bounds = array<i64: 1, 512, 4>}, {transform_indices = @transform_4, window_bounds = array<i64: 1, 1, 4>}, {transform_indices = @transform_5, window_bounds = array<i64: 1, 2, 4>}]} {
    %c0 = arith.constant 0 : index
    %c0_0 = arith.constant 0 : index
    %0 = vector.load %arg1[%c0, %c0_0] : memref<2x3136xf32, #tpu.memory_space<vmem>>, vector<2x3136xf32>
    %1 = arith.truncf %0 : vector<2x3136xf32> to vector<2x3136xbf16>
    %c0_1 = arith.constant 0 : index
    %c0_2 = arith.constant 0 : index
    %2 = vector.load %arg2[%c0_1, %c0_2] : memref<3136x512xbf16, #tpu.memory_space<vmem>>, vector<3136x512xbf16>
    %cst = arith.constant dense<0.000000e+00> : vector<2x512xf32>
    %3 = tpu.matmul %1, %2, %cst {dimension_numbers = #tpu.dot_dimension_numbers<[1], [0], [0], [1], [0, 0, 1, 1], [], []>} : vector<2x3136xbf16>, vector<3136x512xbf16>, vector<2x512xf32> -> vector<2x512xf32>
    %c0_3 = arith.constant 0 : index
    %c0_4 = arith.constant 0 : index
    %4 = vector.load %arg3[%c0_3, %c0_4] : memref<1x512xf32, #tpu.memory_space<vmem>>, vector<1x512xf32>
    %5 = vector.broadcast %4 : vector<1x512xf32> to vector<2x512xf32>
    %6 = arith.addf %3, %5 : vector<2x512xf32>
    %cst_5 = arith.constant 0.000000e+00 : f32
    %7 = vector.broadcast %cst_5 : f32 to vector<2x512xf32>
    %8 = arith.maximumf %6, %7 : vector<2x512xf32>
    %c0_6 = arith.constant 0 : index
    %c0_7 = arith.constant 0 : index
    %c0_8 = arith.constant 0 : index
    %9 = vector.load %arg4[%c0_6, %c0_7, %c0_8] : memref<1x512x4xf32, #tpu.memory_space<vmem>>, vector<1x512x4xf32>
    %10 = vector.shape_cast %9 : vector<1x512x4xf32> to vector<512x4xf32>
    %cst_9 = arith.constant dense<0.000000e+00> : vector<2x4xf32>
    %11 = tpu.matmul %8, %10, %cst_9 {dimension_numbers = #tpu.dot_dimension_numbers<[1], [0], [0], [1], [0, 0, 1, 1], [], []>} : vector<2x512xf32>, vector<512x4xf32>, vector<2x4xf32> -> vector<2x4xf32>
    %c0_10 = arith.constant 0 : index
    %c0_11 = arith.constant 0 : index
    %c0_12 = arith.constant 0 : index
    %12 = vector.load %arg5[%c0_10, %c0_11, %c0_12] : memref<1x1x4xf32, #tpu.memory_space<vmem>>, vector<1x1x4xf32>
    %13 = vector.shape_cast %12 : vector<1x1x4xf32> to vector<1x4xf32>
    %14 = vector.broadcast %13 : vector<1x4xf32> to vector<2x4xf32>
    %15 = arith.addf %11, %14 : vector<2x4xf32>
    %c0_13 = arith.constant 0 : index
    %c0_14 = arith.constant 0 : index
    %c0_15 = arith.constant 0 : index
    %16 = vector.load %arg6[%c0_13, %c0_14, %c0_15] : memref<1x2x4xf32, #tpu.memory_space<vmem>>, vector<1x2x4xf32>
    %17 = vector.shape_cast %16 : vector<1x2x4xf32> to vector<2x4xf32>
    %18 = vector.shape_cast %15 : vector<2x4xf32> to vector<1x2x4xf32>
    tpu.vector_store %arg6[%c0_13, %c0_14, %c0_15], %18 {strides = array<i32>} : memref<1x2x4xf32, #tpu.memory_space<vmem>>, vector<1x2x4xf32>,
    return
  }
  func.func @transform_0(%arg0: i32) -> (i32, i32) {
    %c0_i32 = arith.constant 0 : i32
    %c0_i32_0 = arith.constant 0 : i32
    %c0_i32_1 = arith.constant 0 : i32
    return %c0_i32, %c0_i32_0 : i32, i32
  }
  func.func @transform_1(%arg0: i32) -> (i32, i32) {
    %c0_i32 = arith.constant 0 : i32
    %c0_i32_0 = arith.constant 0 : i32
    return %c0_i32, %arg0 : i32, i32
  }
  func.func @transform_2(%arg0: i32) -> (i32, i32) {
    %c0_i32 = arith.constant 0 : i32
    %c0_i32_0 = arith.constant 0 : i32
    return %c0_i32, %arg0 : i32, i32
  }
  func.func @transform_3(%arg0: i32) -> (i32, i32, i32) {
    %c0_i32 = arith.constant 0 : i32
    %c0_i32_0 = arith.constant 0 : i32
    %c0_i32_1 = arith.constant 0 : i32
    return %arg0, %c0_i32, %c0_i32_0 : i32, i32, i32
  }
  func.func @transform_4(%arg0: i32) -> (i32, i32, i32) {
    %c0_i32 = arith.constant 0 : i32
    %c0_i32_0 = arith.constant 0 : i32
    %c0_i32_1 = arith.constant 0 : i32
    return %arg0, %c0_i32, %c0_i32_0 : i32, i32, i32
  }
  func.func @transform_5(%arg0: i32) -> (i32, i32, i32) {
    %c0_i32 = arith.constant 0 : i32
    %c0_i32_0 = arith.constant 0 : i32
    %c0_i32_1 = arith.constant 0 : i32
    return %arg0, %c0_i32, %c0_i32_0 : i32, i32, i32
  }
}

</mosaic_0001>

<bundles_post_ra>
// kernel: dueling_dqn_forward_pallas.4
= control target key start
LH: loop header
LB: loop body
LE: loop exit
PB: predicated region body
PF: predicated region fallthrough
CT: control target
= control target key end

     0   :  { %v1105_v0 = vmov 0.0|0.0   ;;  %vm918_vm0 = vcmask 261120   ;;  %s2359_s1 = inlined_call_operand.vmem [shape: f32[256,32], index: 1, kind: input, shape index: {}]   ;;  %s2360_s0 = inlined_call_operand.vmem [shape: f32[800,256], index: 0, kind: input, shape index: {}]   ;;  %s2361_s2 = inlined_call_operand.vmem [shape: f32[1,32], index: 2, kind: input, shape index: {}]   ;;  %s2362_s3 = inlined_call_operand.vmem [shape: f32[800,32], index: 3, kind: output, shape index: {}]  }
   0x1   :  { %1024 = vmatprep.subr.bf16.mxu0 %v1105_v0  ;;  %1072 = vmatprep.subr.bf16.mxu1 %v1105_v0  ;;  %v214_v1 = vld [vmem:[%s2359_s1] sm:$0xff]  ;;  %v215_v2 = vld [vmem:[%s2359_s1 + $0x8] sm:$0xff]  ;;  %v216_v3 = vld [vmem:[%s2359_s1 + $0x10] sm:$0xff] }
   0x2   :  { %v1025_v4 = vpack.c.bf16 %v215_v2, %v214_v1  ;;  %v217_v5 = vld [vmem:[%s2359_s1 + $0x18] sm:$0xff]  ;;  %v218_v7 = vld [vmem:[%s2359_s1 + $0x20] sm:$0xff]  ;;  %v219_v8 = vld [vmem:[%s2359_s1 + $0x28] sm:$0xff] }
   0x3   :  { %v1028_v6 = vpack.c.bf16 %v217_v5, %v216_v3  ;;  %v1031_v9 = vpack.c.bf16 %v219_v8, %v218_v7  ;;  %v220_v10 = vld [vmem:[%s2359_s1 + $0x30] sm:$0xff]  ;;  %v221_v11 = vld [vmem:[%s2359_s1 + $0x38] sm:$0xff]  ;;  %v15_v12 = vld [vmem:[%s2360_s0 + $0x8] sm:$0xff] }
   0x4   :  { %1026 = vmatpush1.bf16.msra.mxu0 %v1025_v4  ;;  %1088 = vmatpush1.bf16.msra.mxu1 %v1025_v4  ;;  %v1034_v13 = vpack.c.bf16 %v221_v11, %v220_v10  ;;  %v115_v14 = vld [vmem:[%s2360_s0 + $0x328] sm:$0xff]  ;;  %v222_v15 = vld [vmem:[%s2359_s1 + $0x40] sm:$0xff]  ;;  %v224_v18 = vld [vmem:[%s2359_s1 + $0x50] sm:$0xff] }
   0x5   :  { %1027 = vmatprep.subr.bf16.mxu0 %v1105_v0  ;;  %1073 = vmatprep.subr.bf16.mxu1 %v1105_v0  ;;  %v223_v16 = vld [vmem:[%s2359_s1 + $0x48] sm:$0xff]  ;;  %v225_v19 = vld [vmem:[%s2359_s1 + $0x58] sm:$0xff]  ;;  %v226_v21 = vld [vmem:[%s2359_s1 + $0x60] sm:$0xff] }
   0x6   :  { %317 = vmatprep.mubr.f32.mxu0 %v15_v12  ;;  %567 = vmatprep.mubr.f32.mxu1 %v115_v14  ;;  %v1037_v17 = vpack.c.bf16 %v223_v16, %v222_v15  ;;  %v1040_v20 = vpack.c.bf16 %v225_v19, %v224_v18  ;;  %v227_v22 = vld [vmem:[%s2359_s1 + $0x68] sm:$0xff]  ;;  %v228_v24 = vld [vmem:[%s2359_s1 + $0x70] sm:$0xff]  ;;  %v229_v25 = vld [vmem:[%s2359_s1 + $0x78] sm:$0xff] }
   0x7   :  { %v1043_v23 = vpack.c.bf16 %v227_v22, %v226_v21  ;;  %v1046_v26 = vpack.c.bf16 %v229_v25, %v228_v24  ;;  %v230_v27 = vld [vmem:[%s2359_s1 + $0x80] sm:$0xff]  ;;  %v231_v28 = vld [vmem:[%s2359_s1 + $0x88] sm:$0xff]  ;;  %v232_v30 = vld [vmem:[%s2359_s1 + $0x90] sm:$0xff] }
   0x8   :  { %1029 = vmatpush1.bf16.msra.mxu0 %v1028_v6  ;;  %1089 = vmatpush1.bf16.msra.mxu1 %v1028_v6  ;;  %v1049_v29 = vpack.c.bf16 %v231_v28, %v230_v27  ;;  %v233_v31 = vld [vmem:[%s2359_s1 + $0x98] sm:$0xff]  ;;  %v234_v33 = vld [vmem:[%s2359_s1 + $0xa0] sm:$0xff]  ;;  %v235_v34 = vld [vmem:[%s2359_s1 + $0xa8] sm:$0xff] }
   0x9   :  { %1030 = vmatprep.subr.bf16.mxu0 %v1105_v0  ;;  %1074 = vmatprep.subr.bf16.mxu1 %v1105_v0  ;;  %v1052_v32 = vpack.c.bf16 %v233_v31, %v232_v30  ;;  %v1055_v35 = vpack.c.bf16 %v235_v34, %v234_v33  ;;  %v236_v36 = vld [vmem:[%s2359_s1 + $0xb0] sm:$0xff]  ;;  %v237_v37 = vld [vmem:[%s2359_s1 + $0xb8] sm:$0xff]  ;;  %v238_v39 = vld [vmem:[%s2359_s1 + $0xc0] sm:$0xff] }
   0xa   :  { %v1058_v38 = vpack.c.bf16 %v237_v37, %v236_v36  ;;  %v239_v40 = vld [vmem:[%s2359_s1 + $0xc8] sm:$0xff]  ;;  %v240_v42 = vld [vmem:[%s2359_s1 + $0xd0] sm:$0xff]  ;;  %v241_v43 = vld [vmem:[%s2359_s1 + $0xd8] sm:$0xff] }
   0xb   :  { %v1061_v41 = vpack.c.bf16 %v239_v40, %v238_v39  ;;  %v1064_v44 = vpack.c.bf16 %v241_v43, %v240_v42  ;;  %v242_v45 = vld [vmem:[%s2359_s1 + $0xe0] sm:$0xff]  ;;  %v243_v46 = vld [vmem:[%s2359_s1 + $0xe8] sm:$0xff]  ;;  %v244_v48 = vld [vmem:[%s2359_s1 + $0xf0] sm:$0xff] }
   0xc   :  { %1032 = vmatpush1.bf16.msra.mxu0 %v1031_v9  ;;  %1090 = vmatpush1.bf16.msra.mxu1 %v1031_v9  ;;  %v1067_v47 = vpack.c.bf16 %v243_v46, %v242_v45  ;;  %v245_v49 = vld [vmem:[%s2359_s1 + $0xf8] sm:$0xff]  ;;  %v14_v51 = vld [vmem:[%s2360_s0] sm:$0xff]  ;;  %v16_v55 = vld [vmem:[%s2360_s0 + $0x10] sm:$0xff] }
   0xd   :  { %1033 = vmatprep.subr.bf16.mxu0 %v1105_v0  ;;  %1075 = vmatprep.subr.bf16.mxu1 %v1105_v0  ;;  %v1070_v50 = vpack.c.bf16 %v245_v49, %v244_v48  ;;  %v114_v52 = vld [vmem:[%s2360_s0 + $0x320] sm:$0xff]  ;;  %v17_v53 = vld [vmem:[%s2360_s0 + $0x18] sm:$0xff]  ;;  %v116_v56 = vld [vmem:[%s2360_s0 + $0x330] sm:$0xff] }
   0xe   :  { %v117_v54 = vld [vmem:[%s2360_s0 + $0x338] sm:$0xff]  ;;  %v19_v57 = vld [vmem:[%s2360_s0 + $0x28] sm:$0xff]  ;;  %v18_v59 = vld [vmem:[%s2360_s0 + $0x20] sm:$0xff] }
   0xf   :  { %v119_v58 = vld [vmem:[%s2360_s0 + $0x348] sm:$0xff]  ;;  %v118_v60 = vld [vmem:[%s2360_s0 + $0x340] sm:$0xff]  ;;  %v21_v61 = vld [vmem:[%s2360_s0 + $0x38] sm:$0xff] }
  0x10   :  { %1035 = vmatpush1.bf16.msra.mxu0 %v1034_v13  ;;  %1091 = vmatpush1.bf16.msra.mxu1 %v1034_v13  ;;  %v121_v62 = vld [vmem:[%s2360_s0 + $0x358] sm:$0xff]  ;;  %v20_v63 = vld [vmem:[%s2360_s0 + $0x30] sm:$0xff]  ;;  %v23_v1 = vld [vmem:[%s2360_s0 + $0x48] sm:$0xff] }
  0x11   :  { %1036 = vmatprep.subr.bf16.mxu0 %v1105_v0  ;;  %1076 = vmatprep.subr.bf16.mxu1 %v1105_v0  ;;  %v123_v2 = vld [vmem:[%s2360_s0 + $0x368] sm:$0xff]  ;;  %v22_v3 = vld [vmem:[%s2360_s0 + $0x40] sm:$0xff]  ;;  %v25_v5 = vld [vmem:[%s2360_s0 + $0x58] sm:$0xff] }
  0x12   :  { %v122_v4 = vld [vmem:[%s2360_s0 + $0x360] sm:$0xff]  ;;  %v125_v6 = vld [vmem:[%s2360_s0 + $0x378] sm:$0xff]  ;;  %v24_v7 = vld [vmem:[%s2360_s0 + $0x50] sm:$0xff] }
  0x13   :  { %v124_v8 = vld [vmem:[%s2360_s0 + $0x370] sm:$0xff]  ;;  %v27_v9 = vld [vmem:[%s2360_s0 + $0x68] sm:$0xff]  ;;  %v26_v11 = vld [vmem:[%s2360_s0 + $0x60] sm:$0xff] }
  0x14   :  { %1038 = vmatpush1.bf16.msra.mxu0 %v1037_v17  ;;  %1092 = vmatpush1.bf16.msra.mxu1 %v1037_v17  ;;  %v127_v10 = vld [vmem:[%s2360_s0 + $0x388] sm:$0xff]  ;;  %v126_v12 = vld [vmem:[%s2360_s0 + $0x380] sm:$0xff]  ;;  %v29_v13 = vld [vmem:[%s2360_s0 + $0x78] sm:$0xff] }
  0x15   :  { %1039 = vmatprep.subr.bf16.mxu0 %v1105_v0  ;;  %1077 = vmatprep.subr.bf16.mxu1 %v1105_v0  ;;  %v129_v14 = vld [vmem:[%s2360_s0 + $0x398] sm:$0xff]  ;;  %v28_v15 = vld [vmem:[%s2360_s0 + $0x70] sm:$0xff]  ;;  %v31_v17 = vld [vmem:[%s2360_s0 + $0x88] sm:$0xff] }
  0x16   :  { %v128_v16 = vld [vmem:[%s2360_s0 + $0x390] sm:$0xff]  ;;  %v131_v18 = vld [vmem:[%s2360_s0 + $0x3a8] sm:$0xff]  ;;  %v30_v19 = vld [vmem:[%s2360_s0 + $0x80] sm:$0xff] }
  0x17   :  { %v33_v21 = vld [vmem:[%s2360_s0 + $0x98] sm:$0xff]  ;;  %v132_v24 = vld [vmem:[%s2360_s0 + $0x3b0] sm:$0xff]  ;;  %v35_v25 = vld [vmem:[%s2360_s0 + $0xa8] sm:$0xff] }
  0x18   :  { %1041 = vmatpush1.bf16.msra.mxu0 %v1040_v20  ;;  %1093 = vmatpush1.bf16.msra.mxu1 %v1040_v20  ;;  %v130_v20 = vld [vmem:[%s2360_s0 + $0x3a0] sm:$0xff]  ;;  %v133_v22 = vld [vmem:[%s2360_s0 + $0x3b8] sm:$0xff]  ;;  %v36_v31 = vld [vmem:[%s2360_s0 + $0xb0] sm:$0xff] }
  0x19   :  { %1042 = vmatprep.subr.bf16.mxu0 %v1105_v0  ;;  %1078 = vmatprep.subr.bf16.mxu1 %v1105_v0  ;;  %v34_v27 = vld [vmem:[%s2360_s0 + $0xa0] sm:$0xff]  ;;  %v137_v30 = vld [vmem:[%s2360_s0 + $0x3d8] sm:$0xff]  ;;  %v39_v33 = vld [vmem:[%s2360_s0 + $0xc8] sm:$0xff] }
  0x1a   :  { %v134_v28 = vld [vmem:[%s2360_s0 + $0x3c0] sm:$0xff]  ;;  %v139_v34 = vld [vmem:[%s2360_s0 + $0x3e8] sm:$0xff]  ;;  %v41_v37 = vld [vmem:[%s2360_s0 + $0xd8] sm:$0xff] }
  0x1b   :  { %v138_v36 = vld [vmem:[%s2360_s0 + $0x3e0] sm:$0xff]  ;;  %v40_v39 = vld [vmem:[%s2360_s0 + $0xd0] sm:$0xff]  ;;  %v143_v42 = vld [vmem:[%s2360_s0 + $0x408] sm:$0xff] }
  0x1c   :  { %1044 = vmatpush1.bf16.msra.mxu0 %v1043_v23  ;;  %1094 = vmatpush1.bf16.msra.mxu1 %v1043_v23  ;;  %v32_v23 = vld [vmem:[%s2360_s0 + $0x90] sm:$0xff]  ;;  %v42_v43 = vld [vmem:[%s2360_s0 + $0xe0] sm:$0xff]  ;;  %v45_v45 = vld [vmem:[%s2360_s0 + $0xf8] sm:$0xff] }
  0x1d   :  { %1045 = vmatprep.subr.bf16.mxu0 %v1105_v0  ;;  %1079 = vmatprep.subr.bf16.mxu1 %v1105_v0  ;;  %v140_v40 = vld [vmem:[%s2360_s0 + $0x3f0] sm:$0xff]  ;;  %v145_v46 = vld [vmem:[%s2360_s0 + $0x418] sm:$0xff]  ;;  %v47_v49 = vld [vmem:[%s2360_s0 + $0x108] sm:$0xff] }
  0x1e   :  { %v144_v48 = vld [vmem:[%s2360_s0 + $0x410] sm:$0xff] }
  0x20   :  { %1047 = vmatpush1.bf16.msra.mxu0 %v1046_v26  ;;  %1095 = vmatpush1.bf16.msra.mxu1 %v1046_v26  ;;  %v135_v26 = vld [vmem:[%s2360_s0 + $0x3c8] sm:$0xff] }
  0x21   :  { %1048 = vmatprep.subr.bf16.mxu0 %v1105_v0  ;;  %1080 = vmatprep.subr.bf16.mxu1 %v1105_v0 }
  0x24   :  { %1050 = vmatpush1.bf16.msra.mxu0 %v1049_v29  ;;  %1096 = vmatpush1.bf16.msra.mxu1 %v1049_v29  ;;  %v37_v29 = vld [vmem:[%s2360_s0 + $0xb8] sm:$0xff] }
  0x25   :  { %1051 = vmatprep.subr.bf16.mxu0 %v1105_v0  ;;  %1081 = vmatprep.subr.bf16.mxu1 %v1105_v0 }
  0x28   :  { %1053 = vmatpush1.bf16.msra.mxu0 %v1052_v32  ;;  %1097 = vmatpush1.bf16.msra.mxu1 %v1052_v32  ;;  %v136_v32 = vld [vmem:[%s2360_s0 + $0x3d0] sm:$0xff] }
  0x29   :  { %1054 = vmatprep.subr.bf16.mxu0 %v1105_v0  ;;  %1082 = vmatprep.subr.bf16.mxu1 %v1105_v0 }
  0x2c   :  { %1056 = vmatpush1.bf16.msra.mxu0 %v1055_v35  ;;  %1098 = vmatpush1.bf16.msra.mxu1 %v1055_v35  ;;  %v38_v35 = vld [vmem:[%s2360_s0 + $0xc0] sm:$0xff] }
  0x2d   :  { %1057 = vmatprep.subr.bf16.mxu0 %v1105_v0  ;;  %1083 = vmatprep.subr.bf16.mxu1 %v1105_v0 }
  0x30   :  { %1059 = vmatpush1.bf16.msra.mxu0 %v1058_v38  ;;  %1099 = vmatpush1.bf16.msra.mxu1 %v1058_v38  ;;  %v141_v38 = vld [vmem:[%s2360_s0 + $0x3f8] sm:$0xff] }
  0x31   :  { %1060 = vmatprep.subr.bf16.mxu0 %v1105_v0  ;;  %1084 = vmatprep.subr.bf16.mxu1 %v1105_v0 }
  0x34   :  { %1062 = vmatpush1.bf16.msra.mxu0 %v1061_v41  ;;  %1100 = vmatpush1.bf16.msra.mxu1 %v1061_v41  ;;  %v43_v41 = vld [vmem:[%s2360_s0 + $0xe8] sm:$0xff] }
  0x35   :  { %1063 = vmatprep.subr.bf16.mxu0 %v1105_v0  ;;  %1085 = vmatprep.subr.bf16.mxu1 %v1105_v0 }
  0x38   :  { %1065 = vmatpush1.bf16.msra.mxu0 %v1064_v44  ;;  %1101 = vmatpush1.bf16.msra.mxu1 %v1064_v44  ;;  %v142_v44 = vld [vmem:[%s2360_s0 + $0x400] sm:$0xff] }
  0x39   :  { %1066 = vmatprep.subr.bf16.mxu0 %v1105_v0  ;;  %1086 = vmatprep.subr.bf16.mxu1 %v1105_v0 }
  0x3c   :  { %1068 = vmatpush1.bf16.msra.mxu0 %v1067_v47  ;;  %1102 = vmatpush1.bf16.msra.mxu1 %v1067_v47  ;;  %v44_v47 = vld [vmem:[%s2360_s0 + $0xf0] sm:$0xff] }
  0x3d   :  { %1069 = vmatprep.subr.bf16.mxu0 %v1105_v0  ;;  %1087 = vmatprep.subr.bf16.mxu1 %v1105_v0  ;;  %v120_v0 = vld [vmem:[%s2360_s0 + $0x350] sm:$0xff] }
  0x40   :  { %1071 = vmatpush1.bf16.msra.mxu0 %v1070_v50  ;;  %1103 = vmatpush1.bf16.msra.mxu1 %v1070_v50  ;;  %v147_v50 = vld [vmem:[%s2360_s0 + $0x428] sm:$0xff] }
  0x43   :  { %318 = vmatmul.mubr.f32.vlgmr.msra.gmra.mrb[0].mxu0 %v14_v51  ;;  %568 = vmatmul.mubr.f32.vlgmr.msra.gmra.mrb[0].mxu1 %v114_v52  ;;  %v46_v51 = vld [vmem:[%s2360_s0 + $0x100] sm:$0xff] }
  0x44   :  { %322 = vmatprep.mubr.f32.mxu0 %v17_v53  ;;  %572 = vmatprep.mubr.f32.mxu1 %v117_v54  ;;  %v146_v52 = vld [vmem:[%s2360_s0 + $0x420] sm:$0xff]  ;;  %v49_v53 = vld [vmem:[%s2360_s0 + $0x118] sm:$0xff] }
  0x45   :  { %v149_v54 = vld [vmem:[%s2360_s0 + $0x438] sm:$0xff] }
  0x47   :  { %323 = vmatmul.mubr.f32.gmra.mrb[2].mxu0 %v16_v55  ;;  %573 = vmatmul.mubr.f32.gmra.mrb[2].mxu1 %v116_v56  ;;  %v48_v55 = vld [vmem:[%s2360_s0 + $0x110] sm:$0xff] }
  0x48   :  { %327 = vmatprep.mubr.f32.mxu0 %v19_v57  ;;  %577 = vmatprep.mubr.f32.mxu1 %v119_v58  ;;  %v148_v56 = vld [vmem:[%s2360_s0 + $0x430] sm:$0xff]  ;;  %v51_v57 = vld [vmem:[%s2360_s0 + $0x128] sm:$0xff] }
  0x49   :  { %v151_v58 = vld [vmem:[%s2360_s0 + $0x448] sm:$0xff] }
  0x4b   :  { %328 = vmatmul.mubr.f32.gmra.mrb[4].mxu0 %v18_v59  ;;  %578 = vmatmul.mubr.f32.gmra.mrb[4].mxu1 %v118_v60  ;;  %v50_v59 = vld [vmem:[%s2360_s0 + $0x120] sm:$0xff] }
  0x4c   :  { %332 = vmatprep.mubr.f32.mxu0 %v21_v61  ;;  %582 = vmatprep.mubr.f32.mxu1 %v121_v62  ;;  %v150_v60 = vld [vmem:[%s2360_s0 + $0x440] sm:$0xff]  ;;  %v53_v61 = vld [vmem:[%s2360_s0 + $0x138] sm:$0xff] }
  0x4d   :  { %v153_v62 = vld [vmem:[%s2360_s0 + $0x458] sm:$0xff] }
  0x4f   :  { %333 = vmatmul.mubr.f32.gmra.mrb[6].mxu0 %v20_v63  ;;  %583 = vmatmul.mubr.f32.gmra.mrb[6].mxu1 %v120_v0  ;;  %v52_v63 = vld [vmem:[%s2360_s0 + $0x130] sm:$0xff] }
  0x50   :  { %337 = vmatprep.mubr.f32.mxu0 %v23_v1  ;;  %587 = vmatprep.mubr.f32.mxu1 %v123_v2  ;;  %v152_v0 = vld [vmem:[%s2360_s0 + $0x450] sm:$0xff]  ;;  %v55_v1 = vld [vmem:[%s2360_s0 + $0x148] sm:$0xff] }
  0x51   :  { %v155_v2 = vld [vmem:[%s2360_s0 + $0x468] sm:$0xff] }
  0x53   :  { %338 = vmatmul.mubr.f32.gmra.mrb[8].mxu0 %v22_v3  ;;  %588 = vmatmul.mubr.f32.gmra.mrb[8].mxu1 %v122_v4  ;;  %v54_v3 = vld [vmem:[%s2360_s0 + $0x140] sm:$0xff] }
  0x54   :  { %342 = vmatprep.mubr.f32.mxu0 %v25_v5  ;;  %592 = vmatprep.mubr.f32.mxu1 %v125_v6  ;;  %v154_v4 = vld [vmem:[%s2360_s0 + $0x460] sm:$0xff]  ;;  %v57_v5 = vld [vmem:[%s2360_s0 + $0x158] sm:$0xff] }
  0x55   :  { %v157_v6 = vld [vmem:[%s2360_s0 + $0x478] sm:$0xff] }
  0x57   :  { %343 = vmatmul.mubr.f32.gmra.mrb[10].mxu0 %v24_v7  ;;  %593 = vmatmul.mubr.f32.gmra.mrb[10].mxu1 %v124_v8  ;;  %v56_v7 = vld [vmem:[%s2360_s0 + $0x150] sm:$0xff] }
  0x58   :  { %347 = vmatprep.mubr.f32.mxu0 %v27_v9  ;;  %597 = vmatprep.mubr.f32.mxu1 %v127_v10  ;;  %v156_v8 = vld [vmem:[%s2360_s0 + $0x470] sm:$0xff]  ;;  %v59_v9 = vld [vmem:[%s2360_s0 + $0x168] sm:$0xff] }
  0x59   :  { %v159_v10 = vld [vmem:[%s2360_s0 + $0x488] sm:$0xff] }
  0x5b   :  { %348 = vmatmul.mubr.f32.gmra.mrb[12].mxu0 %v26_v11  ;;  %598 = vmatmul.mubr.f32.gmra.mrb[12].mxu1 %v126_v12  ;;  %v58_v11 = vld [vmem:[%s2360_s0 + $0x160] sm:$0xff] }
  0x5c   :  { %352 = vmatprep.mubr.f32.mxu0 %v29_v13  ;;  %602 = vmatprep.mubr.f32.mxu1 %v129_v14  ;;  %v158_v12 = vld [vmem:[%s2360_s0 + $0x480] sm:$0xff]  ;;  %v61_v13 = vld [vmem:[%s2360_s0 + $0x178] sm:$0xff] }
  0x5d   :  { %v161_v14 = vld [vmem:[%s2360_s0 + $0x498] sm:$0xff] }
  0x5f   :  { %353 = vmatmul.mubr.f32.gmra.mrb[14].mxu0 %v28_v15  ;;  %603 = vmatmul.mubr.f32.gmra.mrb[14].mxu1 %v128_v16  ;;  %v60_v15 = vld [vmem:[%s2360_s0 + $0x170] sm:$0xff] }
  0x60   :  { %357 = vmatprep.mubr.f32.mxu0 %v31_v17  ;;  %607 = vmatprep.mubr.f32.mxu1 %v131_v18  ;;  %v160_v16 = vld [vmem:[%s2360_s0 + $0x490] sm:$0xff]  ;;  %v63_v17 = vld [vmem:[%s2360_s0 + $0x188] sm:$0xff] }
  0x61   :  { %v163_v18 = vld [vmem:[%s2360_s0 + $0x4a8] sm:$0xff] }
  0x63   :  { %358 = vmatmul.mubr.f32.gmra.mrb[16].mxu0 %v30_v19  ;;  %608 = vmatmul.mubr.f32.gmra.mrb[16].mxu1 %v130_v20  ;;  %v62_v19 = vld [vmem:[%s2360_s0 + $0x180] sm:$0xff] }
  0x64   :  { %362 = vmatprep.mubr.f32.mxu0 %v33_v21  ;;  %612 = vmatprep.mubr.f32.mxu1 %v133_v22  ;;  %v162_v20 = vld [vmem:[%s2360_s0 + $0x4a0] sm:$0xff]  ;;  %v65_v21 = vld [vmem:[%s2360_s0 + $0x198] sm:$0xff] }
  0x65   :  { %v165_v22 = vld [vmem:[%s2360_s0 + $0x4b8] sm:$0xff] }
  0x67   :  { %363 = vmatmul.mubr.f32.gmra.mrb[18].mxu0 %v32_v23  ;;  %613 = vmatmul.mubr.f32.gmra.mrb[18].mxu1 %v132_v24  ;;  %v64_v23 = vld [vmem:[%s2360_s0 + $0x190] sm:$0xff] }
  0x68   :  { %367 = vmatprep.mubr.f32.mxu0 %v35_v25  ;;  %617 = vmatprep.mubr.f32.mxu1 %v135_v26  ;;  %v164_v24 = vld [vmem:[%s2360_s0 + $0x4b0] sm:$0xff]  ;;  %v67_v25 = vld [vmem:[%s2360_s0 + $0x1a8] sm:$0xff] }
  0x69   :  { %v167_v26 = vld [vmem:[%s2360_s0 + $0x4c8] sm:$0xff] }
  0x6b   :  { %368 = vmatmul.mubr.f32.gmra.mrb[20].mxu0 %v34_v27  ;;  %618 = vmatmul.mubr.f32.gmra.mrb[20].mxu1 %v134_v28  ;;  %v66_v27 = vld [vmem:[%s2360_s0 + $0x1a0] sm:$0xff] }
  0x6c   :  { %372 = vmatprep.mubr.f32.mxu0 %v37_v29  ;;  %622 = vmatprep.mubr.f32.mxu1 %v137_v30  ;;  %v166_v28 = vld [vmem:[%s2360_s0 + $0x4c0] sm:$0xff]  ;;  %v69_v29 = vld [vmem:[%s2360_s0 + $0x1b8] sm:$0xff] }
  0x6d   :  { %v169_v30 = vld [vmem:[%s2360_s0 + $0x4d8] sm:$0xff] }
  0x6f   :  { %373 = vmatmul.mubr.f32.gmra.mrb[22].mxu0 %v36_v31  ;;  %623 = vmatmul.mubr.f32.gmra.mrb[22].mxu1 %v136_v32  ;;  %v68_v31 = vld [vmem:[%s2360_s0 + $0x1b0] sm:$0xff] }
  0x70   :  { %377 = vmatprep.mubr.f32.mxu0 %v39_v33  ;;  %627 = vmatprep.mubr.f32.mxu1 %v139_v34  ;;  %v168_v32 = vld [vmem:[%s2360_s0 + $0x4d0] sm:$0xff]  ;;  %v71_v33 = vld [vmem:[%s2360_s0 + $0x1c8] sm:$0xff] }
  0x71   :  { %v171_v34 = vld [vmem:[%s2360_s0 + $0x4e8] sm:$0xff] }
  0x73   :  { %378 = vmatmul.mubr.f32.gmra.mrb[24].mxu0 %v38_v35  ;;  %628 = vmatmul.mubr.f32.gmra.mrb[24].mxu1 %v138_v36  ;;  %v70_v35 = vld [vmem:[%s2360_s0 + $0x1c0] sm:$0xff] }
  0x74   :  { %382 = vmatprep.mubr.f32.mxu0 %v41_v37  ;;  %632 = vmatprep.mubr.f32.mxu1 %v141_v38  ;;  %v170_v36 = vld [vmem:[%s2360_s0 + $0x4e0] sm:$0xff]  ;;  %v73_v37 = vld [vmem:[%s2360_s0 + $0x1d8] sm:$0xff] }
  0x75   :  { %v173_v38 = vld [vmem:[%s2360_s0 + $0x4f8] sm:$0xff] }
  0x77   :  { %383 = vmatmul.mubr.f32.gmra.mrb[26].mxu0 %v40_v39  ;;  %633 = vmatmul.mubr.f32.gmra.mrb[26].mxu1 %v140_v40  ;;  %v72_v39 = vld [vmem:[%s2360_s0 + $0x1d0] sm:$0xff] }
  0x78   :  { %387 = vmatprep.mubr.f32.mxu0 %v43_v41  ;;  %637 = vmatprep.mubr.f32.mxu1 %v143_v42  ;;  %v172_v40 = vld [vmem:[%s2360_s0 + $0x4f0] sm:$0xff]  ;;  %v75_v41 = vld [vmem:[%s2360_s0 + $0x1e8] sm:$0xff] }
  0x79   :  { %v175_v42 = vld [vmem:[%s2360_s0 + $0x508] sm:$0xff] }
  0x7b   :  { %388 = vmatmul.mubr.f32.gmra.mrb[28].mxu0 %v42_v43  ;;  %638 = vmatmul.mubr.f32.gmra.mrb[28].mxu1 %v142_v44  ;;  %v74_v43 = vld [vmem:[%s2360_s0 + $0x1e0] sm:$0xff] }
  0x7c   :  { %392 = vmatprep.mubr.f32.mxu0 %v45_v45  ;;  %642 = vmatprep.mubr.f32.mxu1 %v145_v46  ;;  %v174_v44 = vld [vmem:[%s2360_s0 + $0x500] sm:$0xff]  ;;  %v77_v45 = vld [vmem:[%s2360_s0 + $0x1f8] sm:$0xff] }
  0x7d   :  { %v177_v46 = vld [vmem:[%s2360_s0 + $0x518] sm:$0xff] }
  0x7f   :  { %393 = vmatmul.mubr.f32.gmra.mrb[30].mxu0 %v44_v47  ;;  %643 = vmatmul.mubr.f32.gmra.mrb[30].mxu1 %v144_v48  ;;  %v76_v47 = vld [vmem:[%s2360_s0 + $0x1f0] sm:$0xff] }
  0x80   :  { %397 = vmatprep.mubr.f32.mxu0 %v47_v49  ;;  %647 = vmatprep.mubr.f32.mxu1 %v147_v50  ;;  %v176_v48 = vld [vmem:[%s2360_s0 + $0x510] sm:$0xff]  ;;  %v79_v49 = vld [vmem:[%s2360_s0 + $0x208] sm:$0xff] }
  0x81   :  { %v179_v50 = vld [vmem:[%s2360_s0 + $0x528] sm:$0xff] }
  0x83   :  { %398 = vmatmul.mubr.f32.gmra.mrb[32].mxu0 %v46_v51  ;;  %648 = vmatmul.mubr.f32.gmra.mrb[32].mxu1 %v146_v52  ;;  %v78_v51 = vld [vmem:[%s2360_s0 + $0x200] sm:$0xff] }
  0x84   :  { %402 = vmatprep.mubr.f32.mxu0 %v49_v53  ;;  %652 = vmatprep.mubr.f32.mxu1 %v149_v54  ;;  %v178_v52 = vld [vmem:[%s2360_s0 + $0x520] sm:$0xff]  ;;  %v81_v53 = vld [vmem:[%s2360_s0 + $0x218] sm:$0xff] }
  0x85   :  { %v181_v54 = vld [vmem:[%s2360_s0 + $0x538] sm:$0xff] }
  0x87   :  { %403 = vmatmul.mubr.f32.gmra.mrb[34].mxu0 %v48_v55  ;;  %653 = vmatmul.mubr.f32.gmra.mrb[34].mxu1 %v148_v56  ;;  %v80_v55 = vld [vmem:[%s2360_s0 + $0x210] sm:$0xff] }
  0x88   :  { %407 = vmatprep.mubr.f32.mxu0 %v51_v57  ;;  %657 = vmatprep.mubr.f32.mxu1 %v151_v58  ;;  %v180_v56 = vld [vmem:[%s2360_s0 + $0x530] sm:$0xff]  ;;  %v83_v57 = vld [vmem:[%s2360_s0 + $0x228] sm:$0xff] }
  0x89   :  { %v183_v58 = vld [vmem:[%s2360_s0 + $0x548] sm:$0xff] }
  0x8b   :  { %408 = vmatmul.mubr.f32.gmra.mrb[36].mxu0 %v50_v59  ;;  %658 = vmatmul.mubr.f32.gmra.mrb[36].mxu1 %v150_v60  ;;  %v82_v59 = vld [vmem:[%s2360_s0 + $0x220] sm:$0xff] }
  0x8c   :  { %412 = vmatprep.mubr.f32.mxu0 %v53_v61  ;;  %662 = vmatprep.mubr.f32.mxu1 %v153_v62  ;;  %v182_v60 = vld [vmem:[%s2360_s0 + $0x540] sm:$0xff]  ;;  %v85_v61 = vld [vmem:[%s2360_s0 + $0x238] sm:$0xff] }
  0x8d   :  { %v185_v62 = vld [vmem:[%s2360_s0 + $0x558] sm:$0xff] }
  0x8f   :  { %413 = vmatmul.mubr.f32.gmra.mrb[38].mxu0 %v52_v63  ;;  %663 = vmatmul.mubr.f32.gmra.mrb[38].mxu1 %v152_v0  ;;  %v84_v63 = vld [vmem:[%s2360_s0 + $0x230] sm:$0xff] }
  0x90   :  { %417 = vmatprep.mubr.f32.mxu0 %v55_v1  ;;  %667 = vmatprep.mubr.f32.mxu1 %v155_v2  ;;  %v184_v0 = vld [vmem:[%s2360_s0 + $0x550] sm:$0xff]  ;;  %v87_v1 = vld [vmem:[%s2360_s0 + $0x248] sm:$0xff] }
  0x91   :  { %v187_v2 = vld [vmem:[%s2360_s0 + $0x568] sm:$0xff] }
  0x93   :  { %418 = vmatmul.mubr.f32.gmra.mrb[40].mxu0 %v54_v3  ;;  %668 = vmatmul.mubr.f32.gmra.mrb[40].mxu1 %v154_v4  ;;  %v86_v3 = vld [vmem:[%s2360_s0 + $0x240] sm:$0xff] }
  0x94   :  { %422 = vmatprep.mubr.f32.mxu0 %v57_v5  ;;  %672 = vmatprep.mubr.f32.mxu1 %v157_v6  ;;  %v186_v4 = vld [vmem:[%s2360_s0 + $0x560] sm:$0xff]  ;;  %v89_v5 = vld [vmem:[%s2360_s0 + $0x258] sm:$0xff] }
  0x95   :  { %v189_v6 = vld [vmem:[%s2360_s0 + $0x578] sm:$0xff] }
  0x97   :  { %423 = vmatmul.mubr.f32.gmra.mrb[42].mxu0 %v56_v7  ;;  %673 = vmatmul.mubr.f32.gmra.mrb[42].mxu1 %v156_v8  ;;  %v88_v7 = vld [vmem:[%s2360_s0 + $0x250] sm:$0xff] }
  0x98   :  { %427 = vmatprep.mubr.f32.mxu0 %v59_v9  ;;  %677 = vmatprep.mubr.f32.mxu1 %v159_v10  ;;  %v188_v8 = vld [vmem:[%s2360_s0 + $0x570] sm:$0xff]  ;;  %v91_v9 = vld [vmem:[%s2360_s0 + $0x268] sm:$0xff] }
  0x99   :  { %v191_v10 = vld [vmem:[%s2360_s0 + $0x588] sm:$0xff] }
  0x9b   :  { %428 = vmatmul.mubr.f32.gmra.mrb[44].mxu0 %v58_v11  ;;  %678 = vmatmul.mubr.f32.gmra.mrb[44].mxu1 %v158_v12  ;;  %v90_v11 = vld [vmem:[%s2360_s0 + $0x260] sm:$0xff] }
  0x9c   :  { %432 = vmatprep.mubr.f32.mxu0 %v61_v13  ;;  %682 = vmatprep.mubr.f32.mxu1 %v161_v14  ;;  %v190_v12 = vld [vmem:[%s2360_s0 + $0x580] sm:$0xff]  ;;  %v93_v13 = vld [vmem:[%s2360_s0 + $0x278] sm:$0xff] }
  0x9d   :  { %v193_v14 = vld [vmem:[%s2360_s0 + $0x598] sm:$0xff] }
  0x9f   :  { %433 = vmatmul.mubr.f32.gmra.mrb[46].mxu0 %v60_v15  ;;  %683 = vmatmul.mubr.f32.gmra.mrb[46].mxu1 %v160_v16  ;;  %v92_v15 = vld [vmem:[%s2360_s0 + $0x270] sm:$0xff] }
  0xa0   :  { %437 = vmatprep.mubr.f32.mxu0 %v63_v17  ;;  %687 = vmatprep.mubr.f32.mxu1 %v163_v18  ;;  %v192_v16 = vld [vmem:[%s2360_s0 + $0x590] sm:$0xff]  ;;  %v95_v17 = vld [vmem:[%s2360_s0 + $0x288] sm:$0xff] }
  0xa1   :  { %v195_v18 = vld [vmem:[%s2360_s0 + $0x5a8] sm:$0xff] }
  0xa3   :  { %438 = vmatmul.mubr.f32.gmra.mrb[48].mxu0 %v62_v19  ;;  %688 = vmatmul.mubr.f32.gmra.mrb[48].mxu1 %v162_v20  ;;  %v94_v19 = vld [vmem:[%s2360_s0 + $0x280] sm:$0xff] }
  0xa4   :  { %442 = vmatprep.mubr.f32.mxu0 %v65_v21  ;;  %692 = vmatprep.mubr.f32.mxu1 %v165_v22  ;;  %v194_v20 = vld [vmem:[%s2360_s0 + $0x5a0] sm:$0xff]  ;;  %v97_v21 = vld [vmem:[%s2360_s0 + $0x298] sm:$0xff] }
  0xa5   :  { %v197_v22 = vld [vmem:[%s2360_s0 + $0x5b8] sm:$0xff] }
  0xa7   :  { %443 = vmatmul.mubr.f32.gmra.mrb[50].mxu0 %v64_v23  ;;  %693 = vmatmul.mubr.f32.gmra.mrb[50].mxu1 %v164_v24  ;;  %v96_v23 = vld [vmem:[%s2360_s0 + $0x290] sm:$0xff] }
  0xa8   :  { %447 = vmatprep.mubr.f32.mxu0 %v67_v25  ;;  %697 = vmatprep.mubr.f32.mxu1 %v167_v26  ;;  %v196_v24 = vld [vmem:[%s2360_s0 + $0x5b0] sm:$0xff]  ;;  %v99_v25 = vld [vmem:[%s2360_s0 + $0x2a8] sm:$0xff] }
  0xa9   :  { %v199_v26 = vld [vmem:[%s2360_s0 + $0x5c8] sm:$0xff] }
  0xab   :  { %448 = vmatmul.mubr.f32.gmra.mrb[52].mxu0 %v66_v27  ;;  %698 = vmatmul.mubr.f32.gmra.mrb[52].mxu1 %v166_v28  ;;  %v98_v27 = vld [vmem:[%s2360_s0 + $0x2a0] sm:$0xff] }
  0xac   :  { %452 = vmatprep.mubr.f32.mxu0 %v69_v29  ;;  %702 = vmatprep.mubr.f32.mxu1 %v169_v30  ;;  %v198_v28 = vld [vmem:[%s2360_s0 + $0x5c0] sm:$0xff]  ;;  %v101_v29 = vld [vmem:[%s2360_s0 + $0x2b8] sm:$0xff] }
  0xad   :  { %v201_v30 = vld [vmem:[%s2360_s0 + $0x5d8] sm:$0xff] }
  0xaf   :  { %453 = vmatmul.mubr.f32.gmra.mrb[54].mxu0 %v68_v31  ;;  %703 = vmatmul.mubr.f32.gmra.mrb[54].mxu1 %v168_v32  ;;  %v100_v31 = vld [vmem:[%s2360_s0 + $0x2b0] sm:$0xff] }
  0xb0   :  { %457 = vmatprep.mubr.f32.mxu0 %v71_v33  ;;  %707 = vmatprep.mubr.f32.mxu1 %v171_v34  ;;  %v200_v32 = vld [vmem:[%s2360_s0 + $0x5d0] sm:$0xff]  ;;  %v103_v33 = vld [vmem:[%s2360_s0 + $0x2c8] sm:$0xff] }
  0xb1   :  { %v203_v34 = vld [vmem:[%s2360_s0 + $0x5e8] sm:$0xff] }
  0xb3   :  { %458 = vmatmul.mubr.f32.gmra.mrb[56].mxu0 %v70_v35  ;;  %708 = vmatmul.mubr.f32.gmra.mrb[56].mxu1 %v170_v36  ;;  %v102_v35 = vld [vmem:[%s2360_s0 + $0x2c0] sm:$0xff] }
  0xb4   :  { %462 = vmatprep.mubr.f32.mxu0 %v73_v37  ;;  %712 = vmatprep.mubr.f32.mxu1 %v173_v38  ;;  %v202_v36 = vld [vmem:[%s2360_s0 + $0x5e0] sm:$0xff]  ;;  %v105_v37 = vld [vmem:[%s2360_s0 + $0x2d8] sm:$0xff] }
  0xb5   :  { %v205_v38 = vld [vmem:[%s2360_s0 + $0x5f8] sm:$0xff] }
  0xb7   :  { %463 = vmatmul.mubr.f32.gmra.mrb[58].mxu0 %v72_v39  ;;  %713 = vmatmul.mubr.f32.gmra.mrb[58].mxu1 %v172_v40  ;;  %v104_v39 = vld [vmem:[%s2360_s0 + $0x2d0] sm:$0xff] }
  0xb8   :  { %467 = vmatprep.mubr.f32.mxu0 %v75_v41  ;;  %717 = vmatprep.mubr.f32.mxu1 %v175_v42  ;;  %v204_v40 = vld [vmem:[%s2360_s0 + $0x5f0] sm:$0xff]  ;;  %v107_v41 = vld [vmem:[%s2360_s0 + $0x2e8] sm:$0xff] }
  0xb9   :  { %v207_v42 = vld [vmem:[%s2360_s0 + $0x608] sm:$0xff] }
  0xbb   :  { %468 = vmatmul.mubr.f32.gmra.mrb[60].mxu0 %v74_v43  ;;  %718 = vmatmul.mubr.f32.gmra.mrb[60].mxu1 %v174_v44  ;;  %v106_v43 = vld [vmem:[%s2360_s0 + $0x2e0] sm:$0xff] }
  0xbc   :  { %472 = vmatprep.mubr.f32.mxu0 %v77_v45  ;;  %722 = vmatprep.mubr.f32.mxu1 %v177_v46  ;;  %v206_v44 = vld [vmem:[%s2360_s0 + $0x600] sm:$0xff]  ;;  %v109_v45 = vld [vmem:[%s2360_s0 + $0x2f8] sm:$0xff] }
  0xbd   :  { %v209_v46 = vld [vmem:[%s2360_s0 + $0x618] sm:$0xff] }
  0xbf   :  { %473 = vmatmul.mubr.f32.gmra.mrb[62].mxu0 %v76_v47  ;;  %723 = vmatmul.mubr.f32.gmra.mrb[62].mxu1 %v176_v48  ;;  %v108_v47 = vld [vmem:[%s2360_s0 + $0x2f0] sm:$0xff] }
  0xc0   :  { %477 = vmatprep.mubr.f32.mxu0 %v79_v49  ;;  %727 = vmatprep.mubr.f32.mxu1 %v179_v50  ;;  %v208_v48 = vld [vmem:[%s2360_s0 + $0x610] sm:$0xff]  ;;  %v111_v49 = vld [vmem:[%s2360_s0 + $0x308] sm:$0xff] }
  0xc1   :  { %v211_v50 = vld [vmem:[%s2360_s0 + $0x628] sm:$0xff] }
  0xc3   :  { %478 = vmatmul.mubr.f32.gmra.mrb[64].mxu0 %v78_v51  ;;  %728 = vmatmul.mubr.f32.gmra.mrb[64].mxu1 %v178_v52  ;;  %v110_v51 = vld [vmem:[%s2360_s0 + $0x300] sm:$0xff] }
  0xc4   :  { %482 = vmatprep.mubr.f32.mxu0 %v81_v53  ;;  %732 = vmatprep.mubr.f32.mxu1 %v181_v54  ;;  %v210_v52 = vld [vmem:[%s2360_s0 + $0x620] sm:$0xff]  ;;  %v113_v53 = vld [vmem:[%s2360_s0 + $0x318] sm:$0xff] }
  0xc5   :  { %v213_v54 = vld [vmem:[%s2360_s0 + $0x638] sm:$0xff] }
  0xc7   :  { %483 = vmatmul.mubr.f32.gmra.mrb[66].mxu0 %v80_v55  ;;  %733 = vmatmul.mubr.f32.gmra.mrb[66].mxu1 %v180_v56  ;;  %v112_v55 = vld [vmem:[%s2360_s0 + $0x310] sm:$0xff] }
  0xc8   :  { %487 = vmatprep.mubr.f32.mxu0 %v83_v57  ;;  %737 = vmatprep.mubr.f32.mxu1 %v183_v58  ;;  %v212_v56 = vld [vmem:[%s2360_s0 + $0x630] sm:$0xff]  ;;  %v1857_v57 = vld [vmem:[%s2361_s2] ss:$0 sm:$0xff] }
  0xcb   :  { %488 = vmatmul.mubr.f32.gmra.mrb[68].mxu0 %v82_v59  ;;  %738 = vmatmul.mubr.f32.gmra.mrb[68].mxu1 %v182_v60 }
  0xcc   :  { %492 = vmatprep.mubr.f32.mxu0 %v85_v61  ;;  %742 = vmatprep.mubr.f32.mxu1 %v185_v62 }
  0xcf   :  { %493 = vmatmul.mubr.f32.gmra.mrb[70].mxu0 %v84_v63  ;;  %743 = vmatmul.mubr.f32.gmra.mrb[70].mxu1 %v184_v0 }
  0xd0   :  { %497 = vmatprep.mubr.f32.mxu0 %v87_v1  ;;  %747 = vmatprep.mubr.f32.mxu1 %v187_v2 }
  0xd3   :  { %498 = vmatmul.mubr.f32.gmra.mrb[72].mxu0 %v86_v3  ;;  %748 = vmatmul.mubr.f32.gmra.mrb[72].mxu1 %v186_v4 }
  0xd4   :  { %502 = vmatprep.mubr.f32.mxu0 %v89_v5  ;;  %752 = vmatprep.mubr.f32.mxu1 %v189_v6 }
  0xd7   :  { %503 = vmatmul.mubr.f32.gmra.mrb[74].mxu0 %v88_v7  ;;  %753 = vmatmul.mubr.f32.gmra.mrb[74].mxu1 %v188_v8 }
  0xd8   :  { %507 = vmatprep.mubr.f32.mxu0 %v91_v9  ;;  %757 = vmatprep.mubr.f32.mxu1 %v191_v10 }
  0xdb   :  { %508 = vmatmul.mubr.f32.gmra.mrb[76].mxu0 %v90_v11  ;;  %758 = vmatmul.mubr.f32.gmra.mrb[76].mxu1 %v190_v12 }
  0xdc   :  { %512 = vmatprep.mubr.f32.mxu0 %v93_v13  ;;  %762 = vmatprep.mubr.f32.mxu1 %v193_v14 }
  0xdf   :  { %513 = vmatmul.mubr.f32.gmra.mrb[78].mxu0 %v92_v15  ;;  %763 = vmatmul.mubr.f32.gmra.mrb[78].mxu1 %v192_v16 }
  0xe0   :  { %517 = vmatprep.mubr.f32.mxu0 %v95_v17  ;;  %767 = vmatprep.mubr.f32.mxu1 %v195_v18 }
  0xe3   :  { %518 = vmatmul.mubr.f32.gmra.mrb[80].mxu0 %v94_v19  ;;  %768 = vmatmul.mubr.f32.gmra.mrb[80].mxu1 %v194_v20 }
  0xe4   :  { %522 = vmatprep.mubr.f32.mxu0 %v97_v21  ;;  %772 = vmatprep.mubr.f32.mxu1 %v197_v22 }
  0xe7   :  { %523 = vmatmul.mubr.f32.gmra.mrb[82].mxu0 %v96_v23  ;;  %773 = vmatmul.mubr.f32.gmra.mrb[82].mxu1 %v196_v24 }
  0xe8   :  { %527 = vmatprep.mubr.f32.mxu0 %v99_v25  ;;  %777 = vmatprep.mubr.f32.mxu1 %v199_v26 }
  0xeb   :  { %528 = vmatmul.mubr.f32.gmra.mrb[84].mxu0 %v98_v27  ;;  %778 = vmatmul.mubr.f32.gmra.mrb[84].mxu1 %v198_v28 }
  0xec   :  { %532 = vmatprep.mubr.f32.mxu0 %v101_v29  ;;  %782 = vmatprep.mubr.f32.mxu1 %v201_v30 }
  0xef   :  { %533 = vmatmul.mubr.f32.gmra.mrb[86].mxu0 %v100_v31  ;;  %783 = vmatmul.mubr.f32.gmra.mrb[86].mxu1 %v200_v32 }
  0xf0   :  { %537 = vmatprep.mubr.f32.mxu0 %v103_v33  ;;  %787 = vmatprep.mubr.f32.mxu1 %v203_v34 }
  0xf3   :  { %538 = vmatmul.mubr.f32.gmra.mrb[88].mxu0 %v102_v35  ;;  %788 = vmatmul.mubr.f32.gmra.mrb[88].mxu1 %v202_v36 }
  0xf4   :  { %542 = vmatprep.mubr.f32.mxu0 %v105_v37  ;;  %792 = vmatprep.mubr.f32.mxu1 %v205_v38 }
  0xf7   :  { %543 = vmatmul.mubr.f32.gmra.mrb[90].mxu0 %v104_v39  ;;  %793 = vmatmul.mubr.f32.gmra.mrb[90].mxu1 %v204_v40 }
  0xf8   :  { %547 = vmatprep.mubr.f32.mxu0 %v107_v41  ;;  %797 = vmatprep.mubr.f32.mxu1 %v207_v42 }
  0xfb   :  { %548 = vmatmul.mubr.f32.gmra.mrb[92].mxu0 %v106_v43  ;;  %798 = vmatmul.mubr.f32.gmra.mrb[92].mxu1 %v206_v44 }
  0xfc   :  { %552 = vmatprep.mubr.f32.mxu0 %v109_v45  ;;  %802 = vmatprep.mubr.f32.mxu1 %v209_v46 }
  0xff   :  { %553 = vmatmul.mubr.f32.gmra.mrb[94].mxu0 %v108_v47  ;;  %803 = vmatmul.mubr.f32.gmra.mrb[94].mxu1 %v208_v48 }
 0x100   :  { %557 = vmatprep.mubr.f32.mxu0 %v111_v49  ;;  %807 = vmatprep.mubr.f32.mxu1 %v211_v50 }
 0x103   :  { %558 = vmatmul.mubr.f32.gmra.mrb[96].mxu0 %v110_v51  ;;  %808 = vmatmul.mubr.f32.gmra.mrb[96].mxu1 %v210_v52 }
 0x104   :  { %562 = vmatprep.mubr.f32.mxu0 %v113_v53  ;;  %812 = vmatprep.mubr.f32.mxu1 %v213_v54 }
 0x107   :  { %563 = vmatmul.mubr.f32.gmra.mrb[98].mxu0 %v112_v55  ;;  %813 = vmatmul.mubr.f32.gmra.mrb[98].mxu1 %v212_v56 }
 0x116   :  { %v319_v58 = vpop.f32.mrb[0].mxu0  ;;  %v569_v59 = vpop.f32.mrb[0].mxu1 }
 0x117   :  { %v320_v60 = vadd.f32 %v1857_v57, %v319_v58  ;;  %v570_v61 = vadd.f32 %v1857_v57, %v569_v59  ;;  %v321_v62 = vpop.f32.mrb[1].mxu0  ;;  %v571_v63 = vpop.f32.mrb[1].mxu1 }
 0x119   :  { %v818_v0 = vmax.f32 %v320_v60, 0.0  ;;  %v868_v1 = vmax.f32 %v570_v61, 0.0 }
 0x11a   :  { %v324_v2 = vpop.f32.mrb[2].mxu0  ;;  %v574_v3 = vpop.f32.mrb[2].mxu1 }
 0x11b   :  { %919 = vst.msk [vmem:[%s2362_s3] sm:$0xff] %vm918_vm0, %v818_v0  ;;  %969 = vst.msk [vmem:[%s2362_s3 + $0x190] sm:$0xff] %vm918_vm0, %v868_v1  ;;  %v325_v4 = vadd.f32 %v1857_v57, %v324_v2  ;;  %v575_v5 = vadd.f32 %v1857_v57, %v574_v3  ;;  %v326_v6 = vpop.f32.mrb[3].mxu0  ;;  %v576_v7 = vpop.f32.mrb[3].mxu1 }
 0x11d   :  { %v819_v8 = vmax.f32 %v325_v4, 0.0  ;;  %v869_v9 = vmax.f32 %v575_v5, 0.0 }
 0x11e   :  { %v329_v10 = vpop.f32.mrb[4].mxu0  ;;  %v579_v11 = vpop.f32.mrb[4].mxu1 }
 0x11f   :  { %920 = vst.msk [vmem:[%s2362_s3 + $0x8] sm:$0xff] %vm918_vm0, %v819_v8  ;;  %970 = vst.msk [vmem:[%s2362_s3 + $0x198] sm:$0xff] %vm918_vm0, %v869_v9  ;;  %v330_v12 = vadd.f32 %v1857_v57, %v329_v10  ;;  %v580_v13 = vadd.f32 %v1857_v57, %v579_v11  ;;  %v331_v14 = vpop.f32.mrb[5].mxu0  ;;  %v581_v15 = vpop.f32.mrb[5].mxu1 }
 0x121   :  { %v820_v16 = vmax.f32 %v330_v12, 0.0  ;;  %v870_v17 = vmax.f32 %v580_v13, 0.0 }
 0x122   :  { %v334_v18 = vpop.f32.mrb[6].mxu0  ;;  %v584_v19 = vpop.f32.mrb[6].mxu1 }
 0x123   :  { %921 = vst.msk [vmem:[%s2362_s3 + $0x10] sm:$0xff] %vm918_vm0, %v820_v16  ;;  %971 = vst.msk [vmem:[%s2362_s3 + $0x1a0] sm:$0xff] %vm918_vm0, %v870_v17  ;;  %v335_v20 = vadd.f32 %v1857_v57, %v334_v18  ;;  %v585_v21 = vadd.f32 %v1857_v57, %v584_v19  ;;  %v336_v22 = vpop.f32.mrb[7].mxu0  ;;  %v586_v23 = vpop.f32.mrb[7].mxu1 }
 0x125   :  { %v821_v24 = vmax.f32 %v335_v20, 0.0  ;;  %v871_v25 = vmax.f32 %v585_v21, 0.0 }
 0x126   :  { %v339_v26 = vpop.f32.mrb[8].mxu0  ;;  %v589_v27 = vpop.f32.mrb[8].mxu1 }
 0x127   :  { %922 = vst.msk [vmem:[%s2362_s3 + $0x18] sm:$0xff] %vm918_vm0, %v821_v24  ;;  %972 = vst.msk [vmem:[%s2362_s3 + $0x1a8] sm:$0xff] %vm918_vm0, %v871_v25  ;;  %v340_v28 = vadd.f32 %v1857_v57, %v339_v26  ;;  %v590_v29 = vadd.f32 %v1857_v57, %v589_v27  ;;  %v341_v30 = vpop.f32.mrb[9].mxu0  ;;  %v591_v31 = vpop.f32.mrb[9].mxu1 }
 0x129   :  { %v822_v32 = vmax.f32 %v340_v28, 0.0  ;;  %v872_v33 = vmax.f32 %v590_v29, 0.0 }
 0x12a   :  { %v344_v34 = vpop.f32.mrb[10].mxu0  ;;  %v594_v35 = vpop.f32.mrb[10].mxu1 }
 0x12b   :  { %923 = vst.msk [vmem:[%s2362_s3 + $0x20] sm:$0xff] %vm918_vm0, %v822_v32  ;;  %973 = vst.msk [vmem:[%s2362_s3 + $0x1b0] sm:$0xff] %vm918_vm0, %v872_v33  ;;  %v345_v36 = vadd.f32 %v1857_v57, %v344_v34  ;;  %v595_v37 = vadd.f32 %v1857_v57, %v594_v35  ;;  %v346_v38 = vpop.f32.mrb[11].mxu0  ;;  %v596_v39 = vpop.f32.mrb[11].mxu1 }
 0x12d   :  { %v823_v40 = vmax.f32 %v345_v36, 0.0  ;;  %v873_v41 = vmax.f32 %v595_v37, 0.0 }
 0x12e   :  { %v349_v42 = vpop.f32.mrb[12].mxu0  ;;  %v599_v43 = vpop.f32.mrb[12].mxu1 }
 0x12f   :  { %924 = vst.msk [vmem:[%s2362_s3 + $0x28] sm:$0xff] %vm918_vm0, %v823_v40  ;;  %974 = vst.msk [vmem:[%s2362_s3 + $0x1b8] sm:$0xff] %vm918_vm0, %v873_v41  ;;  %v350_v44 = vadd.f32 %v1857_v57, %v349_v42  ;;  %v600_v45 = vadd.f32 %v1857_v57, %v599_v43  ;;  %v351_v46 = vpop.f32.mrb[13].mxu0  ;;  %v601_v47 = vpop.f32.mrb[13].mxu1 }
 0x131   :  { %v824_v48 = vmax.f32 %v350_v44, 0.0  ;;  %v874_v49 = vmax.f32 %v600_v45, 0.0 }
 0x132   :  { %v354_v50 = vpop.f32.mrb[14].mxu0  ;;  %v604_v51 = vpop.f32.mrb[14].mxu1 }
 0x133   :  { %925 = vst.msk [vmem:[%s2362_s3 + $0x30] sm:$0xff] %vm918_vm0, %v824_v48  ;;  %975 = vst.msk [vmem:[%s2362_s3 + $0x1c0] sm:$0xff] %vm918_vm0, %v874_v49  ;;  %v355_v52 = vadd.f32 %v1857_v57, %v354_v50  ;;  %v605_v53 = vadd.f32 %v1857_v57, %v604_v51  ;;  %v356_v54 = vpop.f32.mrb[15].mxu0  ;;  %v606_v55 = vpop.f32.mrb[15].mxu1 }
 0x135   :  { %v825_v56 = vmax.f32 %v355_v52, 0.0  ;;  %v875_v58 = vmax.f32 %v605_v53, 0.0 }
 0x136   :  { %v359_v59 = vpop.f32.mrb[16].mxu0  ;;  %v609_v60 = vpop.f32.mrb[16].mxu1 }
 0x137   :  { %926 = vst.msk [vmem:[%s2362_s3 + $0x38] sm:$0xff] %vm918_vm0, %v825_v56  ;;  %976 = vst.msk [vmem:[%s2362_s3 + $0x1c8] sm:$0xff] %vm918_vm0, %v875_v58  ;;  %v360_v61 = vadd.f32 %v1857_v57, %v359_v59  ;;  %v610_v62 = vadd.f32 %v1857_v57, %v609_v60  ;;  %v361_v63 = vpop.f32.mrb[17].mxu0  ;;  %v611_v0 = vpop.f32.mrb[17].mxu1 }
 0x139   :  { %v826_v1 = vmax.f32 %v360_v61, 0.0  ;;  %v876_v2 = vmax.f32 %v610_v62, 0.0 }
 0x13a   :  { %v364_v3 = vpop.f32.mrb[18].mxu0  ;;  %v614_v4 = vpop.f32.mrb[18].mxu1 }
 0x13b   :  { %927 = vst.msk [vmem:[%s2362_s3 + $0x40] sm:$0xff] %vm918_vm0, %v826_v1  ;;  %977 = vst.msk [vmem:[%s2362_s3 + $0x1d0] sm:$0xff] %vm918_vm0, %v876_v2  ;;  %v365_v5 = vadd.f32 %v1857_v57, %v364_v3  ;;  %v615_v6 = vadd.f32 %v1857_v57, %v614_v4  ;;  %v366_v7 = vpop.f32.mrb[19].mxu0  ;;  %v616_v8 = vpop.f32.mrb[19].mxu1 }
 0x13d   :  { %v827_v9 = vmax.f32 %v365_v5, 0.0  ;;  %v877_v10 = vmax.f32 %v615_v6, 0.0 }
 0x13e   :  { %v369_v11 = vpop.f32.mrb[20].mxu0  ;;  %v619_v12 = vpop.f32.mrb[20].mxu1 }
 0x13f   :  { %928 = vst.msk [vmem:[%s2362_s3 + $0x48] sm:$0xff] %vm918_vm0, %v827_v9  ;;  %978 = vst.msk [vmem:[%s2362_s3 + $0x1d8] sm:$0xff] %vm918_vm0, %v877_v10  ;;  %v370_v13 = vadd.f32 %v1857_v57, %v369_v11  ;;  %v620_v14 = vadd.f32 %v1857_v57, %v619_v12  ;;  %v371_v15 = vpop.f32.mrb[21].mxu0  ;;  %v621_v16 = vpop.f32.mrb[21].mxu1 }
 0x141   :  { %v828_v17 = vmax.f32 %v370_v13, 0.0  ;;  %v878_v18 = vmax.f32 %v620_v14, 0.0 }
 0x142   :  { %v374_v19 = vpop.f32.mrb[22].mxu0  ;;  %v624_v20 = vpop.f32.mrb[22].mxu1 }
 0x143   :  { %929 = vst.msk [vmem:[%s2362_s3 + $0x50] sm:$0xff] %vm918_vm0, %v828_v17  ;;  %979 = vst.msk [vmem:[%s2362_s3 + $0x1e0] sm:$0xff] %vm918_vm0, %v878_v18  ;;  %v375_v21 = vadd.f32 %v1857_v57, %v374_v19  ;;  %v625_v22 = vadd.f32 %v1857_v57, %v624_v20  ;;  %v376_v23 = vpop.f32.mrb[23].mxu0  ;;  %v626_v24 = vpop.f32.mrb[23].mxu1 }
 0x145   :  { %v829_v25 = vmax.f32 %v375_v21, 0.0  ;;  %v879_v26 = vmax.f32 %v625_v22, 0.0 }
 0x146   :  { %v379_v27 = vpop.f32.mrb[24].mxu0  ;;  %v629_v28 = vpop.f32.mrb[24].mxu1 }
 0x147   :  { %930 = vst.msk [vmem:[%s2362_s3 + $0x58] sm:$0xff] %vm918_vm0, %v829_v25  ;;  %980 = vst.msk [vmem:[%s2362_s3 + $0x1e8] sm:$0xff] %vm918_vm0, %v879_v26  ;;  %v380_v29 = vadd.f32 %v1857_v57, %v379_v27  ;;  %v630_v30 = vadd.f32 %v1857_v57, %v629_v28  ;;  %v381_v31 = vpop.f32.mrb[25].mxu0  ;;  %v631_v32 = vpop.f32.mrb[25].mxu1 }
 0x149   :  { %v830_v33 = vmax.f32 %v380_v29, 0.0  ;;  %v880_v34 = vmax.f32 %v630_v30, 0.0 }
 0x14a   :  { %v384_v35 = vpop.f32.mrb[26].mxu0  ;;  %v634_v36 = vpop.f32.mrb[26].mxu1 }
 0x14b   :  { %931 = vst.msk [vmem:[%s2362_s3 + $0x60] sm:$0xff] %vm918_vm0, %v830_v33  ;;  %981 = vst.msk [vmem:[%s2362_s3 + $0x1f0] sm:$0xff] %vm918_vm0, %v880_v34  ;;  %v385_v37 = vadd.f32 %v1857_v57, %v384_v35  ;;  %v635_v38 = vadd.f32 %v1857_v57, %v634_v36  ;;  %v386_v39 = vpop.f32.mrb[27].mxu0  ;;  %v636_v40 = vpop.f32.mrb[27].mxu1 }
 0x14d   :  { %v831_v41 = vmax.f32 %v385_v37, 0.0  ;;  %v881_v42 = vmax.f32 %v635_v38, 0.0 }
 0x14e   :  { %v389_v43 = vpop.f32.mrb[28].mxu0  ;;  %v639_v44 = vpop.f32.mrb[28].mxu1 }
 0x14f   :  { %932 = vst.msk [vmem:[%s2362_s3 + $0x68] sm:$0xff] %vm918_vm0, %v831_v41  ;;  %982 = vst.msk [vmem:[%s2362_s3 + $0x1f8] sm:$0xff] %vm918_vm0, %v881_v42  ;;  %v390_v45 = vadd.f32 %v1857_v57, %v389_v43  ;;  %v640_v46 = vadd.f32 %v1857_v57, %v639_v44  ;;  %v391_v47 = vpop.f32.mrb[29].mxu0  ;;  %v641_v48 = vpop.f32.mrb[29].mxu1 }
 0x151   :  { %v832_v49 = vmax.f32 %v390_v45, 0.0  ;;  %v882_v50 = vmax.f32 %v640_v46, 0.0 }
 0x152   :  { %v394_v51 = vpop.f32.mrb[30].mxu0  ;;  %v644_v52 = vpop.f32.mrb[30].mxu1 }
 0x153   :  { %933 = vst.msk [vmem:[%s2362_s3 + $0x70] sm:$0xff] %vm918_vm0, %v832_v49  ;;  %983 = vst.msk [vmem:[%s2362_s3 + $0x200] sm:$0xff] %vm918_vm0, %v882_v50  ;;  %v395_v53 = vadd.f32 %v1857_v57, %v394_v51  ;;  %v645_v54 = vadd.f32 %v1857_v57, %v644_v52  ;;  %v396_v55 = vpop.f32.mrb[31].mxu0  ;;  %v646_v56 = vpop.f32.mrb[31].mxu1 }
 0x155   :  { %v833_v58 = vmax.f32 %v395_v53, 0.0  ;;  %v883_v59 = vmax.f32 %v645_v54, 0.0 }
 0x156   :  { %v399_v60 = vpop.f32.mrb[32].mxu0  ;;  %v649_v61 = vpop.f32.mrb[32].mxu1 }
 0x157   :  { %934 = vst.msk [vmem:[%s2362_s3 + $0x78] sm:$0xff] %vm918_vm0, %v833_v58  ;;  %984 = vst.msk [vmem:[%s2362_s3 + $0x208] sm:$0xff] %vm918_vm0, %v883_v59  ;;  %v400_v62 = vadd.f32 %v1857_v57, %v399_v60  ;;  %v650_v63 = vadd.f32 %v1857_v57, %v649_v61  ;;  %v401_v0 = vpop.f32.mrb[33].mxu0  ;;  %v651_v1 = vpop.f32.mrb[33].mxu1 }
 0x159   :  { %v834_v2 = vmax.f32 %v400_v62, 0.0  ;;  %v884_v3 = vmax.f32 %v650_v63, 0.0 }
 0x15a   :  { %v404_v4 = vpop.f32.mrb[34].mxu0  ;;  %v654_v5 = vpop.f32.mrb[34].mxu1 }
 0x15b   :  { %935 = vst.msk [vmem:[%s2362_s3 + $0x80] sm:$0xff] %vm918_vm0, %v834_v2  ;;  %985 = vst.msk [vmem:[%s2362_s3 + $0x210] sm:$0xff] %vm918_vm0, %v884_v3  ;;  %v405_v6 = vadd.f32 %v1857_v57, %v404_v4  ;;  %v655_v7 = vadd.f32 %v1857_v57, %v654_v5  ;;  %v406_v8 = vpop.f32.mrb[35].mxu0  ;;  %v656_v9 = vpop.f32.mrb[35].mxu1 }
 0x15d   :  { %v835_v10 = vmax.f32 %v405_v6, 0.0  ;;  %v885_v11 = vmax.f32 %v655_v7, 0.0 }
 0x15e   :  { %v409_v12 = vpop.f32.mrb[36].mxu0  ;;  %v659_v13 = vpop.f32.mrb[36].mxu1 }
 0x15f   :  { %936 = vst.msk [vmem:[%s2362_s3 + $0x88] sm:$0xff] %vm918_vm0, %v835_v10  ;;  %986 = vst.msk [vmem:[%s2362_s3 + $0x218] sm:$0xff] %vm918_vm0, %v885_v11  ;;  %v410_v14 = vadd.f32 %v1857_v57, %v409_v12  ;;  %v660_v15 = vadd.f32 %v1857_v57, %v659_v13  ;;  %v411_v16 = vpop.f32.mrb[37].mxu0  ;;  %v661_v17 = vpop.f32.mrb[37].mxu1 }
 0x161   :  { %v836_v18 = vmax.f32 %v410_v14, 0.0  ;;  %v886_v19 = vmax.f32 %v660_v15, 0.0 }
 0x162   :  { %v414_v20 = vpop.f32.mrb[38].mxu0  ;;  %v664_v21 = vpop.f32.mrb[38].mxu1 }
 0x163   :  { %937 = vst.msk [vmem:[%s2362_s3 + $0x90] sm:$0xff] %vm918_vm0, %v836_v18  ;;  %987 = vst.msk [vmem:[%s2362_s3 + $0x220] sm:$0xff] %vm918_vm0, %v886_v19  ;;  %v415_v22 = vadd.f32 %v1857_v57, %v414_v20  ;;  %v665_v23 = vadd.f32 %v1857_v57, %v664_v21  ;;  %v416_v24 = vpop.f32.mrb[39].mxu0  ;;  %v666_v25 = vpop.f32.mrb[39].mxu1 }
 0x165   :  { %v837_v26 = vmax.f32 %v415_v22, 0.0  ;;  %v887_v27 = vmax.f32 %v665_v23, 0.0 }
 0x166   :  { %v419_v28 = vpop.f32.mrb[40].mxu0  ;;  %v669_v29 = vpop.f32.mrb[40].mxu1 }
 0x167   :  { %938 = vst.msk [vmem:[%s2362_s3 + $0x98] sm:$0xff] %vm918_vm0, %v837_v26  ;;  %988 = vst.msk [vmem:[%s2362_s3 + $0x228] sm:$0xff] %vm918_vm0, %v887_v27  ;;  %v420_v30 = vadd.f32 %v1857_v57, %v419_v28  ;;  %v670_v31 = vadd.f32 %v1857_v57, %v669_v29  ;;  %v421_v32 = vpop.f32.mrb[41].mxu0  ;;  %v671_v33 = vpop.f32.mrb[41].mxu1 }
 0x169   :  { %v838_v34 = vmax.f32 %v420_v30, 0.0  ;;  %v888_v35 = vmax.f32 %v670_v31, 0.0 }
 0x16a   :  { %v424_v36 = vpop.f32.mrb[42].mxu0  ;;  %v674_v37 = vpop.f32.mrb[42].mxu1 }
 0x16b   :  { %939 = vst.msk [vmem:[%s2362_s3 + $0xa0] sm:$0xff] %vm918_vm0, %v838_v34  ;;  %989 = vst.msk [vmem:[%s2362_s3 + $0x230] sm:$0xff] %vm918_vm0, %v888_v35  ;;  %v425_v38 = vadd.f32 %v1857_v57, %v424_v36  ;;  %v675_v39 = vadd.f32 %v1857_v57, %v674_v37  ;;  %v426_v40 = vpop.f32.mrb[43].mxu0  ;;  %v676_v41 = vpop.f32.mrb[43].mxu1 }
 0x16d   :  { %v839_v42 = vmax.f32 %v425_v38, 0.0  ;;  %v889_v43 = vmax.f32 %v675_v39, 0.0 }
 0x16e   :  { %v429_v44 = vpop.f32.mrb[44].mxu0  ;;  %v679_v45 = vpop.f32.mrb[44].mxu1 }
 0x16f   :  { %940 = vst.msk [vmem:[%s2362_s3 + $0xa8] sm:$0xff] %vm918_vm0, %v839_v42  ;;  %990 = vst.msk [vmem:[%s2362_s3 + $0x238] sm:$0xff] %vm918_vm0, %v889_v43  ;;  %v430_v46 = vadd.f32 %v1857_v57, %v429_v44  ;;  %v680_v47 = vadd.f32 %v1857_v57, %v679_v45  ;;  %v431_v48 = vpop.f32.mrb[45].mxu0  ;;  %v681_v49 = vpop.f32.mrb[45].mxu1 }
 0x171   :  { %v840_v50 = vmax.f32 %v430_v46, 0.0  ;;  %v890_v51 = vmax.f32 %v680_v47, 0.0 }
 0x172   :  { %v434_v52 = vpop.f32.mrb[46].mxu0  ;;  %v684_v53 = vpop.f32.mrb[46].mxu1 }
 0x173   :  { %941 = vst.msk [vmem:[%s2362_s3 + $0xb0] sm:$0xff] %vm918_vm0, %v840_v50  ;;  %991 = vst.msk [vmem:[%s2362_s3 + $0x240] sm:$0xff] %vm918_vm0, %v890_v51  ;;  %v435_v54 = vadd.f32 %v1857_v57, %v434_v52  ;;  %v685_v55 = vadd.f32 %v1857_v57, %v684_v53  ;;  %v436_v56 = vpop.f32.mrb[47].mxu0  ;;  %v686_v58 = vpop.f32.mrb[47].mxu1 }
 0x175   :  { %v841_v59 = vmax.f32 %v435_v54, 0.0  ;;  %v891_v60 = vmax.f32 %v685_v55, 0.0 }
 0x176   :  { %v439_v61 = vpop.f32.mrb[48].mxu0  ;;  %v689_v62 = vpop.f32.mrb[48].mxu1 }
 0x177   :  { %942 = vst.msk [vmem:[%s2362_s3 + $0xb8] sm:$0xff] %vm918_vm0, %v841_v59  ;;  %992 = vst.msk [vmem:[%s2362_s3 + $0x248] sm:$0xff] %vm918_vm0, %v891_v60  ;;  %v440_v63 = vadd.f32 %v1857_v57, %v439_v61  ;;  %v690_v0 = vadd.f32 %v1857_v57, %v689_v62  ;;  %v441_v1 = vpop.f32.mrb[49].mxu0  ;;  %v691_v2 = vpop.f32.mrb[49].mxu1 }
 0x179   :  { %v842_v3 = vmax.f32 %v440_v63, 0.0  ;;  %v892_v4 = vmax.f32 %v690_v0, 0.0 }
 0x17a   :  { %v444_v5 = vpop.f32.mrb[50].mxu0  ;;  %v694_v6 = vpop.f32.mrb[50].mxu1 }
 0x17b   :  { %943 = vst.msk [vmem:[%s2362_s3 + $0xc0] sm:$0xff] %vm918_vm0, %v842_v3  ;;  %993 = vst.msk [vmem:[%s2362_s3 + $0x250] sm:$0xff] %vm918_vm0, %v892_v4  ;;  %v445_v7 = vadd.f32 %v1857_v57, %v444_v5  ;;  %v695_v8 = vadd.f32 %v1857_v57, %v694_v6  ;;  %v446_v9 = vpop.f32.mrb[51].mxu0  ;;  %v696_v10 = vpop.f32.mrb[51].mxu1 }
 0x17d   :  { %v843_v11 = vmax.f32 %v445_v7, 0.0  ;;  %v893_v12 = vmax.f32 %v695_v8, 0.0 }
 0x17e   :  { %v449_v13 = vpop.f32.mrb[52].mxu0  ;;  %v699_v14 = vpop.f32.mrb[52].mxu1 }
 0x17f   :  { %944 = vst.msk [vmem:[%s2362_s3 + $0xc8] sm:$0xff] %vm918_vm0, %v843_v11  ;;  %994 = vst.msk [vmem:[%s2362_s3 + $0x258] sm:$0xff] %vm918_vm0, %v893_v12  ;;  %v450_v15 = vadd.f32 %v1857_v57, %v449_v13  ;;  %v700_v16 = vadd.f32 %v1857_v57, %v699_v14  ;;  %v451_v17 = vpop.f32.mrb[53].mxu0  ;;  %v701_v18 = vpop.f32.mrb[53].mxu1 }
 0x181   :  { %v844_v19 = vmax.f32 %v450_v15, 0.0  ;;  %v894_v20 = vmax.f32 %v700_v16, 0.0 }
 0x182   :  { %v454_v21 = vpop.f32.mrb[54].mxu0  ;;  %v704_v22 = vpop.f32.mrb[54].mxu1 }
 0x183   :  { %945 = vst.msk [vmem:[%s2362_s3 + $0xd0] sm:$0xff] %vm918_vm0, %v844_v19  ;;  %995 = vst.msk [vmem:[%s2362_s3 + $0x260] sm:$0xff] %vm918_vm0, %v894_v20  ;;  %v455_v23 = vadd.f32 %v1857_v57, %v454_v21  ;;  %v705_v24 = vadd.f32 %v1857_v57, %v704_v22  ;;  %v456_v25 = vpop.f32.mrb[55].mxu0  ;;  %v706_v26 = vpop.f32.mrb[55].mxu1 }
 0x185   :  { %v845_v27 = vmax.f32 %v455_v23, 0.0  ;;  %v895_v28 = vmax.f32 %v705_v24, 0.0 }
 0x186   :  { %v459_v29 = vpop.f32.mrb[56].mxu0  ;;  %v709_v30 = vpop.f32.mrb[56].mxu1 }
 0x187   :  { %946 = vst.msk [vmem:[%s2362_s3 + $0xd8] sm:$0xff] %vm918_vm0, %v845_v27  ;;  %996 = vst.msk [vmem:[%s2362_s3 + $0x268] sm:$0xff] %vm918_vm0, %v895_v28  ;;  %v460_v31 = vadd.f32 %v1857_v57, %v459_v29  ;;  %v710_v32 = vadd.f32 %v1857_v57, %v709_v30  ;;  %v461_v33 = vpop.f32.mrb[57].mxu0  ;;  %v711_v34 = vpop.f32.mrb[57].mxu1 }
 0x189   :  { %v846_v35 = vmax.f32 %v460_v31, 0.0  ;;  %v896_v36 = vmax.f32 %v710_v32, 0.0 }
 0x18a   :  { %v464_v37 = vpop.f32.mrb[58].mxu0  ;;  %v714_v38 = vpop.f32.mrb[58].mxu1 }
 0x18b   :  { %947 = vst.msk [vmem:[%s2362_s3 + $0xe0] sm:$0xff] %vm918_vm0, %v846_v35  ;;  %997 = vst.msk [vmem:[%s2362_s3 + $0x270] sm:$0xff] %vm918_vm0, %v896_v36  ;;  %v465_v39 = vadd.f32 %v1857_v57, %v464_v37  ;;  %v715_v40 = vadd.f32 %v1857_v57, %v714_v38  ;;  %v466_v41 = vpop.f32.mrb[59].mxu0  ;;  %v716_v42 = vpop.f32.mrb[59].mxu1 }
 0x18d   :  { %v847_v43 = vmax.f32 %v465_v39, 0.0  ;;  %v897_v44 = vmax.f32 %v715_v40, 0.0 }
 0x18e   :  { %v469_v45 = vpop.f32.mrb[60].mxu0  ;;  %v719_v46 = vpop.f32.mrb[60].mxu1 }
 0x18f   :  { %948 = vst.msk [vmem:[%s2362_s3 + $0xe8] sm:$0xff] %vm918_vm0, %v847_v43  ;;  %998 = vst.msk [vmem:[%s2362_s3 + $0x278] sm:$0xff] %vm918_vm0, %v897_v44  ;;  %v470_v47 = vadd.f32 %v1857_v57, %v469_v45  ;;  %v720_v48 = vadd.f32 %v1857_v57, %v719_v46  ;;  %v471_v49 = vpop.f32.mrb[61].mxu0  ;;  %v721_v50 = vpop.f32.mrb[61].mxu1 }
 0x191   :  { %v848_v51 = vmax.f32 %v470_v47, 0.0  ;;  %v898_v52 = vmax.f32 %v720_v48, 0.0 }
 0x192   :  { %v474_v53 = vpop.f32.mrb[62].mxu0  ;;  %v724_v54 = vpop.f32.mrb[62].mxu1 }
 0x193   :  { %949 = vst.msk [vmem:[%s2362_s3 + $0xf0] sm:$0xff] %vm918_vm0, %v848_v51  ;;  %999 = vst.msk [vmem:[%s2362_s3 + $0x280] sm:$0xff] %vm918_vm0, %v898_v52  ;;  %v475_v55 = vadd.f32 %v1857_v57, %v474_v53  ;;  %v725_v56 = vadd.f32 %v1857_v57, %v724_v54  ;;  %v476_v58 = vpop.f32.mrb[63].mxu0  ;;  %v726_v59 = vpop.f32.mrb[63].mxu1 }
 0x195   :  { %v849_v60 = vmax.f32 %v475_v55, 0.0  ;;  %v899_v61 = vmax.f32 %v725_v56, 0.0 }
 0x196   :  { %v479_v62 = vpop.f32.mrb[64].mxu0  ;;  %v729_v63 = vpop.f32.mrb[64].mxu1 }
 0x197   :  { %950 = vst.msk [vmem:[%s2362_s3 + $0xf8] sm:$0xff] %vm918_vm0, %v849_v60  ;;  %1000 = vst.msk [vmem:[%s2362_s3 + $0x288] sm:$0xff] %vm918_vm0, %v899_v61  ;;  %v480_v0 = vadd.f32 %v1857_v57, %v479_v62  ;;  %v730_v1 = vadd.f32 %v1857_v57, %v729_v63  ;;  %v481_v2 = vpop.f32.mrb[65].mxu0  ;;  %v731_v3 = vpop.f32.mrb[65].mxu1 }
 0x199   :  { %v850_v4 = vmax.f32 %v480_v0, 0.0  ;;  %v900_v5 = vmax.f32 %v730_v1, 0.0 }
 0x19a   :  { %v484_v6 = vpop.f32.mrb[66].mxu0  ;;  %v734_v7 = vpop.f32.mrb[66].mxu1 }
 0x19b   :  { %951 = vst.msk [vmem:[%s2362_s3 + $0x100] sm:$0xff] %vm918_vm0, %v850_v4  ;;  %1001 = vst.msk [vmem:[%s2362_s3 + $0x290] sm:$0xff] %vm918_vm0, %v900_v5  ;;  %v485_v8 = vadd.f32 %v1857_v57, %v484_v6  ;;  %v735_v9 = vadd.f32 %v1857_v57, %v734_v7  ;;  %v486_v10 = vpop.f32.mrb[67].mxu0  ;;  %v736_v11 = vpop.f32.mrb[67].mxu1 }
 0x19d   :  { %v851_v12 = vmax.f32 %v485_v8, 0.0  ;;  %v901_v13 = vmax.f32 %v735_v9, 0.0 }
 0x19e   :  { %v489_v14 = vpop.f32.mrb[68].mxu0  ;;  %v739_v15 = vpop.f32.mrb[68].mxu1 }
 0x19f   :  { %952 = vst.msk [vmem:[%s2362_s3 + $0x108] sm:$0xff] %vm918_vm0, %v851_v12  ;;  %1002 = vst.msk [vmem:[%s2362_s3 + $0x298] sm:$0xff] %vm918_vm0, %v901_v13  ;;  %v490_v16 = vadd.f32 %v1857_v57, %v489_v14  ;;  %v740_v17 = vadd.f32 %v1857_v57, %v739_v15  ;;  %v491_v18 = vpop.f32.mrb[69].mxu0  ;;  %v741_v19 = vpop.f32.mrb[69].mxu1 }
 0x1a1   :  { %v852_v20 = vmax.f32 %v490_v16, 0.0  ;;  %v902_v21 = vmax.f32 %v740_v17, 0.0 }
 0x1a2   :  { %v494_v22 = vpop.f32.mrb[70].mxu0  ;;  %v744_v23 = vpop.f32.mrb[70].mxu1 }
 0x1a3   :  { %953 = vst.msk [vmem:[%s2362_s3 + $0x110] sm:$0xff] %vm918_vm0, %v852_v20  ;;  %1003 = vst.msk [vmem:[%s2362_s3 + $0x2a0] sm:$0xff] %vm918_vm0, %v902_v21  ;;  %v495_v24 = vadd.f32 %v1857_v57, %v494_v22  ;;  %v745_v25 = vadd.f32 %v1857_v57, %v744_v23  ;;  %v496_v26 = vpop.f32.mrb[71].mxu0  ;;  %v746_v27 = vpop.f32.mrb[71].mxu1 }
 0x1a5   :  { %v853_v28 = vmax.f32 %v495_v24, 0.0  ;;  %v903_v29 = vmax.f32 %v745_v25, 0.0 }
 0x1a6   :  { %v499_v30 = vpop.f32.mrb[72].mxu0  ;;  %v749_v31 = vpop.f32.mrb[72].mxu1 }
 0x1a7   :  { %954 = vst.msk [vmem:[%s2362_s3 + $0x118] sm:$0xff] %vm918_vm0, %v853_v28  ;;  %1004 = vst.msk [vmem:[%s2362_s3 + $0x2a8] sm:$0xff] %vm918_vm0, %v903_v29  ;;  %v500_v32 = vadd.f32 %v1857_v57, %v499_v30  ;;  %v750_v33 = vadd.f32 %v1857_v57, %v749_v31  ;;  %v501_v34 = vpop.f32.mrb[73].mxu0  ;;  %v751_v35 = vpop.f32.mrb[73].mxu1 }
 0x1a9   :  { %v854_v36 = vmax.f32 %v500_v32, 0.0  ;;  %v904_v37 = vmax.f32 %v750_v33, 0.0 }
 0x1aa   :  { %v504_v38 = vpop.f32.mrb[74].mxu0  ;;  %v754_v39 = vpop.f32.mrb[74].mxu1 }
 0x1ab   :  { %955 = vst.msk [vmem:[%s2362_s3 + $0x120] sm:$0xff] %vm918_vm0, %v854_v36  ;;  %1005 = vst.msk [vmem:[%s2362_s3 + $0x2b0] sm:$0xff] %vm918_vm0, %v904_v37  ;;  %v505_v40 = vadd.f32 %v1857_v57, %v504_v38  ;;  %v755_v41 = vadd.f32 %v1857_v57, %v754_v39  ;;  %v506_v42 = vpop.f32.mrb[75].mxu0  ;;  %v756_v43 = vpop.f32.mrb[75].mxu1 }
 0x1ad   :  { %v855_v44 = vmax.f32 %v505_v40, 0.0  ;;  %v905_v45 = vmax.f32 %v755_v41, 0.0 }
 0x1ae   :  { %v509_v46 = vpop.f32.mrb[76].mxu0  ;;  %v759_v47 = vpop.f32.mrb[76].mxu1 }
 0x1af   :  { %956 = vst.msk [vmem:[%s2362_s3 + $0x128] sm:$0xff] %vm918_vm0, %v855_v44  ;;  %1006 = vst.msk [vmem:[%s2362_s3 + $0x2b8] sm:$0xff] %vm918_vm0, %v905_v45  ;;  %v510_v48 = vadd.f32 %v1857_v57, %v509_v46  ;;  %v760_v49 = vadd.f32 %v1857_v57, %v759_v47  ;;  %v511_v50 = vpop.f32.mrb[77].mxu0  ;;  %v761_v51 = vpop.f32.mrb[77].mxu1 }
 0x1b1   :  { %v856_v52 = vmax.f32 %v510_v48, 0.0  ;;  %v906_v53 = vmax.f32 %v760_v49, 0.0 }
 0x1b2   :  { %v514_v54 = vpop.f32.mrb[78].mxu0  ;;  %v764_v55 = vpop.f32.mrb[78].mxu1 }
 0x1b3   :  { %957 = vst.msk [vmem:[%s2362_s3 + $0x130] sm:$0xff] %vm918_vm0, %v856_v52  ;;  %1007 = vst.msk [vmem:[%s2362_s3 + $0x2c0] sm:$0xff] %vm918_vm0, %v906_v53  ;;  %v515_v56 = vadd.f32 %v1857_v57, %v514_v54  ;;  %v765_v58 = vadd.f32 %v1857_v57, %v764_v55  ;;  %v516_v59 = vpop.f32.mrb[79].mxu0  ;;  %v766_v60 = vpop.f32.mrb[79].mxu1 }
 0x1b5   :  { %v857_v61 = vmax.f32 %v515_v56, 0.0  ;;  %v907_v62 = vmax.f32 %v765_v58, 0.0 }
 0x1b6   :  { %v519_v63 = vpop.f32.mrb[80].mxu0  ;;  %v769_v0 = vpop.f32.mrb[80].mxu1 }
 0x1b7   :  { %958 = vst.msk [vmem:[%s2362_s3 + $0x138] sm:$0xff] %vm918_vm0, %v857_v61  ;;  %1008 = vst.msk [vmem:[%s2362_s3 + $0x2c8] sm:$0xff] %vm918_vm0, %v907_v62  ;;  %v520_v1 = vadd.f32 %v1857_v57, %v519_v63  ;;  %v770_v2 = vadd.f32 %v1857_v57, %v769_v0  ;;  %v521_v3 = vpop.f32.mrb[81].mxu0  ;;  %v771_v4 = vpop.f32.mrb[81].mxu1 }
 0x1b9   :  { %v858_v5 = vmax.f32 %v520_v1, 0.0  ;;  %v908_v6 = vmax.f32 %v770_v2, 0.0 }
 0x1ba   :  { %v524_v7 = vpop.f32.mrb[82].mxu0  ;;  %v774_v8 = vpop.f32.mrb[82].mxu1 }
 0x1bb   :  { %959 = vst.msk [vmem:[%s2362_s3 + $0x140] sm:$0xff] %vm918_vm0, %v858_v5  ;;  %1009 = vst.msk [vmem:[%s2362_s3 + $0x2d0] sm:$0xff] %vm918_vm0, %v908_v6  ;;  %v525_v9 = vadd.f32 %v1857_v57, %v524_v7  ;;  %v775_v10 = vadd.f32 %v1857_v57, %v774_v8  ;;  %v526_v11 = vpop.f32.mrb[83].mxu0  ;;  %v776_v12 = vpop.f32.mrb[83].mxu1 }
 0x1bd   :  { %v859_v13 = vmax.f32 %v525_v9, 0.0  ;;  %v909_v14 = vmax.f32 %v775_v10, 0.0 }
 0x1be   :  { %v529_v15 = vpop.f32.mrb[84].mxu0  ;;  %v779_v16 = vpop.f32.mrb[84].mxu1 }
 0x1bf   :  { %960 = vst.msk [vmem:[%s2362_s3 + $0x148] sm:$0xff] %vm918_vm0, %v859_v13  ;;  %1010 = vst.msk [vmem:[%s2362_s3 + $0x2d8] sm:$0xff] %vm918_vm0, %v909_v14  ;;  %v530_v17 = vadd.f32 %v1857_v57, %v529_v15  ;;  %v780_v18 = vadd.f32 %v1857_v57, %v779_v16  ;;  %v531_v19 = vpop.f32.mrb[85].mxu0  ;;  %v781_v20 = vpop.f32.mrb[85].mxu1 }
 0x1c1   :  { %v860_v21 = vmax.f32 %v530_v17, 0.0  ;;  %v910_v22 = vmax.f32 %v780_v18, 0.0 }
 0x1c2   :  { %v534_v23 = vpop.f32.mrb[86].mxu0  ;;  %v784_v24 = vpop.f32.mrb[86].mxu1 }
 0x1c3   :  { %961 = vst.msk [vmem:[%s2362_s3 + $0x150] sm:$0xff] %vm918_vm0, %v860_v21  ;;  %1011 = vst.msk [vmem:[%s2362_s3 + $0x2e0] sm:$0xff] %vm918_vm0, %v910_v22  ;;  %v535_v25 = vadd.f32 %v1857_v57, %v534_v23  ;;  %v785_v26 = vadd.f32 %v1857_v57, %v784_v24  ;;  %v536_v27 = vpop.f32.mrb[87].mxu0  ;;  %v786_v28 = vpop.f32.mrb[87].mxu1 }
 0x1c5   :  { %v861_v29 = vmax.f32 %v535_v25, 0.0  ;;  %v911_v30 = vmax.f32 %v785_v26, 0.0 }
 0x1c6   :  { %v539_v31 = vpop.f32.mrb[88].mxu0  ;;  %v789_v32 = vpop.f32.mrb[88].mxu1 }
 0x1c7   :  { %962 = vst.msk [vmem:[%s2362_s3 + $0x158] sm:$0xff] %vm918_vm0, %v861_v29  ;;  %1012 = vst.msk [vmem:[%s2362_s3 + $0x2e8] sm:$0xff] %vm918_vm0, %v911_v30  ;;  %v540_v33 = vadd.f32 %v1857_v57, %v539_v31  ;;  %v790_v34 = vadd.f32 %v1857_v57, %v789_v32  ;;  %v541_v35 = vpop.f32.mrb[89].mxu0  ;;  %v791_v36 = vpop.f32.mrb[89].mxu1 }
 0x1c9   :  { %v862_v37 = vmax.f32 %v540_v33, 0.0  ;;  %v912_v38 = vmax.f32 %v790_v34, 0.0 }
 0x1ca   :  { %v544_v39 = vpop.f32.mrb[90].mxu0  ;;  %v794_v40 = vpop.f32.mrb[90].mxu1 }
 0x1cb   :  { %963 = vst.msk [vmem:[%s2362_s3 + $0x160] sm:$0xff] %vm918_vm0, %v862_v37  ;;  %1013 = vst.msk [vmem:[%s2362_s3 + $0x2f0] sm:$0xff] %vm918_vm0, %v912_v38  ;;  %v545_v41 = vadd.f32 %v1857_v57, %v544_v39  ;;  %v795_v42 = vadd.f32 %v1857_v57, %v794_v40  ;;  %v546_v43 = vpop.f32.mrb[91].mxu0  ;;  %v796_v44 = vpop.f32.mrb[91].mxu1 }
 0x1cd   :  { %v863_v45 = vmax.f32 %v545_v41, 0.0  ;;  %v913_v46 = vmax.f32 %v795_v42, 0.0 }
 0x1ce   :  { %v549_v47 = vpop.f32.mrb[92].mxu0  ;;  %v799_v48 = vpop.f32.mrb[92].mxu1 }
 0x1cf   :  { %964 = vst.msk [vmem:[%s2362_s3 + $0x168] sm:$0xff] %vm918_vm0, %v863_v45  ;;  %1014 = vst.msk [vmem:[%s2362_s3 + $0x2f8] sm:$0xff] %vm918_vm0, %v913_v46  ;;  %v550_v49 = vadd.f32 %v1857_v57, %v549_v47  ;;  %v800_v50 = vadd.f32 %v1857_v57, %v799_v48  ;;  %v551_v51 = vpop.f32.mrb[93].mxu0  ;;  %v801_v52 = vpop.f32.mrb[93].mxu1 }
 0x1d1   :  { %v864_v53 = vmax.f32 %v550_v49, 0.0  ;;  %v914_v54 = vmax.f32 %v800_v50, 0.0 }
 0x1d2   :  { %v554_v55 = vpop.f32.mrb[94].mxu0  ;;  %v804_v56 = vpop.f32.mrb[94].mxu1 }
 0x1d3   :  { %965 = vst.msk [vmem:[%s2362_s3 + $0x170] sm:$0xff] %vm918_vm0, %v864_v53  ;;  %1015 = vst.msk [vmem:[%s2362_s3 + $0x300] sm:$0xff] %vm918_vm0, %v914_v54  ;;  %v555_v58 = vadd.f32 %v1857_v57, %v554_v55  ;;  %v805_v59 = vadd.f32 %v1857_v57, %v804_v56  ;;  %v556_v60 = vpop.f32.mrb[95].mxu0  ;;  %v806_v61 = vpop.f32.mrb[95].mxu1 }
 0x1d5   :  { %v865_v62 = vmax.f32 %v555_v58, 0.0  ;;  %v915_v63 = vmax.f32 %v805_v59, 0.0 }
 0x1d6   :  { %v559_v0 = vpop.f32.mrb[96].mxu0  ;;  %v809_v1 = vpop.f32.mrb[96].mxu1 }
 0x1d7   :  { %966 = vst.msk [vmem:[%s2362_s3 + $0x178] sm:$0xff] %vm918_vm0, %v865_v62  ;;  %1016 = vst.msk [vmem:[%s2362_s3 + $0x308] sm:$0xff] %vm918_vm0, %v915_v63  ;;  %v560_v2 = vadd.f32 %v1857_v57, %v559_v0  ;;  %v810_v3 = vadd.f32 %v1857_v57, %v809_v1  ;;  %v561_v4 = vpop.f32.mrb[97].mxu0  ;;  %v811_v5 = vpop.f32.mrb[97].mxu1 }
 0x1d9   :  { %v866_v6 = vmax.f32 %v560_v2, 0.0  ;;  %v916_v7 = vmax.f32 %v810_v3, 0.0 }
 0x1da   :  { %v564_v8 = vpop.f32.mrb[98].mxu0  ;;  %v814_v9 = vpop.f32.mrb[98].mxu1 }
 0x1db   :  { %967 = vst.msk [vmem:[%s2362_s3 + $0x180] sm:$0xff] %vm918_vm0, %v866_v6  ;;  %1017 = vst.msk [vmem:[%s2362_s3 + $0x310] sm:$0xff] %vm918_vm0, %v916_v7  ;;  %v565_v10 = vadd.f32 %v1857_v57, %v564_v8  ;;  %v815_v11 = vadd.f32 %v1857_v57, %v814_v9  ;;  %v566_v12 = vpop.f32.mrb[99].mxu0  ;;  %v816_v13 = vpop.f32.mrb[99].mxu1 }
 0x1dd   :  { %v867_v14 = vmax.f32 %v565_v10, 0.0  ;;  %v917_v15 = vmax.f32 %v815_v11, 0.0 }
 0x1df   :  { %968 = vst.msk [vmem:[%s2362_s3 + $0x188] sm:$0xff] %vm918_vm0, %v867_v14  ;;  %1018 = vst.msk [vmem:[%s2362_s3 + $0x318] sm:$0xff] %vm918_vm0, %v917_v15 }

// kernel: dueling_dqn_forward_pallas.5
= control target key start
LH: loop header
LB: loop body
LE: loop exit
PB: predicated region body
PF: predicated region fallthrough
CT: control target
= control target key end

     0   :  { %v697_v0 = vmov 0.0|0.0   ;;  %vm530_vm0 = vcmask 523264   ;;  %vm551_vm1 = vcmask 517120   ;;  %s1303_s1 = inlined_call_operand.vmem [shape: f32[512,64], index: 1, kind: input, shape index: {}]   ;;  %s1304_s0 = inlined_call_operand.vmem [shape: f32[162,512], index: 0, kind: input, shape index: {}]   ;;  %s1305_s2 = inlined_call_operand.vmem [shape: f32[1,64], index: 2, kind: input, shape index: {}]   ;;  %s1306_s3 = inlined_call_operand.vmem [shape: f32[162,64], index: 3, kind: output, shape index: {}]  }
   0x1   :  { %558 = vmatprep.subr.bf16.mxu1 %v697_v0  ;;  %v98_v1 = vld [vmem:[%s1303_s1] sm:$0xff]  ;;  %v99_v2 = vld [vmem:[%s1303_s1 + $0x8] sm:$0xff]  ;;  %606 = vmatprep.subr.bf16.mxu0 %v697_v0  ;;  %v100_v6 = vld [vmem:[%s1303_s1 + $0x10] sm:$0xff] }
   0x2   :  { %v130_v3 = vld [vmem:[%s1303_s1 + $0x100] sm:$0xff]  ;;  %v559_v4 = vpack.c.bf16 %v99_v2, %v98_v1  ;;  %v131_v5 = vld [vmem:[%s1303_s1 + $0x108] sm:$0xff]  ;;  %v101_v7 = vld [vmem:[%s1303_s1 + $0x18] sm:$0xff] }
   0x3   :  { %v607_v8 = vpack.c.bf16 %v131_v5, %v130_v3  ;;  %v132_v9 = vld [vmem:[%s1303_s1 + $0x110] sm:$0xff]  ;;  %v133_v10 = vld [vmem:[%s1303_s1 + $0x118] sm:$0xff]  ;;  %v562_v11 = vpack.c.bf16 %v101_v7, %v100_v6  ;;  %v102_v13 = vld [vmem:[%s1303_s1 + $0x20] sm:$0xff] }
   0x4   :  { %560 = vmatpush1.bf16.msra.mxu1 %v559_v4  ;;  %v610_v12 = vpack.c.bf16 %v133_v10, %v132_v9  ;;  %v103_v14 = vld [vmem:[%s1303_s1 + $0x28] sm:$0xff]  ;;  %v134_v15 = vld [vmem:[%s1303_s1 + $0x120] sm:$0xff]  ;;  %v104_v19 = vld [vmem:[%s1303_s1 + $0x30] sm:$0xff] }
   0x5   :  { %608 = vmatpush1.bf16.msra.mxu0 %v607_v8  ;;  %561 = vmatprep.subr.bf16.mxu1 %v697_v0  ;;  %v135_v16 = vld [vmem:[%s1303_s1 + $0x128] sm:$0xff]  ;;  %v565_v17 = vpack.c.bf16 %v103_v14, %v102_v13  ;;  %v105_v20 = vld [vmem:[%s1303_s1 + $0x38] sm:$0xff]  ;;  %v136_v21 = vld [vmem:[%s1303_s1 + $0x130] sm:$0xff] }
   0x6   :  { %609 = vmatprep.subr.bf16.mxu0 %v697_v0  ;;  %v613_v18 = vpack.c.bf16 %v135_v16, %v134_v15  ;;  %v137_v22 = vld [vmem:[%s1303_s1 + $0x138] sm:$0xff]  ;;  %v568_v23 = vpack.c.bf16 %v105_v20, %v104_v19  ;;  %v106_v25 = vld [vmem:[%s1303_s1 + $0x40] sm:$0xff]  ;;  %v107_v26 = vld [vmem:[%s1303_s1 + $0x48] sm:$0xff] }
   0x7   :  { %v616_v24 = vpack.c.bf16 %v137_v22, %v136_v21  ;;  %v138_v27 = vld [vmem:[%s1303_s1 + $0x140] sm:$0xff]  ;;  %v139_v28 = vld [vmem:[%s1303_s1 + $0x148] sm:$0xff]  ;;  %v571_v29 = vpack.c.bf16 %v107_v26, %v106_v25  ;;  %v108_v31 = vld [vmem:[%s1303_s1 + $0x50] sm:$0xff] }
   0x8   :  { %563 = vmatpush1.bf16.msra.mxu1 %v562_v11  ;;  %v619_v30 = vpack.c.bf16 %v139_v28, %v138_v27  ;;  %v109_v32 = vld [vmem:[%s1303_s1 + $0x58] sm:$0xff]  ;;  %v140_v33 = vld [vmem:[%s1303_s1 + $0x150] sm:$0xff]  ;;  %v110_v37 = vld [vmem:[%s1303_s1 + $0x60] sm:$0xff] }
   0x9   :  { %611 = vmatpush1.bf16.msra.mxu0 %v610_v12  ;;  %564 = vmatprep.subr.bf16.mxu1 %v697_v0  ;;  %v141_v34 = vld [vmem:[%s1303_s1 + $0x158] sm:$0xff]  ;;  %v574_v35 = vpack.c.bf16 %v109_v32, %v108_v31  ;;  %v111_v38 = vld [vmem:[%s1303_s1 + $0x68] sm:$0xff]  ;;  %v142_v39 = vld [vmem:[%s1303_s1 + $0x160] sm:$0xff] }
   0xa   :  { %612 = vmatprep.subr.bf16.mxu0 %v697_v0  ;;  %v622_v36 = vpack.c.bf16 %v141_v34, %v140_v33  ;;  %v143_v40 = vld [vmem:[%s1303_s1 + $0x168] sm:$0xff]  ;;  %v17_v42 = vld [vmem:[%s1304_s0 + $0x18] sm:$0xff]  ;;  %v577_v43 = vpack.c.bf16 %v111_v38, %v110_v37  ;;  %v112_v45 = vld [vmem:[%s1303_s1 + $0x70] sm:$0xff] }
   0xb   :  { %v15_v41 = vld [vmem:[%s1304_s0 + $0x8] sm:$0xff]  ;;  %403 = vmatprep.mubr.f32.mxu0 %v17_v42  ;;  %v625_v44 = vpack.c.bf16 %v143_v40, %v142_v39  ;;  %v113_v46 = vld [vmem:[%s1303_s1 + $0x78] sm:$0xff]  ;;  %v144_v47 = vld [vmem:[%s1303_s1 + $0x170] sm:$0xff] }
   0xc   :  { %566 = vmatpush1.bf16.msra.mxu1 %v565_v17  ;;  %233 = vmatprep.mubr.f32.mxu1 %v15_v41  ;;  %v145_v48 = vld [vmem:[%s1303_s1 + $0x178] sm:$0xff]  ;;  %v580_v49 = vpack.c.bf16 %v113_v46, %v112_v45  ;;  %v114_v51 = vld [vmem:[%s1303_s1 + $0x80] sm:$0xff]  ;;  %v115_v52 = vld [vmem:[%s1303_s1 + $0x88] sm:$0xff] }
   0xd   :  { %614 = vmatpush1.bf16.msra.mxu0 %v613_v18  ;;  %567 = vmatprep.subr.bf16.mxu1 %v697_v0  ;;  %v628_v50 = vpack.c.bf16 %v145_v48, %v144_v47  ;;  %v146_v53 = vld [vmem:[%s1303_s1 + $0x180] sm:$0xff]  ;;  %v147_v54 = vld [vmem:[%s1303_s1 + $0x188] sm:$0xff]  ;;  %v583_v55 = vpack.c.bf16 %v115_v52, %v114_v51  ;;  %v116_v57 = vld [vmem:[%s1303_s1 + $0x90] sm:$0xff] }
   0xe   :  { %615 = vmatprep.subr.bf16.mxu0 %v697_v0  ;;  %v631_v56 = vpack.c.bf16 %v147_v54, %v146_v53  ;;  %v117_v58 = vld [vmem:[%s1303_s1 + $0x98] sm:$0xff]  ;;  %v148_v59 = vld [vmem:[%s1303_s1 + $0x190] sm:$0xff]  ;;  %v118_v63 = vld [vmem:[%s1303_s1 + $0xa0] sm:$0xff] }
   0xf   :  { %v149_v60 = vld [vmem:[%s1303_s1 + $0x198] sm:$0xff]  ;;  %v586_v61 = vpack.c.bf16 %v117_v58, %v116_v57  ;;  %v119_v1 = vld [vmem:[%s1303_s1 + $0xa8] sm:$0xff]  ;;  %v150_v2 = vld [vmem:[%s1303_s1 + $0x1a0] sm:$0xff] }
  0x10   :  { %569 = vmatpush1.bf16.msra.mxu1 %v568_v23  ;;  %v634_v62 = vpack.c.bf16 %v149_v60, %v148_v59  ;;  %v151_v3 = vld [vmem:[%s1303_s1 + $0x1a8] sm:$0xff]  ;;  %v589_v4 = vpack.c.bf16 %v119_v1, %v118_v63  ;;  %v120_v6 = vld [vmem:[%s1303_s1 + $0xb0] sm:$0xff]  ;;  %v121_v7 = vld [vmem:[%s1303_s1 + $0xb8] sm:$0xff] }
  0x11   :  { %617 = vmatpush1.bf16.msra.mxu0 %v616_v24  ;;  %570 = vmatprep.subr.bf16.mxu1 %v697_v0  ;;  %v637_v5 = vpack.c.bf16 %v151_v3, %v150_v2  ;;  %v152_v8 = vld [vmem:[%s1303_s1 + $0x1b0] sm:$0xff]  ;;  %v153_v9 = vld [vmem:[%s1303_s1 + $0x1b8] sm:$0xff]  ;;  %v592_v10 = vpack.c.bf16 %v121_v7, %v120_v6  ;;  %v122_v12 = vld [vmem:[%s1303_s1 + $0xc0] sm:$0xff] }
  0x12   :  { %618 = vmatprep.subr.bf16.mxu0 %v697_v0  ;;  %v640_v11 = vpack.c.bf16 %v153_v9, %v152_v8  ;;  %v123_v13 = vld [vmem:[%s1303_s1 + $0xc8] sm:$0xff]  ;;  %v154_v14 = vld [vmem:[%s1303_s1 + $0x1c0] sm:$0xff]  ;;  %v124_v18 = vld [vmem:[%s1303_s1 + $0xd0] sm:$0xff] }
  0x13   :  { %v155_v15 = vld [vmem:[%s1303_s1 + $0x1c8] sm:$0xff]  ;;  %v595_v16 = vpack.c.bf16 %v123_v13, %v122_v12  ;;  %v125_v19 = vld [vmem:[%s1303_s1 + $0xd8] sm:$0xff]  ;;  %v156_v20 = vld [vmem:[%s1303_s1 + $0x1d0] sm:$0xff] }
  0x14   :  { %572 = vmatpush1.bf16.msra.mxu1 %v571_v29  ;;  %v643_v17 = vpack.c.bf16 %v155_v15, %v154_v14  ;;  %v157_v21 = vld [vmem:[%s1303_s1 + $0x1d8] sm:$0xff]  ;;  %v598_v22 = vpack.c.bf16 %v125_v19, %v124_v18  ;;  %v126_v24 = vld [vmem:[%s1303_s1 + $0xe0] sm:$0xff]  ;;  %v127_v25 = vld [vmem:[%s1303_s1 + $0xe8] sm:$0xff] }
  0x15   :  { %620 = vmatpush1.bf16.msra.mxu0 %v619_v30  ;;  %573 = vmatprep.subr.bf16.mxu1 %v697_v0  ;;  %v646_v23 = vpack.c.bf16 %v157_v21, %v156_v20  ;;  %v158_v26 = vld [vmem:[%s1303_s1 + $0x1e0] sm:$0xff]  ;;  %v159_v27 = vld [vmem:[%s1303_s1 + $0x1e8] sm:$0xff]  ;;  %v601_v28 = vpack.c.bf16 %v127_v25, %v126_v24  ;;  %v128_v30 = vld [vmem:[%s1303_s1 + $0xf0] sm:$0xff] }
  0x16   :  { %621 = vmatprep.subr.bf16.mxu0 %v697_v0  ;;  %v649_v29 = vpack.c.bf16 %v159_v27, %v158_v26  ;;  %v129_v31 = vld [vmem:[%s1303_s1 + $0xf8] sm:$0xff]  ;;  %v160_v32 = vld [vmem:[%s1303_s1 + $0x1f0] sm:$0xff]  ;;  %v19_v38 = vld [vmem:[%s1304_s0 + $0x28] sm:$0xff] }
  0x17   :  { %v161_v33 = vld [vmem:[%s1303_s1 + $0x1f8] sm:$0xff]  ;;  %v604_v34 = vpack.c.bf16 %v129_v31, %v128_v30  ;;  %v16_v37 = vld [vmem:[%s1304_s0 + $0x10] sm:$0xff]  ;;  %v23_v41 = vld [vmem:[%s1304_s0 + $0x48] sm:$0xff] }
  0x18   :  { %575 = vmatpush1.bf16.msra.mxu1 %v574_v35  ;;  %v652_v35 = vpack.c.bf16 %v161_v33, %v160_v32  ;;  %v21_v39 = vld [vmem:[%s1304_s0 + $0x38] sm:$0xff]  ;;  %v20_v40 = vld [vmem:[%s1304_s0 + $0x30] sm:$0xff]  ;;  %v27_v45 = vld [vmem:[%s1304_s0 + $0x68] sm:$0xff] }
  0x19   :  { %623 = vmatpush1.bf16.msra.mxu0 %v622_v36  ;;  %576 = vmatprep.subr.bf16.mxu1 %v697_v0  ;;  %v14_v36 = vld [vmem:[%s1304_s0] sm:$0xff]  ;;  %v25_v42 = vld [vmem:[%s1304_s0 + $0x58] sm:$0xff]  ;;  %v28_v48 = vld [vmem:[%s1304_s0 + $0x70] sm:$0xff] }
  0x1a   :  { %624 = vmatprep.subr.bf16.mxu0 %v697_v0  ;;  %v29_v46 = vld [vmem:[%s1304_s0 + $0x78] sm:$0xff]  ;;  %v26_v47 = vld [vmem:[%s1304_s0 + $0x60] sm:$0xff]  ;;  %v32_v52 = vld [vmem:[%s1304_s0 + $0x90] sm:$0xff] }
  0x1b   :  { %v30_v51 = vld [vmem:[%s1304_s0 + $0x80] sm:$0xff]  ;;  %v35_v53 = vld [vmem:[%s1304_s0 + $0xa8] sm:$0xff]  ;;  %v37_v54 = vld [vmem:[%s1304_s0 + $0xb8] sm:$0xff] }
  0x1c   :  { %578 = vmatpush1.bf16.msra.mxu1 %v577_v43  ;;  %v22_v43 = vld [vmem:[%s1304_s0 + $0x40] sm:$0xff]  ;;  %v39_v57 = vld [vmem:[%s1304_s0 + $0xc8] sm:$0xff]  ;;  %v41_v58 = vld [vmem:[%s1304_s0 + $0xd8] sm:$0xff] }
  0x1d   :  { %626 = vmatpush1.bf16.msra.mxu0 %v625_v44  ;;  %579 = vmatprep.subr.bf16.mxu1 %v697_v0  ;;  %v24_v44 = vld [vmem:[%s1304_s0 + $0x50] sm:$0xff]  ;;  %v38_v59 = vld [vmem:[%s1304_s0 + $0xc0] sm:$0xff]  ;;  %v47_v2 = vld [vmem:[%s1304_s0 + $0x108] sm:$0xff] }
  0x1e   :  { %627 = vmatprep.subr.bf16.mxu0 %v697_v0  ;;  %v40_v60 = vld [vmem:[%s1304_s0 + $0xd0] sm:$0xff]  ;;  %v42_v63 = vld [vmem:[%s1304_s0 + $0xe0] sm:$0xff]  ;;  %v49_v3 = vld [vmem:[%s1304_s0 + $0x118] sm:$0xff] }
  0x1f   :  { %v44_v1 = vld [vmem:[%s1304_s0 + $0xf0] sm:$0xff]  ;;  %v51_v6 = vld [vmem:[%s1304_s0 + $0x128] sm:$0xff]  ;;  %v53_v7 = vld [vmem:[%s1304_s0 + $0x138] sm:$0xff] }
  0x20   :  { %581 = vmatpush1.bf16.msra.mxu1 %v580_v49  ;;  %v31_v49 = vld [vmem:[%s1304_s0 + $0x88] sm:$0xff]  ;;  %v50_v8 = vld [vmem:[%s1304_s0 + $0x120] sm:$0xff]  ;;  %v52_v9 = vld [vmem:[%s1304_s0 + $0x130] sm:$0xff] }
  0x21   :  { %629 = vmatpush1.bf16.msra.mxu0 %v628_v50  ;;  %582 = vmatprep.subr.bf16.mxu1 %v697_v0  ;;  %v33_v50 = vld [vmem:[%s1304_s0 + $0x98] sm:$0xff]  ;;  %v54_v12 = vld [vmem:[%s1304_s0 + $0x140] sm:$0xff]  ;;  %v56_v13 = vld [vmem:[%s1304_s0 + $0x150] sm:$0xff] }
  0x22   :  { %630 = vmatprep.subr.bf16.mxu0 %v697_v0  ;;  %v59_v14 = vld [vmem:[%s1304_s0 + $0x168] sm:$0xff]  ;;  %v61_v15 = vld [vmem:[%s1304_s0 + $0x178] sm:$0xff]  ;;  %v62_v20 = vld [vmem:[%s1304_s0 + $0x180] sm:$0xff] }
  0x23   :  { %v63_v18 = vld [vmem:[%s1304_s0 + $0x188] sm:$0xff]  ;;  %v65_v19 = vld [vmem:[%s1304_s0 + $0x198] sm:$0xff]  ;;  %v64_v21 = vld [vmem:[%s1304_s0 + $0x190] sm:$0xff] }
  0x24   :  { %584 = vmatpush1.bf16.msra.mxu1 %v583_v55  ;;  %v34_v55 = vld [vmem:[%s1304_s0 + $0xa0] sm:$0xff]  ;;  %v68_v25 = vld [vmem:[%s1304_s0 + $0x1b0] sm:$0xff]  ;;  %v71_v26 = vld [vmem:[%s1304_s0 + $0x1c8] sm:$0xff] }
  0x25   :  { %632 = vmatpush1.bf16.msra.mxu0 %v631_v56  ;;  %585 = vmatprep.subr.bf16.mxu1 %v697_v0  ;;  %v36_v56 = vld [vmem:[%s1304_s0 + $0xb0] sm:$0xff]  ;;  %v66_v24 = vld [vmem:[%s1304_s0 + $0x1a0] sm:$0xff]  ;;  %v73_v27 = vld [vmem:[%s1304_s0 + $0x1d8] sm:$0xff] }
  0x26   :  { %633 = vmatprep.subr.bf16.mxu0 %v697_v0  ;;  %v75_v30 = vld [vmem:[%s1304_s0 + $0x1e8] sm:$0xff]  ;;  %v77_v31 = vld [vmem:[%s1304_s0 + $0x1f8] sm:$0xff]  ;;  %v74_v32 = vld [vmem:[%s1304_s0 + $0x1e0] sm:$0xff] }
  0x27   :  { %v76_v33 = vld [vmem:[%s1304_s0 + $0x1f0] sm:$0xff] }
  0x28   :  { %587 = vmatpush1.bf16.msra.mxu1 %v586_v61  ;;  %v43_v61 = vld [vmem:[%s1304_s0 + $0xe8] sm:$0xff] }
  0x29   :  { %635 = vmatpush1.bf16.msra.mxu0 %v634_v62  ;;  %588 = vmatprep.subr.bf16.mxu1 %v697_v0  ;;  %v45_v62 = vld [vmem:[%s1304_s0 + $0xf8] sm:$0xff] }
  0x2a   :  { %636 = vmatprep.subr.bf16.mxu0 %v697_v0 }
  0x2c   :  { %590 = vmatpush1.bf16.msra.mxu1 %v589_v4  ;;  %v46_v4 = vld [vmem:[%s1304_s0 + $0x100] sm:$0xff] }
  0x2d   :  { %638 = vmatpush1.bf16.msra.mxu0 %v637_v5  ;;  %591 = vmatprep.subr.bf16.mxu1 %v697_v0  ;;  %v48_v5 = vld [vmem:[%s1304_s0 + $0x110] sm:$0xff] }
  0x2e   :  { %639 = vmatprep.subr.bf16.mxu0 %v697_v0 }
  0x30   :  { %593 = vmatpush1.bf16.msra.mxu1 %v592_v10  ;;  %v55_v10 = vld [vmem:[%s1304_s0 + $0x148] sm:$0xff] }
  0x31   :  { %641 = vmatpush1.bf16.msra.mxu0 %v640_v11  ;;  %594 = vmatprep.subr.bf16.mxu1 %v697_v0  ;;  %v57_v11 = vld [vmem:[%s1304_s0 + $0x158] sm:$0xff] }
  0x32   :  { %642 = vmatprep.subr.bf16.mxu0 %v697_v0 }
  0x34   :  { %596 = vmatpush1.bf16.msra.mxu1 %v595_v16  ;;  %v58_v16 = vld [vmem:[%s1304_s0 + $0x160] sm:$0xff] }
  0x35   :  { %644 = vmatpush1.bf16.msra.mxu0 %v643_v17  ;;  %597 = vmatprep.subr.bf16.mxu1 %v697_v0  ;;  %v60_v17 = vld [vmem:[%s1304_s0 + $0x170] sm:$0xff] }
  0x36   :  { %645 = vmatprep.subr.bf16.mxu0 %v697_v0 }
  0x38   :  { %599 = vmatpush1.bf16.msra.mxu1 %v598_v22  ;;  %v67_v22 = vld [vmem:[%s1304_s0 + $0x1a8] sm:$0xff] }
  0x39   :  { %647 = vmatpush1.bf16.msra.mxu0 %v646_v23  ;;  %600 = vmatprep.subr.bf16.mxu1 %v697_v0  ;;  %v69_v23 = vld [vmem:[%s1304_s0 + $0x1b8] sm:$0xff] }
  0x3a   :  { %648 = vmatprep.subr.bf16.mxu0 %v697_v0 }
  0x3c   :  { %602 = vmatpush1.bf16.msra.mxu1 %v601_v28  ;;  %v70_v28 = vld [vmem:[%s1304_s0 + $0x1c0] sm:$0xff] }
  0x3d   :  { %650 = vmatpush1.bf16.msra.mxu0 %v649_v29  ;;  %603 = vmatprep.subr.bf16.mxu1 %v697_v0  ;;  %v72_v29 = vld [vmem:[%s1304_s0 + $0x1d0] sm:$0xff] }
  0x3e   :  { %651 = vmatprep.subr.bf16.mxu0 %v697_v0  ;;  %v18_v0 = vld [vmem:[%s1304_s0 + $0x20] sm:$0xff] }
  0x40   :  { %605 = vmatpush1.bf16.msra.mxu1 %v604_v34  ;;  %v79_v34 = vld [vmem:[%s1304_s0 + $0x208] sm:$0xff] }
  0x41   :  { %653 = vmatpush1.bf16.msra.mxu0 %v652_v35  ;;  %v81_v35 = vld [vmem:[%s1304_s0 + $0x218] sm:$0xff] }
  0x43   :  { %234 = vmatmul.mubr.f32.vlgmr.msra.gmra.mrb[0].mxu1 %v14_v36  ;;  %v78_v36 = vld [vmem:[%s1304_s0 + $0x200] sm:$0xff] }
  0x44   :  { %404 = vmatmul.mubr.f32.vlgmr.msra.gmra.mrb[0].mxu0 %v16_v37  ;;  %238 = vmatprep.mubr.f32.mxu1 %v19_v38  ;;  %v80_v37 = vld [vmem:[%s1304_s0 + $0x210] sm:$0xff]  ;;  %v83_v38 = vld [vmem:[%s1304_s0 + $0x228] sm:$0xff] }
  0x45   :  { %408 = vmatprep.mubr.f32.mxu0 %v21_v39  ;;  %v85_v39 = vld [vmem:[%s1304_s0 + $0x238] sm:$0xff] }
  0x47   :  { %239 = vmatmul.mubr.f32.gmra.mrb[2].mxu1 %v18_v0  ;;  %v82_v0 = vld [vmem:[%s1304_s0 + $0x220] sm:$0xff] }
  0x48   :  { %409 = vmatmul.mubr.f32.gmra.mrb[2].mxu0 %v20_v40  ;;  %243 = vmatprep.mubr.f32.mxu1 %v23_v41  ;;  %v84_v40 = vld [vmem:[%s1304_s0 + $0x230] sm:$0xff]  ;;  %v87_v41 = vld [vmem:[%s1304_s0 + $0x248] sm:$0xff] }
  0x49   :  { %413 = vmatprep.mubr.f32.mxu0 %v25_v42  ;;  %v89_v42 = vld [vmem:[%s1304_s0 + $0x258] sm:$0xff] }
  0x4b   :  { %244 = vmatmul.mubr.f32.gmra.mrb[4].mxu1 %v22_v43  ;;  %v86_v43 = vld [vmem:[%s1304_s0 + $0x240] sm:$0xff] }
  0x4c   :  { %414 = vmatmul.mubr.f32.gmra.mrb[4].mxu0 %v24_v44  ;;  %248 = vmatprep.mubr.f32.mxu1 %v27_v45  ;;  %v88_v44 = vld [vmem:[%s1304_s0 + $0x250] sm:$0xff]  ;;  %v91_v45 = vld [vmem:[%s1304_s0 + $0x268] sm:$0xff] }
  0x4d   :  { %418 = vmatprep.mubr.f32.mxu0 %v29_v46  ;;  %v93_v46 = vld [vmem:[%s1304_s0 + $0x278] sm:$0xff] }
  0x4f   :  { %249 = vmatmul.mubr.f32.gmra.mrb[6].mxu1 %v26_v47  ;;  %v90_v47 = vld [vmem:[%s1304_s0 + $0x260] sm:$0xff] }
  0x50   :  { %419 = vmatmul.mubr.f32.gmra.mrb[6].mxu0 %v28_v48  ;;  %253 = vmatprep.mubr.f32.mxu1 %v31_v49  ;;  %v92_v48 = vld [vmem:[%s1304_s0 + $0x270] sm:$0xff]  ;;  %v95_v49 = vld [vmem:[%s1304_s0 + $0x288] sm:$0x3] }
  0x51   :  { %423 = vmatprep.mubr.f32.mxu0 %v33_v50  ;;  %v97_v50 = vld [vmem:[%s1304_s0 + $0x298] sm:$0x3] }
  0x53   :  { %254 = vmatmul.mubr.f32.gmra.mrb[8].mxu1 %v30_v51  ;;  %v94_v51 = vld [vmem:[%s1304_s0 + $0x280] sm:$0x3] }
  0x54   :  { %424 = vmatmul.mubr.f32.gmra.mrb[8].mxu0 %v32_v52  ;;  %258 = vmatprep.mubr.f32.mxu1 %v35_v53  ;;  %v96_v52 = vld [vmem:[%s1304_s0 + $0x290] sm:$0x3]  ;;  %v1197_v53 = vld [vmem:[%s1305_s2] ss:$0 sm:$0xff] }
  0x55   :  { %428 = vmatprep.mubr.f32.mxu0 %v37_v54 }
  0x57   :  { %259 = vmatmul.mubr.f32.gmra.mrb[10].mxu1 %v34_v55 }
  0x58   :  { %429 = vmatmul.mubr.f32.gmra.mrb[10].mxu0 %v36_v56  ;;  %263 = vmatprep.mubr.f32.mxu1 %v39_v57 }
  0x59   :  { %433 = vmatprep.mubr.f32.mxu0 %v41_v58 }
  0x5b   :  { %264 = vmatmul.mubr.f32.gmra.mrb[12].mxu1 %v38_v59 }
  0x5c   :  { %434 = vmatmul.mubr.f32.gmra.mrb[12].mxu0 %v40_v60  ;;  %268 = vmatprep.mubr.f32.mxu1 %v43_v61 }
  0x5d   :  { %438 = vmatprep.mubr.f32.mxu0 %v45_v62 }
  0x5f   :  { %269 = vmatmul.mubr.f32.gmra.mrb[14].mxu1 %v42_v63 }
  0x60   :  { %439 = vmatmul.mubr.f32.gmra.mrb[14].mxu0 %v44_v1  ;;  %273 = vmatprep.mubr.f32.mxu1 %v47_v2 }
  0x61   :  { %443 = vmatprep.mubr.f32.mxu0 %v49_v3 }
  0x63   :  { %274 = vmatmul.mubr.f32.gmra.mrb[16].mxu1 %v46_v4 }
  0x64   :  { %444 = vmatmul.mubr.f32.gmra.mrb[16].mxu0 %v48_v5  ;;  %278 = vmatprep.mubr.f32.mxu1 %v51_v6 }
  0x65   :  { %448 = vmatprep.mubr.f32.mxu0 %v53_v7 }
  0x67   :  { %279 = vmatmul.mubr.f32.gmra.mrb[18].mxu1 %v50_v8 }
  0x68   :  { %449 = vmatmul.mubr.f32.gmra.mrb[18].mxu0 %v52_v9  ;;  %283 = vmatprep.mubr.f32.mxu1 %v55_v10 }
  0x69   :  { %453 = vmatprep.mubr.f32.mxu0 %v57_v11 }
  0x6b   :  { %284 = vmatmul.mubr.f32.gmra.mrb[20].mxu1 %v54_v12 }
  0x6c   :  { %454 = vmatmul.mubr.f32.gmra.mrb[20].mxu0 %v56_v13  ;;  %288 = vmatprep.mubr.f32.mxu1 %v59_v14 }
  0x6d   :  { %458 = vmatprep.mubr.f32.mxu0 %v61_v15 }
  0x6f   :  { %289 = vmatmul.mubr.f32.gmra.mrb[22].mxu1 %v58_v16 }
  0x70   :  { %459 = vmatmul.mubr.f32.gmra.mrb[22].mxu0 %v60_v17  ;;  %293 = vmatprep.mubr.f32.mxu1 %v63_v18 }
  0x71   :  { %463 = vmatprep.mubr.f32.mxu0 %v65_v19 }
  0x73   :  { %294 = vmatmul.mubr.f32.gmra.mrb[24].mxu1 %v62_v20 }
  0x74   :  { %464 = vmatmul.mubr.f32.gmra.mrb[24].mxu0 %v64_v21  ;;  %298 = vmatprep.mubr.f32.mxu1 %v67_v22 }
  0x75   :  { %468 = vmatprep.mubr.f32.mxu0 %v69_v23 }
  0x77   :  { %299 = vmatmul.mubr.f32.gmra.mrb[26].mxu1 %v66_v24 }
  0x78   :  { %469 = vmatmul.mubr.f32.gmra.mrb[26].mxu0 %v68_v25  ;;  %303 = vmatprep.mubr.f32.mxu1 %v71_v26 }
  0x79   :  { %473 = vmatprep.mubr.f32.mxu0 %v73_v27 }
  0x7b   :  { %304 = vmatmul.mubr.f32.gmra.mrb[28].mxu1 %v70_v28 }
  0x7c   :  { %474 = vmatmul.mubr.f32.gmra.mrb[28].mxu0 %v72_v29  ;;  %308 = vmatprep.mubr.f32.mxu1 %v75_v30 }
  0x7d   :  { %478 = vmatprep.mubr.f32.mxu0 %v77_v31 }
  0x7f   :  { %309 = vmatmul.mubr.f32.gmra.mrb[30].mxu1 %v74_v32 }
  0x80   :  { %479 = vmatmul.mubr.f32.gmra.mrb[30].mxu0 %v76_v33  ;;  %313 = vmatprep.mubr.f32.mxu1 %v79_v34 }
  0x81   :  { %483 = vmatprep.mubr.f32.mxu0 %v81_v35 }
  0x83   :  { %314 = vmatmul.mubr.f32.gmra.mrb[32].mxu1 %v78_v36 }
  0x84   :  { %484 = vmatmul.mubr.f32.gmra.mrb[32].mxu0 %v80_v37  ;;  %318 = vmatprep.mubr.f32.mxu1 %v83_v38 }
  0x85   :  { %488 = vmatprep.mubr.f32.mxu0 %v85_v39 }
  0x87   :  { %319 = vmatmul.mubr.f32.gmra.mrb[34].mxu1 %v82_v0 }
  0x88   :  { %489 = vmatmul.mubr.f32.gmra.mrb[34].mxu0 %v84_v40  ;;  %323 = vmatprep.mubr.f32.mxu1 %v87_v41 }
  0x89   :  { %493 = vmatprep.mubr.f32.mxu0 %v89_v42 }
  0x8b   :  { %324 = vmatmul.mubr.f32.gmra.mrb[36].mxu1 %v86_v43 }
  0x8c   :  { %494 = vmatmul.mubr.f32.gmra.mrb[36].mxu0 %v88_v44  ;;  %328 = vmatprep.mubr.f32.mxu1 %v91_v45 }
  0x8d   :  { %498 = vmatprep.mubr.f32.mxu0 %v93_v46 }
  0x8f   :  { %329 = vmatmul.mubr.f32.gmra.mrb[38].mxu1 %v90_v47 }
  0x90   :  { %499 = vmatmul.mubr.f32.gmra.mrb[38].mxu0 %v92_v48  ;;  %333 = vmatprep.mubr.f32.mxu1 %v95_v49 }
  0x91   :  { %503 = vmatprep.mubr.f32.mxu0 %v97_v50 }
  0x93   :  { %334 = vmatmul.mubr.f32.gmra.mrb[40].mxu1 %v94_v51 }
  0x94   :  { %504 = vmatmul.mubr.f32.gmra.mrb[40].mxu0 %v96_v52 }
 0x116   :  { %v235_v54 = vpop.f32.mrb[0].mxu1 }
 0x117   :  { %v236_v55 = vadd.f32 %v1197_v53, %v235_v54  ;;  %v237_v56 = vpop.f32.mrb[1].mxu1  ;;  %v405_v57 = vpop.f32.mrb[0].mxu0 }
 0x118   :  { %v407_v58 = vpop.f32.mrb[1].mxu0 }
 0x119   :  { %v406_v59 = vadd.f32 %v405_v57, %v236_v55 }
 0x11a   :  { %v240_v60 = vpop.f32.mrb[2].mxu1 }
 0x11b   :  { %v509_v61 = vmax.f32 %v406_v59, 0.0  ;;  %v241_v62 = vadd.f32 %v1197_v53, %v240_v60  ;;  %v242_v63 = vpop.f32.mrb[3].mxu1  ;;  %v410_v1 = vpop.f32.mrb[2].mxu0 }
 0x11c   :  { %v412_v2 = vpop.f32.mrb[3].mxu0 }
 0x11d   :  { %531 = vst.msk [vmem:[%s1306_s3] sm:$0xff] %vm530_vm0, %v509_v61  ;;  %v411_v3 = vadd.f32 %v410_v1, %v241_v62 }
 0x11e   :  { %v245_v4 = vpop.f32.mrb[4].mxu1 }
 0x11f   :  { %v510_v5 = vmax.f32 %v411_v3, 0.0  ;;  %v246_v6 = vadd.f32 %v1197_v53, %v245_v4  ;;  %v247_v7 = vpop.f32.mrb[5].mxu1  ;;  %v415_v8 = vpop.f32.mrb[4].mxu0 }
 0x120   :  { %v417_v9 = vpop.f32.mrb[5].mxu0 }
 0x121   :  { %532 = vst.msk [vmem:[%s1306_s3 + $0x8] sm:$0xff] %vm530_vm0, %v510_v5  ;;  %v416_v10 = vadd.f32 %v415_v8, %v246_v6 }
 0x122   :  { %v250_v11 = vpop.f32.mrb[6].mxu1 }
 0x123   :  { %v511_v12 = vmax.f32 %v416_v10, 0.0  ;;  %v251_v13 = vadd.f32 %v1197_v53, %v250_v11  ;;  %v252_v14 = vpop.f32.mrb[7].mxu1  ;;  %v420_v15 = vpop.f32.mrb[6].mxu0 }
 0x124   :  { %v422_v16 = vpop.f32.mrb[7].mxu0 }
 0x125   :  { %533 = vst.msk [vmem:[%s1306_s3 + $0x10] sm:$0xff] %vm530_vm0, %v511_v12  ;;  %v421_v17 = vadd.f32 %v420_v15, %v251_v13 }
 0x126   :  { %v255_v18 = vpop.f32.mrb[8].mxu1 }
 0x127   :  { %v512_v19 = vmax.f32 %v421_v17, 0.0  ;;  %v256_v20 = vadd.f32 %v1197_v53, %v255_v18  ;;  %v257_v21 = vpop.f32.mrb[9].mxu1  ;;  %v425_v22 = vpop.f32.mrb[8].mxu0 }
 0x128   :  { %v427_v23 = vpop.f32.mrb[9].mxu0 }
 0x129   :  { %534 = vst.msk [vmem:[%s1306_s3 + $0x18] sm:$0xff] %vm530_vm0, %v512_v19  ;;  %v426_v24 = vadd.f32 %v425_v22, %v256_v20 }
 0x12a   :  { %v260_v25 = vpop.f32.mrb[10].mxu1 }
 0x12b   :  { %v513_v26 = vmax.f32 %v426_v24, 0.0  ;;  %v261_v27 = vadd.f32 %v1197_v53, %v260_v25  ;;  %v262_v28 = vpop.f32.mrb[11].mxu1  ;;  %v430_v29 = vpop.f32.mrb[10].mxu0 }
 0x12c   :  { %v432_v30 = vpop.f32.mrb[11].mxu0 }
 0x12d   :  { %535 = vst.msk [vmem:[%s1306_s3 + $0x20] sm:$0xff] %vm530_vm0, %v513_v26  ;;  %v431_v31 = vadd.f32 %v430_v29, %v261_v27 }
 0x12e   :  { %v265_v32 = vpop.f32.mrb[12].mxu1 }
 0x12f   :  { %v514_v33 = vmax.f32 %v431_v31, 0.0  ;;  %v266_v34 = vadd.f32 %v1197_v53, %v265_v32  ;;  %v267_v35 = vpop.f32.mrb[13].mxu1  ;;  %v435_v36 = vpop.f32.mrb[12].mxu0 }
 0x130   :  { %v437_v37 = vpop.f32.mrb[13].mxu0 }
 0x131   :  { %536 = vst.msk [vmem:[%s1306_s3 + $0x28] sm:$0xff] %vm530_vm0, %v514_v33  ;;  %v436_v38 = vadd.f32 %v435_v36, %v266_v34 }
 0x132   :  { %v270_v39 = vpop.f32.mrb[14].mxu1 }
 0x133   :  { %v515_v0 = vmax.f32 %v436_v38, 0.0  ;;  %v271_v40 = vadd.f32 %v1197_v53, %v270_v39  ;;  %v272_v41 = vpop.f32.mrb[15].mxu1  ;;  %v440_v42 = vpop.f32.mrb[14].mxu0 }
 0x134   :  { %v442_v43 = vpop.f32.mrb[15].mxu0 }
 0x135   :  { %537 = vst.msk [vmem:[%s1306_s3 + $0x30] sm:$0xff] %vm530_vm0, %v515_v0  ;;  %v441_v44 = vadd.f32 %v440_v42, %v271_v40 }
 0x136   :  { %v275_v45 = vpop.f32.mrb[16].mxu1 }
 0x137   :  { %v516_v46 = vmax.f32 %v441_v44, 0.0  ;;  %v276_v47 = vadd.f32 %v1197_v53, %v275_v45  ;;  %v277_v48 = vpop.f32.mrb[17].mxu1  ;;  %v445_v49 = vpop.f32.mrb[16].mxu0 }
 0x138   :  { %v447_v50 = vpop.f32.mrb[17].mxu0 }
 0x139   :  { %538 = vst.msk [vmem:[%s1306_s3 + $0x38] sm:$0xff] %vm530_vm0, %v516_v46  ;;  %v446_v51 = vadd.f32 %v445_v49, %v276_v47 }
 0x13a   :  { %v280_v52 = vpop.f32.mrb[18].mxu1 }
 0x13b   :  { %v517_v54 = vmax.f32 %v446_v51, 0.0  ;;  %v281_v55 = vadd.f32 %v1197_v53, %v280_v52  ;;  %v282_v56 = vpop.f32.mrb[19].mxu1  ;;  %v450_v57 = vpop.f32.mrb[18].mxu0 }
 0x13c   :  { %v452_v58 = vpop.f32.mrb[19].mxu0 }
 0x13d   :  { %539 = vst.msk [vmem:[%s1306_s3 + $0x40] sm:$0xff] %vm530_vm0, %v517_v54  ;;  %v451_v59 = vadd.f32 %v450_v57, %v281_v55 }
 0x13e   :  { %v285_v60 = vpop.f32.mrb[20].mxu1 }
 0x13f   :  { %v518_v61 = vmax.f32 %v451_v59, 0.0  ;;  %v286_v62 = vadd.f32 %v1197_v53, %v285_v60  ;;  %v287_v63 = vpop.f32.mrb[21].mxu1  ;;  %v455_v1 = vpop.f32.mrb[20].mxu0 }
 0x140   :  { %v457_v2 = vpop.f32.mrb[21].mxu0 }
 0x141   :  { %540 = vst.msk [vmem:[%s1306_s3 + $0x48] sm:$0xff] %vm530_vm0, %v518_v61  ;;  %v456_v3 = vadd.f32 %v455_v1, %v286_v62 }
 0x142   :  { %v290_v4 = vpop.f32.mrb[22].mxu1 }
 0x143   :  { %v519_v5 = vmax.f32 %v456_v3, 0.0  ;;  %v291_v6 = vadd.f32 %v1197_v53, %v290_v4  ;;  %v292_v7 = vpop.f32.mrb[23].mxu1  ;;  %v460_v8 = vpop.f32.mrb[22].mxu0 }
 0x144   :  { %v462_v9 = vpop.f32.mrb[23].mxu0 }
 0x145   :  { %541 = vst.msk [vmem:[%s1306_s3 + $0x50] sm:$0xff] %vm530_vm0, %v519_v5  ;;  %v461_v10 = vadd.f32 %v460_v8, %v291_v6 }
 0x146   :  { %v295_v11 = vpop.f32.mrb[24].mxu1 }
 0x147   :  { %v520_v12 = vmax.f32 %v461_v10, 0.0  ;;  %v296_v13 = vadd.f32 %v1197_v53, %v295_v11  ;;  %v297_v14 = vpop.f32.mrb[25].mxu1  ;;  %v465_v15 = vpop.f32.mrb[24].mxu0 }
 0x148   :  { %v467_v16 = vpop.f32.mrb[25].mxu0 }
 0x149   :  { %542 = vst.msk [vmem:[%s1306_s3 + $0x58] sm:$0xff] %vm530_vm0, %v520_v12  ;;  %v466_v17 = vadd.f32 %v465_v15, %v296_v13 }
 0x14a   :  { %v300_v18 = vpop.f32.mrb[26].mxu1 }
 0x14b   :  { %v521_v19 = vmax.f32 %v466_v17, 0.0  ;;  %v301_v20 = vadd.f32 %v1197_v53, %v300_v18  ;;  %v302_v21 = vpop.f32.mrb[27].mxu1  ;;  %v470_v22 = vpop.f32.mrb[26].mxu0 }
 0x14c   :  { %v472_v23 = vpop.f32.mrb[27].mxu0 }
 0x14d   :  { %543 = vst.msk [vmem:[%s1306_s3 + $0x60] sm:$0xff] %vm530_vm0, %v521_v19  ;;  %v471_v24 = vadd.f32 %v470_v22, %v301_v20 }
 0x14e   :  { %v305_v25 = vpop.f32.mrb[28].mxu1 }
 0x14f   :  { %v522_v26 = vmax.f32 %v471_v24, 0.0  ;;  %v306_v27 = vadd.f32 %v1197_v53, %v305_v25  ;;  %v307_v28 = vpop.f32.mrb[29].mxu1  ;;  %v475_v29 = vpop.f32.mrb[28].mxu0 }
 0x150   :  { %v477_v30 = vpop.f32.mrb[29].mxu0 }
 0x151   :  { %544 = vst.msk [vmem:[%s1306_s3 + $0x68] sm:$0xff] %vm530_vm0, %v522_v26  ;;  %v476_v31 = vadd.f32 %v475_v29, %v306_v27 }
 0x152   :  { %v310_v32 = vpop.f32.mrb[30].mxu1 }
 0x153   :  { %v523_v33 = vmax.f32 %v476_v31, 0.0  ;;  %v311_v34 = vadd.f32 %v1197_v53, %v310_v32  ;;  %v312_v35 = vpop.f32.mrb[31].mxu1  ;;  %v480_v36 = vpop.f32.mrb[30].mxu0 }
 0x154   :  { %v482_v37 = vpop.f32.mrb[31].mxu0 }
 0x155   :  { %545 = vst.msk [vmem:[%s1306_s3 + $0x70] sm:$0xff] %vm530_vm0, %v523_v33  ;;  %v481_v38 = vadd.f32 %v480_v36, %v311_v34 }
 0x156   :  { %v315_v39 = vpop.f32.mrb[32].mxu1 }
 0x157   :  { %v524_v0 = vmax.f32 %v481_v38, 0.0  ;;  %v316_v40 = vadd.f32 %v1197_v53, %v315_v39  ;;  %v317_v41 = vpop.f32.mrb[33].mxu1  ;;  %v485_v42 = vpop.f32.mrb[32].mxu0 }
 0x158   :  { %v487_v43 = vpop.f32.mrb[33].mxu0 }
 0x159   :  { %546 = vst.msk [vmem:[%s1306_s3 + $0x78] sm:$0xff] %vm530_vm0, %v524_v0  ;;  %v486_v44 = vadd.f32 %v485_v42, %v316_v40 }
 0x15a   :  { %v320_v45 = vpop.f32.mrb[34].mxu1 }
 0x15b   :  { %v525_v46 = vmax.f32 %v486_v44, 0.0  ;;  %v321_v47 = vadd.f32 %v1197_v53, %v320_v45  ;;  %v322_v48 = vpop.f32.mrb[35].mxu1  ;;  %v490_v49 = vpop.f32.mrb[34].mxu0 }
 0x15c   :  { %v492_v50 = vpop.f32.mrb[35].mxu0 }
 0x15d   :  { %547 = vst.msk [vmem:[%s1306_s3 + $0x80] sm:$0xff] %vm530_vm0, %v525_v46  ;;  %v491_v51 = vadd.f32 %v490_v49, %v321_v47 }
 0x15e   :  { %v325_v52 = vpop.f32.mrb[36].mxu1 }
 0x15f   :  { %v526_v54 = vmax.f32 %v491_v51, 0.0  ;;  %v326_v55 = vadd.f32 %v1197_v53, %v325_v52  ;;  %v327_v56 = vpop.f32.mrb[37].mxu1  ;;  %v495_v57 = vpop.f32.mrb[36].mxu0 }
 0x160   :  { %v497_v58 = vpop.f32.mrb[37].mxu0 }
 0x161   :  { %548 = vst.msk [vmem:[%s1306_s3 + $0x88] sm:$0xff] %vm530_vm0, %v526_v54  ;;  %v496_v59 = vadd.f32 %v495_v57, %v326_v55 }
 0x162   :  { %v330_v60 = vpop.f32.mrb[38].mxu1 }
 0x163   :  { %v527_v61 = vmax.f32 %v496_v59, 0.0  ;;  %v331_v62 = vadd.f32 %v1197_v53, %v330_v60  ;;  %v332_v63 = vpop.f32.mrb[39].mxu1  ;;  %v500_v1 = vpop.f32.mrb[38].mxu0 }
 0x164   :  { %v502_v2 = vpop.f32.mrb[39].mxu0 }
 0x165   :  { %549 = vst.msk [vmem:[%s1306_s3 + $0x90] sm:$0xff] %vm530_vm0, %v527_v61  ;;  %v501_v3 = vadd.f32 %v500_v1, %v331_v62 }
 0x166   :  { %v335_v4 = vpop.f32.mrb[40].mxu1 }
 0x167   :  { %v528_v5 = vmax.f32 %v501_v3, 0.0  ;;  %v336_v6 = vadd.f32 %v1197_v53, %v335_v4  ;;  %v337_v7 = vpop.f32.mrb[41].mxu1  ;;  %v505_v8 = vpop.f32.mrb[40].mxu0 }
 0x168   :  { %v507_v9 = vpop.f32.mrb[41].mxu0 }
 0x169   :  { %550 = vst.msk [vmem:[%s1306_s3 + $0x98] sm:$0xff] %vm530_vm0, %v528_v5  ;;  %v506_v10 = vadd.f32 %v505_v8, %v336_v6 }
 0x16b   :  { %v529_v11 = vmax.f32 %v506_v10, 0.0 }
 0x16d   :  { %552 = vst.msk [vmem:[%s1306_s3 + $0xa0] sm:$0x3] %vm551_vm1, %v529_v11 }

// kernel: dueling_dqn_forward_pallas.6
= control target key start
LH: loop header
LB: loop body
LE: loop exit
PB: predicated region body
PF: predicated region fallthrough
CT: control target
= control target key end

     0   :  { %vm939_vm0 = vmmov 0   ;;  %vm158_vm1 = vcmask 523264   ;;  %vm613_vm2 = vcmask 517120   ;;  %s1488_s1 = inlined_call_operand.vmem [shape: f32[576,64], index: 1, kind: input, shape index: {}]   ;;  %s1489_s0 = inlined_call_operand.vmem [shape: f32[98,576], index: 0, kind: input, shape index: {}]   ;;  %s1490_s2 = inlined_call_operand.vmem [shape: f32[1,64], index: 2, kind: input, shape index: {}]   ;;  %s1491_s3 = inlined_call_operand.vmem [shape: f32[98,64], index: 3, kind: output, shape index: {}]  }
   0x1   :  { %v95_v0 = vld [vmem:[%s1488_s1 + $0x80] sm:$0xff]  ;;  %v96_v1 = vld [vmem:[%s1488_s1 + $0x88] sm:$0xff]  ;;  %v97_v11 = vld [vmem:[%s1488_s1 + $0x90] sm:$0xff] }
   0x2   :  { %v127_v2 = vld [vmem:[%s1488_s1 + $0x180] sm:$0xff]  ;;  %v851_v3 = vpack.c.bf16 %v96_v1, %v95_v0  ;;  %v128_v4 = vld [vmem:[%s1488_s1 + $0x188] sm:$0xff]  ;;  %v98_v13 = vld [vmem:[%s1488_s1 + $0x98] sm:$0xff] }
   0x3   :  { %v79_v5 = vld [vmem:[%s1488_s1] sm:$0xff]  ;;  %v80_v6 = vld [vmem:[%s1488_s1 + $0x8] sm:$0xff]  ;;  %v883_v7 = vpack.c.bf16 %v128_v4, %v127_v2  ;;  %v129_v14 = vld [vmem:[%s1488_s1 + $0x190] sm:$0xff]  ;;  %v855_v16 = vpack.c.bf16 %v98_v13, %v97_v11 }
   0x4   :  { %v853_v8 = vpack.c.bf16 %v80_v6, %v79_v5  ;;  %v111_v9 = vld [vmem:[%s1488_s1 + $0x100] sm:$0xff]  ;;  %v112_v10 = vld [vmem:[%s1488_s1 + $0x108] sm:$0xff]  ;;  %852 = vmatprep.subr.bf16.mxu0 %v851_v3  ;;  %v130_v15 = vld [vmem:[%s1488_s1 + $0x198] sm:$0xff] }
   0x5   :  { %v885_v12 = vpack.c.bf16 %v112_v10, %v111_v9  ;;  %884 = vmatprep.subr.bf16.mxu1 %v883_v7  ;;  %v887_v17 = vpack.c.bf16 %v130_v15, %v129_v14  ;;  %v81_v18 = vld [vmem:[%s1488_s1 + $0x10] sm:$0xff]  ;;  %v82_v19 = vld [vmem:[%s1488_s1 + $0x18] sm:$0xff]  ;;  %v99_v23 = vld [vmem:[%s1488_s1 + $0xa0] sm:$0xff] }
   0x6   :  { %854 = vmatpush3.bf16.msra.mxu0 %v853_v8  ;;  %v113_v20 = vld [vmem:[%s1488_s1 + $0x110] sm:$0xff]  ;;  %v857_v21 = vpack.c.bf16 %v82_v19, %v81_v18  ;;  %v114_v22 = vld [vmem:[%s1488_s1 + $0x118] sm:$0xff]  ;;  %v100_v24 = vld [vmem:[%s1488_s1 + $0xa8] sm:$0xff] }
   0x7   :  { %886 = vmatpush3.bf16.msra.mxu1 %v885_v12  ;;  %856 = vmatprep.subr.bf16.mxu0 %v855_v16  ;;  %v889_v25 = vpack.c.bf16 %v114_v22, %v113_v20  ;;  %v859_v26 = vpack.c.bf16 %v100_v24, %v99_v23  ;;  %v131_v27 = vld [vmem:[%s1488_s1 + $0x1a0] sm:$0xff]  ;;  %v132_v28 = vld [vmem:[%s1488_s1 + $0x1a8] sm:$0xff]  ;;  %v101_v35 = vld [vmem:[%s1488_s1 + $0xb0] sm:$0xff] }
   0x8   :  { %888 = vmatprep.subr.bf16.mxu1 %v887_v17  ;;  %v83_v29 = vld [vmem:[%s1488_s1 + $0x20] sm:$0xff]  ;;  %v891_v30 = vpack.c.bf16 %v132_v28, %v131_v27  ;;  %v84_v31 = vld [vmem:[%s1488_s1 + $0x28] sm:$0xff]  ;;  %v102_v36 = vld [vmem:[%s1488_s1 + $0xb8] sm:$0xff] }
   0x9   :  { %v115_v32 = vld [vmem:[%s1488_s1 + $0x120] sm:$0xff]  ;;  %v116_v33 = vld [vmem:[%s1488_s1 + $0x128] sm:$0xff]  ;;  %v861_v34 = vpack.c.bf16 %v84_v31, %v83_v29  ;;  %v133_v37 = vld [vmem:[%s1488_s1 + $0x1b0] sm:$0xff]  ;;  %v863_v39 = vpack.c.bf16 %v102_v36, %v101_v35 }
   0xa   :  { %858 = vmatpush3.bf16.msra.mxu0 %v857_v21  ;;  %v893_v38 = vpack.c.bf16 %v116_v33, %v115_v32  ;;  %v134_v40 = vld [vmem:[%s1488_s1 + $0x1b8] sm:$0xff]  ;;  %v85_v41 = vld [vmem:[%s1488_s1 + $0x30] sm:$0xff]  ;;  %v103_v46 = vld [vmem:[%s1488_s1 + $0xc0] sm:$0xff] }
   0xb   :  { %890 = vmatpush3.bf16.msra.mxu1 %v889_v25  ;;  %860 = vmatprep.subr.bf16.mxu0 %v859_v26  ;;  %v86_v42 = vld [vmem:[%s1488_s1 + $0x38] sm:$0xff]  ;;  %v895_v43 = vpack.c.bf16 %v134_v40, %v133_v37  ;;  %v117_v44 = vld [vmem:[%s1488_s1 + $0x130] sm:$0xff]  ;;  %v104_v47 = vld [vmem:[%s1488_s1 + $0xc8] sm:$0xff] }
   0xc   :  { %892 = vmatprep.subr.bf16.mxu1 %v891_v30  ;;  %v118_v45 = vld [vmem:[%s1488_s1 + $0x138] sm:$0xff]  ;;  %v135_v48 = vld [vmem:[%s1488_s1 + $0x1c0] sm:$0xff]  ;;  %v136_v49 = vld [vmem:[%s1488_s1 + $0x1c8] sm:$0xff]  ;;  %v865_v50 = vpack.c.bf16 %v86_v42, %v85_v41  ;;  %v867_v52 = vpack.c.bf16 %v104_v47, %v103_v46 }
   0xd   :  { %v897_v51 = vpack.c.bf16 %v118_v45, %v117_v44  ;;  %v87_v53 = vld [vmem:[%s1488_s1 + $0x40] sm:$0xff]  ;;  %v88_v54 = vld [vmem:[%s1488_s1 + $0x48] sm:$0xff]  ;;  %v899_v56 = vpack.c.bf16 %v136_v49, %v135_v48  ;;  %v105_v58 = vld [vmem:[%s1488_s1 + $0xd0] sm:$0xff] }
   0xe   :  { %862 = vmatpush3.bf16.msra.mxu0 %v861_v34  ;;  %v119_v55 = vld [vmem:[%s1488_s1 + $0x140] sm:$0xff]  ;;  %v120_v57 = vld [vmem:[%s1488_s1 + $0x148] sm:$0xff]  ;;  %v106_v59 = vld [vmem:[%s1488_s1 + $0xd8] sm:$0xff]  ;;  %v869_v62 = vpack.c.bf16 %v88_v54, %v87_v53 }
   0xf   :  { %894 = vmatpush3.bf16.msra.mxu1 %v893_v38  ;;  %864 = vmatprep.subr.bf16.mxu0 %v863_v39  ;;  %v137_v60 = vld [vmem:[%s1488_s1 + $0x1d0] sm:$0xff]  ;;  %v138_v61 = vld [vmem:[%s1488_s1 + $0x1d8] sm:$0xff]  ;;  %v901_v63 = vpack.c.bf16 %v120_v57, %v119_v55  ;;  %v871_v0 = vpack.c.bf16 %v106_v59, %v105_v58  ;;  %v107_v6 = vld [vmem:[%s1488_s1 + $0xe0] sm:$0xff]  ;;  %v938_v39 = vmov 0.0|0.0  }
  0x10   :  { %896 = vmatprep.subr.bf16.mxu1 %v895_v43  ;;  %v89_v1 = vld [vmem:[%s1488_s1 + $0x50] sm:$0xff]  ;;  %v90_v2 = vld [vmem:[%s1488_s1 + $0x58] sm:$0xff]  ;;  %v903_v4 = vpack.c.bf16 %v138_v61, %v137_v60  ;;  %v108_v7 = vld [vmem:[%s1488_s1 + $0xe8] sm:$0xff] }
  0x11   :  { %v121_v3 = vld [vmem:[%s1488_s1 + $0x150] sm:$0xff]  ;;  %v122_v5 = vld [vmem:[%s1488_s1 + $0x158] sm:$0xff]  ;;  %v139_v8 = vld [vmem:[%s1488_s1 + $0x1e0] sm:$0xff]  ;;  %v873_v10 = vpack.c.bf16 %v90_v2, %v89_v1  ;;  %v875_v14 = vpack.c.bf16 %v108_v7, %v107_v6 }
  0x12   :  { %866 = vmatpush3.bf16.msra.mxu0 %v865_v50  ;;  %v140_v9 = vld [vmem:[%s1488_s1 + $0x1e8] sm:$0xff]  ;;  %v91_v11 = vld [vmem:[%s1488_s1 + $0x60] sm:$0xff]  ;;  %v905_v13 = vpack.c.bf16 %v122_v5, %v121_v3  ;;  %v17_v17 = vld [vmem:[%s1489_s0 + $0x18] sm:$0xff] }
  0x13   :  { %898 = vmatpush3.bf16.msra.mxu1 %v897_v51  ;;  %868 = vmatprep.subr.bf16.mxu0 %v867_v52  ;;  %v92_v12 = vld [vmem:[%s1488_s1 + $0x68] sm:$0xff]  ;;  %v123_v15 = vld [vmem:[%s1488_s1 + $0x160] sm:$0xff]  ;;  %v907_v18 = vpack.c.bf16 %v140_v9, %v139_v8  ;;  %v109_v20 = vld [vmem:[%s1488_s1 + $0xf0] sm:$0xff] }
  0x14   :  { %900 = vmatprep.subr.bf16.mxu1 %v899_v56  ;;  %v15_v16 = vld [vmem:[%s1489_s0 + $0x8] sm:$0xff]  ;;  %v110_v21 = vld [vmem:[%s1488_s1 + $0xf8] sm:$0xff]  ;;  %v141_v22 = vld [vmem:[%s1488_s1 + $0x1f0] sm:$0xff]  ;;  %392 = vmatprep.mubr.f32.mxu1 %v17_v17  ;;  %v877_v24 = vpack.c.bf16 %v92_v12, %v91_v11 }
  0x15   :  { %v124_v19 = vld [vmem:[%s1488_s1 + $0x168] sm:$0xff]  ;;  %262 = vmatprep.mubr.f32.mxu0 %v15_v16  ;;  %v142_v23 = vld [vmem:[%s1488_s1 + $0x1f8] sm:$0xff]  ;;  %v879_v26 = vpack.c.bf16 %v110_v21, %v109_v20  ;;  %v93_v27 = vld [vmem:[%s1488_s1 + $0x70] sm:$0xff] }
  0x16   :  { %870 = vmatpush3.bf16.msra.mxu0 %v869_v62  ;;  %v909_v25 = vpack.c.bf16 %v124_v19, %v123_v15  ;;  %v94_v28 = vld [vmem:[%s1488_s1 + $0x78] sm:$0xff]  ;;  %v911_v29 = vpack.c.bf16 %v142_v23, %v141_v22  ;;  %v125_v30 = vld [vmem:[%s1488_s1 + $0x170] sm:$0xff]  ;;  %v143_v34 = vld [vmem:[%s1488_s1 + $0x200] sm:$0xff] }
  0x17   :  { %902 = vmatpush3.bf16.msra.mxu1 %v901_v63  ;;  %872 = vmatprep.subr.bf16.mxu0 %v871_v0  ;;  %v126_v31 = vld [vmem:[%s1488_s1 + $0x178] sm:$0xff]  ;;  %v881_v32 = vpack.c.bf16 %v94_v28, %v93_v27  ;;  %v144_v35 = vld [vmem:[%s1488_s1 + $0x208] sm:$0xff]  ;;  %v14_v36 = vld [vmem:[%s1489_s0] sm:$0xff] }
  0x18   :  { %904 = vmatprep.subr.bf16.mxu1 %v903_v4  ;;  %v913_v33 = vpack.c.bf16 %v126_v31, %v125_v30  ;;  %v916_v37 = vpack.c.bf16 %v144_v35, %v143_v34  ;;  %v16_v38 = vld [vmem:[%s1489_s0 + $0x10] sm:$0xff]  ;;  %v22_v41 = vld [vmem:[%s1489_s0 + $0x40] sm:$0xff]  ;;  %v146_v43 = vld [vmem:[%s1488_s1 + $0x218] sm:$0xff] }
  0x19   :  { %v20_v40 = vld [vmem:[%s1489_s0 + $0x30] sm:$0xff]  ;;  %v19_v44 = vld [vmem:[%s1489_s0 + $0x28] sm:$0xff]  ;;  %v21_v45 = vld [vmem:[%s1489_s0 + $0x38] sm:$0xff] }
  0x1a   :  { %874 = vmatpush3.bf16.msra.mxu0 %v873_v10  ;;  %v145_v42 = vld [vmem:[%s1488_s1 + $0x210] sm:$0xff]  ;;  %v25_v46 = vld [vmem:[%s1489_s0 + $0x58] sm:$0xff]  ;;  %v27_v48 = vld [vmem:[%s1489_s0 + $0x68] sm:$0xff] }
  0x1b   :  { %906 = vmatpush3.bf16.msra.mxu1 %v905_v13  ;;  %876 = vmatprep.subr.bf16.mxu0 %v875_v14  ;;  %v919_v47 = vpack.c.bf16 %v146_v43, %v145_v42  ;;  %v147_v49 = vld [vmem:[%s1488_s1 + $0x220] sm:$0xff]  ;;  %v148_v50 = vld [vmem:[%s1488_s1 + $0x228] sm:$0xff]  ;;  %v24_v51 = vld [vmem:[%s1489_s0 + $0x50] sm:$0xff] }
  0x1c   :  { %908 = vmatprep.subr.bf16.mxu1 %v907_v18  ;;  %v26_v52 = vld [vmem:[%s1489_s0 + $0x60] sm:$0xff]  ;;  %v922_v54 = vpack.c.bf16 %v148_v50, %v147_v49  ;;  %v32_v55 = vld [vmem:[%s1489_s0 + $0x90] sm:$0xff]  ;;  %v150_v57 = vld [vmem:[%s1488_s1 + $0x238] sm:$0xff] }
  0x1d   :  { %v30_v53 = vld [vmem:[%s1489_s0 + $0x80] sm:$0xff]  ;;  %v149_v56 = vld [vmem:[%s1488_s1 + $0x230] sm:$0xff]  ;;  %v29_v58 = vld [vmem:[%s1489_s0 + $0x78] sm:$0xff] }
  0x1e   :  { %878 = vmatpush3.bf16.msra.mxu0 %v877_v24  ;;  %v31_v59 = vld [vmem:[%s1489_s0 + $0x88] sm:$0xff]  ;;  %v925_v61 = vpack.c.bf16 %v150_v57, %v149_v56  ;;  %v37_v62 = vld [vmem:[%s1489_s0 + $0xb8] sm:$0xff]  ;;  %v34_v63 = vld [vmem:[%s1489_s0 + $0xa0] sm:$0xff] }
  0x1f   :  { %910 = vmatpush3.bf16.msra.mxu1 %v909_v25  ;;  %880 = vmatprep.subr.bf16.mxu0 %v879_v26  ;;  %v35_v60 = vld [vmem:[%s1489_s0 + $0xa8] sm:$0xff]  ;;  %v36_v0 = vld [vmem:[%s1489_s0 + $0xb0] sm:$0xff]  ;;  %v42_v2 = vld [vmem:[%s1489_s0 + $0xe0] sm:$0xff] }
  0x20   :  { %912 = vmatprep.subr.bf16.mxu1 %v911_v29  ;;  %v40_v1 = vld [vmem:[%s1489_s0 + $0xd0] sm:$0xff]  ;;  %v39_v3 = vld [vmem:[%s1489_s0 + $0xc8] sm:$0xff]  ;;  %v41_v4 = vld [vmem:[%s1489_s0 + $0xd8] sm:$0xff] }
  0x21   :  { %v45_v5 = vld [vmem:[%s1489_s0 + $0xf8] sm:$0xff]  ;;  %v47_v6 = vld [vmem:[%s1489_s0 + $0x108] sm:$0xff]  ;;  %v44_v7 = vld [vmem:[%s1489_s0 + $0xf0] sm:$0xff] }
  0x22   :  { %882 = vmatpush3.bf16.msra.mxu0 %v881_v32  ;;  %v46_v8 = vld [vmem:[%s1489_s0 + $0x100] sm:$0xff]  ;;  %v52_v10 = vld [vmem:[%s1489_s0 + $0x130] sm:$0xff]  ;;  %v49_v11 = vld [vmem:[%s1489_s0 + $0x118] sm:$0xff] }
  0x23   :  { %914 = vmatpush3.bf16.msra.mxu1 %v913_v33  ;;  %915 = vmatprep.subr.bf16.mxu0 %v938_v39  ;;  %v50_v9 = vld [vmem:[%s1489_s0 + $0x120] sm:$0xff]  ;;  %v51_v12 = vld [vmem:[%s1489_s0 + $0x128] sm:$0xff]  ;;  %v57_v14 = vld [vmem:[%s1489_s0 + $0x158] sm:$0xff]  ;;  %v940_v33 = vmov 0.0  }
  0x24   :  { %927 = vmatprep.subr.bf16.mxu1 %v938_v39  ;;  %v55_v13 = vld [vmem:[%s1489_s0 + $0x148] sm:$0xff]  ;;  %v54_v15 = vld [vmem:[%s1489_s0 + $0x140] sm:$0xff]  ;;  %v56_v16 = vld [vmem:[%s1489_s0 + $0x150] sm:$0xff] }
  0x25   :  { %263 = vmatmul.mubr.f32.vlgmr.msra.gmra.mrb[0].mxu0 %v14_v36  ;;  %v60_v17 = vld [vmem:[%s1489_s0 + $0x170] sm:$0xff]  ;;  %v62_v18 = vld [vmem:[%s1489_s0 + $0x180] sm:$0xff]  ;;  %v59_v19 = vld [vmem:[%s1489_s0 + $0x168] sm:$0xff] }
  0x26   :  { %393 = vmatmul.mubr.f32.vlgmr.msra.gmra.mrb[0].mxu1 %v16_v38  ;;  %917 = vmatpush3.bf16.msra.mxu0 %v916_v37  ;;  %v61_v20 = vld [vmem:[%s1489_s0 + $0x178] sm:$0xff]  ;;  %v67_v22 = vld [vmem:[%s1489_s0 + $0x1a8] sm:$0xff]  ;;  %v64_v23 = vld [vmem:[%s1489_s0 + $0x190] sm:$0xff] }
  0x27   :  { %267 = vmatprep.mubr.f32.mxu0 %v20_v40  ;;  %397 = vmatprep.mubr.f32.mxu1 %v22_v41  ;;  %v65_v21 = vld [vmem:[%s1489_s0 + $0x198] sm:$0xff]  ;;  %v66_v24 = vld [vmem:[%s1489_s0 + $0x1a0] sm:$0xff]  ;;  %v72_v26 = vld [vmem:[%s1489_s0 + $0x1d0] sm:$0xff] }
  0x28   :  { %931 = vmatpush3.bf16.msra.mxu1 %v916_v37  ;;  %918 = vmatprep.subr.bf16.mxu0 %v938_v39  ;;  %v70_v25 = vld [vmem:[%s1489_s0 + $0x1c0] sm:$0xff]  ;;  %v69_v27 = vld [vmem:[%s1489_s0 + $0x1b8] sm:$0xff]  ;;  %v71_v28 = vld [vmem:[%s1489_s0 + $0x1c8] sm:$0xff] }
  0x29   :  { %268 = vmatmul.mubr.f32.gmra.mrb[2].mxu0 %v19_v44  ;;  %928 = vmatprep.subr.bf16.mxu1 %v938_v39  ;;  %v75_v29 = vld [vmem:[%s1489_s0 + $0x1e8] sm:$0x3]  ;;  %v77_v30 = vld [vmem:[%s1489_s0 + $0x1f8] sm:$0x3]  ;;  %v74_v31 = vld [vmem:[%s1489_s0 + $0x1e0] sm:$0x3] }
  0x2a   :  { %398 = vmatmul.mubr.f32.gmra.mrb[2].mxu1 %v21_v45  ;;  %272 = vmatprep.mubr.f32.mxu0 %v25_v46  ;;  %v76_v32 = vld [vmem:[%s1489_s0 + $0x1f0] sm:$0x3]  ;;  %v18_v34 = vld [vmem:[%s1489_s0 + $0x20] sm:$0xff]  ;;  %v53_v35 = vld [vmem:[%s1489_s0 + $0x138] sm:$0xff] }
  0x2b   :  { %402 = vmatprep.mubr.f32.mxu1 %v27_v48  ;;  %920 = vmatpush3.bf16.msra.mxu0 %v919_v47  ;;  %v23_v36 = vld [vmem:[%s1489_s0 + $0x48] sm:$0xff]  ;;  %v58_v37 = vld [vmem:[%s1489_s0 + $0x160] sm:$0xff]  ;;  %v28_v38 = vld [vmem:[%s1489_s0 + $0x70] sm:$0xff] }
  0x2c   :  { %932 = vmatpush3.bf16.msra.mxu1 %v919_v47  ;;  %921 = vmatprep.subr.bf16.mxu0 %v938_v39  ;;  %v33_v40 = vld [vmem:[%s1489_s0 + $0x98] sm:$0xff]  ;;  %v68_v41 = vld [vmem:[%s1489_s0 + $0x1b0] sm:$0xff]  ;;  %v38_v42 = vld [vmem:[%s1489_s0 + $0xc0] sm:$0xff] }
  0x2d   :  { %273 = vmatmul.mubr.f32.gmra.mrb[4].mxu0 %v24_v51  ;;  %929 = vmatprep.subr.bf16.mxu1 %v938_v39  ;;  %v73_v43 = vld [vmem:[%s1489_s0 + $0x1d8] sm:$0xff]  ;;  %v43_v44 = vld [vmem:[%s1489_s0 + $0xe8] sm:$0xff]  ;;  %v78_v45 = vld [vmem:[%s1489_s0 + $0x200] sm:$0x3] }
  0x2e   :  { %403 = vmatmul.mubr.f32.gmra.mrb[4].mxu1 %v26_v52  ;;  %277 = vmatprep.mubr.f32.mxu0 %v30_v53  ;;  %v48_v46 = vld [vmem:[%s1489_s0 + $0x110] sm:$0xff]  ;;  %v1401_v48 = vld [vmem:[%s1490_s2] ss:$0 sm:$0xff] }
  0x2f   :  { %407 = vmatprep.mubr.f32.mxu1 %v32_v55  ;;  %923 = vmatpush3.bf16.msra.mxu0 %v922_v54 }
  0x30   :  { %933 = vmatpush3.bf16.msra.mxu1 %v922_v54  ;;  %924 = vmatprep.subr.bf16.mxu0 %v938_v39 }
  0x31   :  { %278 = vmatmul.mubr.f32.gmra.mrb[6].mxu0 %v29_v58  ;;  %930 = vmatprep.subr.bf16.mxu1 %v938_v39  ;;  %v63_v39 = vld [vmem:[%s1489_s0 + $0x188] sm:$0xff] }
  0x32   :  { %408 = vmatmul.mubr.f32.gmra.mrb[6].mxu1 %v31_v59  ;;  %282 = vmatprep.mubr.f32.mxu0 %v35_v60 }
  0x33   :  { %412 = vmatprep.mubr.f32.mxu1 %v37_v62  ;;  %926 = vmatpush3.bf16.msra.mxu0 %v925_v61 }
  0x34   :  { %934 = vmatpush3.bf16.msra.mxu1 %v925_v61 }
  0x35   :  { %283 = vmatmul.mubr.f32.gmra.mrb[8].mxu0 %v34_v63 }
  0x36   :  { %413 = vmatmul.mubr.f32.gmra.mrb[8].mxu1 %v36_v0  ;;  %287 = vmatprep.mubr.f32.mxu0 %v40_v1 }
  0x37   :  { %417 = vmatprep.mubr.f32.mxu1 %v42_v2 }
  0x39   :  { %288 = vmatmul.mubr.f32.gmra.mrb[10].mxu0 %v39_v3 }
  0x3a   :  { %418 = vmatmul.mubr.f32.gmra.mrb[10].mxu1 %v41_v4  ;;  %292 = vmatprep.mubr.f32.mxu0 %v45_v5 }
  0x3b   :  { %422 = vmatprep.mubr.f32.mxu1 %v47_v6 }
  0x3d   :  { %293 = vmatmul.mubr.f32.gmra.mrb[12].mxu0 %v44_v7 }
  0x3e   :  { %423 = vmatmul.mubr.f32.gmra.mrb[12].mxu1 %v46_v8  ;;  %297 = vmatprep.mubr.f32.mxu0 %v50_v9 }
  0x3f   :  { %427 = vmatprep.mubr.f32.mxu1 %v52_v10 }
  0x41   :  { %298 = vmatmul.mubr.f32.gmra.mrb[14].mxu0 %v49_v11 }
  0x42   :  { %428 = vmatmul.mubr.f32.gmra.mrb[14].mxu1 %v51_v12  ;;  %302 = vmatprep.mubr.f32.mxu0 %v55_v13 }
  0x43   :  { %432 = vmatprep.mubr.f32.mxu1 %v57_v14 }
  0x45   :  { %303 = vmatmul.mubr.f32.gmra.mrb[16].mxu0 %v54_v15 }
  0x46   :  { %433 = vmatmul.mubr.f32.gmra.mrb[16].mxu1 %v56_v16  ;;  %307 = vmatprep.mubr.f32.mxu0 %v60_v17 }
  0x47   :  { %437 = vmatprep.mubr.f32.mxu1 %v62_v18 }
  0x49   :  { %308 = vmatmul.mubr.f32.gmra.mrb[18].mxu0 %v59_v19 }
  0x4a   :  { %438 = vmatmul.mubr.f32.gmra.mrb[18].mxu1 %v61_v20  ;;  %312 = vmatprep.mubr.f32.mxu0 %v65_v21 }
  0x4b   :  { %442 = vmatprep.mubr.f32.mxu1 %v67_v22 }
  0x4d   :  { %313 = vmatmul.mubr.f32.gmra.mrb[20].mxu0 %v64_v23 }
  0x4e   :  { %443 = vmatmul.mubr.f32.gmra.mrb[20].mxu1 %v66_v24  ;;  %317 = vmatprep.mubr.f32.mxu0 %v70_v25 }
  0x4f   :  { %447 = vmatprep.mubr.f32.mxu1 %v72_v26 }
  0x51   :  { %318 = vmatmul.mubr.f32.gmra.mrb[22].mxu0 %v69_v27 }
  0x52   :  { %448 = vmatmul.mubr.f32.gmra.mrb[22].mxu1 %v71_v28  ;;  %322 = vmatprep.mubr.f32.mxu0 %v75_v29 }
  0x53   :  { %452 = vmatprep.mubr.f32.mxu1 %v77_v30 }
  0x55   :  { %323 = vmatmul.mubr.f32.gmra.mrb[24].mxu0 %v74_v31 }
  0x56   :  { %453 = vmatmul.mubr.f32.gmra.mrb[24].mxu1 %v76_v32  ;;  %812 = vmatprep.mubr.msk.f32.mxu0 %vm939_vm0, %v940_v33 }
  0x57   :  { %833 = vmatprep.mubr.msk.f32.mxu1 %vm939_vm0, %v940_v33 }
  0x59   :  { %813 = vmatmul.mubr.msk.f32.vlgmr.msra.gmra.mrb[26].mxu0 %vm158_vm1, %v18_v34 }
  0x5a   :  { %834 = vmatmul.mubr.msk.f32.vlgmr.msra.gmra.mrb[26].mxu1 %vm158_vm1, %v53_v35  ;;  %815 = vmatprep.mubr.msk.f32.mxu0 %vm939_vm0, %v940_v33 }
  0x5b   :  { %836 = vmatprep.mubr.msk.f32.mxu1 %vm939_vm0, %v940_v33 }
  0x5d   :  { %816 = vmatmul.mubr.msk.f32.gmra.mrb[28].mxu0 %vm158_vm1, %v23_v36 }
  0x5e   :  { %837 = vmatmul.mubr.msk.f32.gmra.mrb[28].mxu1 %vm158_vm1, %v58_v37  ;;  %818 = vmatprep.mubr.msk.f32.mxu0 %vm939_vm0, %v940_v33 }
  0x5f   :  { %839 = vmatprep.mubr.msk.f32.mxu1 %vm939_vm0, %v940_v33 }
  0x61   :  { %819 = vmatmul.mubr.msk.f32.gmra.mrb[30].mxu0 %vm158_vm1, %v28_v38 }
  0x62   :  { %840 = vmatmul.mubr.msk.f32.gmra.mrb[30].mxu1 %vm158_vm1, %v63_v39  ;;  %821 = vmatprep.mubr.msk.f32.mxu0 %vm939_vm0, %v940_v33 }
  0x63   :  { %842 = vmatprep.mubr.msk.f32.mxu1 %vm939_vm0, %v940_v33 }
  0x65   :  { %822 = vmatmul.mubr.msk.f32.gmra.mrb[32].mxu0 %vm158_vm1, %v33_v40 }
  0x66   :  { %843 = vmatmul.mubr.msk.f32.gmra.mrb[32].mxu1 %vm158_vm1, %v68_v41  ;;  %824 = vmatprep.mubr.msk.f32.mxu0 %vm939_vm0, %v940_v33 }
  0x67   :  { %845 = vmatprep.mubr.msk.f32.mxu1 %vm939_vm0, %v940_v33 }
  0x69   :  { %825 = vmatmul.mubr.msk.f32.gmra.mrb[34].mxu0 %vm158_vm1, %v38_v42 }
  0x6a   :  { %846 = vmatmul.mubr.msk.f32.gmra.mrb[34].mxu1 %vm158_vm1, %v73_v43  ;;  %827 = vmatprep.mubr.msk.f32.mxu0 %vm939_vm0, %v940_v33 }
  0x6b   :  { %848 = vmatprep.mubr.msk.f32.mxu1 %vm939_vm0, %v940_v33 }
  0x6d   :  { %828 = vmatmul.mubr.msk.f32.gmra.mrb[36].mxu0 %vm158_vm1, %v43_v44 }
  0x6e   :  { %849 = vmatmul.mubr.msk.f32.gmra.mrb[36].mxu1 %vm158_vm1, %v78_v45  ;;  %830 = vmatprep.mubr.msk.f32.mxu0 %vm939_vm0, %v940_v33 }
  0x71   :  { %831 = vmatmul.mubr.msk.f32.gmra.mrb[38].mxu0 %vm158_vm1, %v48_v46 }
  0xf8   :  { %v665_v47 = vpop.f32.mrb[0].mxu0 }
  0xf9   :  { %v666_v49 = vpop.f32.mrb[1].mxu0  ;;  %v736_v50 = vpop.f32.mrb[0].mxu1 }
  0xfa   :  { %v667_v51 = vadd.f32 %v666_v49, %v665_v47  ;;  %v737_v52 = vpop.f32.mrb[1].mxu1 }
  0xfb   :  { %v738_v53 = vadd.f32 %v737_v52, %v736_v50 }
  0xfc   :  { %v265_v54 = vadd.f32 %v667_v51, %v1401_v48  ;;  %v668_v55 = vpop.f32.mrb[2].mxu0 }
  0xfd   :  { %v669_v56 = vpop.f32.mrb[3].mxu0  ;;  %v739_v57 = vpop.f32.mrb[2].mxu1 }
  0xfe   :  { %v670_v58 = vadd.f32 %v669_v56, %v668_v55  ;;  %v740_v59 = vpop.f32.mrb[3].mxu1  ;;  %v1404_v60 = vadd.f32 %v738_v53, %v265_v54 }
  0xff   :  { %v741_v61 = vadd.f32 %v740_v59, %v739_v57 }
 0x100   :  { %v270_v62 = vadd.f32 %v670_v58, %v1401_v48  ;;  %v671_v63 = vpop.f32.mrb[4].mxu0 }
 0x101   :  { %v672_v0 = vpop.f32.mrb[5].mxu0  ;;  %v742_v1 = vpop.f32.mrb[4].mxu1 }
 0x102   :  { %v673_v2 = vadd.f32 %v672_v0, %v671_v63  ;;  %v743_v3 = vpop.f32.mrb[5].mxu1  ;;  %v1407_v4 = vadd.f32 %v741_v61, %v270_v62 }
 0x103   :  { %v744_v5 = vadd.f32 %v743_v3, %v742_v1 }
 0x104   :  { %v275_v6 = vadd.f32 %v673_v2, %v1401_v48  ;;  %v674_v7 = vpop.f32.mrb[6].mxu0 }
 0x105   :  { %v675_v8 = vpop.f32.mrb[7].mxu0  ;;  %v745_v9 = vpop.f32.mrb[6].mxu1 }
 0x106   :  { %v676_v10 = vadd.f32 %v675_v8, %v674_v7  ;;  %v746_v11 = vpop.f32.mrb[7].mxu1  ;;  %v1410_v12 = vadd.f32 %v744_v5, %v275_v6 }
 0x107   :  { %v747_v13 = vadd.f32 %v746_v11, %v745_v9 }
 0x108   :  { %v280_v14 = vadd.f32 %v676_v10, %v1401_v48  ;;  %v677_v15 = vpop.f32.mrb[8].mxu0 }
 0x109   :  { %v678_v16 = vpop.f32.mrb[9].mxu0  ;;  %v748_v17 = vpop.f32.mrb[8].mxu1 }
 0x10a   :  { %v679_v18 = vadd.f32 %v678_v16, %v677_v15  ;;  %v749_v19 = vpop.f32.mrb[9].mxu1  ;;  %v1413_v20 = vadd.f32 %v747_v13, %v280_v14 }
 0x10b   :  { %v750_v21 = vadd.f32 %v749_v19, %v748_v17 }
 0x10c   :  { %v285_v22 = vadd.f32 %v679_v18, %v1401_v48  ;;  %v680_v23 = vpop.f32.mrb[10].mxu0 }
 0x10d   :  { %v681_v24 = vpop.f32.mrb[11].mxu0  ;;  %v751_v25 = vpop.f32.mrb[10].mxu1 }
 0x10e   :  { %v682_v26 = vadd.f32 %v681_v24, %v680_v23  ;;  %v752_v27 = vpop.f32.mrb[11].mxu1  ;;  %v1416_v28 = vadd.f32 %v750_v21, %v285_v22 }
 0x10f   :  { %v753_v29 = vadd.f32 %v752_v27, %v751_v25 }
 0x110   :  { %v290_v30 = vadd.f32 %v682_v26, %v1401_v48  ;;  %v683_v31 = vpop.f32.mrb[12].mxu0 }
 0x111   :  { %v684_v32 = vpop.f32.mrb[13].mxu0  ;;  %v754_v33 = vpop.f32.mrb[12].mxu1 }
 0x112   :  { %v685_v34 = vadd.f32 %v684_v32, %v683_v31  ;;  %v755_v35 = vpop.f32.mrb[13].mxu1  ;;  %v1419_v36 = vadd.f32 %v753_v29, %v290_v30 }
 0x113   :  { %v756_v37 = vadd.f32 %v755_v35, %v754_v33 }
 0x114   :  { %v295_v38 = vadd.f32 %v685_v34, %v1401_v48  ;;  %v686_v39 = vpop.f32.mrb[14].mxu0 }
 0x115   :  { %v687_v40 = vpop.f32.mrb[15].mxu0  ;;  %v757_v41 = vpop.f32.mrb[14].mxu1 }
 0x116   :  { %v688_v42 = vadd.f32 %v687_v40, %v686_v39  ;;  %v758_v43 = vpop.f32.mrb[15].mxu1  ;;  %v1422_v44 = vadd.f32 %v756_v37, %v295_v38 }
 0x117   :  { %v759_v45 = vadd.f32 %v758_v43, %v757_v41 }
 0x118   :  { %v300_v46 = vadd.f32 %v688_v42, %v1401_v48  ;;  %v689_v47 = vpop.f32.mrb[16].mxu0 }
 0x119   :  { %v690_v49 = vpop.f32.mrb[17].mxu0  ;;  %v760_v50 = vpop.f32.mrb[16].mxu1 }
 0x11a   :  { %v691_v51 = vadd.f32 %v690_v49, %v689_v47  ;;  %v761_v52 = vpop.f32.mrb[17].mxu1  ;;  %v430_v53 = vadd.f32 %v759_v45, %v300_v46 }
 0x11b   :  { %v762_v54 = vadd.f32 %v761_v52, %v760_v50 }
 0x11c   :  { %v305_v55 = vadd.f32 %v691_v51, %v1401_v48  ;;  %v692_v56 = vpop.f32.mrb[18].mxu0 }
 0x11d   :  { %v693_v57 = vpop.f32.mrb[19].mxu0  ;;  %v763_v58 = vpop.f32.mrb[18].mxu1 }
 0x11e   :  { %v694_v59 = vadd.f32 %v693_v57, %v692_v56  ;;  %v764_v61 = vpop.f32.mrb[19].mxu1  ;;  %v435_v62 = vadd.f32 %v762_v54, %v305_v55 }
 0x11f   :  { %v765_v63 = vadd.f32 %v764_v61, %v763_v58 }
 0x120   :  { %v310_v0 = vadd.f32 %v694_v59, %v1401_v48  ;;  %v695_v1 = vpop.f32.mrb[20].mxu0 }
 0x121   :  { %v696_v2 = vpop.f32.mrb[21].mxu0  ;;  %v766_v3 = vpop.f32.mrb[20].mxu1 }
 0x122   :  { %v697_v5 = vadd.f32 %v696_v2, %v695_v1  ;;  %v767_v6 = vpop.f32.mrb[21].mxu1  ;;  %v440_v7 = vadd.f32 %v765_v63, %v310_v0 }
 0x123   :  { %v768_v8 = vadd.f32 %v767_v6, %v766_v3 }
 0x124   :  { %v315_v9 = vadd.f32 %v697_v5, %v1401_v48  ;;  %v698_v10 = vpop.f32.mrb[22].mxu0 }
 0x125   :  { %v699_v11 = vpop.f32.mrb[23].mxu0  ;;  %v769_v13 = vpop.f32.mrb[22].mxu1 }
 0x126   :  { %v700_v14 = vadd.f32 %v699_v11, %v698_v10  ;;  %v770_v15 = vpop.f32.mrb[23].mxu1  ;;  %v445_v16 = vadd.f32 %v768_v8, %v315_v9 }
 0x127   :  { %v771_v17 = vadd.f32 %v770_v15, %v769_v13 }
 0x128   :  { %v320_v18 = vadd.f32 %v700_v14, %v1401_v48  ;;  %v701_v19 = vpop.f32.mrb[24].mxu0 }
 0x129   :  { %v702_v21 = vpop.f32.mrb[25].mxu0  ;;  %v772_v22 = vpop.f32.mrb[24].mxu1 }
 0x12a   :  { %v703_v23 = vadd.f32 %v702_v21, %v701_v19  ;;  %v773_v24 = vpop.f32.mrb[25].mxu1  ;;  %v450_v25 = vadd.f32 %v771_v17, %v320_v18 }
 0x12b   :  { %v774_v26 = vadd.f32 %v773_v24, %v772_v22 }
 0x12c   :  { %v325_v27 = vadd.f32 %v703_v23, %v1401_v48  ;;  %v524_v29 = vpop.f32.mrb[26].mxu0 }
 0x12d   :  { %v525_v30 = vadd.f32 %v524_v29, %v1404_v60  ;;  %v559_v31 = vpop.f32.mrb[26].mxu1  ;;  %v814_v32 = vpop.f32.mrb[27].mxu0 }
 0x12e   :  { %v560_v33 = vadd.f32 %v559_v31, %v430_v53  ;;  %v835_v34 = vpop.f32.mrb[27].mxu1  ;;  %v455_v35 = vadd.f32 %v774_v26, %v325_v27 }
 0x12f   :  { %v588_v37 = vmax.f32 %v525_v30, 0.0 }
 0x130   :  { %v595_v38 = vmax.f32 %v560_v33, 0.0  ;;  %v529_v39 = vpop.f32.mrb[28].mxu0 }
 0x131   :  { %601 = vst.msk [vmem:[%s1491_s3] sm:$0xff] %vm158_vm1, %v588_v37  ;;  %v530_v40 = vadd.f32 %v529_v39, %v1407_v4  ;;  %v564_v41 = vpop.f32.mrb[28].mxu1  ;;  %v817_v48 = vpop.f32.mrb[29].mxu0 }
 0x132   :  { %608 = vst.msk [vmem:[%s1491_s3 + $0x38] sm:$0xff] %vm158_vm1, %v595_v38  ;;  %v565_v60 = vadd.f32 %v564_v41, %v435_v62  ;;  %v838_v42 = vpop.f32.mrb[29].mxu1 }
 0x133   :  { %v589_v43 = vmax.f32 %v530_v40, 0.0 }
 0x134   :  { %v596_v45 = vmax.f32 %v565_v60, 0.0  ;;  %v534_v46 = vpop.f32.mrb[30].mxu0 }
 0x135   :  { %602 = vst.msk [vmem:[%s1491_s3 + $0x8] sm:$0xff] %vm158_vm1, %v589_v43  ;;  %v535_v47 = vadd.f32 %v534_v46, %v1410_v12  ;;  %v569_v4 = vpop.f32.mrb[30].mxu1  ;;  %v820_v49 = vpop.f32.mrb[31].mxu0 }
 0x136   :  { %609 = vst.msk [vmem:[%s1491_s3 + $0x40] sm:$0xff] %vm158_vm1, %v596_v45  ;;  %v570_v50 = vadd.f32 %v569_v4, %v440_v7  ;;  %v841_v51 = vpop.f32.mrb[31].mxu1 }
 0x137   :  { %v590_v52 = vmax.f32 %v535_v47, 0.0 }
 0x138   :  { %v597_v53 = vmax.f32 %v570_v50, 0.0  ;;  %v539_v54 = vpop.f32.mrb[32].mxu0 }
 0x139   :  { %603 = vst.msk [vmem:[%s1491_s3 + $0x10] sm:$0xff] %vm158_vm1, %v590_v52  ;;  %v540_v55 = vadd.f32 %v539_v54, %v1413_v20  ;;  %v574_v12 = vpop.f32.mrb[32].mxu1  ;;  %v823_v56 = vpop.f32.mrb[33].mxu0 }
 0x13a   :  { %610 = vst.msk [vmem:[%s1491_s3 + $0x48] sm:$0xff] %vm158_vm1, %v597_v53  ;;  %v575_v57 = vadd.f32 %v574_v12, %v445_v16  ;;  %v844_v58 = vpop.f32.mrb[33].mxu1 }
 0x13b   :  { %v591_v59 = vmax.f32 %v540_v55, 0.0 }
 0x13c   :  { %v598_v61 = vmax.f32 %v575_v57, 0.0  ;;  %v544_v62 = vpop.f32.mrb[34].mxu0 }
 0x13d   :  { %604 = vst.msk [vmem:[%s1491_s3 + $0x18] sm:$0xff] %vm158_vm1, %v591_v59  ;;  %v545_v63 = vadd.f32 %v544_v62, %v1416_v28  ;;  %v579_v20 = vpop.f32.mrb[34].mxu1  ;;  %v826_v0 = vpop.f32.mrb[35].mxu0 }
 0x13e   :  { %611 = vst.msk [vmem:[%s1491_s3 + $0x50] sm:$0xff] %vm158_vm1, %v598_v61  ;;  %v580_v1 = vadd.f32 %v579_v20, %v450_v25  ;;  %v847_v2 = vpop.f32.mrb[35].mxu1 }
 0x13f   :  { %v592_v3 = vmax.f32 %v545_v63, 0.0 }
 0x140   :  { %v599_v5 = vmax.f32 %v580_v1, 0.0  ;;  %v549_v6 = vpop.f32.mrb[36].mxu0 }
 0x141   :  { %605 = vst.msk [vmem:[%s1491_s3 + $0x20] sm:$0xff] %vm158_vm1, %v592_v3  ;;  %v550_v7 = vadd.f32 %v549_v6, %v1419_v36  ;;  %v584_v28 = vpop.f32.mrb[36].mxu1  ;;  %v829_v8 = vpop.f32.mrb[37].mxu0 }
 0x142   :  { %612 = vst.msk [vmem:[%s1491_s3 + $0x58] sm:$0xff] %vm158_vm1, %v599_v5  ;;  %v585_v9 = vadd.f32 %v584_v28, %v455_v35  ;;  %v850_v10 = vpop.f32.mrb[37].mxu1 }
 0x143   :  { %v593_v11 = vmax.f32 %v550_v7, 0.0 }
 0x144   :  { %v600_v13 = vmax.f32 %v585_v9, 0.0  ;;  %v554_v14 = vpop.f32.mrb[38].mxu0 }
 0x145   :  { %606 = vst.msk [vmem:[%s1491_s3 + $0x28] sm:$0xff] %vm158_vm1, %v593_v11  ;;  %v555_v36 = vadd.f32 %v554_v14, %v1422_v44  ;;  %v832_v15 = vpop.f32.mrb[39].mxu0 }
 0x146   :  { %614 = vst.msk [vmem:[%s1491_s3 + $0x60] sm:$0x3] %vm613_vm2, %v600_v13 }
 0x147   :  { %v594_v16 = vmax.f32 %v555_v36, 0.0 }
 0x149   :  { %607 = vst.msk [vmem:[%s1491_s3 + $0x30] sm:$0xff] %vm158_vm1, %v594_v16 }

// kernel: dueling_dqn_forward_pallas.7
= control target key start
LH: loop header
LB: loop body
LE: loop exit
PB: predicated region body
PF: predicated region fallthrough
CT: control target
= control target key end

     0   :  { %s10442_s18 = smov 0   ;;  %s10444_s19 = smov 0   ;;  %s13081_s0 = inlined_call_operand.vmem [shape: f32[2,3136], index: 0, kind: input, shape index: {}]   ;;  %s13082_s1 = inlined_call_operand.vmem [shape: bf16[3136,1024], index: 1, kind: input, shape index: {}]   ;;  %s13083_s2 = inlined_call_operand.vmem [shape: f32[1,1024], index: 2, kind: input, shape index: {}]   ;;  %s13084_s3 = inlined_call_operand.vmem [shape: f32[2,512,4], index: 3, kind: input, shape index: {}]   ;;  %s13085_s4 = inlined_call_operand.vmem [shape: f32[2,1,4], index: 4, kind: input, shape index: {}]   ;;  %s13086_s5 = inlined_call_operand.vmem [shape: f32[2,2,4], index: 5, kind: output, shape index: {}]  }
   0x1   :  { %s10446_s20 = smov 0  }
   0x2 LB: > { %s10458_s21 = sadd.s32 4294967295, %s10408_s20   ;;  %s10461_s22 = sadd.s32 1, %s10408_s20   ;;  %s10408_s20 = sphi %s10446_s20, %s13089_s20   ;;  %s10404_s19 = sphi %s10444_s19, %s13088_s19   ;;  %s10400_s18 = sphi %s10442_s18, %s13087_s18  }
   0x3   : > { %s40_s23 = ssub.s32 %s10408_s20, %s10461_s22  ;;  %s43_s24 = sadd.s32 1, %s10404_s19 }
   0x4   : > { %p41_p0 = scmp.eq.s32.totalorder %s40_s23, 0  ;;  %p50_p1 = scmp.ne.s32.totalorder %s10404_s19, %s10400_s18 }
   0x5   : > { %p51_p2 = scmp.eq.s32.totalorder %s10408_s20, 0  ;;  %p8142_p4 = scmp.ge.s32.totalorder %s10408_s20, 2 }
   0x6   : > { %s10470_s25 = scalar_select %p41_p0, %s10404_s19, %s43_s24  }
   0x7   : > { %p52_p3 = por %p51_p2, %p50_p1  ;;  %183 = sbr.rel (%p8142_p4) target bundleno = 410 (0x19a), region = 20 }
   0xe   : > { %186 = sbr.rel (!%p52_p3) target bundleno = 410 (0x19a), region = 24  ;;  %s188_s26 = sand.u32 (%p52_p3), 1, %s10404_s19  }
   0xf   : > { %s8940_s27 = sshll.u32 (%p52_p3), %s10408_s20, 4  ;;  %s9176_s28 = smul.u32 (%p52_p3), 6272, %s188_s26 }
  0x10   : > { %s10478_s6 = scalar_lea.vmem (%p52_p3), %s13082_s1, %s8940_s27 }
  0x11   : > { %v206_v0 = vld [vmem:[%s10478_s6] sm:$0xff] (%p52_p3)  ;;  %v208_v1 = vld [vmem:[%s10478_s6 + $0x8] sm:$0xff] (%p52_p3)  ;;  %s10486_s7 = scalar_lea.vmem (%p52_p3), [#allocation2], %s9176_s28 }
  0x12   : > { %v210_v2 = vld [vmem:[%s10478_s6 + $0x20] sm:$0xff] (%p52_p3)  ;;  %v212_v3 = vld [vmem:[%s10478_s6 + $0x28] sm:$0xff] (%p52_p3)  ;;  %207 = vst [vmem:[%s10486_s7] sm:$0xff] (%p52_p3), %v206_v0  ;;  %209 = vst [vmem:[%s10486_s7 + $0x8] sm:$0xff] (%p52_p3), %v208_v1 }
  0x13   : > { %v214_v4 = vld [vmem:[%s10478_s6 + $0x40] sm:$0xff] (%p52_p3)  ;;  %v216_v5 = vld [vmem:[%s10478_s6 + $0x48] sm:$0xff] (%p52_p3)  ;;  %211 = vst [vmem:[%s10486_s7 + $0x10] sm:$0xff] (%p52_p3), %v210_v2  ;;  %213 = vst [vmem:[%s10486_s7 + $0x18] sm:$0xff] (%p52_p3), %v212_v3 }
  0x14   : > { %215 = vst [vmem:[%s10486_s7 + $0x20] sm:$0xff] (%p52_p3), %v214_v4  ;;  %217 = vst [vmem:[%s10486_s7 + $0x28] sm:$0xff] (%p52_p3), %v216_v5  ;;  %v218_v6 = vld [vmem:[%s10478_s6 + $0x60] sm:$0xff] (%p52_p3)  ;;  %v220_v7 = vld [vmem:[%s10478_s6 + $0x68] sm:$0xff] (%p52_p3) }
  0x15   : > { %v222_v8 = vld [vmem:[%s10478_s6 + $0x80] sm:$0xff]  ;;  %219 = vst [vmem:[%s10486_s7 + $0x30] sm:$0xff] %v218_v6  ;;  %221 = vst [vmem:[%s10486_s7 + $0x38] sm:$0xff] %v220_v7  ;;  %v224_v9 = vld [vmem:[%s10478_s6 + $0x88] sm:$0xff] }
  0x16   : > { %223 = vst [vmem:[%s10486_s7 + $0x40] sm:$0xff] %v222_v8  ;;  %v226_v10 = vld [vmem:[%s10478_s6 + $0xa0] sm:$0xff]  ;;  %v228_v11 = vld [vmem:[%s10478_s6 + $0xa8] sm:$0xff]  ;;  %225 = vst [vmem:[%s10486_s7 + $0x48] sm:$0xff] %v224_v9 }
  0x17   : > { %227 = vst [vmem:[%s10486_s7 + $0x50] sm:$0xff] %v226_v10  ;;  %229 = vst [vmem:[%s10486_s7 + $0x58] sm:$0xff] %v228_v11  ;;  %v230_v12 = vld [vmem:[%s10478_s6 + $0xc0] sm:$0xff]  ;;  %v232_v13 = vld [vmem:[%s10478_s6 + $0xc8] sm:$0xff] }
  0x18   : > { %v234_v14 = vld [vmem:[%s10478_s6 + $0xe0] sm:$0xff]  ;;  %231 = vst [vmem:[%s10486_s7 + $0x60] sm:$0xff] %v230_v12  ;;  %233 = vst [vmem:[%s10486_s7 + $0x68] sm:$0xff] %v232_v13  ;;  %v236_v15 = vld [vmem:[%s10478_s6 + $0xe8] sm:$0xff] }
  0x19   : > { %235 = vst [vmem:[%s10486_s7 + $0x70] sm:$0xff] %v234_v14  ;;  %v238_v16 = vld [vmem:[%s10478_s6 + $0x100] sm:$0xff]  ;;  %v240_v17 = vld [vmem:[%s10478_s6 + $0x108] sm:$0xff]  ;;  %237 = vst [vmem:[%s10486_s7 + $0x78] sm:$0xff] %v236_v15 }
  0x1a   : > { %239 = vst [vmem:[%s10486_s7 + $0x80] sm:$0xff] %v238_v16  ;;  %241 = vst [vmem:[%s10486_s7 + $0x88] sm:$0xff] %v240_v17  ;;  %v242_v18 = vld [vmem:[%s10478_s6 + $0x120] sm:$0xff]  ;;  %v244_v19 = vld [vmem:[%s10478_s6 + $0x128] sm:$0xff] }
  0x1b   : > { %v246_v20 = vld [vmem:[%s10478_s6 + $0x140] sm:$0xff]  ;;  %243 = vst [vmem:[%s10486_s7 + $0x90] sm:$0xff] %v242_v18  ;;  %245 = vst [vmem:[%s10486_s7 + $0x98] sm:$0xff] %v244_v19  ;;  %v248_v21 = vld [vmem:[%s10478_s6 + $0x148] sm:$0xff] }
  0x1c   : > { %247 = vst [vmem:[%s10486_s7 + $0xa0] sm:$0xff] %v246_v20  ;;  %v250_v22 = vld [vmem:[%s10478_s6 + $0x160] sm:$0xff]  ;;  %v252_v23 = vld [vmem:[%s10478_s6 + $0x168] sm:$0xff]  ;;  %249 = vst [vmem:[%s10486_s7 + $0xa8] sm:$0xff] %v248_v21 }
  0x1d   : > { %251 = vst [vmem:[%s10486_s7 + $0xb0] sm:$0xff] %v250_v22  ;;  %253 = vst [vmem:[%s10486_s7 + $0xb8] sm:$0xff] %v252_v23  ;;  %v254_v24 = vld [vmem:[%s10478_s6 + $0x180] sm:$0xff]  ;;  %v256_v25 = vld [vmem:[%s10478_s6 + $0x188] sm:$0xff] }
  0x1e   : > { %v258_v26 = vld [vmem:[%s10478_s6 + $0x1a0] sm:$0xff]  ;;  %255 = vst [vmem:[%s10486_s7 + $0xc0] sm:$0xff] %v254_v24  ;;  %257 = vst [vmem:[%s10486_s7 + $0xc8] sm:$0xff] %v256_v25  ;;  %v260_v27 = vld [vmem:[%s10478_s6 + $0x1a8] sm:$0xff] }
  0x1f   : > { %259 = vst [vmem:[%s10486_s7 + $0xd0] sm:$0xff] %v258_v26  ;;  %v262_v28 = vld [vmem:[%s10478_s6 + $0x1c0] sm:$0xff]  ;;  %v264_v29 = vld [vmem:[%s10478_s6 + $0x1c8] sm:$0xff]  ;;  %261 = vst [vmem:[%s10486_s7 + $0xd8] sm:$0xff] %v260_v27 }
  0x20   : > { %263 = vst [vmem:[%s10486_s7 + $0xe0] sm:$0xff] %v262_v28  ;;  %265 = vst [vmem:[%s10486_s7 + $0xe8] sm:$0xff] %v264_v29  ;;  %v266_v30 = vld [vmem:[%s10478_s6 + $0x1e0] sm:$0xff]  ;;  %v268_v31 = vld [vmem:[%s10478_s6 + $0x1e8] sm:$0xff] }
  0x21   : > { %v270_v32 = vld [vmem:[%s10478_s6 + $0x200] sm:$0xff]  ;;  %267 = vst [vmem:[%s10486_s7 + $0xf0] sm:$0xff] %v266_v30  ;;  %269 = vst [vmem:[%s10486_s7 + $0xf8] sm:$0xff] %v268_v31  ;;  %v272_v33 = vld [vmem:[%s10478_s6 + $0x208] sm:$0xff] }
  0x22   : > { %271 = vst [vmem:[%s10486_s7 + $0x100] sm:$0xff] %v270_v32  ;;  %v274_v34 = vld [vmem:[%s10478_s6 + $0x220] sm:$0xff]  ;;  %v276_v35 = vld [vmem:[%s10478_s6 + $0x228] sm:$0xff]  ;;  %273 = vst [vmem:[%s10486_s7 + $0x108] sm:$0xff] %v272_v33 }
  0x23   : > { %275 = vst [vmem:[%s10486_s7 + $0x110] sm:$0xff] %v274_v34  ;;  %277 = vst [vmem:[%s10486_s7 + $0x118] sm:$0xff] %v276_v35  ;;  %v278_v36 = vld [vmem:[%s10478_s6 + $0x240] sm:$0xff]  ;;  %v280_v37 = vld [vmem:[%s10478_s6 + $0x248] sm:$0xff] }
  0x24   : > { %v282_v38 = vld [vmem:[%s10478_s6 + $0x260] sm:$0xff]  ;;  %279 = vst [vmem:[%s10486_s7 + $0x120] sm:$0xff] %v278_v36  ;;  %281 = vst [vmem:[%s10486_s7 + $0x128] sm:$0xff] %v280_v37  ;;  %v284_v39 = vld [vmem:[%s10478_s6 + $0x268] sm:$0xff] }
  0x25   : > { %283 = vst [vmem:[%s10486_s7 + $0x130] sm:$0xff] %v282_v38  ;;  %v286_v40 = vld [vmem:[%s10478_s6 + $0x280] sm:$0xff]  ;;  %v288_v41 = vld [vmem:[%s10478_s6 + $0x288] sm:$0xff]  ;;  %285 = vst [vmem:[%s10486_s7 + $0x138] sm:$0xff] %v284_v39 }
  0x26   : > { %287 = vst [vmem:[%s10486_s7 + $0x140] sm:$0xff] %v286_v40  ;;  %289 = vst [vmem:[%s10486_s7 + $0x148] sm:$0xff] %v288_v41  ;;  %v290_v42 = vld [vmem:[%s10478_s6 + $0x2a0] sm:$0xff]  ;;  %v292_v43 = vld [vmem:[%s10478_s6 + $0x2a8] sm:$0xff] }
  0x27   : > { %v294_v44 = vld [vmem:[%s10478_s6 + $0x2c0] sm:$0xff]  ;;  %291 = vst [vmem:[%s10486_s7 + $0x150] sm:$0xff] %v290_v42  ;;  %293 = vst [vmem:[%s10486_s7 + $0x158] sm:$0xff] %v292_v43  ;;  %v296_v45 = vld [vmem:[%s10478_s6 + $0x2c8] sm:$0xff] }
  0x28   : > { %295 = vst [vmem:[%s10486_s7 + $0x160] sm:$0xff] %v294_v44  ;;  %v298_v46 = vld [vmem:[%s10478_s6 + $0x2e0] sm:$0xff]  ;;  %v300_v47 = vld [vmem:[%s10478_s6 + $0x2e8] sm:$0xff]  ;;  %297 = vst [vmem:[%s10486_s7 + $0x168] sm:$0xff] %v296_v45 }
  0x29   : > { %299 = vst [vmem:[%s10486_s7 + $0x170] sm:$0xff] %v298_v46  ;;  %301 = vst [vmem:[%s10486_s7 + $0x178] sm:$0xff] %v300_v47  ;;  %v302_v48 = vld [vmem:[%s10478_s6 + $0x300] sm:$0xff]  ;;  %v304_v49 = vld [vmem:[%s10478_s6 + $0x308] sm:$0xff] }
  0x2a   : > { %v306_v50 = vld [vmem:[%s10478_s6 + $0x320] sm:$0xff]  ;;  %303 = vst [vmem:[%s10486_s7 + $0x180] sm:$0xff] %v302_v48  ;;  %305 = vst [vmem:[%s10486_s7 + $0x188] sm:$0xff] %v304_v49  ;;  %v308_v51 = vld [vmem:[%s10478_s6 + $0x328] sm:$0xff] }
  0x2b   : > { %307 = vst [vmem:[%s10486_s7 + $0x190] sm:$0xff] %v306_v50  ;;  %v310_v52 = vld [vmem:[%s10478_s6 + $0x340] sm:$0xff]  ;;  %v312_v53 = vld [vmem:[%s10478_s6 + $0x348] sm:$0xff]  ;;  %309 = vst [vmem:[%s10486_s7 + $0x198] sm:$0xff] %v308_v51 }
  0x2c   : > { %311 = vst [vmem:[%s10486_s7 + $0x1a0] sm:$0xff] %v310_v52  ;;  %313 = vst [vmem:[%s10486_s7 + $0x1a8] sm:$0xff] %v312_v53  ;;  %v314_v54 = vld [vmem:[%s10478_s6 + $0x360] sm:$0xff]  ;;  %v316_v55 = vld [vmem:[%s10478_s6 + $0x368] sm:$0xff] }
  0x2d   : > { %v318_v56 = vld [vmem:[%s10478_s6 + $0x380] sm:$0xff]  ;;  %315 = vst [vmem:[%s10486_s7 + $0x1b0] sm:$0xff] %v314_v54  ;;  %317 = vst [vmem:[%s10486_s7 + $0x1b8] sm:$0xff] %v316_v55  ;;  %v320_v57 = vld [vmem:[%s10478_s6 + $0x388] sm:$0xff] }
  0x2e   : > { %319 = vst [vmem:[%s10486_s7 + $0x1c0] sm:$0xff] %v318_v56  ;;  %v322_v58 = vld [vmem:[%s10478_s6 + $0x3a0] sm:$0xff]  ;;  %v324_v59 = vld [vmem:[%s10478_s6 + $0x3a8] sm:$0xff]  ;;  %321 = vst [vmem:[%s10486_s7 + $0x1c8] sm:$0xff] %v320_v57 }
  0x2f   : > { %323 = vst [vmem:[%s10486_s7 + $0x1d0] sm:$0xff] %v322_v58  ;;  %325 = vst [vmem:[%s10486_s7 + $0x1d8] sm:$0xff] %v324_v59  ;;  %v326_v60 = vld [vmem:[%s10478_s6 + $0x3c0] sm:$0xff]  ;;  %v328_v61 = vld [vmem:[%s10478_s6 + $0x3c8] sm:$0xff] }
  0x30   : > { %v330_v62 = vld [vmem:[%s10478_s6 + $0x3e0] sm:$0xff]  ;;  %327 = vst [vmem:[%s10486_s7 + $0x1e0] sm:$0xff] %v326_v60  ;;  %329 = vst [vmem:[%s10486_s7 + $0x1e8] sm:$0xff] %v328_v61  ;;  %v332_v63 = vld [vmem:[%s10478_s6 + $0x3e8] sm:$0xff] }
  0x31   : > { %331 = vst [vmem:[%s10486_s7 + $0x1f0] sm:$0xff] %v330_v62  ;;  %v334_v0 = vld [vmem:[%s10478_s6 + $0x400] sm:$0xff]  ;;  %v336_v1 = vld [vmem:[%s10478_s6 + $0x408] sm:$0xff]  ;;  %333 = vst [vmem:[%s10486_s7 + $0x1f8] sm:$0xff] %v332_v63 }
  0x32   : > { %335 = vst [vmem:[%s10486_s7 + $0x200] sm:$0xff] %v334_v0  ;;  %337 = vst [vmem:[%s10486_s7 + $0x208] sm:$0xff] %v336_v1  ;;  %v338_v2 = vld [vmem:[%s10478_s6 + $0x420] sm:$0xff]  ;;  %v340_v3 = vld [vmem:[%s10478_s6 + $0x428] sm:$0xff] }
  0x33   : > { %v342_v4 = vld [vmem:[%s10478_s6 + $0x440] sm:$0xff]  ;;  %339 = vst [vmem:[%s10486_s7 + $0x210] sm:$0xff] %v338_v2  ;;  %341 = vst [vmem:[%s10486_s7 + $0x218] sm:$0xff] %v340_v3  ;;  %v344_v5 = vld [vmem:[%s10478_s6 + $0x448] sm:$0xff] }
  0x34   : > { %343 = vst [vmem:[%s10486_s7 + $0x220] sm:$0xff] %v342_v4  ;;  %v346_v6 = vld [vmem:[%s10478_s6 + $0x460] sm:$0xff]  ;;  %v348_v7 = vld [vmem:[%s10478_s6 + $0x468] sm:$0xff]  ;;  %345 = vst [vmem:[%s10486_s7 + $0x228] sm:$0xff] %v344_v5 }
  0x35   : > { %347 = vst [vmem:[%s10486_s7 + $0x230] sm:$0xff] %v346_v6  ;;  %349 = vst [vmem:[%s10486_s7 + $0x238] sm:$0xff] %v348_v7  ;;  %v350_v8 = vld [vmem:[%s10478_s6 + $0x480] sm:$0xff]  ;;  %v352_v9 = vld [vmem:[%s10478_s6 + $0x488] sm:$0xff] }
  0x36   : > { %v354_v10 = vld [vmem:[%s10478_s6 + $0x4a0] sm:$0xff]  ;;  %351 = vst [vmem:[%s10486_s7 + $0x240] sm:$0xff] %v350_v8  ;;  %353 = vst [vmem:[%s10486_s7 + $0x248] sm:$0xff] %v352_v9  ;;  %v356_v11 = vld [vmem:[%s10478_s6 + $0x4a8] sm:$0xff] }
  0x37   : > { %355 = vst [vmem:[%s10486_s7 + $0x250] sm:$0xff] %v354_v10  ;;  %v358_v12 = vld [vmem:[%s10478_s6 + $0x4c0] sm:$0xff]  ;;  %v360_v13 = vld [vmem:[%s10478_s6 + $0x4c8] sm:$0xff]  ;;  %357 = vst [vmem:[%s10486_s7 + $0x258] sm:$0xff] %v356_v11 }
  0x38   : > { %359 = vst [vmem:[%s10486_s7 + $0x260] sm:$0xff] %v358_v12  ;;  %361 = vst [vmem:[%s10486_s7 + $0x268] sm:$0xff] %v360_v13  ;;  %v362_v14 = vld [vmem:[%s10478_s6 + $0x4e0] sm:$0xff]  ;;  %v364_v15 = vld [vmem:[%s10478_s6 + $0x4e8] sm:$0xff] }
  0x39   : > { %v366_v16 = vld [vmem:[%s10478_s6 + $0x500] sm:$0xff]  ;;  %363 = vst [vmem:[%s10486_s7 + $0x270] sm:$0xff] %v362_v14  ;;  %365 = vst [vmem:[%s10486_s7 + $0x278] sm:$0xff] %v364_v15  ;;  %v368_v17 = vld [vmem:[%s10478_s6 + $0x508] sm:$0xff] }
  0x3a   : > { %367 = vst [vmem:[%s10486_s7 + $0x280] sm:$0xff] %v366_v16  ;;  %v370_v18 = vld [vmem:[%s10478_s6 + $0x520] sm:$0xff]  ;;  %v372_v19 = vld [vmem:[%s10478_s6 + $0x528] sm:$0xff]  ;;  %369 = vst [vmem:[%s10486_s7 + $0x288] sm:$0xff] %v368_v17 }
  0x3b   : > { %371 = vst [vmem:[%s10486_s7 + $0x290] sm:$0xff] %v370_v18  ;;  %373 = vst [vmem:[%s10486_s7 + $0x298] sm:$0xff] %v372_v19  ;;  %v374_v20 = vld [vmem:[%s10478_s6 + $0x540] sm:$0xff]  ;;  %v376_v21 = vld [vmem:[%s10478_s6 + $0x548] sm:$0xff] }
  0x3c   : > { %v378_v22 = vld [vmem:[%s10478_s6 + $0x560] sm:$0xff]  ;;  %375 = vst [vmem:[%s10486_s7 + $0x2a0] sm:$0xff] %v374_v20  ;;  %377 = vst [vmem:[%s10486_s7 + $0x2a8] sm:$0xff] %v376_v21  ;;  %v380_v23 = vld [vmem:[%s10478_s6 + $0x568] sm:$0xff] }
  0x3d   : > { %379 = vst [vmem:[%s10486_s7 + $0x2b0] sm:$0xff] %v378_v22  ;;  %v382_v24 = vld [vmem:[%s10478_s6 + $0x580] sm:$0xff]  ;;  %v384_v25 = vld [vmem:[%s10478_s6 + $0x588] sm:$0xff]  ;;  %381 = vst [vmem:[%s10486_s7 + $0x2b8] sm:$0xff] %v380_v23 }
  0x3e   : > { %383 = vst [vmem:[%s10486_s7 + $0x2c0] sm:$0xff] %v382_v24  ;;  %385 = vst [vmem:[%s10486_s7 + $0x2c8] sm:$0xff] %v384_v25  ;;  %v386_v26 = vld [vmem:[%s10478_s6 + $0x5a0] sm:$0xff]  ;;  %v388_v27 = vld [vmem:[%s10478_s6 + $0x5a8] sm:$0xff] }
  0x3f   : > { %v390_v28 = vld [vmem:[%s10478_s6 + $0x5c0] sm:$0xff]  ;;  %387 = vst [vmem:[%s10486_s7 + $0x2d0] sm:$0xff] %v386_v26  ;;  %389 = vst [vmem:[%s10486_s7 + $0x2d8] sm:$0xff] %v388_v27  ;;  %v392_v29 = vld [vmem:[%s10478_s6 + $0x5c8] sm:$0xff] }
  0x40   : > { %391 = vst [vmem:[%s10486_s7 + $0x2e0] sm:$0xff] %v390_v28  ;;  %v394_v30 = vld [vmem:[%s10478_s6 + $0x5e0] sm:$0xff]  ;;  %v396_v31 = vld [vmem:[%s10478_s6 + $0x5e8] sm:$0xff]  ;;  %393 = vst [vmem:[%s10486_s7 + $0x2e8] sm:$0xff] %v392_v29 }
  0x41   : > { %395 = vst [vmem:[%s10486_s7 + $0x2f0] sm:$0xff] %v394_v30  ;;  %397 = vst [vmem:[%s10486_s7 + $0x2f8] sm:$0xff] %v396_v31  ;;  %v398_v32 = vld [vmem:[%s10478_s6 + $0x600] sm:$0xff]  ;;  %v400_v33 = vld [vmem:[%s10478_s6 + $0x608] sm:$0xff] }
  0x42   : > { %v402_v34 = vld [vmem:[%s10478_s6 + $0x620] sm:$0xff]  ;;  %399 = vst [vmem:[%s10486_s7 + $0x300] sm:$0xff] %v398_v32  ;;  %401 = vst [vmem:[%s10486_s7 + $0x308] sm:$0xff] %v400_v33  ;;  %v404_v35 = vld [vmem:[%s10478_s6 + $0x628] sm:$0xff] }
  0x43   : > { %403 = vst [vmem:[%s10486_s7 + $0x310] sm:$0xff] %v402_v34  ;;  %v406_v36 = vld [vmem:[%s10478_s6 + $0x640] sm:$0xff]  ;;  %v408_v37 = vld [vmem:[%s10478_s6 + $0x648] sm:$0xff]  ;;  %405 = vst [vmem:[%s10486_s7 + $0x318] sm:$0xff] %v404_v35 }
  0x44   : > { %407 = vst [vmem:[%s10486_s7 + $0x320] sm:$0xff] %v406_v36  ;;  %409 = vst [vmem:[%s10486_s7 + $0x328] sm:$0xff] %v408_v37  ;;  %v410_v38 = vld [vmem:[%s10478_s6 + $0x660] sm:$0xff]  ;;  %v412_v39 = vld [vmem:[%s10478_s6 + $0x668] sm:$0xff] }
  0x45   : > { %v414_v40 = vld [vmem:[%s10478_s6 + $0x680] sm:$0xff]  ;;  %411 = vst [vmem:[%s10486_s7 + $0x330] sm:$0xff] %v410_v38  ;;  %413 = vst [vmem:[%s10486_s7 + $0x338] sm:$0xff] %v412_v39  ;;  %v416_v41 = vld [vmem:[%s10478_s6 + $0x688] sm:$0xff] }
  0x46   : > { %415 = vst [vmem:[%s10486_s7 + $0x340] sm:$0xff] %v414_v40  ;;  %v418_v42 = vld [vmem:[%s10478_s6 + $0x6a0] sm:$0xff]  ;;  %v420_v43 = vld [vmem:[%s10478_s6 + $0x6a8] sm:$0xff]  ;;  %417 = vst [vmem:[%s10486_s7 + $0x348] sm:$0xff] %v416_v41 }
  0x47   : > { %419 = vst [vmem:[%s10486_s7 + $0x350] sm:$0xff] %v418_v42  ;;  %421 = vst [vmem:[%s10486_s7 + $0x358] sm:$0xff] %v420_v43  ;;  %v422_v44 = vld [vmem:[%s10478_s6 + $0x6c0] sm:$0xff]  ;;  %v424_v45 = vld [vmem:[%s10478_s6 + $0x6c8] sm:$0xff] }
  0x48   : > { %v426_v46 = vld [vmem:[%s10478_s6 + $0x6e0] sm:$0xff]  ;;  %423 = vst [vmem:[%s10486_s7 + $0x360] sm:$0xff] %v422_v44  ;;  %425 = vst [vmem:[%s10486_s7 + $0x368] sm:$0xff] %v424_v45  ;;  %v428_v47 = vld [vmem:[%s10478_s6 + $0x6e8] sm:$0xff] }
  0x49   : > { %427 = vst [vmem:[%s10486_s7 + $0x370] sm:$0xff] %v426_v46  ;;  %v430_v48 = vld [vmem:[%s10478_s6 + $0x700] sm:$0xff]  ;;  %v432_v49 = vld [vmem:[%s10478_s6 + $0x708] sm:$0xff]  ;;  %429 = vst [vmem:[%s10486_s7 + $0x378] sm:$0xff] %v428_v47 }
  0x4a   : > { %431 = vst [vmem:[%s10486_s7 + $0x380] sm:$0xff] %v430_v48  ;;  %433 = vst [vmem:[%s10486_s7 + $0x388] sm:$0xff] %v432_v49  ;;  %v434_v50 = vld [vmem:[%s10478_s6 + $0x720] sm:$0xff]  ;;  %v436_v51 = vld [vmem:[%s10478_s6 + $0x728] sm:$0xff] }
  0x4b   : > { %v438_v52 = vld [vmem:[%s10478_s6 + $0x740] sm:$0xff]  ;;  %435 = vst [vmem:[%s10486_s7 + $0x390] sm:$0xff] %v434_v50  ;;  %437 = vst [vmem:[%s10486_s7 + $0x398] sm:$0xff] %v436_v51  ;;  %v440_v53 = vld [vmem:[%s10478_s6 + $0x748] sm:$0xff] }
  0x4c   : > { %439 = vst [vmem:[%s10486_s7 + $0x3a0] sm:$0xff] %v438_v52  ;;  %v442_v54 = vld [vmem:[%s10478_s6 + $0x760] sm:$0xff]  ;;  %v444_v55 = vld [vmem:[%s10478_s6 + $0x768] sm:$0xff]  ;;  %441 = vst [vmem:[%s10486_s7 + $0x3a8] sm:$0xff] %v440_v53 }
  0x4d   : > { %443 = vst [vmem:[%s10486_s7 + $0x3b0] sm:$0xff] %v442_v54  ;;  %445 = vst [vmem:[%s10486_s7 + $0x3b8] sm:$0xff] %v444_v55  ;;  %v446_v56 = vld [vmem:[%s10478_s6 + $0x780] sm:$0xff]  ;;  %v448_v57 = vld [vmem:[%s10478_s6 + $0x788] sm:$0xff] }
  0x4e   : > { %v450_v58 = vld [vmem:[%s10478_s6 + $0x7a0] sm:$0xff]  ;;  %447 = vst [vmem:[%s10486_s7 + $0x3c0] sm:$0xff] %v446_v56  ;;  %449 = vst [vmem:[%s10486_s7 + $0x3c8] sm:$0xff] %v448_v57  ;;  %v452_v59 = vld [vmem:[%s10478_s6 + $0x7a8] sm:$0xff] }
  0x4f   : > { %451 = vst [vmem:[%s10486_s7 + $0x3d0] sm:$0xff] %v450_v58  ;;  %v454_v60 = vld [vmem:[%s10478_s6 + $0x7c0] sm:$0xff]  ;;  %v456_v61 = vld [vmem:[%s10478_s6 + $0x7c8] sm:$0xff]  ;;  %453 = vst [vmem:[%s10486_s7 + $0x3d8] sm:$0xff] %v452_v59 }
  0x50   : > { %455 = vst [vmem:[%s10486_s7 + $0x3e0] sm:$0xff] %v454_v60  ;;  %457 = vst [vmem:[%s10486_s7 + $0x3e8] sm:$0xff] %v456_v61  ;;  %v458_v62 = vld [vmem:[%s10478_s6 + $0x7e0] sm:$0xff]  ;;  %v460_v63 = vld [vmem:[%s10478_s6 + $0x7e8] sm:$0xff] }
  0x51   : > { %v462_v0 = vld [vmem:[%s10478_s6 + $0x800] sm:$0xff]  ;;  %459 = vst [vmem:[%s10486_s7 + $0x3f0] sm:$0xff] %v458_v62  ;;  %461 = vst [vmem:[%s10486_s7 + $0x3f8] sm:$0xff] %v460_v63  ;;  %v464_v1 = vld [vmem:[%s10478_s6 + $0x808] sm:$0xff] }
  0x52   : > { %463 = vst [vmem:[%s10486_s7 + $0x400] sm:$0xff] %v462_v0  ;;  %v466_v2 = vld [vmem:[%s10478_s6 + $0x820] sm:$0xff]  ;;  %v468_v3 = vld [vmem:[%s10478_s6 + $0x828] sm:$0xff]  ;;  %465 = vst [vmem:[%s10486_s7 + $0x408] sm:$0xff] %v464_v1 }
  0x53   : > { %467 = vst [vmem:[%s10486_s7 + $0x410] sm:$0xff] %v466_v2  ;;  %469 = vst [vmem:[%s10486_s7 + $0x418] sm:$0xff] %v468_v3  ;;  %v470_v4 = vld [vmem:[%s10478_s6 + $0x840] sm:$0xff]  ;;  %v472_v5 = vld [vmem:[%s10478_s6 + $0x848] sm:$0xff] }
  0x54   : > { %v474_v6 = vld [vmem:[%s10478_s6 + $0x860] sm:$0xff]  ;;  %471 = vst [vmem:[%s10486_s7 + $0x420] sm:$0xff] %v470_v4  ;;  %473 = vst [vmem:[%s10486_s7 + $0x428] sm:$0xff] %v472_v5  ;;  %v476_v7 = vld [vmem:[%s10478_s6 + $0x868] sm:$0xff] }
  0x55   : > { %475 = vst [vmem:[%s10486_s7 + $0x430] sm:$0xff] %v474_v6  ;;  %v478_v8 = vld [vmem:[%s10478_s6 + $0x880] sm:$0xff]  ;;  %v480_v9 = vld [vmem:[%s10478_s6 + $0x888] sm:$0xff]  ;;  %477 = vst [vmem:[%s10486_s7 + $0x438] sm:$0xff] %v476_v7 }
  0x56   : > { %479 = vst [vmem:[%s10486_s7 + $0x440] sm:$0xff] %v478_v8  ;;  %481 = vst [vmem:[%s10486_s7 + $0x448] sm:$0xff] %v480_v9  ;;  %v482_v10 = vld [vmem:[%s10478_s6 + $0x8a0] sm:$0xff]  ;;  %v484_v11 = vld [vmem:[%s10478_s6 + $0x8a8] sm:$0xff] }
  0x57   : > { %v486_v12 = vld [vmem:[%s10478_s6 + $0x8c0] sm:$0xff]  ;;  %483 = vst [vmem:[%s10486_s7 + $0x450] sm:$0xff] %v482_v10  ;;  %485 = vst [vmem:[%s10486_s7 + $0x458] sm:$0xff] %v484_v11  ;;  %v488_v13 = vld [vmem:[%s10478_s6 + $0x8c8] sm:$0xff] }
  0x58   : > { %487 = vst [vmem:[%s10486_s7 + $0x460] sm:$0xff] %v486_v12  ;;  %v490_v14 = vld [vmem:[%s10478_s6 + $0x8e0] sm:$0xff]  ;;  %v492_v15 = vld [vmem:[%s10478_s6 + $0x8e8] sm:$0xff]  ;;  %489 = vst [vmem:[%s10486_s7 + $0x468] sm:$0xff] %v488_v13 }
  0x59   : > { %491 = vst [vmem:[%s10486_s7 + $0x470] sm:$0xff] %v490_v14  ;;  %493 = vst [vmem:[%s10486_s7 + $0x478] sm:$0xff] %v492_v15  ;;  %v494_v16 = vld [vmem:[%s10478_s6 + $0x900] sm:$0xff]  ;;  %v496_v17 = vld [vmem:[%s10478_s6 + $0x908] sm:$0xff] }
  0x5a   : > { %v498_v18 = vld [vmem:[%s10478_s6 + $0x920] sm:$0xff]  ;;  %495 = vst [vmem:[%s10486_s7 + $0x480] sm:$0xff] %v494_v16  ;;  %497 = vst [vmem:[%s10486_s7 + $0x488] sm:$0xff] %v496_v17  ;;  %v500_v19 = vld [vmem:[%s10478_s6 + $0x928] sm:$0xff] }
  0x5b   : > { %499 = vst [vmem:[%s10486_s7 + $0x490] sm:$0xff] %v498_v18  ;;  %v502_v20 = vld [vmem:[%s10478_s6 + $0x940] sm:$0xff]  ;;  %v504_v21 = vld [vmem:[%s10478_s6 + $0x948] sm:$0xff]  ;;  %501 = vst [vmem:[%s10486_s7 + $0x498] sm:$0xff] %v500_v19 }
  0x5c   : > { %503 = vst [vmem:[%s10486_s7 + $0x4a0] sm:$0xff] %v502_v20  ;;  %505 = vst [vmem:[%s10486_s7 + $0x4a8] sm:$0xff] %v504_v21  ;;  %v506_v22 = vld [vmem:[%s10478_s6 + $0x960] sm:$0xff]  ;;  %v508_v23 = vld [vmem:[%s10478_s6 + $0x968] sm:$0xff] }
  0x5d   : > { %v510_v24 = vld [vmem:[%s10478_s6 + $0x980] sm:$0xff]  ;;  %507 = vst [vmem:[%s10486_s7 + $0x4b0] sm:$0xff] %v506_v22  ;;  %509 = vst [vmem:[%s10486_s7 + $0x4b8] sm:$0xff] %v508_v23  ;;  %v512_v25 = vld [vmem:[%s10478_s6 + $0x988] sm:$0xff] }
  0x5e   : > { %511 = vst [vmem:[%s10486_s7 + $0x4c0] sm:$0xff] %v510_v24  ;;  %v514_v26 = vld [vmem:[%s10478_s6 + $0x9a0] sm:$0xff]  ;;  %v516_v27 = vld [vmem:[%s10478_s6 + $0x9a8] sm:$0xff]  ;;  %513 = vst [vmem:[%s10486_s7 + $0x4c8] sm:$0xff] %v512_v25 }
  0x5f   : > { %515 = vst [vmem:[%s10486_s7 + $0x4d0] sm:$0xff] %v514_v26  ;;  %517 = vst [vmem:[%s10486_s7 + $0x4d8] sm:$0xff] %v516_v27  ;;  %v518_v28 = vld [vmem:[%s10478_s6 + $0x9c0] sm:$0xff]  ;;  %v520_v29 = vld [vmem:[%s10478_s6 + $0x9c8] sm:$0xff] }
  0x60   : > { %v522_v30 = vld [vmem:[%s10478_s6 + $0x9e0] sm:$0xff]  ;;  %519 = vst [vmem:[%s10486_s7 + $0x4e0] sm:$0xff] %v518_v28  ;;  %521 = vst [vmem:[%s10486_s7 + $0x4e8] sm:$0xff] %v520_v29  ;;  %v524_v31 = vld [vmem:[%s10478_s6 + $0x9e8] sm:$0xff] }
  0x61   : > { %523 = vst [vmem:[%s10486_s7 + $0x4f0] sm:$0xff] %v522_v30  ;;  %v526_v32 = vld [vmem:[%s10478_s6 + $0xa00] sm:$0xff]  ;;  %v528_v33 = vld [vmem:[%s10478_s6 + $0xa08] sm:$0xff]  ;;  %525 = vst [vmem:[%s10486_s7 + $0x4f8] sm:$0xff] %v524_v31 }
  0x62   : > { %527 = vst [vmem:[%s10486_s7 + $0x500] sm:$0xff] %v526_v32  ;;  %529 = vst [vmem:[%s10486_s7 + $0x508] sm:$0xff] %v528_v33  ;;  %v530_v34 = vld [vmem:[%s10478_s6 + $0xa20] sm:$0xff]  ;;  %v532_v35 = vld [vmem:[%s10478_s6 + $0xa28] sm:$0xff] }
  0x63   : > { %v534_v36 = vld [vmem:[%s10478_s6 + $0xa40] sm:$0xff]  ;;  %531 = vst [vmem:[%s10486_s7 + $0x510] sm:$0xff] %v530_v34  ;;  %533 = vst [vmem:[%s10486_s7 + $0x518] sm:$0xff] %v532_v35  ;;  %v536_v37 = vld [vmem:[%s10478_s6 + $0xa48] sm:$0xff] }
  0x64   : > { %535 = vst [vmem:[%s10486_s7 + $0x520] sm:$0xff] %v534_v36  ;;  %v538_v38 = vld [vmem:[%s10478_s6 + $0xa60] sm:$0xff]  ;;  %v540_v39 = vld [vmem:[%s10478_s6 + $0xa68] sm:$0xff]  ;;  %537 = vst [vmem:[%s10486_s7 + $0x528] sm:$0xff] %v536_v37 }
  0x65   : > { %539 = vst [vmem:[%s10486_s7 + $0x530] sm:$0xff] %v538_v38  ;;  %541 = vst [vmem:[%s10486_s7 + $0x538] sm:$0xff] %v540_v39  ;;  %v542_v40 = vld [vmem:[%s10478_s6 + $0xa80] sm:$0xff]  ;;  %v544_v41 = vld [vmem:[%s10478_s6 + $0xa88] sm:$0xff] }
  0x66   : > { %v546_v42 = vld [vmem:[%s10478_s6 + $0xaa0] sm:$0xff]  ;;  %543 = vst [vmem:[%s10486_s7 + $0x540] sm:$0xff] %v542_v40  ;;  %545 = vst [vmem:[%s10486_s7 + $0x548] sm:$0xff] %v544_v41  ;;  %v548_v43 = vld [vmem:[%s10478_s6 + $0xaa8] sm:$0xff] }
  0x67   : > { %547 = vst [vmem:[%s10486_s7 + $0x550] sm:$0xff] %v546_v42  ;;  %v550_v44 = vld [vmem:[%s10478_s6 + $0xac0] sm:$0xff]  ;;  %v552_v45 = vld [vmem:[%s10478_s6 + $0xac8] sm:$0xff]  ;;  %549 = vst [vmem:[%s10486_s7 + $0x558] sm:$0xff] %v548_v43 }
  0x68   : > { %551 = vst [vmem:[%s10486_s7 + $0x560] sm:$0xff] %v550_v44  ;;  %553 = vst [vmem:[%s10486_s7 + $0x568] sm:$0xff] %v552_v45  ;;  %v554_v46 = vld [vmem:[%s10478_s6 + $0xae0] sm:$0xff]  ;;  %v556_v47 = vld [vmem:[%s10478_s6 + $0xae8] sm:$0xff] }
  0x69   : > { %v558_v48 = vld [vmem:[%s10478_s6 + $0xb00] sm:$0xff]  ;;  %555 = vst [vmem:[%s10486_s7 + $0x570] sm:$0xff] %v554_v46  ;;  %557 = vst [vmem:[%s10486_s7 + $0x578] sm:$0xff] %v556_v47  ;;  %v560_v49 = vld [vmem:[%s10478_s6 + $0xb08] sm:$0xff] }
  0x6a   : > { %559 = vst [vmem:[%s10486_s7 + $0x580] sm:$0xff] %v558_v48  ;;  %v562_v50 = vld [vmem:[%s10478_s6 + $0xb20] sm:$0xff]  ;;  %v564_v51 = vld [vmem:[%s10478_s6 + $0xb28] sm:$0xff]  ;;  %561 = vst [vmem:[%s10486_s7 + $0x588] sm:$0xff] %v560_v49 }
  0x6b   : > { %563 = vst [vmem:[%s10486_s7 + $0x590] sm:$0xff] %v562_v50  ;;  %565 = vst [vmem:[%s10486_s7 + $0x598] sm:$0xff] %v564_v51  ;;  %v566_v52 = vld [vmem:[%s10478_s6 + $0xb40] sm:$0xff]  ;;  %v568_v53 = vld [vmem:[%s10478_s6 + $0xb48] sm:$0xff] }
  0x6c   : > { %v570_v54 = vld [vmem:[%s10478_s6 + $0xb60] sm:$0xff]  ;;  %567 = vst [vmem:[%s10486_s7 + $0x5a0] sm:$0xff] %v566_v52  ;;  %569 = vst [vmem:[%s10486_s7 + $0x5a8] sm:$0xff] %v568_v53  ;;  %v572_v55 = vld [vmem:[%s10478_s6 + $0xb68] sm:$0xff] }
  0x6d   : > { %571 = vst [vmem:[%s10486_s7 + $0x5b0] sm:$0xff] %v570_v54  ;;  %v574_v56 = vld [vmem:[%s10478_s6 + $0xb80] sm:$0xff]  ;;  %v576_v57 = vld [vmem:[%s10478_s6 + $0xb88] sm:$0xff]  ;;  %573 = vst [vmem:[%s10486_s7 + $0x5b8] sm:$0xff] %v572_v55 }
  0x6e   : > { %575 = vst [vmem:[%s10486_s7 + $0x5c0] sm:$0xff] %v574_v56  ;;  %577 = vst [vmem:[%s10486_s7 + $0x5c8] sm:$0xff] %v576_v57  ;;  %v578_v58 = vld [vmem:[%s10478_s6 + $0xba0] sm:$0xff]  ;;  %v580_v59 = vld [vmem:[%s10478_s6 + $0xba8] sm:$0xff] }
  0x6f   : > { %v582_v60 = vld [vmem:[%s10478_s6 + $0xbc0] sm:$0xff]  ;;  %579 = vst [vmem:[%s10486_s7 + $0x5d0] sm:$0xff] %v578_v58  ;;  %581 = vst [vmem:[%s10486_s7 + $0x5d8] sm:$0xff] %v580_v59  ;;  %v584_v61 = vld [vmem:[%s10478_s6 + $0xbc8] sm:$0xff] }
  0x70   : > { %583 = vst [vmem:[%s10486_s7 + $0x5e0] sm:$0xff] %v582_v60  ;;  %v586_v62 = vld [vmem:[%s10478_s6 + $0xbe0] sm:$0xff]  ;;  %v588_v63 = vld [vmem:[%s10478_s6 + $0xbe8] sm:$0xff]  ;;  %585 = vst [vmem:[%s10486_s7 + $0x5e8] sm:$0xff] %v584_v61 }
  0x71   : > { %587 = vst [vmem:[%s10486_s7 + $0x5f0] sm:$0xff] %v586_v62  ;;  %589 = vst [vmem:[%s10486_s7 + $0x5f8] sm:$0xff] %v588_v63  ;;  %v590_v0 = vld [vmem:[%s10478_s6 + $0xc00] sm:$0xff]  ;;  %v592_v1 = vld [vmem:[%s10478_s6 + $0xc08] sm:$0xff] }
  0x72   : > { %v594_v2 = vld [vmem:[%s10478_s6 + $0xc20] sm:$0xff]  ;;  %591 = vst [vmem:[%s10486_s7 + $0x600] sm:$0xff] %v590_v0  ;;  %593 = vst [vmem:[%s10486_s7 + $0x608] sm:$0xff] %v592_v1  ;;  %v596_v3 = vld [vmem:[%s10478_s6 + $0xc28] sm:$0xff] }
  0x73   : > { %595 = vst [vmem:[%s10486_s7 + $0x610] sm:$0xff] %v594_v2  ;;  %v598_v4 = vld [vmem:[%s10478_s6 + $0xc40] sm:$0xff]  ;;  %v600_v5 = vld [vmem:[%s10478_s6 + $0xc48] sm:$0xff]  ;;  %597 = vst [vmem:[%s10486_s7 + $0x618] sm:$0xff] %v596_v3 }
  0x74   : > { %599 = vst [vmem:[%s10486_s7 + $0x620] sm:$0xff] %v598_v4  ;;  %601 = vst [vmem:[%s10486_s7 + $0x628] sm:$0xff] %v600_v5  ;;  %v602_v6 = vld [vmem:[%s10478_s6 + $0xc60] sm:$0xff]  ;;  %v604_v7 = vld [vmem:[%s10478_s6 + $0xc68] sm:$0xff] }
  0x75   : > { %v606_v8 = vld [vmem:[%s10478_s6 + $0xc80] sm:$0xff]  ;;  %603 = vst [vmem:[%s10486_s7 + $0x630] sm:$0xff] %v602_v6  ;;  %605 = vst [vmem:[%s10486_s7 + $0x638] sm:$0xff] %v604_v7  ;;  %v608_v9 = vld [vmem:[%s10478_s6 + $0xc88] sm:$0xff] }
  0x76   : > { %607 = vst [vmem:[%s10486_s7 + $0x640] sm:$0xff] %v606_v8  ;;  %v610_v10 = vld [vmem:[%s10478_s6 + $0xca0] sm:$0xff]  ;;  %v612_v11 = vld [vmem:[%s10478_s6 + $0xca8] sm:$0xff]  ;;  %609 = vst [vmem:[%s10486_s7 + $0x648] sm:$0xff] %v608_v9 }
  0x77   : > { %611 = vst [vmem:[%s10486_s7 + $0x650] sm:$0xff] %v610_v10  ;;  %613 = vst [vmem:[%s10486_s7 + $0x658] sm:$0xff] %v612_v11  ;;  %v614_v12 = vld [vmem:[%s10478_s6 + $0xcc0] sm:$0xff]  ;;  %v616_v13 = vld [vmem:[%s10478_s6 + $0xcc8] sm:$0xff] }
  0x78   : > { %v618_v14 = vld [vmem:[%s10478_s6 + $0xce0] sm:$0xff]  ;;  %615 = vst [vmem:[%s10486_s7 + $0x660] sm:$0xff] %v614_v12  ;;  %617 = vst [vmem:[%s10486_s7 + $0x668] sm:$0xff] %v616_v13  ;;  %v620_v15 = vld [vmem:[%s10478_s6 + $0xce8] sm:$0xff] }
  0x79   : > { %619 = vst [vmem:[%s10486_s7 + $0x670] sm:$0xff] %v618_v14  ;;  %v622_v16 = vld [vmem:[%s10478_s6 + $0xd00] sm:$0xff]  ;;  %v624_v17 = vld [vmem:[%s10478_s6 + $0xd08] sm:$0xff]  ;;  %621 = vst [vmem:[%s10486_s7 + $0x678] sm:$0xff] %v620_v15 }
  0x7a   : > { %623 = vst [vmem:[%s10486_s7 + $0x680] sm:$0xff] %v622_v16  ;;  %625 = vst [vmem:[%s10486_s7 + $0x688] sm:$0xff] %v624_v17  ;;  %v626_v18 = vld [vmem:[%s10478_s6 + $0xd20] sm:$0xff]  ;;  %v628_v19 = vld [vmem:[%s10478_s6 + $0xd28] sm:$0xff] }
  0x7b   : > { %v630_v20 = vld [vmem:[%s10478_s6 + $0xd40] sm:$0xff]  ;;  %627 = vst [vmem:[%s10486_s7 + $0x690] sm:$0xff] %v626_v18  ;;  %629 = vst [vmem:[%s10486_s7 + $0x698] sm:$0xff] %v628_v19  ;;  %v632_v21 = vld [vmem:[%s10478_s6 + $0xd48] sm:$0xff] }
  0x7c   : > { %631 = vst [vmem:[%s10486_s7 + $0x6a0] sm:$0xff] %v630_v20  ;;  %v634_v22 = vld [vmem:[%s10478_s6 + $0xd60] sm:$0xff]  ;;  %v636_v23 = vld [vmem:[%s10478_s6 + $0xd68] sm:$0xff]  ;;  %633 = vst [vmem:[%s10486_s7 + $0x6a8] sm:$0xff] %v632_v21 }
  0x7d   : > { %635 = vst [vmem:[%s10486_s7 + $0x6b0] sm:$0xff] %v634_v22  ;;  %637 = vst [vmem:[%s10486_s7 + $0x6b8] sm:$0xff] %v636_v23  ;;  %v638_v24 = vld [vmem:[%s10478_s6 + $0xd80] sm:$0xff]  ;;  %v640_v25 = vld [vmem:[%s10478_s6 + $0xd88] sm:$0xff] }
  0x7e   : > { %v642_v26 = vld [vmem:[%s10478_s6 + $0xda0] sm:$0xff]  ;;  %639 = vst [vmem:[%s10486_s7 + $0x6c0] sm:$0xff] %v638_v24  ;;  %641 = vst [vmem:[%s10486_s7 + $0x6c8] sm:$0xff] %v640_v25  ;;  %v644_v27 = vld [vmem:[%s10478_s6 + $0xda8] sm:$0xff] }
  0x7f   : > { %643 = vst [vmem:[%s10486_s7 + $0x6d0] sm:$0xff] %v642_v26  ;;  %v646_v28 = vld [vmem:[%s10478_s6 + $0xdc0] sm:$0xff]  ;;  %v648_v29 = vld [vmem:[%s10478_s6 + $0xdc8] sm:$0xff]  ;;  %645 = vst [vmem:[%s10486_s7 + $0x6d8] sm:$0xff] %v644_v27 }
  0x80   : > { %647 = vst [vmem:[%s10486_s7 + $0x6e0] sm:$0xff] %v646_v28  ;;  %649 = vst [vmem:[%s10486_s7 + $0x6e8] sm:$0xff] %v648_v29  ;;  %v650_v30 = vld [vmem:[%s10478_s6 + $0xde0] sm:$0xff]  ;;  %v652_v31 = vld [vmem:[%s10478_s6 + $0xde8] sm:$0xff] }
  0x81   : > { %v654_v32 = vld [vmem:[%s10478_s6 + $0xe00] sm:$0xff]  ;;  %651 = vst [vmem:[%s10486_s7 + $0x6f0] sm:$0xff] %v650_v30  ;;  %653 = vst [vmem:[%s10486_s7 + $0x6f8] sm:$0xff] %v652_v31  ;;  %v656_v33 = vld [vmem:[%s10478_s6 + $0xe08] sm:$0xff] }
  0x82   : > { %655 = vst [vmem:[%s10486_s7 + $0x700] sm:$0xff] %v654_v32  ;;  %v658_v34 = vld [vmem:[%s10478_s6 + $0xe20] sm:$0xff]  ;;  %v660_v35 = vld [vmem:[%s10478_s6 + $0xe28] sm:$0xff]  ;;  %657 = vst [vmem:[%s10486_s7 + $0x708] sm:$0xff] %v656_v33 }
  0x83   : > { %659 = vst [vmem:[%s10486_s7 + $0x710] sm:$0xff] %v658_v34  ;;  %661 = vst [vmem:[%s10486_s7 + $0x718] sm:$0xff] %v660_v35  ;;  %v662_v36 = vld [vmem:[%s10478_s6 + $0xe40] sm:$0xff]  ;;  %v664_v37 = vld [vmem:[%s10478_s6 + $0xe48] sm:$0xff] }
  0x84   : > { %v666_v38 = vld [vmem:[%s10478_s6 + $0xe60] sm:$0xff]  ;;  %663 = vst [vmem:[%s10486_s7 + $0x720] sm:$0xff] %v662_v36  ;;  %665 = vst [vmem:[%s10486_s7 + $0x728] sm:$0xff] %v664_v37  ;;  %v668_v39 = vld [vmem:[%s10478_s6 + $0xe68] sm:$0xff] }
  0x85   : > { %667 = vst [vmem:[%s10486_s7 + $0x730] sm:$0xff] %v666_v38  ;;  %v670_v40 = vld [vmem:[%s10478_s6 + $0xe80] sm:$0xff]  ;;  %v672_v41 = vld [vmem:[%s10478_s6 + $0xe88] sm:$0xff]  ;;  %669 = vst [vmem:[%s10486_s7 + $0x738] sm:$0xff] %v668_v39 }
  0x86   : > { %671 = vst [vmem:[%s10486_s7 + $0x740] sm:$0xff] %v670_v40  ;;  %673 = vst [vmem:[%s10486_s7 + $0x748] sm:$0xff] %v672_v41  ;;  %v674_v42 = vld [vmem:[%s10478_s6 + $0xea0] sm:$0xff]  ;;  %v676_v43 = vld [vmem:[%s10478_s6 + $0xea8] sm:$0xff] }
  0x87   : > { %v678_v44 = vld [vmem:[%s10478_s6 + $0xec0] sm:$0xff]  ;;  %675 = vst [vmem:[%s10486_s7 + $0x750] sm:$0xff] %v674_v42  ;;  %677 = vst [vmem:[%s10486_s7 + $0x758] sm:$0xff] %v676_v43  ;;  %v680_v45 = vld [vmem:[%s10478_s6 + $0xec8] sm:$0xff] }
  0x88   : > { %679 = vst [vmem:[%s10486_s7 + $0x760] sm:$0xff] %v678_v44  ;;  %v682_v46 = vld [vmem:[%s10478_s6 + $0xee0] sm:$0xff]  ;;  %v684_v47 = vld [vmem:[%s10478_s6 + $0xee8] sm:$0xff]  ;;  %681 = vst [vmem:[%s10486_s7 + $0x768] sm:$0xff] %v680_v45 }
  0x89   : > { %683 = vst [vmem:[%s10486_s7 + $0x770] sm:$0xff] %v682_v46  ;;  %685 = vst [vmem:[%s10486_s7 + $0x778] sm:$0xff] %v684_v47  ;;  %v686_v48 = vld [vmem:[%s10478_s6 + $0xf00] sm:$0xff]  ;;  %v688_v49 = vld [vmem:[%s10478_s6 + $0xf08] sm:$0xff] }
  0x8a   : > { %v690_v50 = vld [vmem:[%s10478_s6 + $0xf20] sm:$0xff]  ;;  %687 = vst [vmem:[%s10486_s7 + $0x780] sm:$0xff] %v686_v48  ;;  %689 = vst [vmem:[%s10486_s7 + $0x788] sm:$0xff] %v688_v49  ;;  %v692_v51 = vld [vmem:[%s10478_s6 + $0xf28] sm:$0xff] }
  0x8b   : > { %691 = vst [vmem:[%s10486_s7 + $0x790] sm:$0xff] %v690_v50  ;;  %v694_v52 = vld [vmem:[%s10478_s6 + $0xf40] sm:$0xff]  ;;  %v696_v53 = vld [vmem:[%s10478_s6 + $0xf48] sm:$0xff]  ;;  %693 = vst [vmem:[%s10486_s7 + $0x798] sm:$0xff] %v692_v51 }
  0x8c   : > { %695 = vst [vmem:[%s10486_s7 + $0x7a0] sm:$0xff] %v694_v52  ;;  %697 = vst [vmem:[%s10486_s7 + $0x7a8] sm:$0xff] %v696_v53  ;;  %v698_v54 = vld [vmem:[%s10478_s6 + $0xf60] sm:$0xff]  ;;  %v700_v55 = vld [vmem:[%s10478_s6 + $0xf68] sm:$0xff] }
  0x8d   : > { %v702_v56 = vld [vmem:[%s10478_s6 + $0xf80] sm:$0xff]  ;;  %699 = vst [vmem:[%s10486_s7 + $0x7b0] sm:$0xff] %v698_v54  ;;  %701 = vst [vmem:[%s10486_s7 + $0x7b8] sm:$0xff] %v700_v55  ;;  %v704_v57 = vld [vmem:[%s10478_s6 + $0xf88] sm:$0xff] }
  0x8e   : > { %703 = vst [vmem:[%s10486_s7 + $0x7c0] sm:$0xff] %v702_v56  ;;  %v706_v58 = vld [vmem:[%s10478_s6 + $0xfa0] sm:$0xff]  ;;  %v708_v59 = vld [vmem:[%s10478_s6 + $0xfa8] sm:$0xff]  ;;  %705 = vst [vmem:[%s10486_s7 + $0x7c8] sm:$0xff] %v704_v57 }
  0x8f   : > { %707 = vst [vmem:[%s10486_s7 + $0x7d0] sm:$0xff] %v706_v58  ;;  %709 = vst [vmem:[%s10486_s7 + $0x7d8] sm:$0xff] %v708_v59  ;;  %v710_v60 = vld [vmem:[%s10478_s6 + $0xfc0] sm:$0xff]  ;;  %v712_v61 = vld [vmem:[%s10478_s6 + $0xfc8] sm:$0xff] }
  0x90   : > { %v714_v62 = vld [vmem:[%s10478_s6 + $0xfe0] sm:$0xff]  ;;  %711 = vst [vmem:[%s10486_s7 + $0x7e0] sm:$0xff] %v710_v60  ;;  %713 = vst [vmem:[%s10486_s7 + $0x7e8] sm:$0xff] %v712_v61  ;;  %v716_v63 = vld [vmem:[%s10478_s6 + $0xfe8] sm:$0xff] }
  0x91   : > { %715 = vst [vmem:[%s10486_s7 + $0x7f0] sm:$0xff] %v714_v62  ;;  %v718_v0 = vld [vmem:[%s10478_s6 + $0x1000] sm:$0xff]  ;;  %v720_v1 = vld [vmem:[%s10478_s6 + $0x1008] sm:$0xff]  ;;  %717 = vst [vmem:[%s10486_s7 + $0x7f8] sm:$0xff] %v716_v63 }
  0x92   : > { %719 = vst [vmem:[%s10486_s7 + $0x800] sm:$0xff] %v718_v0  ;;  %721 = vst [vmem:[%s10486_s7 + $0x808] sm:$0xff] %v720_v1  ;;  %v722_v2 = vld [vmem:[%s10478_s6 + $0x1020] sm:$0xff]  ;;  %v724_v3 = vld [vmem:[%s10478_s6 + $0x1028] sm:$0xff] }
  0x93   : > { %v726_v4 = vld [vmem:[%s10478_s6 + $0x1040] sm:$0xff]  ;;  %723 = vst [vmem:[%s10486_s7 + $0x810] sm:$0xff] %v722_v2  ;;  %725 = vst [vmem:[%s10486_s7 + $0x818] sm:$0xff] %v724_v3  ;;  %v728_v5 = vld [vmem:[%s10478_s6 + $0x1048] sm:$0xff] }
  0x94   : > { %727 = vst [vmem:[%s10486_s7 + $0x820] sm:$0xff] %v726_v4  ;;  %v730_v6 = vld [vmem:[%s10478_s6 + $0x1060] sm:$0xff]  ;;  %v732_v7 = vld [vmem:[%s10478_s6 + $0x1068] sm:$0xff]  ;;  %729 = vst [vmem:[%s10486_s7 + $0x828] sm:$0xff] %v728_v5 }
  0x95   : > { %731 = vst [vmem:[%s10486_s7 + $0x830] sm:$0xff] %v730_v6  ;;  %733 = vst [vmem:[%s10486_s7 + $0x838] sm:$0xff] %v732_v7  ;;  %v734_v8 = vld [vmem:[%s10478_s6 + $0x1080] sm:$0xff]  ;;  %v736_v9 = vld [vmem:[%s10478_s6 + $0x1088] sm:$0xff] }
  0x96   : > { %v738_v10 = vld [vmem:[%s10478_s6 + $0x10a0] sm:$0xff]  ;;  %735 = vst [vmem:[%s10486_s7 + $0x840] sm:$0xff] %v734_v8  ;;  %737 = vst [vmem:[%s10486_s7 + $0x848] sm:$0xff] %v736_v9  ;;  %v740_v11 = vld [vmem:[%s10478_s6 + $0x10a8] sm:$0xff] }
  0x97   : > { %739 = vst [vmem:[%s10486_s7 + $0x850] sm:$0xff] %v738_v10  ;;  %v742_v12 = vld [vmem:[%s10478_s6 + $0x10c0] sm:$0xff]  ;;  %v744_v13 = vld [vmem:[%s10478_s6 + $0x10c8] sm:$0xff]  ;;  %741 = vst [vmem:[%s10486_s7 + $0x858] sm:$0xff] %v740_v11 }
  0x98   : > { %743 = vst [vmem:[%s10486_s7 + $0x860] sm:$0xff] %v742_v12  ;;  %745 = vst [vmem:[%s10486_s7 + $0x868] sm:$0xff] %v744_v13  ;;  %v746_v14 = vld [vmem:[%s10478_s6 + $0x10e0] sm:$0xff]  ;;  %v748_v15 = vld [vmem:[%s10478_s6 + $0x10e8] sm:$0xff] }
  0x99   : > { %v750_v16 = vld [vmem:[%s10478_s6 + $0x1100] sm:$0xff]  ;;  %747 = vst [vmem:[%s10486_s7 + $0x870] sm:$0xff] %v746_v14  ;;  %749 = vst [vmem:[%s10486_s7 + $0x878] sm:$0xff] %v748_v15  ;;  %v752_v17 = vld [vmem:[%s10478_s6 + $0x1108] sm:$0xff] }
  0x9a   : > { %751 = vst [vmem:[%s10486_s7 + $0x880] sm:$0xff] %v750_v16  ;;  %v754_v18 = vld [vmem:[%s10478_s6 + $0x1120] sm:$0xff]  ;;  %v756_v19 = vld [vmem:[%s10478_s6 + $0x1128] sm:$0xff]  ;;  %753 = vst [vmem:[%s10486_s7 + $0x888] sm:$0xff] %v752_v17 }
  0x9b   : > { %755 = vst [vmem:[%s10486_s7 + $0x890] sm:$0xff] %v754_v18  ;;  %757 = vst [vmem:[%s10486_s7 + $0x898] sm:$0xff] %v756_v19  ;;  %v758_v20 = vld [vmem:[%s10478_s6 + $0x1140] sm:$0xff]  ;;  %v760_v21 = vld [vmem:[%s10478_s6 + $0x1148] sm:$0xff] }
  0x9c   : > { %v762_v22 = vld [vmem:[%s10478_s6 + $0x1160] sm:$0xff]  ;;  %759 = vst [vmem:[%s10486_s7 + $0x8a0] sm:$0xff] %v758_v20  ;;  %761 = vst [vmem:[%s10486_s7 + $0x8a8] sm:$0xff] %v760_v21  ;;  %v764_v23 = vld [vmem:[%s10478_s6 + $0x1168] sm:$0xff] }
  0x9d   : > { %763 = vst [vmem:[%s10486_s7 + $0x8b0] sm:$0xff] %v762_v22  ;;  %v766_v24 = vld [vmem:[%s10478_s6 + $0x1180] sm:$0xff]  ;;  %v768_v25 = vld [vmem:[%s10478_s6 + $0x1188] sm:$0xff]  ;;  %765 = vst [vmem:[%s10486_s7 + $0x8b8] sm:$0xff] %v764_v23 }
  0x9e   : > { %767 = vst [vmem:[%s10486_s7 + $0x8c0] sm:$0xff] %v766_v24  ;;  %769 = vst [vmem:[%s10486_s7 + $0x8c8] sm:$0xff] %v768_v25  ;;  %v770_v26 = vld [vmem:[%s10478_s6 + $0x11a0] sm:$0xff]  ;;  %v772_v27 = vld [vmem:[%s10478_s6 + $0x11a8] sm:$0xff] }
  0x9f   : > { %v774_v28 = vld [vmem:[%s10478_s6 + $0x11c0] sm:$0xff]  ;;  %771 = vst [vmem:[%s10486_s7 + $0x8d0] sm:$0xff] %v770_v26  ;;  %773 = vst [vmem:[%s10486_s7 + $0x8d8] sm:$0xff] %v772_v27  ;;  %v776_v29 = vld [vmem:[%s10478_s6 + $0x11c8] sm:$0xff] }
  0xa0   : > { %775 = vst [vmem:[%s10486_s7 + $0x8e0] sm:$0xff] %v774_v28  ;;  %v778_v30 = vld [vmem:[%s10478_s6 + $0x11e0] sm:$0xff]  ;;  %v780_v31 = vld [vmem:[%s10478_s6 + $0x11e8] sm:$0xff]  ;;  %777 = vst [vmem:[%s10486_s7 + $0x8e8] sm:$0xff] %v776_v29 }
  0xa1   : > { %779 = vst [vmem:[%s10486_s7 + $0x8f0] sm:$0xff] %v778_v30  ;;  %781 = vst [vmem:[%s10486_s7 + $0x8f8] sm:$0xff] %v780_v31  ;;  %v782_v32 = vld [vmem:[%s10478_s6 + $0x1200] sm:$0xff]  ;;  %v784_v33 = vld [vmem:[%s10478_s6 + $0x1208] sm:$0xff] }
  0xa2   : > { %v786_v34 = vld [vmem:[%s10478_s6 + $0x1220] sm:$0xff]  ;;  %783 = vst [vmem:[%s10486_s7 + $0x900] sm:$0xff] %v782_v32  ;;  %785 = vst [vmem:[%s10486_s7 + $0x908] sm:$0xff] %v784_v33  ;;  %v788_v35 = vld [vmem:[%s10478_s6 + $0x1228] sm:$0xff] }
  0xa3   : > { %787 = vst [vmem:[%s10486_s7 + $0x910] sm:$0xff] %v786_v34  ;;  %v790_v36 = vld [vmem:[%s10478_s6 + $0x1240] sm:$0xff]  ;;  %v792_v37 = vld [vmem:[%s10478_s6 + $0x1248] sm:$0xff]  ;;  %789 = vst [vmem:[%s10486_s7 + $0x918] sm:$0xff] %v788_v35 }
  0xa4   : > { %791 = vst [vmem:[%s10486_s7 + $0x920] sm:$0xff] %v790_v36  ;;  %793 = vst [vmem:[%s10486_s7 + $0x928] sm:$0xff] %v792_v37  ;;  %v794_v38 = vld [vmem:[%s10478_s6 + $0x1260] sm:$0xff]  ;;  %v796_v39 = vld [vmem:[%s10478_s6 + $0x1268] sm:$0xff] }
  0xa5   : > { %v798_v40 = vld [vmem:[%s10478_s6 + $0x1280] sm:$0xff]  ;;  %795 = vst [vmem:[%s10486_s7 + $0x930] sm:$0xff] %v794_v38  ;;  %797 = vst [vmem:[%s10486_s7 + $0x938] sm:$0xff] %v796_v39  ;;  %v800_v41 = vld [vmem:[%s10478_s6 + $0x1288] sm:$0xff] }
  0xa6   : > { %799 = vst [vmem:[%s10486_s7 + $0x940] sm:$0xff] %v798_v40  ;;  %v802_v42 = vld [vmem:[%s10478_s6 + $0x12a0] sm:$0xff]  ;;  %v804_v43 = vld [vmem:[%s10478_s6 + $0x12a8] sm:$0xff]  ;;  %801 = vst [vmem:[%s10486_s7 + $0x948] sm:$0xff] %v800_v41 }
  0xa7   : > { %803 = vst [vmem:[%s10486_s7 + $0x950] sm:$0xff] %v802_v42  ;;  %805 = vst [vmem:[%s10486_s7 + $0x958] sm:$0xff] %v804_v43  ;;  %v806_v44 = vld [vmem:[%s10478_s6 + $0x12c0] sm:$0xff]  ;;  %v808_v45 = vld [vmem:[%s10478_s6 + $0x12c8] sm:$0xff] }
  0xa8   : > { %v810_v46 = vld [vmem:[%s10478_s6 + $0x12e0] sm:$0xff]  ;;  %807 = vst [vmem:[%s10486_s7 + $0x960] sm:$0xff] %v806_v44  ;;  %809 = vst [vmem:[%s10486_s7 + $0x968] sm:$0xff] %v808_v45  ;;  %v812_v47 = vld [vmem:[%s10478_s6 + $0x12e8] sm:$0xff] }
  0xa9   : > { %811 = vst [vmem:[%s10486_s7 + $0x970] sm:$0xff] %v810_v46  ;;  %v814_v48 = vld [vmem:[%s10478_s6 + $0x1300] sm:$0xff]  ;;  %v816_v49 = vld [vmem:[%s10478_s6 + $0x1308] sm:$0xff]  ;;  %813 = vst [vmem:[%s10486_s7 + $0x978] sm:$0xff] %v812_v47 }
  0xaa   : > { %815 = vst [vmem:[%s10486_s7 + $0x980] sm:$0xff] %v814_v48  ;;  %817 = vst [vmem:[%s10486_s7 + $0x988] sm:$0xff] %v816_v49  ;;  %v818_v50 = vld [vmem:[%s10478_s6 + $0x1320] sm:$0xff]  ;;  %v820_v51 = vld [vmem:[%s10478_s6 + $0x1328] sm:$0xff] }
  0xab   : > { %v822_v52 = vld [vmem:[%s10478_s6 + $0x1340] sm:$0xff]  ;;  %819 = vst [vmem:[%s10486_s7 + $0x990] sm:$0xff] %v818_v50  ;;  %821 = vst [vmem:[%s10486_s7 + $0x998] sm:$0xff] %v820_v51  ;;  %v824_v53 = vld [vmem:[%s10478_s6 + $0x1348] sm:$0xff] }
  0xac   : > { %823 = vst [vmem:[%s10486_s7 + $0x9a0] sm:$0xff] %v822_v52  ;;  %v826_v54 = vld [vmem:[%s10478_s6 + $0x1360] sm:$0xff]  ;;  %v828_v55 = vld [vmem:[%s10478_s6 + $0x1368] sm:$0xff]  ;;  %825 = vst [vmem:[%s10486_s7 + $0x9a8] sm:$0xff] %v824_v53 }
  0xad   : > { %827 = vst [vmem:[%s10486_s7 + $0x9b0] sm:$0xff] %v826_v54  ;;  %829 = vst [vmem:[%s10486_s7 + $0x9b8] sm:$0xff] %v828_v55  ;;  %v830_v56 = vld [vmem:[%s10478_s6 + $0x1380] sm:$0xff]  ;;  %v832_v57 = vld [vmem:[%s10478_s6 + $0x1388] sm:$0xff] }
  0xae   : > { %v834_v58 = vld [vmem:[%s10478_s6 + $0x13a0] sm:$0xff]  ;;  %831 = vst [vmem:[%s10486_s7 + $0x9c0] sm:$0xff] %v830_v56  ;;  %833 = vst [vmem:[%s10486_s7 + $0x9c8] sm:$0xff] %v832_v57  ;;  %v836_v59 = vld [vmem:[%s10478_s6 + $0x13a8] sm:$0xff] }
  0xaf   : > { %835 = vst [vmem:[%s10486_s7 + $0x9d0] sm:$0xff] %v834_v58  ;;  %v838_v60 = vld [vmem:[%s10478_s6 + $0x13c0] sm:$0xff]  ;;  %v840_v61 = vld [vmem:[%s10478_s6 + $0x13c8] sm:$0xff]  ;;  %837 = vst [vmem:[%s10486_s7 + $0x9d8] sm:$0xff] %v836_v59 }
  0xb0   : > { %839 = vst [vmem:[%s10486_s7 + $0x9e0] sm:$0xff] %v838_v60  ;;  %841 = vst [vmem:[%s10486_s7 + $0x9e8] sm:$0xff] %v840_v61  ;;  %v842_v62 = vld [vmem:[%s10478_s6 + $0x13e0] sm:$0xff]  ;;  %v844_v63 = vld [vmem:[%s10478_s6 + $0x13e8] sm:$0xff] }
  0xb1   : > { %v846_v0 = vld [vmem:[%s10478_s6 + $0x1400] sm:$0xff]  ;;  %843 = vst [vmem:[%s10486_s7 + $0x9f0] sm:$0xff] %v842_v62  ;;  %845 = vst [vmem:[%s10486_s7 + $0x9f8] sm:$0xff] %v844_v63  ;;  %v848_v1 = vld [vmem:[%s10478_s6 + $0x1408] sm:$0xff] }
  0xb2   : > { %847 = vst [vmem:[%s10486_s7 + $0xa00] sm:$0xff] %v846_v0  ;;  %v850_v2 = vld [vmem:[%s10478_s6 + $0x1420] sm:$0xff]  ;;  %v852_v3 = vld [vmem:[%s10478_s6 + $0x1428] sm:$0xff]  ;;  %849 = vst [vmem:[%s10486_s7 + $0xa08] sm:$0xff] %v848_v1 }
  0xb3   : > { %851 = vst [vmem:[%s10486_s7 + $0xa10] sm:$0xff] %v850_v2  ;;  %853 = vst [vmem:[%s10486_s7 + $0xa18] sm:$0xff] %v852_v3  ;;  %v854_v4 = vld [vmem:[%s10478_s6 + $0x1440] sm:$0xff]  ;;  %v856_v5 = vld [vmem:[%s10478_s6 + $0x1448] sm:$0xff] }
  0xb4   : > { %v858_v6 = vld [vmem:[%s10478_s6 + $0x1460] sm:$0xff]  ;;  %855 = vst [vmem:[%s10486_s7 + $0xa20] sm:$0xff] %v854_v4  ;;  %857 = vst [vmem:[%s10486_s7 + $0xa28] sm:$0xff] %v856_v5  ;;  %v860_v7 = vld [vmem:[%s10478_s6 + $0x1468] sm:$0xff] }
  0xb5   : > { %859 = vst [vmem:[%s10486_s7 + $0xa30] sm:$0xff] %v858_v6  ;;  %v862_v8 = vld [vmem:[%s10478_s6 + $0x1480] sm:$0xff]  ;;  %v864_v9 = vld [vmem:[%s10478_s6 + $0x1488] sm:$0xff]  ;;  %861 = vst [vmem:[%s10486_s7 + $0xa38] sm:$0xff] %v860_v7 }
  0xb6   : > { %863 = vst [vmem:[%s10486_s7 + $0xa40] sm:$0xff] %v862_v8  ;;  %865 = vst [vmem:[%s10486_s7 + $0xa48] sm:$0xff] %v864_v9  ;;  %v866_v10 = vld [vmem:[%s10478_s6 + $0x14a0] sm:$0xff]  ;;  %v868_v11 = vld [vmem:[%s10478_s6 + $0x14a8] sm:$0xff] }
  0xb7   : > { %v870_v12 = vld [vmem:[%s10478_s6 + $0x14c0] sm:$0xff]  ;;  %867 = vst [vmem:[%s10486_s7 + $0xa50] sm:$0xff] %v866_v10  ;;  %869 = vst [vmem:[%s10486_s7 + $0xa58] sm:$0xff] %v868_v11  ;;  %v872_v13 = vld [vmem:[%s10478_s6 + $0x14c8] sm:$0xff] }
  0xb8   : > { %871 = vst [vmem:[%s10486_s7 + $0xa60] sm:$0xff] %v870_v12  ;;  %v874_v14 = vld [vmem:[%s10478_s6 + $0x14e0] sm:$0xff]  ;;  %v876_v15 = vld [vmem:[%s10478_s6 + $0x14e8] sm:$0xff]  ;;  %873 = vst [vmem:[%s10486_s7 + $0xa68] sm:$0xff] %v872_v13 }
  0xb9   : > { %875 = vst [vmem:[%s10486_s7 + $0xa70] sm:$0xff] %v874_v14  ;;  %877 = vst [vmem:[%s10486_s7 + $0xa78] sm:$0xff] %v876_v15  ;;  %v878_v16 = vld [vmem:[%s10478_s6 + $0x1500] sm:$0xff]  ;;  %v880_v17 = vld [vmem:[%s10478_s6 + $0x1508] sm:$0xff] }
  0xba   : > { %v882_v18 = vld [vmem:[%s10478_s6 + $0x1520] sm:$0xff]  ;;  %879 = vst [vmem:[%s10486_s7 + $0xa80] sm:$0xff] %v878_v16  ;;  %881 = vst [vmem:[%s10486_s7 + $0xa88] sm:$0xff] %v880_v17  ;;  %v884_v19 = vld [vmem:[%s10478_s6 + $0x1528] sm:$0xff] }
  0xbb   : > { %883 = vst [vmem:[%s10486_s7 + $0xa90] sm:$0xff] %v882_v18  ;;  %v886_v20 = vld [vmem:[%s10478_s6 + $0x1540] sm:$0xff]  ;;  %v888_v21 = vld [vmem:[%s10478_s6 + $0x1548] sm:$0xff]  ;;  %885 = vst [vmem:[%s10486_s7 + $0xa98] sm:$0xff] %v884_v19 }
  0xbc   : > { %887 = vst [vmem:[%s10486_s7 + $0xaa0] sm:$0xff] %v886_v20  ;;  %889 = vst [vmem:[%s10486_s7 + $0xaa8] sm:$0xff] %v888_v21  ;;  %v890_v22 = vld [vmem:[%s10478_s6 + $0x1560] sm:$0xff]  ;;  %v892_v23 = vld [vmem:[%s10478_s6 + $0x1568] sm:$0xff] }
  0xbd   : > { %v894_v24 = vld [vmem:[%s10478_s6 + $0x1580] sm:$0xff]  ;;  %891 = vst [vmem:[%s10486_s7 + $0xab0] sm:$0xff] %v890_v22  ;;  %893 = vst [vmem:[%s10486_s7 + $0xab8] sm:$0xff] %v892_v23  ;;  %v896_v25 = vld [vmem:[%s10478_s6 + $0x1588] sm:$0xff] }
  0xbe   : > { %895 = vst [vmem:[%s10486_s7 + $0xac0] sm:$0xff] %v894_v24  ;;  %v898_v26 = vld [vmem:[%s10478_s6 + $0x15a0] sm:$0xff]  ;;  %v900_v27 = vld [vmem:[%s10478_s6 + $0x15a8] sm:$0xff]  ;;  %897 = vst [vmem:[%s10486_s7 + $0xac8] sm:$0xff] %v896_v25 }
  0xbf   : > { %899 = vst [vmem:[%s10486_s7 + $0xad0] sm:$0xff] %v898_v26  ;;  %901 = vst [vmem:[%s10486_s7 + $0xad8] sm:$0xff] %v900_v27  ;;  %v902_v28 = vld [vmem:[%s10478_s6 + $0x15c0] sm:$0xff]  ;;  %v904_v29 = vld [vmem:[%s10478_s6 + $0x15c8] sm:$0xff] }
  0xc0   : > { %v906_v30 = vld [vmem:[%s10478_s6 + $0x15e0] sm:$0xff]  ;;  %903 = vst [vmem:[%s10486_s7 + $0xae0] sm:$0xff] %v902_v28  ;;  %905 = vst [vmem:[%s10486_s7 + $0xae8] sm:$0xff] %v904_v29  ;;  %v908_v31 = vld [vmem:[%s10478_s6 + $0x15e8] sm:$0xff] }
  0xc1   : > { %907 = vst [vmem:[%s10486_s7 + $0xaf0] sm:$0xff] %v906_v30  ;;  %v910_v32 = vld [vmem:[%s10478_s6 + $0x1600] sm:$0xff]  ;;  %v912_v33 = vld [vmem:[%s10478_s6 + $0x1608] sm:$0xff]  ;;  %909 = vst [vmem:[%s10486_s7 + $0xaf8] sm:$0xff] %v908_v31 }
  0xc2   : > { %911 = vst [vmem:[%s10486_s7 + $0xb00] sm:$0xff] %v910_v32  ;;  %913 = vst [vmem:[%s10486_s7 + $0xb08] sm:$0xff] %v912_v33  ;;  %v914_v34 = vld [vmem:[%s10478_s6 + $0x1620] sm:$0xff]  ;;  %v916_v35 = vld [vmem:[%s10478_s6 + $0x1628] sm:$0xff] }
  0xc3   : > { %v918_v36 = vld [vmem:[%s10478_s6 + $0x1640] sm:$0xff]  ;;  %915 = vst [vmem:[%s10486_s7 + $0xb10] sm:$0xff] %v914_v34  ;;  %917 = vst [vmem:[%s10486_s7 + $0xb18] sm:$0xff] %v916_v35  ;;  %v920_v37 = vld [vmem:[%s10478_s6 + $0x1648] sm:$0xff] }
  0xc4   : > { %919 = vst [vmem:[%s10486_s7 + $0xb20] sm:$0xff] %v918_v36  ;;  %v922_v38 = vld [vmem:[%s10478_s6 + $0x1660] sm:$0xff]  ;;  %v924_v39 = vld [vmem:[%s10478_s6 + $0x1668] sm:$0xff]  ;;  %921 = vst [vmem:[%s10486_s7 + $0xb28] sm:$0xff] %v920_v37 }
  0xc5   : > { %923 = vst [vmem:[%s10486_s7 + $0xb30] sm:$0xff] %v922_v38  ;;  %925 = vst [vmem:[%s10486_s7 + $0xb38] sm:$0xff] %v924_v39  ;;  %v926_v40 = vld [vmem:[%s10478_s6 + $0x1680] sm:$0xff]  ;;  %v928_v41 = vld [vmem:[%s10478_s6 + $0x1688] sm:$0xff] }
  0xc6   : > { %v930_v42 = vld [vmem:[%s10478_s6 + $0x16a0] sm:$0xff]  ;;  %927 = vst [vmem:[%s10486_s7 + $0xb40] sm:$0xff] %v926_v40  ;;  %929 = vst [vmem:[%s10486_s7 + $0xb48] sm:$0xff] %v928_v41  ;;  %v932_v43 = vld [vmem:[%s10478_s6 + $0x16a8] sm:$0xff] }
  0xc7   : > { %931 = vst [vmem:[%s10486_s7 + $0xb50] sm:$0xff] %v930_v42  ;;  %v934_v44 = vld [vmem:[%s10478_s6 + $0x16c0] sm:$0xff]  ;;  %v936_v45 = vld [vmem:[%s10478_s6 + $0x16c8] sm:$0xff]  ;;  %933 = vst [vmem:[%s10486_s7 + $0xb58] sm:$0xff] %v932_v43 }
  0xc8   : > { %935 = vst [vmem:[%s10486_s7 + $0xb60] sm:$0xff] %v934_v44  ;;  %937 = vst [vmem:[%s10486_s7 + $0xb68] sm:$0xff] %v936_v45  ;;  %v938_v46 = vld [vmem:[%s10478_s6 + $0x16e0] sm:$0xff]  ;;  %v940_v47 = vld [vmem:[%s10478_s6 + $0x16e8] sm:$0xff] }
  0xc9   : > { %v942_v48 = vld [vmem:[%s10478_s6 + $0x1700] sm:$0xff]  ;;  %939 = vst [vmem:[%s10486_s7 + $0xb70] sm:$0xff] %v938_v46  ;;  %941 = vst [vmem:[%s10486_s7 + $0xb78] sm:$0xff] %v940_v47  ;;  %v944_v49 = vld [vmem:[%s10478_s6 + $0x1708] sm:$0xff] }
  0xca   : > { %943 = vst [vmem:[%s10486_s7 + $0xb80] sm:$0xff] %v942_v48  ;;  %v946_v50 = vld [vmem:[%s10478_s6 + $0x1720] sm:$0xff]  ;;  %v948_v51 = vld [vmem:[%s10478_s6 + $0x1728] sm:$0xff]  ;;  %945 = vst [vmem:[%s10486_s7 + $0xb88] sm:$0xff] %v944_v49 }
  0xcb   : > { %947 = vst [vmem:[%s10486_s7 + $0xb90] sm:$0xff] %v946_v50  ;;  %949 = vst [vmem:[%s10486_s7 + $0xb98] sm:$0xff] %v948_v51  ;;  %v950_v52 = vld [vmem:[%s10478_s6 + $0x1740] sm:$0xff]  ;;  %v952_v53 = vld [vmem:[%s10478_s6 + $0x1748] sm:$0xff] }
  0xcc   : > { %v954_v54 = vld [vmem:[%s10478_s6 + $0x1760] sm:$0xff]  ;;  %951 = vst [vmem:[%s10486_s7 + $0xba0] sm:$0xff] %v950_v52  ;;  %953 = vst [vmem:[%s10486_s7 + $0xba8] sm:$0xff] %v952_v53  ;;  %v956_v55 = vld [vmem:[%s10478_s6 + $0x1768] sm:$0xff] }
  0xcd   : > { %955 = vst [vmem:[%s10486_s7 + $0xbb0] sm:$0xff] %v954_v54  ;;  %v958_v56 = vld [vmem:[%s10478_s6 + $0x1780] sm:$0xff]  ;;  %v960_v57 = vld [vmem:[%s10478_s6 + $0x1788] sm:$0xff]  ;;  %957 = vst [vmem:[%s10486_s7 + $0xbb8] sm:$0xff] %v956_v55 }
  0xce   : > { %959 = vst [vmem:[%s10486_s7 + $0xbc0] sm:$0xff] %v958_v56  ;;  %961 = vst [vmem:[%s10486_s7 + $0xbc8] sm:$0xff] %v960_v57  ;;  %v962_v58 = vld [vmem:[%s10478_s6 + $0x17a0] sm:$0xff]  ;;  %v964_v59 = vld [vmem:[%s10478_s6 + $0x17a8] sm:$0xff] }
  0xcf   : > { %v966_v60 = vld [vmem:[%s10478_s6 + $0x17c0] sm:$0xff]  ;;  %963 = vst [vmem:[%s10486_s7 + $0xbd0] sm:$0xff] %v962_v58  ;;  %965 = vst [vmem:[%s10486_s7 + $0xbd8] sm:$0xff] %v964_v59  ;;  %v968_v61 = vld [vmem:[%s10478_s6 + $0x17c8] sm:$0xff] }
  0xd0   : > { %967 = vst [vmem:[%s10486_s7 + $0xbe0] sm:$0xff] %v966_v60  ;;  %v970_v62 = vld [vmem:[%s10478_s6 + $0x17e0] sm:$0xff]  ;;  %v972_v63 = vld [vmem:[%s10478_s6 + $0x17e8] sm:$0xff]  ;;  %969 = vst [vmem:[%s10486_s7 + $0xbe8] sm:$0xff] %v968_v61 }
  0xd1   : > { %971 = vst [vmem:[%s10486_s7 + $0xbf0] sm:$0xff] %v970_v62  ;;  %973 = vst [vmem:[%s10486_s7 + $0xbf8] sm:$0xff] %v972_v63  ;;  %v974_v0 = vld [vmem:[%s10478_s6 + $0x1800] sm:$0xff]  ;;  %v976_v1 = vld [vmem:[%s10478_s6 + $0x1808] sm:$0xff] }
  0xd2   : > { %v978_v2 = vld [vmem:[%s10478_s6 + $0x1820] sm:$0xff]  ;;  %975 = vst [vmem:[%s10486_s7 + $0xc00] sm:$0xff] %v974_v0  ;;  %977 = vst [vmem:[%s10486_s7 + $0xc08] sm:$0xff] %v976_v1  ;;  %v980_v3 = vld [vmem:[%s10478_s6 + $0x1828] sm:$0xff] }
  0xd3   : > { %979 = vst [vmem:[%s10486_s7 + $0xc10] sm:$0xff] %v978_v2  ;;  %v982_v4 = vld [vmem:[%s10478_s6 + $0x1840] sm:$0xff]  ;;  %v984_v5 = vld [vmem:[%s10478_s6 + $0x1848] sm:$0xff]  ;;  %981 = vst [vmem:[%s10486_s7 + $0xc18] sm:$0xff] %v980_v3 }
  0xd4   : > { %983 = vst [vmem:[%s10486_s7 + $0xc20] sm:$0xff] %v982_v4  ;;  %985 = vst [vmem:[%s10486_s7 + $0xc28] sm:$0xff] %v984_v5  ;;  %v986_v6 = vld [vmem:[%s10478_s6 + $0x1860] sm:$0xff]  ;;  %v988_v7 = vld [vmem:[%s10478_s6 + $0x1868] sm:$0xff] }
  0xd5   : > { %v990_v8 = vld [vmem:[%s10478_s6 + $0x1880] sm:$0xff]  ;;  %987 = vst [vmem:[%s10486_s7 + $0xc30] sm:$0xff] %v986_v6  ;;  %989 = vst [vmem:[%s10486_s7 + $0xc38] sm:$0xff] %v988_v7  ;;  %v992_v9 = vld [vmem:[%s10478_s6 + $0x1888] sm:$0xff] }
  0xd6   : > { %991 = vst [vmem:[%s10486_s7 + $0xc40] sm:$0xff] %v990_v8  ;;  %v994_v10 = vld [vmem:[%s10478_s6 + $0x18a0] sm:$0xff]  ;;  %v996_v11 = vld [vmem:[%s10478_s6 + $0x18a8] sm:$0xff]  ;;  %993 = vst [vmem:[%s10486_s7 + $0xc48] sm:$0xff] %v992_v9 }
  0xd7   : > { %995 = vst [vmem:[%s10486_s7 + $0xc50] sm:$0xff] %v994_v10  ;;  %997 = vst [vmem:[%s10486_s7 + $0xc58] sm:$0xff] %v996_v11  ;;  %v998_v12 = vld [vmem:[%s10478_s6 + $0x18c0] sm:$0xff]  ;;  %v1000_v13 = vld [vmem:[%s10478_s6 + $0x18c8] sm:$0xff] }
  0xd8   : > { %v1002_v14 = vld [vmem:[%s10478_s6 + $0x18e0] sm:$0xff]  ;;  %999 = vst [vmem:[%s10486_s7 + $0xc60] sm:$0xff] %v998_v12  ;;  %1001 = vst [vmem:[%s10486_s7 + $0xc68] sm:$0xff] %v1000_v13  ;;  %v1004_v15 = vld [vmem:[%s10478_s6 + $0x18e8] sm:$0xff] }
  0xd9   : > { %1003 = vst [vmem:[%s10486_s7 + $0xc70] sm:$0xff] %v1002_v14  ;;  %v1006_v16 = vld [vmem:[%s10478_s6 + $0x1900] sm:$0xff]  ;;  %v1008_v17 = vld [vmem:[%s10478_s6 + $0x1908] sm:$0xff]  ;;  %1005 = vst [vmem:[%s10486_s7 + $0xc78] sm:$0xff] %v1004_v15 }
  0xda   : > { %1007 = vst [vmem:[%s10486_s7 + $0xc80] sm:$0xff] %v1006_v16  ;;  %1009 = vst [vmem:[%s10486_s7 + $0xc88] sm:$0xff] %v1008_v17  ;;  %v1010_v18 = vld [vmem:[%s10478_s6 + $0x1920] sm:$0xff]  ;;  %v1012_v19 = vld [vmem:[%s10478_s6 + $0x1928] sm:$0xff] }
  0xdb   : > { %v1014_v20 = vld [vmem:[%s10478_s6 + $0x1940] sm:$0xff]  ;;  %1011 = vst [vmem:[%s10486_s7 + $0xc90] sm:$0xff] %v1010_v18  ;;  %1013 = vst [vmem:[%s10486_s7 + $0xc98] sm:$0xff] %v1012_v19  ;;  %v1016_v21 = vld [vmem:[%s10478_s6 + $0x1948] sm:$0xff] }
  0xdc   : > { %1015 = vst [vmem:[%s10486_s7 + $0xca0] sm:$0xff] %v1014_v20  ;;  %v1018_v22 = vld [vmem:[%s10478_s6 + $0x1960] sm:$0xff]  ;;  %v1020_v23 = vld [vmem:[%s10478_s6 + $0x1968] sm:$0xff]  ;;  %1017 = vst [vmem:[%s10486_s7 + $0xca8] sm:$0xff] %v1016_v21 }
  0xdd   : > { %1019 = vst [vmem:[%s10486_s7 + $0xcb0] sm:$0xff] %v1018_v22  ;;  %1021 = vst [vmem:[%s10486_s7 + $0xcb8] sm:$0xff] %v1020_v23  ;;  %v1022_v24 = vld [vmem:[%s10478_s6 + $0x1980] sm:$0xff]  ;;  %v1024_v25 = vld [vmem:[%s10478_s6 + $0x1988] sm:$0xff] }
  0xde   : > { %v1026_v26 = vld [vmem:[%s10478_s6 + $0x19a0] sm:$0xff]  ;;  %1023 = vst [vmem:[%s10486_s7 + $0xcc0] sm:$0xff] %v1022_v24  ;;  %1025 = vst [vmem:[%s10486_s7 + $0xcc8] sm:$0xff] %v1024_v25  ;;  %v1028_v27 = vld [vmem:[%s10478_s6 + $0x19a8] sm:$0xff] }
  0xdf   : > { %1027 = vst [vmem:[%s10486_s7 + $0xcd0] sm:$0xff] %v1026_v26  ;;  %v1030_v28 = vld [vmem:[%s10478_s6 + $0x19c0] sm:$0xff]  ;;  %v1032_v29 = vld [vmem:[%s10478_s6 + $0x19c8] sm:$0xff]  ;;  %1029 = vst [vmem:[%s10486_s7 + $0xcd8] sm:$0xff] %v1028_v27 }
  0xe0   : > { %1031 = vst [vmem:[%s10486_s7 + $0xce0] sm:$0xff] %v1030_v28  ;;  %1033 = vst [vmem:[%s10486_s7 + $0xce8] sm:$0xff] %v1032_v29  ;;  %v1034_v30 = vld [vmem:[%s10478_s6 + $0x19e0] sm:$0xff]  ;;  %v1036_v31 = vld [vmem:[%s10478_s6 + $0x19e8] sm:$0xff] }
  0xe1   : > { %v1038_v32 = vld [vmem:[%s10478_s6 + $0x1a00] sm:$0xff]  ;;  %1035 = vst [vmem:[%s10486_s7 + $0xcf0] sm:$0xff] %v1034_v30  ;;  %1037 = vst [vmem:[%s10486_s7 + $0xcf8] sm:$0xff] %v1036_v31  ;;  %v1040_v33 = vld [vmem:[%s10478_s6 + $0x1a08] sm:$0xff] }
  0xe2   : > { %1039 = vst [vmem:[%s10486_s7 + $0xd00] sm:$0xff] %v1038_v32  ;;  %v1042_v34 = vld [vmem:[%s10478_s6 + $0x1a20] sm:$0xff]  ;;  %v1044_v35 = vld [vmem:[%s10478_s6 + $0x1a28] sm:$0xff]  ;;  %1041 = vst [vmem:[%s10486_s7 + $0xd08] sm:$0xff] %v1040_v33 }
  0xe3   : > { %1043 = vst [vmem:[%s10486_s7 + $0xd10] sm:$0xff] %v1042_v34  ;;  %1045 = vst [vmem:[%s10486_s7 + $0xd18] sm:$0xff] %v1044_v35  ;;  %v1046_v36 = vld [vmem:[%s10478_s6 + $0x1a40] sm:$0xff]  ;;  %v1048_v37 = vld [vmem:[%s10478_s6 + $0x1a48] sm:$0xff] }
  0xe4   : > { %v1050_v38 = vld [vmem:[%s10478_s6 + $0x1a60] sm:$0xff]  ;;  %1047 = vst [vmem:[%s10486_s7 + $0xd20] sm:$0xff] %v1046_v36  ;;  %1049 = vst [vmem:[%s10486_s7 + $0xd28] sm:$0xff] %v1048_v37  ;;  %v1052_v39 = vld [vmem:[%s10478_s6 + $0x1a68] sm:$0xff] }
  0xe5   : > { %1051 = vst [vmem:[%s10486_s7 + $0xd30] sm:$0xff] %v1050_v38  ;;  %v1054_v40 = vld [vmem:[%s10478_s6 + $0x1a80] sm:$0xff]  ;;  %v1056_v41 = vld [vmem:[%s10478_s6 + $0x1a88] sm:$0xff]  ;;  %1053 = vst [vmem:[%s10486_s7 + $0xd38] sm:$0xff] %v1052_v39 }
  0xe6   : > { %1055 = vst [vmem:[%s10486_s7 + $0xd40] sm:$0xff] %v1054_v40  ;;  %1057 = vst [vmem:[%s10486_s7 + $0xd48] sm:$0xff] %v1056_v41  ;;  %v1058_v42 = vld [vmem:[%s10478_s6 + $0x1aa0] sm:$0xff]  ;;  %v1060_v43 = vld [vmem:[%s10478_s6 + $0x1aa8] sm:$0xff] }
  0xe7   : > { %v1062_v44 = vld [vmem:[%s10478_s6 + $0x1ac0] sm:$0xff]  ;;  %1059 = vst [vmem:[%s10486_s7 + $0xd50] sm:$0xff] %v1058_v42  ;;  %1061 = vst [vmem:[%s10486_s7 + $0xd58] sm:$0xff] %v1060_v43  ;;  %v1064_v45 = vld [vmem:[%s10478_s6 + $0x1ac8] sm:$0xff] }
  0xe8   : > { %1063 = vst [vmem:[%s10486_s7 + $0xd60] sm:$0xff] %v1062_v44  ;;  %v1066_v46 = vld [vmem:[%s10478_s6 + $0x1ae0] sm:$0xff]  ;;  %v1068_v47 = vld [vmem:[%s10478_s6 + $0x1ae8] sm:$0xff]  ;;  %1065 = vst [vmem:[%s10486_s7 + $0xd68] sm:$0xff] %v1064_v45 }
  0xe9   : > { %1067 = vst [vmem:[%s10486_s7 + $0xd70] sm:$0xff] %v1066_v46  ;;  %1069 = vst [vmem:[%s10486_s7 + $0xd78] sm:$0xff] %v1068_v47  ;;  %v1070_v48 = vld [vmem:[%s10478_s6 + $0x1b00] sm:$0xff]  ;;  %v1072_v49 = vld [vmem:[%s10478_s6 + $0x1b08] sm:$0xff] }
  0xea   : > { %v1074_v50 = vld [vmem:[%s10478_s6 + $0x1b20] sm:$0xff]  ;;  %1071 = vst [vmem:[%s10486_s7 + $0xd80] sm:$0xff] %v1070_v48  ;;  %1073 = vst [vmem:[%s10486_s7 + $0xd88] sm:$0xff] %v1072_v49  ;;  %v1076_v51 = vld [vmem:[%s10478_s6 + $0x1b28] sm:$0xff] }
  0xeb   : > { %1075 = vst [vmem:[%s10486_s7 + $0xd90] sm:$0xff] %v1074_v50  ;;  %v1078_v52 = vld [vmem:[%s10478_s6 + $0x1b40] sm:$0xff]  ;;  %v1080_v53 = vld [vmem:[%s10478_s6 + $0x1b48] sm:$0xff]  ;;  %1077 = vst [vmem:[%s10486_s7 + $0xd98] sm:$0xff] %v1076_v51 }
  0xec   : > { %1079 = vst [vmem:[%s10486_s7 + $0xda0] sm:$0xff] %v1078_v52  ;;  %1081 = vst [vmem:[%s10486_s7 + $0xda8] sm:$0xff] %v1080_v53  ;;  %v1082_v54 = vld [vmem:[%s10478_s6 + $0x1b60] sm:$0xff]  ;;  %v1084_v55 = vld [vmem:[%s10478_s6 + $0x1b68] sm:$0xff] }
  0xed   : > { %v1086_v56 = vld [vmem:[%s10478_s6 + $0x1b80] sm:$0xff]  ;;  %1083 = vst [vmem:[%s10486_s7 + $0xdb0] sm:$0xff] %v1082_v54  ;;  %1085 = vst [vmem:[%s10486_s7 + $0xdb8] sm:$0xff] %v1084_v55  ;;  %v1088_v57 = vld [vmem:[%s10478_s6 + $0x1b88] sm:$0xff] }
  0xee   : > { %1087 = vst [vmem:[%s10486_s7 + $0xdc0] sm:$0xff] %v1086_v56  ;;  %v1090_v58 = vld [vmem:[%s10478_s6 + $0x1ba0] sm:$0xff]  ;;  %v1092_v59 = vld [vmem:[%s10478_s6 + $0x1ba8] sm:$0xff]  ;;  %1089 = vst [vmem:[%s10486_s7 + $0xdc8] sm:$0xff] %v1088_v57 }
  0xef   : > { %1091 = vst [vmem:[%s10486_s7 + $0xdd0] sm:$0xff] %v1090_v58  ;;  %1093 = vst [vmem:[%s10486_s7 + $0xdd8] sm:$0xff] %v1092_v59  ;;  %v1094_v60 = vld [vmem:[%s10478_s6 + $0x1bc0] sm:$0xff]  ;;  %v1096_v61 = vld [vmem:[%s10478_s6 + $0x1bc8] sm:$0xff] }
  0xf0   : > { %v1098_v62 = vld [vmem:[%s10478_s6 + $0x1be0] sm:$0xff]  ;;  %1095 = vst [vmem:[%s10486_s7 + $0xde0] sm:$0xff] %v1094_v60  ;;  %1097 = vst [vmem:[%s10486_s7 + $0xde8] sm:$0xff] %v1096_v61  ;;  %v1100_v63 = vld [vmem:[%s10478_s6 + $0x1be8] sm:$0xff] }
  0xf1   : > { %1099 = vst [vmem:[%s10486_s7 + $0xdf0] sm:$0xff] %v1098_v62  ;;  %v1102_v0 = vld [vmem:[%s10478_s6 + $0x1c00] sm:$0xff]  ;;  %v1104_v1 = vld [vmem:[%s10478_s6 + $0x1c08] sm:$0xff]  ;;  %1101 = vst [vmem:[%s10486_s7 + $0xdf8] sm:$0xff] %v1100_v63 }
  0xf2   : > { %1103 = vst [vmem:[%s10486_s7 + $0xe00] sm:$0xff] %v1102_v0  ;;  %1105 = vst [vmem:[%s10486_s7 + $0xe08] sm:$0xff] %v1104_v1  ;;  %v1106_v2 = vld [vmem:[%s10478_s6 + $0x1c20] sm:$0xff]  ;;  %v1108_v3 = vld [vmem:[%s10478_s6 + $0x1c28] sm:$0xff] }
  0xf3   : > { %v1110_v4 = vld [vmem:[%s10478_s6 + $0x1c40] sm:$0xff]  ;;  %1107 = vst [vmem:[%s10486_s7 + $0xe10] sm:$0xff] %v1106_v2  ;;  %1109 = vst [vmem:[%s10486_s7 + $0xe18] sm:$0xff] %v1108_v3  ;;  %v1112_v5 = vld [vmem:[%s10478_s6 + $0x1c48] sm:$0xff] }
  0xf4   : > { %1111 = vst [vmem:[%s10486_s7 + $0xe20] sm:$0xff] %v1110_v4  ;;  %v1114_v6 = vld [vmem:[%s10478_s6 + $0x1c60] sm:$0xff]  ;;  %v1116_v7 = vld [vmem:[%s10478_s6 + $0x1c68] sm:$0xff]  ;;  %1113 = vst [vmem:[%s10486_s7 + $0xe28] sm:$0xff] %v1112_v5 }
  0xf5   : > { %1115 = vst [vmem:[%s10486_s7 + $0xe30] sm:$0xff] %v1114_v6  ;;  %1117 = vst [vmem:[%s10486_s7 + $0xe38] sm:$0xff] %v1116_v7  ;;  %v1118_v8 = vld [vmem:[%s10478_s6 + $0x1c80] sm:$0xff]  ;;  %v1120_v9 = vld [vmem:[%s10478_s6 + $0x1c88] sm:$0xff] }
  0xf6   : > { %v1122_v10 = vld [vmem:[%s10478_s6 + $0x1ca0] sm:$0xff]  ;;  %1119 = vst [vmem:[%s10486_s7 + $0xe40] sm:$0xff] %v1118_v8  ;;  %1121 = vst [vmem:[%s10486_s7 + $0xe48] sm:$0xff] %v1120_v9  ;;  %v1124_v11 = vld [vmem:[%s10478_s6 + $0x1ca8] sm:$0xff] }
  0xf7   : > { %1123 = vst [vmem:[%s10486_s7 + $0xe50] sm:$0xff] %v1122_v10  ;;  %v1126_v12 = vld [vmem:[%s10478_s6 + $0x1cc0] sm:$0xff]  ;;  %v1128_v13 = vld [vmem:[%s10478_s6 + $0x1cc8] sm:$0xff]  ;;  %1125 = vst [vmem:[%s10486_s7 + $0xe58] sm:$0xff] %v1124_v11 }
  0xf8   : > { %1127 = vst [vmem:[%s10486_s7 + $0xe60] sm:$0xff] %v1126_v12  ;;  %1129 = vst [vmem:[%s10486_s7 + $0xe68] sm:$0xff] %v1128_v13  ;;  %v1130_v14 = vld [vmem:[%s10478_s6 + $0x1ce0] sm:$0xff]  ;;  %v1132_v15 = vld [vmem:[%s10478_s6 + $0x1ce8] sm:$0xff] }
  0xf9   : > { %v1134_v16 = vld [vmem:[%s10478_s6 + $0x1d00] sm:$0xff]  ;;  %1131 = vst [vmem:[%s10486_s7 + $0xe70] sm:$0xff] %v1130_v14  ;;  %1133 = vst [vmem:[%s10486_s7 + $0xe78] sm:$0xff] %v1132_v15  ;;  %v1136_v17 = vld [vmem:[%s10478_s6 + $0x1d08] sm:$0xff] }
  0xfa   : > { %1135 = vst [vmem:[%s10486_s7 + $0xe80] sm:$0xff] %v1134_v16  ;;  %v1138_v18 = vld [vmem:[%s10478_s6 + $0x1d20] sm:$0xff]  ;;  %v1140_v19 = vld [vmem:[%s10478_s6 + $0x1d28] sm:$0xff]  ;;  %1137 = vst [vmem:[%s10486_s7 + $0xe88] sm:$0xff] %v1136_v17 }
  0xfb   : > { %1139 = vst [vmem:[%s10486_s7 + $0xe90] sm:$0xff] %v1138_v18  ;;  %1141 = vst [vmem:[%s10486_s7 + $0xe98] sm:$0xff] %v1140_v19  ;;  %v1142_v20 = vld [vmem:[%s10478_s6 + $0x1d40] sm:$0xff]  ;;  %v1144_v21 = vld [vmem:[%s10478_s6 + $0x1d48] sm:$0xff] }
  0xfc   : > { %v1146_v22 = vld [vmem:[%s10478_s6 + $0x1d60] sm:$0xff]  ;;  %1143 = vst [vmem:[%s10486_s7 + $0xea0] sm:$0xff] %v1142_v20  ;;  %1145 = vst [vmem:[%s10486_s7 + $0xea8] sm:$0xff] %v1144_v21  ;;  %v1148_v23 = vld [vmem:[%s10478_s6 + $0x1d68] sm:$0xff] }
  0xfd   : > { %1147 = vst [vmem:[%s10486_s7 + $0xeb0] sm:$0xff] %v1146_v22  ;;  %v1150_v24 = vld [vmem:[%s10478_s6 + $0x1d80] sm:$0xff]  ;;  %v1152_v25 = vld [vmem:[%s10478_s6 + $0x1d88] sm:$0xff]  ;;  %1149 = vst [vmem:[%s10486_s7 + $0xeb8] sm:$0xff] %v1148_v23 }
  0xfe   : > { %1151 = vst [vmem:[%s10486_s7 + $0xec0] sm:$0xff] %v1150_v24  ;;  %1153 = vst [vmem:[%s10486_s7 + $0xec8] sm:$0xff] %v1152_v25  ;;  %v1154_v26 = vld [vmem:[%s10478_s6 + $0x1da0] sm:$0xff]  ;;  %v1156_v27 = vld [vmem:[%s10478_s6 + $0x1da8] sm:$0xff] }
  0xff   : > { %v1158_v28 = vld [vmem:[%s10478_s6 + $0x1dc0] sm:$0xff]  ;;  %1155 = vst [vmem:[%s10486_s7 + $0xed0] sm:$0xff] %v1154_v26  ;;  %1157 = vst [vmem:[%s10486_s7 + $0xed8] sm:$0xff] %v1156_v27  ;;  %v1160_v29 = vld [vmem:[%s10478_s6 + $0x1dc8] sm:$0xff] }
 0x100   : > { %1159 = vst [vmem:[%s10486_s7 + $0xee0] sm:$0xff] %v1158_v28  ;;  %v1162_v30 = vld [vmem:[%s10478_s6 + $0x1de0] sm:$0xff]  ;;  %v1164_v31 = vld [vmem:[%s10478_s6 + $0x1de8] sm:$0xff]  ;;  %1161 = vst [vmem:[%s10486_s7 + $0xee8] sm:$0xff] %v1160_v29 }
 0x101   : > { %1163 = vst [vmem:[%s10486_s7 + $0xef0] sm:$0xff] %v1162_v30  ;;  %1165 = vst [vmem:[%s10486_s7 + $0xef8] sm:$0xff] %v1164_v31  ;;  %v1166_v32 = vld [vmem:[%s10478_s6 + $0x1e00] sm:$0xff]  ;;  %v1168_v33 = vld [vmem:[%s10478_s6 + $0x1e08] sm:$0xff] }
 0x102   : > { %v1170_v34 = vld [vmem:[%s10478_s6 + $0x1e20] sm:$0xff]  ;;  %1167 = vst [vmem:[%s10486_s7 + $0xf00] sm:$0xff] %v1166_v32  ;;  %1169 = vst [vmem:[%s10486_s7 + $0xf08] sm:$0xff] %v1168_v33  ;;  %v1172_v35 = vld [vmem:[%s10478_s6 + $0x1e28] sm:$0xff] }
 0x103   : > { %1171 = vst [vmem:[%s10486_s7 + $0xf10] sm:$0xff] %v1170_v34  ;;  %v1174_v36 = vld [vmem:[%s10478_s6 + $0x1e40] sm:$0xff]  ;;  %v1176_v37 = vld [vmem:[%s10478_s6 + $0x1e48] sm:$0xff]  ;;  %1173 = vst [vmem:[%s10486_s7 + $0xf18] sm:$0xff] %v1172_v35 }
 0x104   : > { %1175 = vst [vmem:[%s10486_s7 + $0xf20] sm:$0xff] %v1174_v36  ;;  %1177 = vst [vmem:[%s10486_s7 + $0xf28] sm:$0xff] %v1176_v37  ;;  %v1178_v38 = vld [vmem:[%s10478_s6 + $0x1e60] sm:$0xff]  ;;  %v1180_v39 = vld [vmem:[%s10478_s6 + $0x1e68] sm:$0xff] }
 0x105   : > { %v1182_v40 = vld [vmem:[%s10478_s6 + $0x1e80] sm:$0xff]  ;;  %1179 = vst [vmem:[%s10486_s7 + $0xf30] sm:$0xff] %v1178_v38  ;;  %1181 = vst [vmem:[%s10486_s7 + $0xf38] sm:$0xff] %v1180_v39  ;;  %v1184_v41 = vld [vmem:[%s10478_s6 + $0x1e88] sm:$0xff] }
 0x106   : > { %1183 = vst [vmem:[%s10486_s7 + $0xf40] sm:$0xff] %v1182_v40  ;;  %v1186_v42 = vld [vmem:[%s10478_s6 + $0x1ea0] sm:$0xff]  ;;  %v1188_v43 = vld [vmem:[%s10478_s6 + $0x1ea8] sm:$0xff]  ;;  %1185 = vst [vmem:[%s10486_s7 + $0xf48] sm:$0xff] %v1184_v41 }
 0x107   : > { %1187 = vst [vmem:[%s10486_s7 + $0xf50] sm:$0xff] %v1186_v42  ;;  %1189 = vst [vmem:[%s10486_s7 + $0xf58] sm:$0xff] %v1188_v43  ;;  %v1190_v44 = vld [vmem:[%s10478_s6 + $0x1ec0] sm:$0xff]  ;;  %v1192_v45 = vld [vmem:[%s10478_s6 + $0x1ec8] sm:$0xff] }
 0x108   : > { %v1194_v46 = vld [vmem:[%s10478_s6 + $0x1ee0] sm:$0xff]  ;;  %1191 = vst [vmem:[%s10486_s7 + $0xf60] sm:$0xff] %v1190_v44  ;;  %1193 = vst [vmem:[%s10486_s7 + $0xf68] sm:$0xff] %v1192_v45  ;;  %v1196_v47 = vld [vmem:[%s10478_s6 + $0x1ee8] sm:$0xff] }
 0x109   : > { %1195 = vst [vmem:[%s10486_s7 + $0xf70] sm:$0xff] %v1194_v46  ;;  %v1198_v48 = vld [vmem:[%s10478_s6 + $0x1f00] sm:$0xff]  ;;  %v1200_v49 = vld [vmem:[%s10478_s6 + $0x1f08] sm:$0xff]  ;;  %1197 = vst [vmem:[%s10486_s7 + $0xf78] sm:$0xff] %v1196_v47 }
 0x10a   : > { %1199 = vst [vmem:[%s10486_s7 + $0xf80] sm:$0xff] %v1198_v48  ;;  %1201 = vst [vmem:[%s10486_s7 + $0xf88] sm:$0xff] %v1200_v49  ;;  %v1202_v50 = vld [vmem:[%s10478_s6 + $0x1f20] sm:$0xff]  ;;  %v1204_v51 = vld [vmem:[%s10478_s6 + $0x1f28] sm:$0xff] }
 0x10b   : > { %v1206_v52 = vld [vmem:[%s10478_s6 + $0x1f40] sm:$0xff]  ;;  %1203 = vst [vmem:[%s10486_s7 + $0xf90] sm:$0xff] %v1202_v50  ;;  %1205 = vst [vmem:[%s10486_s7 + $0xf98] sm:$0xff] %v1204_v51  ;;  %v1208_v53 = vld [vmem:[%s10478_s6 + $0x1f48] sm:$0xff] }
 0x10c   : > { %1207 = vst [vmem:[%s10486_s7 + $0xfa0] sm:$0xff] %v1206_v52  ;;  %v1210_v54 = vld [vmem:[%s10478_s6 + $0x1f60] sm:$0xff]  ;;  %v1212_v55 = vld [vmem:[%s10478_s6 + $0x1f68] sm:$0xff]  ;;  %1209 = vst [vmem:[%s10486_s7 + $0xfa8] sm:$0xff] %v1208_v53 }
 0x10d   : > { %1211 = vst [vmem:[%s10486_s7 + $0xfb0] sm:$0xff] %v1210_v54  ;;  %1213 = vst [vmem:[%s10486_s7 + $0xfb8] sm:$0xff] %v1212_v55  ;;  %v1214_v56 = vld [vmem:[%s10478_s6 + $0x1f80] sm:$0xff]  ;;  %v1216_v57 = vld [vmem:[%s10478_s6 + $0x1f88] sm:$0xff] }
 0x10e   : > { %v1218_v58 = vld [vmem:[%s10478_s6 + $0x1fa0] sm:$0xff]  ;;  %1215 = vst [vmem:[%s10486_s7 + $0xfc0] sm:$0xff] %v1214_v56  ;;  %1217 = vst [vmem:[%s10486_s7 + $0xfc8] sm:$0xff] %v1216_v57  ;;  %v1220_v59 = vld [vmem:[%s10478_s6 + $0x1fa8] sm:$0xff] }
 0x10f   : > { %1219 = vst [vmem:[%s10486_s7 + $0xfd0] sm:$0xff] %v1218_v58  ;;  %v1222_v60 = vld [vmem:[%s10478_s6 + $0x1fc0] sm:$0xff]  ;;  %v1224_v61 = vld [vmem:[%s10478_s6 + $0x1fc8] sm:$0xff]  ;;  %1221 = vst [vmem:[%s10486_s7 + $0xfd8] sm:$0xff] %v1220_v59 }
 0x110   : > { %1223 = vst [vmem:[%s10486_s7 + $0xfe0] sm:$0xff] %v1222_v60  ;;  %1225 = vst [vmem:[%s10486_s7 + $0xfe8] sm:$0xff] %v1224_v61  ;;  %v1226_v62 = vld [vmem:[%s10478_s6 + $0x1fe0] sm:$0xff]  ;;  %v1228_v63 = vld [vmem:[%s10478_s6 + $0x1fe8] sm:$0xff] }
 0x111   : > { %v1230_v0 = vld [vmem:[%s10478_s6 + $0x2000] sm:$0xff]  ;;  %1227 = vst [vmem:[%s10486_s7 + $0xff0] sm:$0xff] %v1226_v62  ;;  %1229 = vst [vmem:[%s10486_s7 + $0xff8] sm:$0xff] %v1228_v63  ;;  %v1232_v1 = vld [vmem:[%s10478_s6 + $0x2008] sm:$0xff] }
 0x112   : > { %1231 = vst [vmem:[%s10486_s7 + $0x1000] sm:$0xff] %v1230_v0  ;;  %v1234_v2 = vld [vmem:[%s10478_s6 + $0x2020] sm:$0xff]  ;;  %v1236_v3 = vld [vmem:[%s10478_s6 + $0x2028] sm:$0xff]  ;;  %1233 = vst [vmem:[%s10486_s7 + $0x1008] sm:$0xff] %v1232_v1 }
 0x113   : > { %1235 = vst [vmem:[%s10486_s7 + $0x1010] sm:$0xff] %v1234_v2  ;;  %1237 = vst [vmem:[%s10486_s7 + $0x1018] sm:$0xff] %v1236_v3  ;;  %v1238_v4 = vld [vmem:[%s10478_s6 + $0x2040] sm:$0xff]  ;;  %v1240_v5 = vld [vmem:[%s10478_s6 + $0x2048] sm:$0xff] }
 0x114   : > { %v1242_v6 = vld [vmem:[%s10478_s6 + $0x2060] sm:$0xff]  ;;  %1239 = vst [vmem:[%s10486_s7 + $0x1020] sm:$0xff] %v1238_v4  ;;  %1241 = vst [vmem:[%s10486_s7 + $0x1028] sm:$0xff] %v1240_v5  ;;  %v1244_v7 = vld [vmem:[%s10478_s6 + $0x2068] sm:$0xff] }
 0x115   : > { %1243 = vst [vmem:[%s10486_s7 + $0x1030] sm:$0xff] %v1242_v6  ;;  %v1246_v8 = vld [vmem:[%s10478_s6 + $0x2080] sm:$0xff]  ;;  %v1248_v9 = vld [vmem:[%s10478_s6 + $0x2088] sm:$0xff]  ;;  %1245 = vst [vmem:[%s10486_s7 + $0x1038] sm:$0xff] %v1244_v7 }
 0x116   : > { %1247 = vst [vmem:[%s10486_s7 + $0x1040] sm:$0xff] %v1246_v8  ;;  %1249 = vst [vmem:[%s10486_s7 + $0x1048] sm:$0xff] %v1248_v9  ;;  %v1250_v10 = vld [vmem:[%s10478_s6 + $0x20a0] sm:$0xff]  ;;  %v1252_v11 = vld [vmem:[%s10478_s6 + $0x20a8] sm:$0xff] }
 0x117   : > { %v1254_v12 = vld [vmem:[%s10478_s6 + $0x20c0] sm:$0xff]  ;;  %1251 = vst [vmem:[%s10486_s7 + $0x1050] sm:$0xff] %v1250_v10  ;;  %1253 = vst [vmem:[%s10486_s7 + $0x1058] sm:$0xff] %v1252_v11  ;;  %v1256_v13 = vld [vmem:[%s10478_s6 + $0x20c8] sm:$0xff] }
 0x118   : > { %1255 = vst [vmem:[%s10486_s7 + $0x1060] sm:$0xff] %v1254_v12  ;;  %v1258_v14 = vld [vmem:[%s10478_s6 + $0x20e0] sm:$0xff]  ;;  %v1260_v15 = vld [vmem:[%s10478_s6 + $0x20e8] sm:$0xff]  ;;  %1257 = vst [vmem:[%s10486_s7 + $0x1068] sm:$0xff] %v1256_v13 }
 0x119   : > { %1259 = vst [vmem:[%s10486_s7 + $0x1070] sm:$0xff] %v1258_v14  ;;  %1261 = vst [vmem:[%s10486_s7 + $0x1078] sm:$0xff] %v1260_v15  ;;  %v1262_v16 = vld [vmem:[%s10478_s6 + $0x2100] sm:$0xff]  ;;  %v1264_v17 = vld [vmem:[%s10478_s6 + $0x2108] sm:$0xff] }
 0x11a   : > { %v1266_v18 = vld [vmem:[%s10478_s6 + $0x2120] sm:$0xff]  ;;  %1263 = vst [vmem:[%s10486_s7 + $0x1080] sm:$0xff] %v1262_v16  ;;  %1265 = vst [vmem:[%s10486_s7 + $0x1088] sm:$0xff] %v1264_v17  ;;  %v1268_v19 = vld [vmem:[%s10478_s6 + $0x2128] sm:$0xff] }
 0x11b   : > { %1267 = vst [vmem:[%s10486_s7 + $0x1090] sm:$0xff] %v1266_v18  ;;  %v1270_v20 = vld [vmem:[%s10478_s6 + $0x2140] sm:$0xff]  ;;  %v1272_v21 = vld [vmem:[%s10478_s6 + $0x2148] sm:$0xff]  ;;  %1269 = vst [vmem:[%s10486_s7 + $0x1098] sm:$0xff] %v1268_v19 }
 0x11c   : > { %1271 = vst [vmem:[%s10486_s7 + $0x10a0] sm:$0xff] %v1270_v20  ;;  %1273 = vst [vmem:[%s10486_s7 + $0x10a8] sm:$0xff] %v1272_v21  ;;  %v1274_v22 = vld [vmem:[%s10478_s6 + $0x2160] sm:$0xff]  ;;  %v1276_v23 = vld [vmem:[%s10478_s6 + $0x2168] sm:$0xff] }
 0x11d   : > { %v1278_v24 = vld [vmem:[%s10478_s6 + $0x2180] sm:$0xff]  ;;  %1275 = vst [vmem:[%s10486_s7 + $0x10b0] sm:$0xff] %v1274_v22  ;;  %1277 = vst [vmem:[%s10486_s7 + $0x10b8] sm:$0xff] %v1276_v23  ;;  %v1280_v25 = vld [vmem:[%s10478_s6 + $0x2188] sm:$0xff] }
 0x11e   : > { %1279 = vst [vmem:[%s10486_s7 + $0x10c0] sm:$0xff] %v1278_v24  ;;  %v1282_v26 = vld [vmem:[%s10478_s6 + $0x21a0] sm:$0xff]  ;;  %v1284_v27 = vld [vmem:[%s10478_s6 + $0x21a8] sm:$0xff]  ;;  %1281 = vst [vmem:[%s10486_s7 + $0x10c8] sm:$0xff] %v1280_v25 }
 0x11f   : > { %1283 = vst [vmem:[%s10486_s7 + $0x10d0] sm:$0xff] %v1282_v26  ;;  %1285 = vst [vmem:[%s10486_s7 + $0x10d8] sm:$0xff] %v1284_v27  ;;  %v1286_v28 = vld [vmem:[%s10478_s6 + $0x21c0] sm:$0xff]  ;;  %v1288_v29 = vld [vmem:[%s10478_s6 + $0x21c8] sm:$0xff] }
 0x120   : > { %v1290_v30 = vld [vmem:[%s10478_s6 + $0x21e0] sm:$0xff]  ;;  %1287 = vst [vmem:[%s10486_s7 + $0x10e0] sm:$0xff] %v1286_v28  ;;  %1289 = vst [vmem:[%s10486_s7 + $0x10e8] sm:$0xff] %v1288_v29  ;;  %v1292_v31 = vld [vmem:[%s10478_s6 + $0x21e8] sm:$0xff] }
 0x121   : > { %1291 = vst [vmem:[%s10486_s7 + $0x10f0] sm:$0xff] %v1290_v30  ;;  %v1294_v32 = vld [vmem:[%s10478_s6 + $0x2200] sm:$0xff]  ;;  %v1296_v33 = vld [vmem:[%s10478_s6 + $0x2208] sm:$0xff]  ;;  %1293 = vst [vmem:[%s10486_s7 + $0x10f8] sm:$0xff] %v1292_v31 }
 0x122   : > { %1295 = vst [vmem:[%s10486_s7 + $0x1100] sm:$0xff] %v1294_v32  ;;  %1297 = vst [vmem:[%s10486_s7 + $0x1108] sm:$0xff] %v1296_v33  ;;  %v1298_v34 = vld [vmem:[%s10478_s6 + $0x2220] sm:$0xff]  ;;  %v1300_v35 = vld [vmem:[%s10478_s6 + $0x2228] sm:$0xff] }
 0x123   : > { %v1302_v36 = vld [vmem:[%s10478_s6 + $0x2240] sm:$0xff]  ;;  %1299 = vst [vmem:[%s10486_s7 + $0x1110] sm:$0xff] %v1298_v34  ;;  %1301 = vst [vmem:[%s10486_s7 + $0x1118] sm:$0xff] %v1300_v35  ;;  %v1304_v37 = vld [vmem:[%s10478_s6 + $0x2248] sm:$0xff] }
 0x124   : > { %1303 = vst [vmem:[%s10486_s7 + $0x1120] sm:$0xff] %v1302_v36  ;;  %v1306_v38 = vld [vmem:[%s10478_s6 + $0x2260] sm:$0xff]  ;;  %v1308_v39 = vld [vmem:[%s10478_s6 + $0x2268] sm:$0xff]  ;;  %1305 = vst [vmem:[%s10486_s7 + $0x1128] sm:$0xff] %v1304_v37 }
 0x125   : > { %1307 = vst [vmem:[%s10486_s7 + $0x1130] sm:$0xff] %v1306_v38  ;;  %1309 = vst [vmem:[%s10486_s7 + $0x1138] sm:$0xff] %v1308_v39  ;;  %v1310_v40 = vld [vmem:[%s10478_s6 + $0x2280] sm:$0xff]  ;;  %v1312_v41 = vld [vmem:[%s10478_s6 + $0x2288] sm:$0xff] }
 0x126   : > { %v1314_v42 = vld [vmem:[%s10478_s6 + $0x22a0] sm:$0xff]  ;;  %1311 = vst [vmem:[%s10486_s7 + $0x1140] sm:$0xff] %v1310_v40  ;;  %1313 = vst [vmem:[%s10486_s7 + $0x1148] sm:$0xff] %v1312_v41  ;;  %v1316_v43 = vld [vmem:[%s10478_s6 + $0x22a8] sm:$0xff] }
 0x127   : > { %1315 = vst [vmem:[%s10486_s7 + $0x1150] sm:$0xff] %v1314_v42  ;;  %v1318_v44 = vld [vmem:[%s10478_s6 + $0x22c0] sm:$0xff]  ;;  %v1320_v45 = vld [vmem:[%s10478_s6 + $0x22c8] sm:$0xff]  ;;  %1317 = vst [vmem:[%s10486_s7 + $0x1158] sm:$0xff] %v1316_v43 }
 0x128   : > { %1319 = vst [vmem:[%s10486_s7 + $0x1160] sm:$0xff] %v1318_v44  ;;  %1321 = vst [vmem:[%s10486_s7 + $0x1168] sm:$0xff] %v1320_v45  ;;  %v1322_v46 = vld [vmem:[%s10478_s6 + $0x22e0] sm:$0xff]  ;;  %v1324_v47 = vld [vmem:[%s10478_s6 + $0x22e8] sm:$0xff] }
 0x129   : > { %v1326_v48 = vld [vmem:[%s10478_s6 + $0x2300] sm:$0xff]  ;;  %1323 = vst [vmem:[%s10486_s7 + $0x1170] sm:$0xff] %v1322_v46  ;;  %1325 = vst [vmem:[%s10486_s7 + $0x1178] sm:$0xff] %v1324_v47  ;;  %v1328_v49 = vld [vmem:[%s10478_s6 + $0x2308] sm:$0xff] }
 0x12a   : > { %1327 = vst [vmem:[%s10486_s7 + $0x1180] sm:$0xff] %v1326_v48  ;;  %v1330_v50 = vld [vmem:[%s10478_s6 + $0x2320] sm:$0xff]  ;;  %v1332_v51 = vld [vmem:[%s10478_s6 + $0x2328] sm:$0xff]  ;;  %1329 = vst [vmem:[%s10486_s7 + $0x1188] sm:$0xff] %v1328_v49 }
 0x12b   : > { %1331 = vst [vmem:[%s10486_s7 + $0x1190] sm:$0xff] %v1330_v50  ;;  %1333 = vst [vmem:[%s10486_s7 + $0x1198] sm:$0xff] %v1332_v51  ;;  %v1334_v52 = vld [vmem:[%s10478_s6 + $0x2340] sm:$0xff]  ;;  %v1336_v53 = vld [vmem:[%s10478_s6 + $0x2348] sm:$0xff] }
 0x12c   : > { %v1338_v54 = vld [vmem:[%s10478_s6 + $0x2360] sm:$0xff]  ;;  %1335 = vst [vmem:[%s10486_s7 + $0x11a0] sm:$0xff] %v1334_v52  ;;  %1337 = vst [vmem:[%s10486_s7 + $0x11a8] sm:$0xff] %v1336_v53  ;;  %v1340_v55 = vld [vmem:[%s10478_s6 + $0x2368] sm:$0xff] }
 0x12d   : > { %1339 = vst [vmem:[%s10486_s7 + $0x11b0] sm:$0xff] %v1338_v54  ;;  %v1342_v56 = vld [vmem:[%s10478_s6 + $0x2380] sm:$0xff]  ;;  %v1344_v57 = vld [vmem:[%s10478_s6 + $0x2388] sm:$0xff]  ;;  %1341 = vst [vmem:[%s10486_s7 + $0x11b8] sm:$0xff] %v1340_v55 }
 0x12e   : > { %1343 = vst [vmem:[%s10486_s7 + $0x11c0] sm:$0xff] %v1342_v56  ;;  %1345 = vst [vmem:[%s10486_s7 + $0x11c8] sm:$0xff] %v1344_v57  ;;  %v1346_v58 = vld [vmem:[%s10478_s6 + $0x23a0] sm:$0xff]  ;;  %v1348_v59 = vld [vmem:[%s10478_s6 + $0x23a8] sm:$0xff] }
 0x12f   : > { %v1350_v60 = vld [vmem:[%s10478_s6 + $0x23c0] sm:$0xff]  ;;  %1347 = vst [vmem:[%s10486_s7 + $0x11d0] sm:$0xff] %v1346_v58  ;;  %1349 = vst [vmem:[%s10486_s7 + $0x11d8] sm:$0xff] %v1348_v59  ;;  %v1352_v61 = vld [vmem:[%s10478_s6 + $0x23c8] sm:$0xff] }
 0x130   : > { %1351 = vst [vmem:[%s10486_s7 + $0x11e0] sm:$0xff] %v1350_v60  ;;  %v1354_v62 = vld [vmem:[%s10478_s6 + $0x23e0] sm:$0xff]  ;;  %v1356_v63 = vld [vmem:[%s10478_s6 + $0x23e8] sm:$0xff]  ;;  %1353 = vst [vmem:[%s10486_s7 + $0x11e8] sm:$0xff] %v1352_v61 }
 0x131   : > { %1355 = vst [vmem:[%s10486_s7 + $0x11f0] sm:$0xff] %v1354_v62  ;;  %1357 = vst [vmem:[%s10486_s7 + $0x11f8] sm:$0xff] %v1356_v63  ;;  %v1358_v0 = vld [vmem:[%s10478_s6 + $0x2400] sm:$0xff]  ;;  %v1360_v1 = vld [vmem:[%s10478_s6 + $0x2408] sm:$0xff] }
 0x132   : > { %v1362_v2 = vld [vmem:[%s10478_s6 + $0x2420] sm:$0xff]  ;;  %1359 = vst [vmem:[%s10486_s7 + $0x1200] sm:$0xff] %v1358_v0  ;;  %1361 = vst [vmem:[%s10486_s7 + $0x1208] sm:$0xff] %v1360_v1  ;;  %v1364_v3 = vld [vmem:[%s10478_s6 + $0x2428] sm:$0xff] }
 0x133   : > { %1363 = vst [vmem:[%s10486_s7 + $0x1210] sm:$0xff] %v1362_v2  ;;  %v1366_v4 = vld [vmem:[%s10478_s6 + $0x2440] sm:$0xff]  ;;  %v1368_v5 = vld [vmem:[%s10478_s6 + $0x2448] sm:$0xff]  ;;  %1365 = vst [vmem:[%s10486_s7 + $0x1218] sm:$0xff] %v1364_v3 }
 0x134   : > { %1367 = vst [vmem:[%s10486_s7 + $0x1220] sm:$0xff] %v1366_v4  ;;  %1369 = vst [vmem:[%s10486_s7 + $0x1228] sm:$0xff] %v1368_v5  ;;  %v1370_v6 = vld [vmem:[%s10478_s6 + $0x2460] sm:$0xff]  ;;  %v1372_v7 = vld [vmem:[%s10478_s6 + $0x2468] sm:$0xff] }
 0x135   : > { %v1374_v8 = vld [vmem:[%s10478_s6 + $0x2480] sm:$0xff]  ;;  %1371 = vst [vmem:[%s10486_s7 + $0x1230] sm:$0xff] %v1370_v6  ;;  %1373 = vst [vmem:[%s10486_s7 + $0x1238] sm:$0xff] %v1372_v7  ;;  %v1376_v9 = vld [vmem:[%s10478_s6 + $0x2488] sm:$0xff] }
 0x136   : > { %1375 = vst [vmem:[%s10486_s7 + $0x1240] sm:$0xff] %v1374_v8  ;;  %v1378_v10 = vld [vmem:[%s10478_s6 + $0x24a0] sm:$0xff]  ;;  %v1380_v11 = vld [vmem:[%s10478_s6 + $0x24a8] sm:$0xff]  ;;  %1377 = vst [vmem:[%s10486_s7 + $0x1248] sm:$0xff] %v1376_v9 }
 0x137   : > { %1379 = vst [vmem:[%s10486_s7 + $0x1250] sm:$0xff] %v1378_v10  ;;  %1381 = vst [vmem:[%s10486_s7 + $0x1258] sm:$0xff] %v1380_v11  ;;  %v1382_v12 = vld [vmem:[%s10478_s6 + $0x24c0] sm:$0xff]  ;;  %v1384_v13 = vld [vmem:[%s10478_s6 + $0x24c8] sm:$0xff] }
 0x138   : > { %v1386_v14 = vld [vmem:[%s10478_s6 + $0x24e0] sm:$0xff]  ;;  %1383 = vst [vmem:[%s10486_s7 + $0x1260] sm:$0xff] %v1382_v12  ;;  %1385 = vst [vmem:[%s10486_s7 + $0x1268] sm:$0xff] %v1384_v13  ;;  %v1388_v15 = vld [vmem:[%s10478_s6 + $0x24e8] sm:$0xff] }
 0x139   : > { %1387 = vst [vmem:[%s10486_s7 + $0x1270] sm:$0xff] %v1386_v14  ;;  %v1390_v16 = vld [vmem:[%s10478_s6 + $0x2500] sm:$0xff]  ;;  %v1392_v17 = vld [vmem:[%s10478_s6 + $0x2508] sm:$0xff]  ;;  %1389 = vst [vmem:[%s10486_s7 + $0x1278] sm:$0xff] %v1388_v15 }
 0x13a   : > { %1391 = vst [vmem:[%s10486_s7 + $0x1280] sm:$0xff] %v1390_v16  ;;  %1393 = vst [vmem:[%s10486_s7 + $0x1288] sm:$0xff] %v1392_v17  ;;  %v1394_v18 = vld [vmem:[%s10478_s6 + $0x2520] sm:$0xff]  ;;  %v1396_v19 = vld [vmem:[%s10478_s6 + $0x2528] sm:$0xff] }
 0x13b   : > { %v1398_v20 = vld [vmem:[%s10478_s6 + $0x2540] sm:$0xff]  ;;  %1395 = vst [vmem:[%s10486_s7 + $0x1290] sm:$0xff] %v1394_v18  ;;  %1397 = vst [vmem:[%s10486_s7 + $0x1298] sm:$0xff] %v1396_v19  ;;  %v1400_v21 = vld [vmem:[%s10478_s6 + $0x2548] sm:$0xff] }
 0x13c   : > { %1399 = vst [vmem:[%s10486_s7 + $0x12a0] sm:$0xff] %v1398_v20  ;;  %v1402_v22 = vld [vmem:[%s10478_s6 + $0x2560] sm:$0xff]  ;;  %v1404_v23 = vld [vmem:[%s10478_s6 + $0x2568] sm:$0xff]  ;;  %1401 = vst [vmem:[%s10486_s7 + $0x12a8] sm:$0xff] %v1400_v21 }
 0x13d   : > { %1403 = vst [vmem:[%s10486_s7 + $0x12b0] sm:$0xff] %v1402_v22  ;;  %1405 = vst [vmem:[%s10486_s7 + $0x12b8] sm:$0xff] %v1404_v23  ;;  %v1406_v24 = vld [vmem:[%s10478_s6 + $0x2580] sm:$0xff]  ;;  %v1408_v25 = vld [vmem:[%s10478_s6 + $0x2588] sm:$0xff] }
 0x13e   : > { %v1410_v26 = vld [vmem:[%s10478_s6 + $0x25a0] sm:$0xff]  ;;  %1407 = vst [vmem:[%s10486_s7 + $0x12c0] sm:$0xff] %v1406_v24  ;;  %1409 = vst [vmem:[%s10486_s7 + $0x12c8] sm:$0xff] %v1408_v25  ;;  %v1412_v27 = vld [vmem:[%s10478_s6 + $0x25a8] sm:$0xff] }
 0x13f   : > { %1411 = vst [vmem:[%s10486_s7 + $0x12d0] sm:$0xff] %v1410_v26  ;;  %v1414_v28 = vld [vmem:[%s10478_s6 + $0x25c0] sm:$0xff]  ;;  %v1416_v29 = vld [vmem:[%s10478_s6 + $0x25c8] sm:$0xff]  ;;  %1413 = vst [vmem:[%s10486_s7 + $0x12d8] sm:$0xff] %v1412_v27 }
 0x140   : > { %1415 = vst [vmem:[%s10486_s7 + $0x12e0] sm:$0xff] %v1414_v28  ;;  %1417 = vst [vmem:[%s10486_s7 + $0x12e8] sm:$0xff] %v1416_v29  ;;  %v1418_v30 = vld [vmem:[%s10478_s6 + $0x25e0] sm:$0xff]  ;;  %v1420_v31 = vld [vmem:[%s10478_s6 + $0x25e8] sm:$0xff] }
 0x141   : > { %v1422_v32 = vld [vmem:[%s10478_s6 + $0x2600] sm:$0xff]  ;;  %1419 = vst [vmem:[%s10486_s7 + $0x12f0] sm:$0xff] %v1418_v30  ;;  %1421 = vst [vmem:[%s10486_s7 + $0x12f8] sm:$0xff] %v1420_v31  ;;  %v1424_v33 = vld [vmem:[%s10478_s6 + $0x2608] sm:$0xff] }
 0x142   : > { %1423 = vst [vmem:[%s10486_s7 + $0x1300] sm:$0xff] %v1422_v32  ;;  %v1426_v34 = vld [vmem:[%s10478_s6 + $0x2620] sm:$0xff]  ;;  %v1428_v35 = vld [vmem:[%s10478_s6 + $0x2628] sm:$0xff]  ;;  %1425 = vst [vmem:[%s10486_s7 + $0x1308] sm:$0xff] %v1424_v33 }
 0x143   : > { %1427 = vst [vmem:[%s10486_s7 + $0x1310] sm:$0xff] %v1426_v34  ;;  %1429 = vst [vmem:[%s10486_s7 + $0x1318] sm:$0xff] %v1428_v35  ;;  %v1430_v36 = vld [vmem:[%s10478_s6 + $0x2640] sm:$0xff]  ;;  %v1432_v37 = vld [vmem:[%s10478_s6 + $0x2648] sm:$0xff] }
 0x144   : > { %v1434_v38 = vld [vmem:[%s10478_s6 + $0x2660] sm:$0xff]  ;;  %1431 = vst [vmem:[%s10486_s7 + $0x1320] sm:$0xff] %v1430_v36  ;;  %1433 = vst [vmem:[%s10486_s7 + $0x1328] sm:$0xff] %v1432_v37  ;;  %v1436_v39 = vld [vmem:[%s10478_s6 + $0x2668] sm:$0xff] }
 0x145   : > { %1435 = vst [vmem:[%s10486_s7 + $0x1330] sm:$0xff] %v1434_v38  ;;  %v1438_v40 = vld [vmem:[%s10478_s6 + $0x2680] sm:$0xff]  ;;  %v1440_v41 = vld [vmem:[%s10478_s6 + $0x2688] sm:$0xff]  ;;  %1437 = vst [vmem:[%s10486_s7 + $0x1338] sm:$0xff] %v1436_v39 }
 0x146   : > { %1439 = vst [vmem:[%s10486_s7 + $0x1340] sm:$0xff] %v1438_v40  ;;  %1441 = vst [vmem:[%s10486_s7 + $0x1348] sm:$0xff] %v1440_v41  ;;  %v1442_v42 = vld [vmem:[%s10478_s6 + $0x26a0] sm:$0xff]  ;;  %v1444_v43 = vld [vmem:[%s10478_s6 + $0x26a8] sm:$0xff] }
 0x147   : > { %v1446_v44 = vld [vmem:[%s10478_s6 + $0x26c0] sm:$0xff]  ;;  %1443 = vst [vmem:[%s10486_s7 + $0x1350] sm:$0xff] %v1442_v42  ;;  %1445 = vst [vmem:[%s10486_s7 + $0x1358] sm:$0xff] %v1444_v43  ;;  %v1448_v45 = vld [vmem:[%s10478_s6 + $0x26c8] sm:$0xff] }
 0x148   : > { %1447 = vst [vmem:[%s10486_s7 + $0x1360] sm:$0xff] %v1446_v44  ;;  %v1450_v46 = vld [vmem:[%s10478_s6 + $0x26e0] sm:$0xff]  ;;  %v1452_v47 = vld [vmem:[%s10478_s6 + $0x26e8] sm:$0xff]  ;;  %1449 = vst [vmem:[%s10486_s7 + $0x1368] sm:$0xff] %v1448_v45 }
 0x149   : > { %1451 = vst [vmem:[%s10486_s7 + $0x1370] sm:$0xff] %v1450_v46  ;;  %1453 = vst [vmem:[%s10486_s7 + $0x1378] sm:$0xff] %v1452_v47  ;;  %v1454_v48 = vld [vmem:[%s10478_s6 + $0x2700] sm:$0xff]  ;;  %v1456_v49 = vld [vmem:[%s10478_s6 + $0x2708] sm:$0xff] }
 0x14a   : > { %v1458_v50 = vld [vmem:[%s10478_s6 + $0x2720] sm:$0xff]  ;;  %1455 = vst [vmem:[%s10486_s7 + $0x1380] sm:$0xff] %v1454_v48  ;;  %1457 = vst [vmem:[%s10486_s7 + $0x1388] sm:$0xff] %v1456_v49  ;;  %v1460_v51 = vld [vmem:[%s10478_s6 + $0x2728] sm:$0xff] }
 0x14b   : > { %1459 = vst [vmem:[%s10486_s7 + $0x1390] sm:$0xff] %v1458_v50  ;;  %v1462_v52 = vld [vmem:[%s10478_s6 + $0x2740] sm:$0xff]  ;;  %v1464_v53 = vld [vmem:[%s10478_s6 + $0x2748] sm:$0xff]  ;;  %1461 = vst [vmem:[%s10486_s7 + $0x1398] sm:$0xff] %v1460_v51 }
 0x14c   : > { %1463 = vst [vmem:[%s10486_s7 + $0x13a0] sm:$0xff] %v1462_v52  ;;  %1465 = vst [vmem:[%s10486_s7 + $0x13a8] sm:$0xff] %v1464_v53  ;;  %v1466_v54 = vld [vmem:[%s10478_s6 + $0x2760] sm:$0xff]  ;;  %v1468_v55 = vld [vmem:[%s10478_s6 + $0x2768] sm:$0xff] }
 0x14d   : > { %v1470_v56 = vld [vmem:[%s10478_s6 + $0x2780] sm:$0xff]  ;;  %1467 = vst [vmem:[%s10486_s7 + $0x13b0] sm:$0xff] %v1466_v54  ;;  %1469 = vst [vmem:[%s10486_s7 + $0x13b8] sm:$0xff] %v1468_v55  ;;  %v1472_v57 = vld [vmem:[%s10478_s6 + $0x2788] sm:$0xff] }
 0x14e   : > { %1471 = vst [vmem:[%s10486_s7 + $0x13c0] sm:$0xff] %v1470_v56  ;;  %v1474_v58 = vld [vmem:[%s10478_s6 + $0x27a0] sm:$0xff]  ;;  %v1476_v59 = vld [vmem:[%s10478_s6 + $0x27a8] sm:$0xff]  ;;  %1473 = vst [vmem:[%s10486_s7 + $0x13c8] sm:$0xff] %v1472_v57 }
 0x14f   : > { %1475 = vst [vmem:[%s10486_s7 + $0x13d0] sm:$0xff] %v1474_v58  ;;  %1477 = vst [vmem:[%s10486_s7 + $0x13d8] sm:$0xff] %v1476_v59  ;;  %v1478_v60 = vld [vmem:[%s10478_s6 + $0x27c0] sm:$0xff]  ;;  %v1480_v61 = vld [vmem:[%s10478_s6 + $0x27c8] sm:$0xff] }
 0x150   : > { %v1482_v62 = vld [vmem:[%s10478_s6 + $0x27e0] sm:$0xff]  ;;  %1479 = vst [vmem:[%s10486_s7 + $0x13e0] sm:$0xff] %v1478_v60  ;;  %1481 = vst [vmem:[%s10486_s7 + $0x13e8] sm:$0xff] %v1480_v61  ;;  %v1484_v63 = vld [vmem:[%s10478_s6 + $0x27e8] sm:$0xff] }
 0x151   : > { %1483 = vst [vmem:[%s10486_s7 + $0x13f0] sm:$0xff] %v1482_v62  ;;  %v1486_v0 = vld [vmem:[%s10478_s6 + $0x2800] sm:$0xff]  ;;  %v1488_v1 = vld [vmem:[%s10478_s6 + $0x2808] sm:$0xff]  ;;  %1485 = vst [vmem:[%s10486_s7 + $0x13f8] sm:$0xff] %v1484_v63 }
 0x152   : > { %1487 = vst [vmem:[%s10486_s7 + $0x1400] sm:$0xff] %v1486_v0  ;;  %1489 = vst [vmem:[%s10486_s7 + $0x1408] sm:$0xff] %v1488_v1  ;;  %v1490_v2 = vld [vmem:[%s10478_s6 + $0x2820] sm:$0xff]  ;;  %v1492_v3 = vld [vmem:[%s10478_s6 + $0x2828] sm:$0xff] }
 0x153   : > { %v1494_v4 = vld [vmem:[%s10478_s6 + $0x2840] sm:$0xff]  ;;  %1491 = vst [vmem:[%s10486_s7 + $0x1410] sm:$0xff] %v1490_v2  ;;  %1493 = vst [vmem:[%s10486_s7 + $0x1418] sm:$0xff] %v1492_v3  ;;  %v1496_v5 = vld [vmem:[%s10478_s6 + $0x2848] sm:$0xff] }
 0x154   : > { %1495 = vst [vmem:[%s10486_s7 + $0x1420] sm:$0xff] %v1494_v4  ;;  %v1498_v6 = vld [vmem:[%s10478_s6 + $0x2860] sm:$0xff]  ;;  %v1500_v7 = vld [vmem:[%s10478_s6 + $0x2868] sm:$0xff]  ;;  %1497 = vst [vmem:[%s10486_s7 + $0x1428] sm:$0xff] %v1496_v5 }
 0x155   : > { %1499 = vst [vmem:[%s10486_s7 + $0x1430] sm:$0xff] %v1498_v6  ;;  %1501 = vst [vmem:[%s10486_s7 + $0x1438] sm:$0xff] %v1500_v7  ;;  %v1502_v8 = vld [vmem:[%s10478_s6 + $0x2880] sm:$0xff]  ;;  %v1504_v9 = vld [vmem:[%s10478_s6 + $0x2888] sm:$0xff] }
 0x156   : > { %v1506_v10 = vld [vmem:[%s10478_s6 + $0x28a0] sm:$0xff]  ;;  %1503 = vst [vmem:[%s10486_s7 + $0x1440] sm:$0xff] %v1502_v8  ;;  %1505 = vst [vmem:[%s10486_s7 + $0x1448] sm:$0xff] %v1504_v9  ;;  %v1508_v11 = vld [vmem:[%s10478_s6 + $0x28a8] sm:$0xff] }
 0x157   : > { %1507 = vst [vmem:[%s10486_s7 + $0x1450] sm:$0xff] %v1506_v10  ;;  %v1510_v12 = vld [vmem:[%s10478_s6 + $0x28c0] sm:$0xff]  ;;  %v1512_v13 = vld [vmem:[%s10478_s6 + $0x28c8] sm:$0xff]  ;;  %1509 = vst [vmem:[%s10486_s7 + $0x1458] sm:$0xff] %v1508_v11 }
 0x158   : > { %1511 = vst [vmem:[%s10486_s7 + $0x1460] sm:$0xff] %v1510_v12  ;;  %1513 = vst [vmem:[%s10486_s7 + $0x1468] sm:$0xff] %v1512_v13  ;;  %v1514_v14 = vld [vmem:[%s10478_s6 + $0x28e0] sm:$0xff]  ;;  %v1516_v15 = vld [vmem:[%s10478_s6 + $0x28e8] sm:$0xff] }
 0x159   : > { %v1518_v16 = vld [vmem:[%s10478_s6 + $0x2900] sm:$0xff]  ;;  %1515 = vst [vmem:[%s10486_s7 + $0x1470] sm:$0xff] %v1514_v14  ;;  %1517 = vst [vmem:[%s10486_s7 + $0x1478] sm:$0xff] %v1516_v15  ;;  %v1520_v17 = vld [vmem:[%s10478_s6 + $0x2908] sm:$0xff] }
 0x15a   : > { %1519 = vst [vmem:[%s10486_s7 + $0x1480] sm:$0xff] %v1518_v16  ;;  %v1522_v18 = vld [vmem:[%s10478_s6 + $0x2920] sm:$0xff]  ;;  %v1524_v19 = vld [vmem:[%s10478_s6 + $0x2928] sm:$0xff]  ;;  %1521 = vst [vmem:[%s10486_s7 + $0x1488] sm:$0xff] %v1520_v17 }
 0x15b   : > { %1523 = vst [vmem:[%s10486_s7 + $0x1490] sm:$0xff] %v1522_v18  ;;  %1525 = vst [vmem:[%s10486_s7 + $0x1498] sm:$0xff] %v1524_v19  ;;  %v1526_v20 = vld [vmem:[%s10478_s6 + $0x2940] sm:$0xff]  ;;  %v1528_v21 = vld [vmem:[%s10478_s6 + $0x2948] sm:$0xff] }
 0x15c   : > { %v1530_v22 = vld [vmem:[%s10478_s6 + $0x2960] sm:$0xff]  ;;  %1527 = vst [vmem:[%s10486_s7 + $0x14a0] sm:$0xff] %v1526_v20  ;;  %1529 = vst [vmem:[%s10486_s7 + $0x14a8] sm:$0xff] %v1528_v21  ;;  %v1532_v23 = vld [vmem:[%s10478_s6 + $0x2968] sm:$0xff] }
 0x15d   : > { %1531 = vst [vmem:[%s10486_s7 + $0x14b0] sm:$0xff] %v1530_v22  ;;  %v1534_v24 = vld [vmem:[%s10478_s6 + $0x2980] sm:$0xff]  ;;  %v1536_v25 = vld [vmem:[%s10478_s6 + $0x2988] sm:$0xff]  ;;  %1533 = vst [vmem:[%s10486_s7 + $0x14b8] sm:$0xff] %v1532_v23 }
 0x15e   : > { %1535 = vst [vmem:[%s10486_s7 + $0x14c0] sm:$0xff] %v1534_v24  ;;  %1537 = vst [vmem:[%s10486_s7 + $0x14c8] sm:$0xff] %v1536_v25  ;;  %v1538_v26 = vld [vmem:[%s10478_s6 + $0x29a0] sm:$0xff]  ;;  %v1540_v27 = vld [vmem:[%s10478_s6 + $0x29a8] sm:$0xff] }
 0x15f   : > { %v1542_v28 = vld [vmem:[%s10478_s6 + $0x29c0] sm:$0xff]  ;;  %1539 = vst [vmem:[%s10486_s7 + $0x14d0] sm:$0xff] %v1538_v26  ;;  %1541 = vst [vmem:[%s10486_s7 + $0x14d8] sm:$0xff] %v1540_v27  ;;  %v1544_v29 = vld [vmem:[%s10478_s6 + $0x29c8] sm:$0xff] }
 0x160   : > { %1543 = vst [vmem:[%s10486_s7 + $0x14e0] sm:$0xff] %v1542_v28  ;;  %v1546_v30 = vld [vmem:[%s10478_s6 + $0x29e0] sm:$0xff]  ;;  %v1548_v31 = vld [vmem:[%s10478_s6 + $0x29e8] sm:$0xff]  ;;  %1545 = vst [vmem:[%s10486_s7 + $0x14e8] sm:$0xff] %v1544_v29 }
 0x161   : > { %1547 = vst [vmem:[%s10486_s7 + $0x14f0] sm:$0xff] %v1546_v30  ;;  %1549 = vst [vmem:[%s10486_s7 + $0x14f8] sm:$0xff] %v1548_v31  ;;  %v1550_v32 = vld [vmem:[%s10478_s6 + $0x2a00] sm:$0xff]  ;;  %v1552_v33 = vld [vmem:[%s10478_s6 + $0x2a08] sm:$0xff] }
 0x162   : > { %v1554_v34 = vld [vmem:[%s10478_s6 + $0x2a20] sm:$0xff]  ;;  %1551 = vst [vmem:[%s10486_s7 + $0x1500] sm:$0xff] %v1550_v32  ;;  %1553 = vst [vmem:[%s10486_s7 + $0x1508] sm:$0xff] %v1552_v33  ;;  %v1556_v35 = vld [vmem:[%s10478_s6 + $0x2a28] sm:$0xff] }
 0x163   : > { %1555 = vst [vmem:[%s10486_s7 + $0x1510] sm:$0xff] %v1554_v34  ;;  %v1558_v36 = vld [vmem:[%s10478_s6 + $0x2a40] sm:$0xff]  ;;  %v1560_v37 = vld [vmem:[%s10478_s6 + $0x2a48] sm:$0xff]  ;;  %1557 = vst [vmem:[%s10486_s7 + $0x1518] sm:$0xff] %v1556_v35 }
 0x164   : > { %1559 = vst [vmem:[%s10486_s7 + $0x1520] sm:$0xff] %v1558_v36  ;;  %1561 = vst [vmem:[%s10486_s7 + $0x1528] sm:$0xff] %v1560_v37  ;;  %v1562_v38 = vld [vmem:[%s10478_s6 + $0x2a60] sm:$0xff]  ;;  %v1564_v39 = vld [vmem:[%s10478_s6 + $0x2a68] sm:$0xff] }
 0x165   : > { %v1566_v40 = vld [vmem:[%s10478_s6 + $0x2a80] sm:$0xff]  ;;  %1563 = vst [vmem:[%s10486_s7 + $0x1530] sm:$0xff] %v1562_v38  ;;  %1565 = vst [vmem:[%s10486_s7 + $0x1538] sm:$0xff] %v1564_v39  ;;  %v1568_v41 = vld [vmem:[%s10478_s6 + $0x2a88] sm:$0xff] }
 0x166   : > { %1567 = vst [vmem:[%s10486_s7 + $0x1540] sm:$0xff] %v1566_v40  ;;  %v1570_v42 = vld [vmem:[%s10478_s6 + $0x2aa0] sm:$0xff]  ;;  %v1572_v43 = vld [vmem:[%s10478_s6 + $0x2aa8] sm:$0xff]  ;;  %1569 = vst [vmem:[%s10486_s7 + $0x1548] sm:$0xff] %v1568_v41 }
 0x167   : > { %1571 = vst [vmem:[%s10486_s7 + $0x1550] sm:$0xff] %v1570_v42  ;;  %1573 = vst [vmem:[%s10486_s7 + $0x1558] sm:$0xff] %v1572_v43  ;;  %v1574_v44 = vld [vmem:[%s10478_s6 + $0x2ac0] sm:$0xff]  ;;  %v1576_v45 = vld [vmem:[%s10478_s6 + $0x2ac8] sm:$0xff] }
 0x168   : > { %v1578_v46 = vld [vmem:[%s10478_s6 + $0x2ae0] sm:$0xff]  ;;  %1575 = vst [vmem:[%s10486_s7 + $0x1560] sm:$0xff] %v1574_v44  ;;  %1577 = vst [vmem:[%s10486_s7 + $0x1568] sm:$0xff] %v1576_v45  ;;  %v1580_v47 = vld [vmem:[%s10478_s6 + $0x2ae8] sm:$0xff] }
 0x169   : > { %1579 = vst [vmem:[%s10486_s7 + $0x1570] sm:$0xff] %v1578_v46  ;;  %v1582_v48 = vld [vmem:[%s10478_s6 + $0x2b00] sm:$0xff]  ;;  %v1584_v49 = vld [vmem:[%s10478_s6 + $0x2b08] sm:$0xff]  ;;  %1581 = vst [vmem:[%s10486_s7 + $0x1578] sm:$0xff] %v1580_v47 }
 0x16a   : > { %1583 = vst [vmem:[%s10486_s7 + $0x1580] sm:$0xff] %v1582_v48  ;;  %1585 = vst [vmem:[%s10486_s7 + $0x1588] sm:$0xff] %v1584_v49  ;;  %v1586_v50 = vld [vmem:[%s10478_s6 + $0x2b20] sm:$0xff]  ;;  %v1588_v51 = vld [vmem:[%s10478_s6 + $0x2b28] sm:$0xff] }
 0x16b   : > { %v1590_v52 = vld [vmem:[%s10478_s6 + $0x2b40] sm:$0xff]  ;;  %1587 = vst [vmem:[%s10486_s7 + $0x1590] sm:$0xff] %v1586_v50  ;;  %1589 = vst [vmem:[%s10486_s7 + $0x1598] sm:$0xff] %v1588_v51  ;;  %v1592_v53 = vld [vmem:[%s10478_s6 + $0x2b48] sm:$0xff] }
 0x16c   : > { %1591 = vst [vmem:[%s10486_s7 + $0x15a0] sm:$0xff] %v1590_v52  ;;  %v1594_v54 = vld [vmem:[%s10478_s6 + $0x2b60] sm:$0xff]  ;;  %v1596_v55 = vld [vmem:[%s10478_s6 + $0x2b68] sm:$0xff]  ;;  %1593 = vst [vmem:[%s10486_s7 + $0x15a8] sm:$0xff] %v1592_v53 }
 0x16d   : > { %1595 = vst [vmem:[%s10486_s7 + $0x15b0] sm:$0xff] %v1594_v54  ;;  %1597 = vst [vmem:[%s10486_s7 + $0x15b8] sm:$0xff] %v1596_v55  ;;  %v1598_v56 = vld [vmem:[%s10478_s6 + $0x2b80] sm:$0xff]  ;;  %v1600_v57 = vld [vmem:[%s10478_s6 + $0x2b88] sm:$0xff] }
 0x16e   : > { %v1602_v58 = vld [vmem:[%s10478_s6 + $0x2ba0] sm:$0xff]  ;;  %1599 = vst [vmem:[%s10486_s7 + $0x15c0] sm:$0xff] %v1598_v56  ;;  %1601 = vst [vmem:[%s10486_s7 + $0x15c8] sm:$0xff] %v1600_v57  ;;  %v1604_v59 = vld [vmem:[%s10478_s6 + $0x2ba8] sm:$0xff] }
 0x16f   : > { %1603 = vst [vmem:[%s10486_s7 + $0x15d0] sm:$0xff] %v1602_v58  ;;  %v1606_v60 = vld [vmem:[%s10478_s6 + $0x2bc0] sm:$0xff]  ;;  %v1608_v61 = vld [vmem:[%s10478_s6 + $0x2bc8] sm:$0xff]  ;;  %1605 = vst [vmem:[%s10486_s7 + $0x15d8] sm:$0xff] %v1604_v59 }
 0x170   : > { %1607 = vst [vmem:[%s10486_s7 + $0x15e0] sm:$0xff] %v1606_v60  ;;  %1609 = vst [vmem:[%s10486_s7 + $0x15e8] sm:$0xff] %v1608_v61  ;;  %v1610_v62 = vld [vmem:[%s10478_s6 + $0x2be0] sm:$0xff]  ;;  %v1612_v63 = vld [vmem:[%s10478_s6 + $0x2be8] sm:$0xff] }
 0x171   : > { %v1614_v0 = vld [vmem:[%s10478_s6 + $0x2c00] sm:$0xff]  ;;  %1611 = vst [vmem:[%s10486_s7 + $0x15f0] sm:$0xff] %v1610_v62  ;;  %1613 = vst [vmem:[%s10486_s7 + $0x15f8] sm:$0xff] %v1612_v63  ;;  %v1616_v1 = vld [vmem:[%s10478_s6 + $0x2c08] sm:$0xff] }
 0x172   : > { %1615 = vst [vmem:[%s10486_s7 + $0x1600] sm:$0xff] %v1614_v0  ;;  %v1618_v2 = vld [vmem:[%s10478_s6 + $0x2c20] sm:$0xff]  ;;  %v1620_v3 = vld [vmem:[%s10478_s6 + $0x2c28] sm:$0xff]  ;;  %1617 = vst [vmem:[%s10486_s7 + $0x1608] sm:$0xff] %v1616_v1 }
 0x173   : > { %1619 = vst [vmem:[%s10486_s7 + $0x1610] sm:$0xff] %v1618_v2  ;;  %1621 = vst [vmem:[%s10486_s7 + $0x1618] sm:$0xff] %v1620_v3  ;;  %v1622_v4 = vld [vmem:[%s10478_s6 + $0x2c40] sm:$0xff]  ;;  %v1624_v5 = vld [vmem:[%s10478_s6 + $0x2c48] sm:$0xff] }
 0x174   : > { %v1626_v6 = vld [vmem:[%s10478_s6 + $0x2c60] sm:$0xff]  ;;  %1623 = vst [vmem:[%s10486_s7 + $0x1620] sm:$0xff] %v1622_v4  ;;  %1625 = vst [vmem:[%s10486_s7 + $0x1628] sm:$0xff] %v1624_v5  ;;  %v1628_v7 = vld [vmem:[%s10478_s6 + $0x2c68] sm:$0xff] }
 0x175   : > { %1627 = vst [vmem:[%s10486_s7 + $0x1630] sm:$0xff] %v1626_v6  ;;  %v1630_v8 = vld [vmem:[%s10478_s6 + $0x2c80] sm:$0xff]  ;;  %v1632_v9 = vld [vmem:[%s10478_s6 + $0x2c88] sm:$0xff]  ;;  %1629 = vst [vmem:[%s10486_s7 + $0x1638] sm:$0xff] %v1628_v7 }
 0x176   : > { %1631 = vst [vmem:[%s10486_s7 + $0x1640] sm:$0xff] %v1630_v8  ;;  %1633 = vst [vmem:[%s10486_s7 + $0x1648] sm:$0xff] %v1632_v9  ;;  %v1634_v10 = vld [vmem:[%s10478_s6 + $0x2ca0] sm:$0xff]  ;;  %v1636_v11 = vld [vmem:[%s10478_s6 + $0x2ca8] sm:$0xff] }
 0x177   : > { %v1638_v12 = vld [vmem:[%s10478_s6 + $0x2cc0] sm:$0xff]  ;;  %1635 = vst [vmem:[%s10486_s7 + $0x1650] sm:$0xff] %v1634_v10  ;;  %1637 = vst [vmem:[%s10486_s7 + $0x1658] sm:$0xff] %v1636_v11  ;;  %v1640_v13 = vld [vmem:[%s10478_s6 + $0x2cc8] sm:$0xff] }
 0x178   : > { %1639 = vst [vmem:[%s10486_s7 + $0x1660] sm:$0xff] %v1638_v12  ;;  %v1642_v14 = vld [vmem:[%s10478_s6 + $0x2ce0] sm:$0xff]  ;;  %v1644_v15 = vld [vmem:[%s10478_s6 + $0x2ce8] sm:$0xff]  ;;  %1641 = vst [vmem:[%s10486_s7 + $0x1668] sm:$0xff] %v1640_v13 }
 0x179   : > { %1643 = vst [vmem:[%s10486_s7 + $0x1670] sm:$0xff] %v1642_v14  ;;  %1645 = vst [vmem:[%s10486_s7 + $0x1678] sm:$0xff] %v1644_v15  ;;  %v1646_v16 = vld [vmem:[%s10478_s6 + $0x2d00] sm:$0xff]  ;;  %v1648_v17 = vld [vmem:[%s10478_s6 + $0x2d08] sm:$0xff] }
 0x17a   : > { %v1650_v18 = vld [vmem:[%s10478_s6 + $0x2d20] sm:$0xff]  ;;  %1647 = vst [vmem:[%s10486_s7 + $0x1680] sm:$0xff] %v1646_v16  ;;  %1649 = vst [vmem:[%s10486_s7 + $0x1688] sm:$0xff] %v1648_v17  ;;  %v1652_v19 = vld [vmem:[%s10478_s6 + $0x2d28] sm:$0xff] }
 0x17b   : > { %1651 = vst [vmem:[%s10486_s7 + $0x1690] sm:$0xff] %v1650_v18  ;;  %v1654_v20 = vld [vmem:[%s10478_s6 + $0x2d40] sm:$0xff]  ;;  %v1656_v21 = vld [vmem:[%s10478_s6 + $0x2d48] sm:$0xff]  ;;  %1653 = vst [vmem:[%s10486_s7 + $0x1698] sm:$0xff] %v1652_v19 }
 0x17c   : > { %1655 = vst [vmem:[%s10486_s7 + $0x16a0] sm:$0xff] %v1654_v20  ;;  %1657 = vst [vmem:[%s10486_s7 + $0x16a8] sm:$0xff] %v1656_v21  ;;  %v1658_v22 = vld [vmem:[%s10478_s6 + $0x2d60] sm:$0xff]  ;;  %v1660_v23 = vld [vmem:[%s10478_s6 + $0x2d68] sm:$0xff] }
 0x17d   : > { %v1662_v24 = vld [vmem:[%s10478_s6 + $0x2d80] sm:$0xff]  ;;  %1659 = vst [vmem:[%s10486_s7 + $0x16b0] sm:$0xff] %v1658_v22  ;;  %1661 = vst [vmem:[%s10486_s7 + $0x16b8] sm:$0xff] %v1660_v23  ;;  %v1664_v25 = vld [vmem:[%s10478_s6 + $0x2d88] sm:$0xff] }
 0x17e   : > { %1663 = vst [vmem:[%s10486_s7 + $0x16c0] sm:$0xff] %v1662_v24  ;;  %v1666_v26 = vld [vmem:[%s10478_s6 + $0x2da0] sm:$0xff]  ;;  %v1668_v27 = vld [vmem:[%s10478_s6 + $0x2da8] sm:$0xff]  ;;  %1665 = vst [vmem:[%s10486_s7 + $0x16c8] sm:$0xff] %v1664_v25 }
 0x17f   : > { %1667 = vst [vmem:[%s10486_s7 + $0x16d0] sm:$0xff] %v1666_v26  ;;  %1669 = vst [vmem:[%s10486_s7 + $0x16d8] sm:$0xff] %v1668_v27  ;;  %v1670_v28 = vld [vmem:[%s10478_s6 + $0x2dc0] sm:$0xff]  ;;  %v1672_v29 = vld [vmem:[%s10478_s6 + $0x2dc8] sm:$0xff] }
 0x180   : > { %v1674_v30 = vld [vmem:[%s10478_s6 + $0x2de0] sm:$0xff]  ;;  %1671 = vst [vmem:[%s10486_s7 + $0x16e0] sm:$0xff] %v1670_v28  ;;  %1673 = vst [vmem:[%s10486_s7 + $0x16e8] sm:$0xff] %v1672_v29  ;;  %v1676_v31 = vld [vmem:[%s10478_s6 + $0x2de8] sm:$0xff] }
 0x181   : > { %1675 = vst [vmem:[%s10486_s7 + $0x16f0] sm:$0xff] %v1674_v30  ;;  %v1678_v32 = vld [vmem:[%s10478_s6 + $0x2e00] sm:$0xff]  ;;  %v1680_v33 = vld [vmem:[%s10478_s6 + $0x2e08] sm:$0xff]  ;;  %1677 = vst [vmem:[%s10486_s7 + $0x16f8] sm:$0xff] %v1676_v31 }
 0x182   : > { %1679 = vst [vmem:[%s10486_s7 + $0x1700] sm:$0xff] %v1678_v32  ;;  %1681 = vst [vmem:[%s10486_s7 + $0x1708] sm:$0xff] %v1680_v33  ;;  %v1682_v34 = vld [vmem:[%s10478_s6 + $0x2e20] sm:$0xff]  ;;  %v1684_v35 = vld [vmem:[%s10478_s6 + $0x2e28] sm:$0xff] }
 0x183   : > { %v1686_v36 = vld [vmem:[%s10478_s6 + $0x2e40] sm:$0xff]  ;;  %1683 = vst [vmem:[%s10486_s7 + $0x1710] sm:$0xff] %v1682_v34  ;;  %1685 = vst [vmem:[%s10486_s7 + $0x1718] sm:$0xff] %v1684_v35  ;;  %v1688_v37 = vld [vmem:[%s10478_s6 + $0x2e48] sm:$0xff] }
 0x184   : > { %1687 = vst [vmem:[%s10486_s7 + $0x1720] sm:$0xff] %v1686_v36  ;;  %v1690_v38 = vld [vmem:[%s10478_s6 + $0x2e60] sm:$0xff]  ;;  %v1692_v39 = vld [vmem:[%s10478_s6 + $0x2e68] sm:$0xff]  ;;  %1689 = vst [vmem:[%s10486_s7 + $0x1728] sm:$0xff] %v1688_v37 }
 0x185   : > { %1691 = vst [vmem:[%s10486_s7 + $0x1730] sm:$0xff] %v1690_v38  ;;  %1693 = vst [vmem:[%s10486_s7 + $0x1738] sm:$0xff] %v1692_v39  ;;  %v1694_v40 = vld [vmem:[%s10478_s6 + $0x2e80] sm:$0xff]  ;;  %v1696_v41 = vld [vmem:[%s10478_s6 + $0x2e88] sm:$0xff] }
 0x186   : > { %v1698_v42 = vld [vmem:[%s10478_s6 + $0x2ea0] sm:$0xff]  ;;  %1695 = vst [vmem:[%s10486_s7 + $0x1740] sm:$0xff] %v1694_v40  ;;  %1697 = vst [vmem:[%s10486_s7 + $0x1748] sm:$0xff] %v1696_v41  ;;  %v1700_v43 = vld [vmem:[%s10478_s6 + $0x2ea8] sm:$0xff] }
 0x187   : > { %1699 = vst [vmem:[%s10486_s7 + $0x1750] sm:$0xff] %v1698_v42  ;;  %v1702_v44 = vld [vmem:[%s10478_s6 + $0x2ec0] sm:$0xff]  ;;  %v1704_v45 = vld [vmem:[%s10478_s6 + $0x2ec8] sm:$0xff]  ;;  %1701 = vst [vmem:[%s10486_s7 + $0x1758] sm:$0xff] %v1700_v43 }
 0x188   : > { %1703 = vst [vmem:[%s10486_s7 + $0x1760] sm:$0xff] %v1702_v44  ;;  %1705 = vst [vmem:[%s10486_s7 + $0x1768] sm:$0xff] %v1704_v45  ;;  %v1706_v46 = vld [vmem:[%s10478_s6 + $0x2ee0] sm:$0xff]  ;;  %v1708_v47 = vld [vmem:[%s10478_s6 + $0x2ee8] sm:$0xff] }
 0x189   : > { %v1710_v48 = vld [vmem:[%s10478_s6 + $0x2f00] sm:$0xff]  ;;  %1707 = vst [vmem:[%s10486_s7 + $0x1770] sm:$0xff] %v1706_v46  ;;  %1709 = vst [vmem:[%s10486_s7 + $0x1778] sm:$0xff] %v1708_v47  ;;  %v1712_v49 = vld [vmem:[%s10478_s6 + $0x2f08] sm:$0xff] }
 0x18a   : > { %1711 = vst [vmem:[%s10486_s7 + $0x1780] sm:$0xff] %v1710_v48  ;;  %v1714_v50 = vld [vmem:[%s10478_s6 + $0x2f20] sm:$0xff]  ;;  %v1716_v51 = vld [vmem:[%s10478_s6 + $0x2f28] sm:$0xff]  ;;  %1713 = vst [vmem:[%s10486_s7 + $0x1788] sm:$0xff] %v1712_v49 }
 0x18b   : > { %1715 = vst [vmem:[%s10486_s7 + $0x1790] sm:$0xff] %v1714_v50  ;;  %1717 = vst [vmem:[%s10486_s7 + $0x1798] sm:$0xff] %v1716_v51  ;;  %v1718_v52 = vld [vmem:[%s10478_s6 + $0x2f40] sm:$0xff]  ;;  %v1720_v53 = vld [vmem:[%s10478_s6 + $0x2f48] sm:$0xff] }
 0x18c   : > { %v1722_v54 = vld [vmem:[%s10478_s6 + $0x2f60] sm:$0xff]  ;;  %1719 = vst [vmem:[%s10486_s7 + $0x17a0] sm:$0xff] %v1718_v52  ;;  %1721 = vst [vmem:[%s10486_s7 + $0x17a8] sm:$0xff] %v1720_v53  ;;  %v1724_v55 = vld [vmem:[%s10478_s6 + $0x2f68] sm:$0xff] }
 0x18d   : > { %1723 = vst [vmem:[%s10486_s7 + $0x17b0] sm:$0xff] %v1722_v54  ;;  %v1726_v56 = vld [vmem:[%s10478_s6 + $0x2f80] sm:$0xff]  ;;  %v1728_v57 = vld [vmem:[%s10478_s6 + $0x2f88] sm:$0xff]  ;;  %1725 = vst [vmem:[%s10486_s7 + $0x17b8] sm:$0xff] %v1724_v55 }
 0x18e   : > { %1727 = vst [vmem:[%s10486_s7 + $0x17c0] sm:$0xff] %v1726_v56  ;;  %1729 = vst [vmem:[%s10486_s7 + $0x17c8] sm:$0xff] %v1728_v57  ;;  %v1730_v58 = vld [vmem:[%s10478_s6 + $0x2fa0] sm:$0xff]  ;;  %v1732_v59 = vld [vmem:[%s10478_s6 + $0x2fa8] sm:$0xff] }
 0x18f   : > { %v1734_v60 = vld [vmem:[%s10478_s6 + $0x2fc0] sm:$0xff]  ;;  %1731 = vst [vmem:[%s10486_s7 + $0x17d0] sm:$0xff] %v1730_v58  ;;  %1733 = vst [vmem:[%s10486_s7 + $0x17d8] sm:$0xff] %v1732_v59  ;;  %v1736_v61 = vld [vmem:[%s10478_s6 + $0x2fc8] sm:$0xff] }
 0x190   : > { %1735 = vst [vmem:[%s10486_s7 + $0x17e0] sm:$0xff] %v1734_v60  ;;  %v1738_v62 = vld [vmem:[%s10478_s6 + $0x2fe0] sm:$0xff]  ;;  %v1740_v63 = vld [vmem:[%s10478_s6 + $0x2fe8] sm:$0xff]  ;;  %1737 = vst [vmem:[%s10486_s7 + $0x17e8] sm:$0xff] %v1736_v61 }
 0x191   : > { %1739 = vst [vmem:[%s10486_s7 + $0x17f0] sm:$0xff] %v1738_v62  ;;  %1741 = vst [vmem:[%s10486_s7 + $0x17f8] sm:$0xff] %v1740_v63  ;;  %v1742_v0 = vld [vmem:[%s10478_s6 + $0x3000] sm:$0xff]  ;;  %v1744_v1 = vld [vmem:[%s10478_s6 + $0x3008] sm:$0xff] }
 0x192   : > { %v1746_v2 = vld [vmem:[%s10478_s6 + $0x3020] sm:$0xff]  ;;  %1743 = vst [vmem:[%s10486_s7 + $0x1800] sm:$0xff] %v1742_v0  ;;  %1745 = vst [vmem:[%s10486_s7 + $0x1808] sm:$0xff] %v1744_v1  ;;  %v1748_v3 = vld [vmem:[%s10478_s6 + $0x3028] sm:$0xff] }
 0x193   : > { %1747 = vst [vmem:[%s10486_s7 + $0x1810] sm:$0xff] %v1746_v2  ;;  %v1750_v4 = vld [vmem:[%s10478_s6 + $0x3040] sm:$0xff]  ;;  %v1752_v5 = vld [vmem:[%s10478_s6 + $0x3048] sm:$0xff]  ;;  %1749 = vst [vmem:[%s10486_s7 + $0x1818] sm:$0xff] %v1748_v3 }
 0x194   : > { %1751 = vst [vmem:[%s10486_s7 + $0x1820] sm:$0xff] %v1750_v4  ;;  %1753 = vst [vmem:[%s10486_s7 + $0x1828] sm:$0xff] %v1752_v5  ;;  %v1754_v6 = vld [vmem:[%s10478_s6 + $0x3060] sm:$0xff]  ;;  %v1756_v7 = vld [vmem:[%s10478_s6 + $0x3068] sm:$0xff] }
 0x195   : > { %v1758_v8 = vld [vmem:[%s10478_s6 + $0x3080] sm:$0xff]  ;;  %1755 = vst [vmem:[%s10486_s7 + $0x1830] sm:$0xff] %v1754_v6  ;;  %1757 = vst [vmem:[%s10486_s7 + $0x1838] sm:$0xff] %v1756_v7  ;;  %v1760_v9 = vld [vmem:[%s10478_s6 + $0x3088] sm:$0xff] }
 0x196   : > { %1759 = vst [vmem:[%s10486_s7 + $0x1840] sm:$0xff] %v1758_v8  ;;  %v1762_v10 = vld [vmem:[%s10478_s6 + $0x30a0] sm:$0xff]  ;;  %v1764_v11 = vld [vmem:[%s10478_s6 + $0x30a8] sm:$0xff]  ;;  %1761 = vst [vmem:[%s10486_s7 + $0x1848] sm:$0xff] %v1760_v9 }
 0x197   : > { %1763 = vst [vmem:[%s10486_s7 + $0x1850] sm:$0xff] %v1762_v10  ;;  %1765 = vst [vmem:[%s10486_s7 + $0x1858] sm:$0xff] %v1764_v11  ;;  %v1766_v12 = vld [vmem:[%s10478_s6 + $0x30c0] sm:$0xff]  ;;  %v1768_v13 = vld [vmem:[%s10478_s6 + $0x30c8] sm:$0xff] }
 0x198   : > { %v1770_v14 = vld [vmem:[%s10478_s6 + $0x30e0] sm:$0xff]  ;;  %1767 = vst [vmem:[%s10486_s7 + $0x1860] sm:$0xff] %v1766_v12  ;;  %1769 = vst [vmem:[%s10486_s7 + $0x1868] sm:$0xff] %v1768_v13  ;;  %v1772_v15 = vld [vmem:[%s10478_s6 + $0x30e8] sm:$0xff] }
 0x199   : > { %1771 = vst [vmem:[%s10486_s7 + $0x1870] sm:$0xff] %v1770_v14  ;;  %1773 = vst [vmem:[%s10486_s7 + $0x1878] sm:$0xff] %v1772_v15 }
 0x19a PF: > { %p8145_p5 = scmp.ge.s32.totalorder %s10408_s20, 1  ;;  %p1800_p6 = scmp.lt.s32.totalorder %s10408_s20, 3 }
 0x19c   : > { %p1801_p7 = pnand %p8145_p5, %p1800_p6 }
 0x19d   : > { %s1807_s8 = sand.u32 (!%p1801_p7), 1, %s10400_s18   ;;  %v1882_v16 = vlaneseq (!%p1801_p7)  ;;  %v10410_v17 = vmov (!%p1801_p7), 1983009808   ;;  %v12058_v20 = vld [vmem:[%s13081_s0] sm:$0xff] (!%p1801_p7)  ;;  %p1851_p8 = scmp.lt.s32.totalorder (!%p1801_p7), %s10458_s21, 1  ;;  %vm6763_vm0 = vcmask (!%p1801_p7), 523264  }
 0x19e   : > { %1804 = sbr.rel (%p1801_p7) target bundleno = 1641 (0x669), region = 59  ;;  %v1880_v18 = vunpack.c.l.s4 (!%p1801_p7), %v10410_v17  ;;  %vm8048_vm1 = vcmask (!%p1801_p7), 25600  }
 0x19f   : > { %s9177_s9 = smul.u32 (!%p1801_p7), 6272, %s1807_s8  ;;  %v12053_v19 = vshrl.u32 (!%p1801_p7), %v1882_v16, 7 }
 0x1a0   : > { %v1881_v21 = vunpack.c.0.s8 (!%p1801_p7), %v1880_v18 }
 0x1a1   : > { %s12060_s12 = scalar_lea.vmem (!%p1801_p7), [#allocation2], %s9177_s9  ;;  %s8146_s9 = sshll.u32 (!%p1801_p7), %s10458_s21, 2 }
 0x1a2   : > { %v9204_v22 = vld [vmem:[%s12060_s12 + $0x4] ss:$16 sps:$4 sm:$0xff] (!%p1801_p7)   ;;  %v9206_v23 = vld [vmem:[%s12060_s12 + $0xc] ss:$16 sps:$4 sm:$0xff] (!%p1801_p7)   ;;  %v12065_v24 = vsub.s32 (!%p1801_p7), %v1881_v21, %v12053_v19  ;;  %v9208_v25 = vld [vmem:[%s12060_s12] ss:$16 sps:$4 sm:$0xff] (!%p1801_p7)  }
 0x1a3   : > { %6767 = vmatprep.subr.bf16.mxu0 (!%p1801_p7), %v9204_v22  ;;  %v9209_v26 = vld [vmem:[%s12060_s12 + $0x8] ss:$16 sps:$4 sm:$0xff] (!%p1801_p7)   ;;  %7300 = vmatprep.subr.bf16.mxu1 (!%p1801_p7), %v9206_v23  ;;  %v9210_v27 = vld [vmem:[%s12060_s12 + $0x24] ss:$16 sps:$4 sm:$0xff] (!%p1801_p7)   ;;  %v9212_v29 = vld [vmem:[%s12060_s12 + $0x2c] ss:$16 sps:$4 sm:$0xff] (!%p1801_p7)   ;;  %v1878_v22 = vcombine.high (!%p1801_p7), %v12058_v20, %v12058_v20 }
 0x1a4   : > { %v12072_v28 = vrot.slane (!%p1801_p7), %v12058_v20, %v12065_v24  ;;  %6768 = vmatpush1.bf16.msra.mxu0 (!%p1801_p7), %v9208_v25  ;;  %7301 = vmatpush1.bf16.msra.mxu1 (!%p1801_p7), %v9209_v26  ;;  %v9214_v30 = vld [vmem:[%s12060_s12 + $0x20] ss:$16 sps:$4 sm:$0xff] (!%p1801_p7)   ;;  %v9215_v31 = vld [vmem:[%s12060_s12 + $0x28] ss:$16 sps:$4 sm:$0xff] (!%p1801_p7)   ;;  %v9216_v33 = vld [vmem:[%s12060_s12 + $0x44] ss:$16 sps:$4 sm:$0xff] (!%p1801_p7)  }
 0x1a5   : > { %6769 = vmatprep.subr.bf16.mxu0 %v9210_v27  ;;  %7302 = vmatprep.subr.bf16.mxu1 %v9212_v29  ;;  %v9218_v34 = vld [vmem:[%s12060_s12 + $0x4c] ss:$16 sps:$4 sm:$0xff]   ;;  %v9220_v35 = vld [vmem:[%s12060_s12 + $0x40] ss:$16 sps:$4 sm:$0xff]   ;;  %v9221_v36 = vld [vmem:[%s12060_s12 + $0x48] ss:$16 sps:$4 sm:$0xff]   ;;  %v12136_v29 = vrot.slane %v1878_v22, %v12065_v24 }
 0x1a6   : > { %v1893_v32 = vcombine.high %v12072_v28, %v12072_v28  ;;  %v9222_v38 = vld [vmem:[%s12060_s12 + $0x64] ss:$16 sps:$4 sm:$0xff]   ;;  %v9224_v39 = vld [vmem:[%s12060_s12 + $0x6c] ss:$16 sps:$4 sm:$0xff]   ;;  %v9226_v40 = vld [vmem:[%s12060_s12 + $0x60] ss:$16 sps:$4 sm:$0xff]  }
 0x1a7   : > { %v9227_v41 = vld [vmem:[%s12060_s12 + $0x68] ss:$16 sps:$4 sm:$0xff]   ;;  %v9228_v42 = vld [vmem:[%s12060_s12 + $0x84] ss:$16 sps:$4 sm:$0xff]   ;;  %v9230_v43 = vld [vmem:[%s12060_s12 + $0x8c] ss:$16 sps:$4 sm:$0xff]  }
 0x1a8   : > { %v2013_v37 = vpack.c.bf16 %v1893_v32, %v1893_v32  ;;  %6770 = vmatpush1.bf16.msra.mxu0 %v9214_v30  ;;  %7303 = vmatpush1.bf16.msra.mxu1 %v9215_v31  ;;  %v9232_v44 = vld [vmem:[%s12060_s12 + $0x80] ss:$16 sps:$4 sm:$0xff]   ;;  %v9233_v45 = vld [vmem:[%s12060_s12 + $0x88] ss:$16 sps:$4 sm:$0xff]   ;;  %v9234_v46 = vld [vmem:[%s12060_s12 + $0xa4] ss:$16 sps:$4 sm:$0xff]  }
 0x1a9   : > { %6771 = vmatprep.subr.bf16.mxu0 %v9216_v33  ;;  %7304 = vmatprep.subr.bf16.mxu1 %v9218_v34  ;;  %v9236_v47 = vld [vmem:[%s12060_s12 + $0xac] ss:$16 sps:$4 sm:$0xff]   ;;  %v9238_v48 = vld [vmem:[%s12060_s12 + $0xa0] ss:$16 sps:$4 sm:$0xff]   ;;  %v9239_v49 = vld [vmem:[%s12060_s12 + $0xa8] ss:$16 sps:$4 sm:$0xff]   ;;  %v1894_v33 = vcombine.high %v12136_v29, %v12136_v29 }
 0x1aa   : > { %6799 = vmatprep.mubr.bf16.mxu0 %v2013_v37  ;;  %7332 = vmatprep.mubr.bf16.mxu1 %v2013_v37  ;;  %v9240_v50 = vld [vmem:[%s12060_s12 + $0xc4] ss:$16 sps:$4 sm:$0xff]   ;;  %v9242_v51 = vld [vmem:[%s12060_s12 + $0xcc] ss:$16 sps:$4 sm:$0xff]   ;;  %v9244_v52 = vld [vmem:[%s12060_s12 + $0xc0] ss:$16 sps:$4 sm:$0xff]  }
 0x1ab   : > { %v9245_v53 = vld [vmem:[%s12060_s12 + $0xc8] ss:$16 sps:$4 sm:$0xff]   ;;  %v9246_v54 = vld [vmem:[%s12060_s12 + $0xe4] ss:$16 sps:$4 sm:$0xff]   ;;  %v9248_v55 = vld [vmem:[%s12060_s12 + $0xec] ss:$16 sps:$4 sm:$0xff]  }
 0x1ac   : > { %6772 = vmatpush1.bf16.msra.mxu0 %v9220_v35  ;;  %7305 = vmatpush1.bf16.msra.mxu1 %v9221_v36  ;;  %v9250_v56 = vld [vmem:[%s12060_s12 + $0xe0] ss:$16 sps:$4 sm:$0xff]   ;;  %v9251_v57 = vld [vmem:[%s12060_s12 + $0xe8] ss:$16 sps:$4 sm:$0xff]   ;;  %v9252_v58 = vld [vmem:[%s12060_s12 + $0x104] ss:$16 sps:$4 sm:$0xff]   ;;  %v2012_v36 = vpack.c.bf16 %v12072_v28, %v12072_v28 }
 0x1ad   : > { %6773 = vmatprep.subr.bf16.mxu0 %v9222_v38  ;;  %7306 = vmatprep.subr.bf16.mxu1 %v9224_v39  ;;  %v9254_v59 = vld [vmem:[%s12060_s12 + $0x10c] ss:$16 sps:$4 sm:$0xff]   ;;  %v9256_v60 = vld [vmem:[%s12060_s12 + $0x100] ss:$16 sps:$4 sm:$0xff]   ;;  %v9257_v61 = vld [vmem:[%s12060_s12 + $0x108] ss:$16 sps:$4 sm:$0xff]   ;;  %v2015_v39 = vpack.c.bf16 %v1894_v33, %v1894_v33 }
 0x1ae   : > { %v9258_v62 = vld [vmem:[%s12060_s12 + $0x124] ss:$16 sps:$4 sm:$0xff]   ;;  %v9260_v63 = vld [vmem:[%s12060_s12 + $0x12c] ss:$16 sps:$4 sm:$0xff]   ;;  %v9262_v0 = vld [vmem:[%s12060_s12 + $0x120] ss:$16 sps:$4 sm:$0xff]  }
 0x1af   : > { %v9263_v1 = vld [vmem:[%s12060_s12 + $0x128] ss:$16 sps:$4 sm:$0xff]   ;;  %v9264_v2 = vld [vmem:[%s12060_s12 + $0x144] ss:$16 sps:$4 sm:$0xff]   ;;  %v9266_v3 = vld [vmem:[%s12060_s12 + $0x14c] ss:$16 sps:$4 sm:$0xff]  }
 0x1b0   : > { %6774 = vmatpush1.bf16.msra.mxu0 %v9226_v40  ;;  %7307 = vmatpush1.bf16.msra.mxu1 %v9227_v41  ;;  %v9268_v4 = vld [vmem:[%s12060_s12 + $0x140] ss:$16 sps:$4 sm:$0xff]   ;;  %v9269_v5 = vld [vmem:[%s12060_s12 + $0x148] ss:$16 sps:$4 sm:$0xff]   ;;  %v9270_v6 = vld [vmem:[%s12060_s12 + $0x164] ss:$16 sps:$4 sm:$0xff]  }
 0x1b1   : > { %6775 = vmatprep.subr.bf16.mxu0 %v9228_v42  ;;  %7308 = vmatprep.subr.bf16.mxu1 %v9230_v43  ;;  %v9272_v7 = vld [vmem:[%s12060_s12 + $0x16c] ss:$16 sps:$4 sm:$0xff]   ;;  %v9274_v8 = vld [vmem:[%s12060_s12 + $0x160] ss:$16 sps:$4 sm:$0xff]   ;;  %v9275_v9 = vld [vmem:[%s12060_s12 + $0x168] ss:$16 sps:$4 sm:$0xff]  }
 0x1b2   : > { %v9276_v10 = vld [vmem:[%s12060_s12 + $0x184] ss:$16 sps:$4 sm:$0xff]   ;;  %v9278_v11 = vld [vmem:[%s12060_s12 + $0x18c] ss:$16 sps:$4 sm:$0xff]   ;;  %v9280_v12 = vld [vmem:[%s12060_s12 + $0x180] ss:$16 sps:$4 sm:$0xff]  }
 0x1b3   : > { %v9281_v13 = vld [vmem:[%s12060_s12 + $0x188] ss:$16 sps:$4 sm:$0xff]   ;;  %v9282_v14 = vld [vmem:[%s12060_s12 + $0x1a4] ss:$16 sps:$4 sm:$0xff]   ;;  %v9284_v15 = vld [vmem:[%s12060_s12 + $0x1ac] ss:$16 sps:$4 sm:$0xff]  }
 0x1b4   : > { %6776 = vmatpush1.bf16.msra.mxu0 %v9232_v44  ;;  %7309 = vmatpush1.bf16.msra.mxu1 %v9233_v45  ;;  %v9286_v16 = vld [vmem:[%s12060_s12 + $0x1a0] ss:$16 sps:$4 sm:$0xff]   ;;  %v9287_v17 = vld [vmem:[%s12060_s12 + $0x1a8] ss:$16 sps:$4 sm:$0xff]   ;;  %v9288_v18 = vld [vmem:[%s12060_s12 + $0x1c4] ss:$16 sps:$4 sm:$0xff]  }
 0x1b5   : > { %6777 = vmatprep.subr.bf16.mxu0 %v9234_v46  ;;  %7310 = vmatprep.subr.bf16.mxu1 %v9236_v47  ;;  %v9290_v21 = vld [vmem:[%s12060_s12 + $0x1cc] ss:$16 sps:$4 sm:$0xff]   ;;  %v9292_v23 = vld [vmem:[%s12060_s12 + $0x1c0] ss:$16 sps:$4 sm:$0xff]   ;;  %v9293_v25 = vld [vmem:[%s12060_s12 + $0x1c8] ss:$16 sps:$4 sm:$0xff]  }
 0x1b6   : > { %v9294_v26 = vld [vmem:[%s12060_s12 + $0x1e4] ss:$16 sps:$4 sm:$0xff]   ;;  %v9296_v27 = vld [vmem:[%s12060_s12 + $0x1ec] ss:$16 sps:$4 sm:$0xff]   ;;  %v9298_v30 = vld [vmem:[%s12060_s12 + $0x1e0] ss:$16 sps:$4 sm:$0xff]  }
 0x1b7   : > { %v9299_v31 = vld [vmem:[%s12060_s12 + $0x1e8] ss:$16 sps:$4 sm:$0xff]   ;;  %v9303_v20 = vld [vmem:[%s12060_s12 + $0x204] ss:$16 sps:$4 sm:$0xff]   ;;  %v9306_v32 = vld [vmem:[%s12060_s12 + $0x20c] ss:$16 sps:$4 sm:$0xff]  }
 0x1b8   : > { %6778 = vmatpush1.bf16.msra.mxu0 %v9238_v48  ;;  %7311 = vmatpush1.bf16.msra.mxu1 %v9239_v49  ;;  %v9301_v34 = vld [vmem:[%s12060_s12 + $0x200] ss:$16 sps:$4 sm:$0xff]   ;;  %v9304_v35 = vld [vmem:[%s12060_s12 + $0x208] ss:$16 sps:$4 sm:$0xff]   ;;  %v9309_v37 = vld [vmem:[%s12060_s12 + $0x224] ss:$16 sps:$4 sm:$0xff]  }
 0x1b9   : > { %6779 = vmatprep.subr.bf16.mxu0 %v9240_v50  ;;  %7312 = vmatprep.subr.bf16.mxu1 %v9242_v51  ;;  %v9312_v38 = vld [vmem:[%s12060_s12 + $0x22c] ss:$16 sps:$4 sm:$0xff]   ;;  %v9307_v40 = vld [vmem:[%s12060_s12 + $0x220] ss:$16 sps:$4 sm:$0xff]   ;;  %v9310_v41 = vld [vmem:[%s12060_s12 + $0x228] ss:$16 sps:$4 sm:$0xff]  }
 0x1ba   : > { %v9315_v28 = vld [vmem:[%s12060_s12 + $0x244] ss:$16 sps:$4 sm:$0xff]   ;;  %v9318_v42 = vld [vmem:[%s12060_s12 + $0x24c] ss:$16 sps:$4 sm:$0xff]   ;;  %v9313_v43 = vld [vmem:[%s12060_s12 + $0x240] ss:$16 sps:$4 sm:$0xff]  }
 0x1bb   : > { %v9316_v44 = vld [vmem:[%s12060_s12 + $0x248] ss:$16 sps:$4 sm:$0xff]   ;;  %v9321_v45 = vld [vmem:[%s12060_s12 + $0x264] ss:$16 sps:$4 sm:$0xff]   ;;  %v9324_v46 = vld [vmem:[%s12060_s12 + $0x26c] ss:$16 sps:$4 sm:$0xff]  }
 0x1bc   : > { %6780 = vmatpush1.bf16.msra.mxu0 %v9244_v52  ;;  %7313 = vmatpush1.bf16.msra.mxu1 %v9245_v53  ;;  %v9319_v47 = vld [vmem:[%s12060_s12 + $0x260] ss:$16 sps:$4 sm:$0xff]   ;;  %v9322_v48 = vld [vmem:[%s12060_s12 + $0x268] ss:$16 sps:$4 sm:$0xff]   ;;  %v9327_v49 = vld [vmem:[%s12060_s12 + $0x284] ss:$16 sps:$4 sm:$0xff]  }
 0x1bd   : > { %6781 = vmatprep.subr.bf16.mxu0 %v9246_v54  ;;  %7314 = vmatprep.subr.bf16.mxu1 %v9248_v55  ;;  %v9330_v50 = vld [vmem:[%s12060_s12 + $0x28c] ss:$16 sps:$4 sm:$0xff]   ;;  %v9325_v51 = vld [vmem:[%s12060_s12 + $0x280] ss:$16 sps:$4 sm:$0xff]   ;;  %v9328_v52 = vld [vmem:[%s12060_s12 + $0x288] ss:$16 sps:$4 sm:$0xff]  }
 0x1be   : > { %v9333_v53 = vld [vmem:[%s12060_s12 + $0x2a4] ss:$16 sps:$4 sm:$0xff]   ;;  %v9336_v54 = vld [vmem:[%s12060_s12 + $0x2ac] ss:$16 sps:$4 sm:$0xff]   ;;  %v9331_v55 = vld [vmem:[%s12060_s12 + $0x2a0] ss:$16 sps:$4 sm:$0xff]  }
 0x1bf   : > { %v9376_v22 = vld [vmem:[%s12060_s12 + $0x388] ss:$16 sps:$4 sm:$0xff]   ;;  %v9393_v33 = vld [vmem:[%s12060_s12 + $0x3e4] ss:$16 sps:$4 sm:$0xff]   ;;  %s12964_s27 = scalar_select %p1851_p8, %s10458_s21, 1 }
 0x1c0   : > { %6782 = vmatpush1.bf16.msra.mxu0 %v9250_v56  ;;  %7315 = vmatpush1.bf16.msra.mxu1 %v9251_v57  ;;  %v9334_v56 = vld [vmem:[%s12060_s12 + $0x2a8] ss:$16 sps:$4 sm:$0xff]   ;;  %v9339_v57 = vld [vmem:[%s12060_s12 + $0x2c4] ss:$16 sps:$4 sm:$0xff]   ;;  %p1847_p9 = scmp.lt.s32.totalorder %s8146_s9, 7 }
 0x1c1   : > { %6783 = vmatprep.subr.bf16.mxu0 %v9252_v58  ;;  %7316 = vmatprep.subr.bf16.mxu1 %v9254_v59  ;;  %v9342_v58 = vld [vmem:[%s12060_s12 + $0x2cc] ss:$16 sps:$4 sm:$0xff]   ;;  %v9337_v59 = vld [vmem:[%s12060_s12 + $0x2c0] ss:$16 sps:$4 sm:$0xff]   ;;  %s8941_s28 = sshll.u32 %s12964_s27, 9  ;;  %s1858_s14 = scalar_lea.vmem %s13085_s4, %s12964_s27 }
 0x1c2   : > { %s12978_s6 = scalar_lea.vmem %s13084_s3, %s8941_s28  ;;  %s13091_s9 = smov (!%p1847_p9, %s8146_s9), 7 }
 0x1c3   : > { %s8149_s15 = sshll.u32 %s12964_s27, 1 }
 0x1c4   : > { %6784 = vmatpush1.bf16.msra.mxu0 %v9256_v60  ;;  %7317 = vmatpush1.bf16.msra.mxu1 %v9257_v61  ;;  %v9340_v60 = vld [vmem:[%s12060_s12 + $0x2c8] ss:$16 sps:$4 sm:$0xff]   ;;  %v9345_v61 = vld [vmem:[%s12060_s12 + $0x2e4] ss:$16 sps:$4 sm:$0xff]   ;;  %s1862_s18 = scalar_lea.vmem %s13086_s5, %s8149_s15 }
 0x1c5   : > { %6785 = vmatprep.subr.bf16.mxu0 %v9258_v62  ;;  %7318 = vmatprep.subr.bf16.mxu1 %v9260_v63  ;;  %v9348_v62 = vld [vmem:[%s12060_s12 + $0x2ec] ss:$16 sps:$4 sm:$0xff]   ;;  %v9343_v63 = vld [vmem:[%s12060_s12 + $0x2e0] ss:$16 sps:$4 sm:$0xff]  }
 0x1c8   : > { %6786 = vmatpush1.bf16.msra.mxu0 %v9262_v0  ;;  %7319 = vmatpush1.bf16.msra.mxu1 %v9263_v1  ;;  %v9346_v0 = vld [vmem:[%s12060_s12 + $0x2e8] ss:$16 sps:$4 sm:$0xff]   ;;  %v9351_v1 = vld [vmem:[%s12060_s12 + $0x304] ss:$16 sps:$4 sm:$0xff]  }
 0x1c9   : > { %6787 = vmatprep.subr.bf16.mxu0 %v9264_v2  ;;  %7320 = vmatprep.subr.bf16.mxu1 %v9266_v3  ;;  %v9354_v2 = vld [vmem:[%s12060_s12 + $0x30c] ss:$16 sps:$4 sm:$0xff]   ;;  %v9349_v3 = vld [vmem:[%s12060_s12 + $0x300] ss:$16 sps:$4 sm:$0xff]  }
 0x1cc   : > { %6788 = vmatpush1.bf16.msra.mxu0 %v9268_v4  ;;  %7321 = vmatpush1.bf16.msra.mxu1 %v9269_v5  ;;  %v9352_v4 = vld [vmem:[%s12060_s12 + $0x308] ss:$16 sps:$4 sm:$0xff]   ;;  %v9357_v5 = vld [vmem:[%s12060_s12 + $0x324] ss:$16 sps:$4 sm:$0xff]  }
 0x1cd   : > { %6789 = vmatprep.subr.bf16.mxu0 %v9270_v6  ;;  %7322 = vmatprep.subr.bf16.mxu1 %v9272_v7  ;;  %v9360_v6 = vld [vmem:[%s12060_s12 + $0x32c] ss:$16 sps:$4 sm:$0xff]   ;;  %v9355_v7 = vld [vmem:[%s12060_s12 + $0x320] ss:$16 sps:$4 sm:$0xff]  }
 0x1d0   : > { %6790 = vmatpush1.bf16.msra.mxu0 %v9274_v8  ;;  %7323 = vmatpush1.bf16.msra.mxu1 %v9275_v9  ;;  %v9358_v8 = vld [vmem:[%s12060_s12 + $0x328] ss:$16 sps:$4 sm:$0xff]   ;;  %v9363_v9 = vld [vmem:[%s12060_s12 + $0x344] ss:$16 sps:$4 sm:$0xff]  }
 0x1d1   : > { %6791 = vmatprep.subr.bf16.mxu0 %v9276_v10  ;;  %7324 = vmatprep.subr.bf16.mxu1 %v9278_v11  ;;  %v9366_v10 = vld [vmem:[%s12060_s12 + $0x34c] ss:$16 sps:$4 sm:$0xff]   ;;  %v9361_v11 = vld [vmem:[%s12060_s12 + $0x340] ss:$16 sps:$4 sm:$0xff]  }
 0x1d4   : > { %6792 = vmatpush1.bf16.msra.mxu0 %v9280_v12  ;;  %7325 = vmatpush1.bf16.msra.mxu1 %v9281_v13  ;;  %v9364_v12 = vld [vmem:[%s12060_s12 + $0x348] ss:$16 sps:$4 sm:$0xff]   ;;  %v9369_v13 = vld [vmem:[%s12060_s12 + $0x364] ss:$16 sps:$4 sm:$0xff]  }
 0x1d5   : > { %6793 = vmatprep.subr.bf16.mxu0 %v9282_v14  ;;  %7326 = vmatprep.subr.bf16.mxu1 %v9284_v15  ;;  %v9372_v14 = vld [vmem:[%s12060_s12 + $0x36c] ss:$16 sps:$4 sm:$0xff]   ;;  %v9367_v15 = vld [vmem:[%s12060_s12 + $0x360] ss:$16 sps:$4 sm:$0xff]  }
 0x1d8   : > { %6794 = vmatpush1.bf16.msra.mxu0 %v9286_v16  ;;  %7327 = vmatpush1.bf16.msra.mxu1 %v9287_v17  ;;  %v9370_v16 = vld [vmem:[%s12060_s12 + $0x368] ss:$16 sps:$4 sm:$0xff]   ;;  %v9375_v17 = vld [vmem:[%s12060_s12 + $0x384] ss:$16 sps:$4 sm:$0xff]  }
 0x1d9   : > { %6795 = vmatprep.subr.bf16.mxu0 %v9288_v18  ;;  %7328 = vmatprep.subr.bf16.mxu1 %v9290_v21  ;;  %v9378_v18 = vld [vmem:[%s12060_s12 + $0x38c] ss:$16 sps:$4 sm:$0xff]   ;;  %v9373_v21 = vld [vmem:[%s12060_s12 + $0x380] ss:$16 sps:$4 sm:$0xff]  }
 0x1dc   : > { %6796 = vmatpush1.bf16.msra.mxu0 %v9292_v23  ;;  %7329 = vmatpush1.bf16.msra.mxu1 %v9293_v25  ;;  %v9381_v23 = vld [vmem:[%s12060_s12 + $0x3a4] ss:$16 sps:$4 sm:$0xff]   ;;  %v9384_v25 = vld [vmem:[%s12060_s12 + $0x3ac] ss:$16 sps:$4 sm:$0xff]  }
 0x1dd   : > { %6797 = vmatprep.subr.bf16.mxu0 %v9294_v26  ;;  %7330 = vmatprep.subr.bf16.mxu1 %v9296_v27  ;;  %v9379_v26 = vld [vmem:[%s12060_s12 + $0x3a0] ss:$16 sps:$4 sm:$0xff]   ;;  %v9382_v27 = vld [vmem:[%s12060_s12 + $0x3a8] ss:$16 sps:$4 sm:$0xff]  }
 0x1e0   : > { %6798 = vmatpush1.bf16.msra.mxu0 %v9298_v30  ;;  %7331 = vmatpush1.bf16.msra.mxu1 %v9299_v31  ;;  %v9387_v30 = vld [vmem:[%s12060_s12 + $0x3c4] ss:$16 sps:$4 sm:$0xff]   ;;  %v9390_v31 = vld [vmem:[%s12060_s12 + $0x3cc] ss:$16 sps:$4 sm:$0xff]  }
 0x1e1   : > { %6808 = vmatprep.subr.bf16.mxu0 %v9303_v20  ;;  %7341 = vmatprep.subr.bf16.mxu1 %v9306_v32  ;;  %v9385_v20 = vld [vmem:[%s12060_s12 + $0x3c0] ss:$16 sps:$4 sm:$0xff]   ;;  %v9388_v32 = vld [vmem:[%s12060_s12 + $0x3c8] ss:$16 sps:$4 sm:$0xff]  }
 0x1e3   : > { %6800 = vmatmul.mubr.bf16.vlgmr.msra.gmra.mrb[0].mxu0 %v2012_v36  ;;  %7333 = vmatmul.mubr.bf16.vlgmr.msra.gmra.mrb[0].mxu1 %v2012_v36  ;;  %v9394_v36 = vld [vmem:[%s12060_s12 + $0x3e8] ss:$16 sps:$4 sm:$0xff]  }
 0x1e4   : > { %6809 = vmatpush1.bf16.msra.mxu0 %v9301_v34  ;;  %7342 = vmatpush1.bf16.msra.mxu1 %v9304_v35  ;;  %v9396_v34 = vld [vmem:[%s12060_s12 + $0x3ec] ss:$16 sps:$4 sm:$0xff]   ;;  %v9391_v35 = vld [vmem:[%s12060_s12 + $0x3e0] ss:$16 sps:$4 sm:$0xff]  }
 0x1e5   : > { %6810 = vmatprep.subr.bf16.mxu0 %v9309_v37  ;;  %7343 = vmatprep.subr.bf16.mxu1 %v9312_v38  ;;  %v9399_v37 = vld [vmem:[%s12060_s12 + $0x404] ss:$16 sps:$4 sm:$0xff]   ;;  %v9402_v38 = vld [vmem:[%s12060_s12 + $0x40c] ss:$16 sps:$4 sm:$0xff]  }
 0x1e6   : > { %6840 = vmatprep.mubr.bf16.mxu0 %v2015_v39  ;;  %7373 = vmatprep.mubr.bf16.mxu1 %v2015_v39  ;;  %v9397_v39 = vld [vmem:[%s12060_s12 + $0x400] ss:$16 sps:$4 sm:$0xff]  }
 0x1e8   : > { %6811 = vmatpush1.bf16.msra.mxu0 %v9307_v40  ;;  %7344 = vmatpush1.bf16.msra.mxu1 %v9310_v41  ;;  %v9400_v40 = vld [vmem:[%s12060_s12 + $0x408] ss:$16 sps:$4 sm:$0xff]   ;;  %v2014_v41 = vpack.c.bf16 %v12136_v29, %v12136_v29  ;;  %v9403_v29 = vld [vmem:[%s12060_s12 + $0x420] ss:$16 sps:$4 sm:$0xff]  }
 0x1e9   : > { %6812 = vmatprep.subr.bf16.mxu0 %v9315_v28  ;;  %7345 = vmatprep.subr.bf16.mxu1 %v9318_v42  ;;  %v12217_v28 = vld [vmem:[%s13081_s0 + $0x8] sm:$0xff]  ;;  %v9405_v42 = vld [vmem:[%s12060_s12 + $0x424] ss:$16 sps:$4 sm:$0xff]  }
 0x1ec   : > { %6813 = vmatpush1.bf16.msra.mxu0 %v9313_v43  ;;  %7346 = vmatpush1.bf16.msra.mxu1 %v9316_v44  ;;  %v9408_v43 = vld [vmem:[%s12060_s12 + $0x42c] ss:$16 sps:$4 sm:$0xff]   ;;  %v12223_v44 = vrot.slane %v12217_v28, %v12065_v24 }
 0x1ed   : > { %6814 = vmatprep.subr.bf16.mxu0 %v9321_v45  ;;  %7347 = vmatprep.subr.bf16.mxu1 %v9324_v46  ;;  %v9406_v46 = vld [vmem:[%s12060_s12 + $0x428] ss:$16 sps:$4 sm:$0xff]  }
 0x1ee   : > { %v1910_v45 = vcombine.high %v12223_v44, %v12223_v44 }
 0x1f0   : > { %6815 = vmatpush1.bf16.msra.mxu0 %v9319_v47  ;;  %7348 = vmatpush1.bf16.msra.mxu1 %v9322_v48  ;;  %v9411_v47 = vld [vmem:[%s12060_s12 + $0x444] ss:$16 sps:$4 sm:$0xff]   ;;  %v9414_v48 = vld [vmem:[%s12060_s12 + $0x44c] ss:$16 sps:$4 sm:$0xff]  }
 0x1f1   : > { %6816 = vmatprep.subr.bf16.mxu0 %v9327_v49  ;;  %7349 = vmatprep.subr.bf16.mxu1 %v9330_v50  ;;  %v2017_v49 = vpack.c.bf16 %v1910_v45, %v1910_v45  ;;  %v9409_v50 = vld [vmem:[%s12060_s12 + $0x440] ss:$16 sps:$4 sm:$0xff]   ;;  %v9495_v45 = vld [vmem:[%s12060_s12 + $0x604] ss:$16 sps:$4 sm:$0xff]  }
 0x1f4   : > { %6817 = vmatpush1.bf16.msra.mxu0 %v9325_v51  ;;  %7350 = vmatpush1.bf16.msra.mxu1 %v9328_v52  ;;  %v9412_v51 = vld [vmem:[%s12060_s12 + $0x448] ss:$16 sps:$4 sm:$0xff]   ;;  %v9417_v52 = vld [vmem:[%s12060_s12 + $0x464] ss:$16 sps:$4 sm:$0xff]  }
 0x1f5   : > { %6818 = vmatprep.subr.bf16.mxu0 %v9333_v53  ;;  %7351 = vmatprep.subr.bf16.mxu1 %v9336_v54  ;;  %v9420_v53 = vld [vmem:[%s12060_s12 + $0x46c] ss:$16 sps:$4 sm:$0xff]   ;;  %v9415_v54 = vld [vmem:[%s12060_s12 + $0x460] ss:$16 sps:$4 sm:$0xff]  }
 0x1f8   : > { %6819 = vmatpush1.bf16.msra.mxu0 %v9331_v55  ;;  %7352 = vmatpush1.bf16.msra.mxu1 %v9334_v56  ;;  %v9418_v55 = vld [vmem:[%s12060_s12 + $0x468] ss:$16 sps:$4 sm:$0xff]   ;;  %v9423_v56 = vld [vmem:[%s12060_s12 + $0x484] ss:$16 sps:$4 sm:$0xff]  }
 0x1f9   : > { %6820 = vmatprep.subr.bf16.mxu0 %v9339_v57  ;;  %7353 = vmatprep.subr.bf16.mxu1 %v9342_v58  ;;  %v9426_v57 = vld [vmem:[%s12060_s12 + $0x48c] ss:$16 sps:$4 sm:$0xff]   ;;  %v9421_v58 = vld [vmem:[%s12060_s12 + $0x480] ss:$16 sps:$4 sm:$0xff]  }
 0x1fc   : > { %6821 = vmatpush1.bf16.msra.mxu0 %v9337_v59  ;;  %7354 = vmatpush1.bf16.msra.mxu1 %v9340_v60  ;;  %v9424_v59 = vld [vmem:[%s12060_s12 + $0x488] ss:$16 sps:$4 sm:$0xff]   ;;  %v9429_v60 = vld [vmem:[%s12060_s12 + $0x4a4] ss:$16 sps:$4 sm:$0xff]  }
 0x1fd   : > { %6822 = vmatprep.subr.bf16.mxu0 %v9345_v61  ;;  %7355 = vmatprep.subr.bf16.mxu1 %v9348_v62  ;;  %v9432_v61 = vld [vmem:[%s12060_s12 + $0x4ac] ss:$16 sps:$4 sm:$0xff]   ;;  %v9427_v62 = vld [vmem:[%s12060_s12 + $0x4a0] ss:$16 sps:$4 sm:$0xff]  }
 0x200   : > { %6823 = vmatpush1.bf16.msra.mxu0 %v9343_v63  ;;  %7356 = vmatpush1.bf16.msra.mxu1 %v9346_v0  ;;  %v9430_v63 = vld [vmem:[%s12060_s12 + $0x4a8] ss:$16 sps:$4 sm:$0xff]   ;;  %v9435_v0 = vld [vmem:[%s12060_s12 + $0x4c4] ss:$16 sps:$4 sm:$0xff]  }
 0x201   : > { %6824 = vmatprep.subr.bf16.mxu0 %v9351_v1  ;;  %7357 = vmatprep.subr.bf16.mxu1 %v9354_v2  ;;  %v9438_v1 = vld [vmem:[%s12060_s12 + $0x4cc] ss:$16 sps:$4 sm:$0xff]   ;;  %v9433_v2 = vld [vmem:[%s12060_s12 + $0x4c0] ss:$16 sps:$4 sm:$0xff]  }
 0x204   : > { %6825 = vmatpush1.bf16.msra.mxu0 %v9349_v3  ;;  %7358 = vmatpush1.bf16.msra.mxu1 %v9352_v4  ;;  %v9436_v3 = vld [vmem:[%s12060_s12 + $0x4c8] ss:$16 sps:$4 sm:$0xff]   ;;  %v9441_v4 = vld [vmem:[%s12060_s12 + $0x4e4] ss:$16 sps:$4 sm:$0xff]  }
 0x205   : > { %6826 = vmatprep.subr.bf16.mxu0 %v9357_v5  ;;  %7359 = vmatprep.subr.bf16.mxu1 %v9360_v6  ;;  %v9444_v5 = vld [vmem:[%s12060_s12 + $0x4ec] ss:$16 sps:$4 sm:$0xff]   ;;  %v9439_v6 = vld [vmem:[%s12060_s12 + $0x4e0] ss:$16 sps:$4 sm:$0xff]  }
 0x208   : > { %6827 = vmatpush1.bf16.msra.mxu0 %v9355_v7  ;;  %7360 = vmatpush1.bf16.msra.mxu1 %v9358_v8  ;;  %v9442_v7 = vld [vmem:[%s12060_s12 + $0x4e8] ss:$16 sps:$4 sm:$0xff]   ;;  %v9447_v8 = vld [vmem:[%s12060_s12 + $0x504] ss:$16 sps:$4 sm:$0xff]  }
 0x209   : > { %6828 = vmatprep.subr.bf16.mxu0 %v9363_v9  ;;  %7361 = vmatprep.subr.bf16.mxu1 %v9366_v10  ;;  %v9450_v9 = vld [vmem:[%s12060_s12 + $0x50c] ss:$16 sps:$4 sm:$0xff]   ;;  %v9445_v10 = vld [vmem:[%s12060_s12 + $0x500] ss:$16 sps:$4 sm:$0xff]  }
 0x20c   : > { %6829 = vmatpush1.bf16.msra.mxu0 %v9361_v11  ;;  %7362 = vmatpush1.bf16.msra.mxu1 %v9364_v12  ;;  %v9448_v11 = vld [vmem:[%s12060_s12 + $0x508] ss:$16 sps:$4 sm:$0xff]   ;;  %v9453_v12 = vld [vmem:[%s12060_s12 + $0x524] ss:$16 sps:$4 sm:$0xff]  }
 0x20d   : > { %6830 = vmatprep.subr.bf16.mxu0 %v9369_v13  ;;  %7363 = vmatprep.subr.bf16.mxu1 %v9372_v14  ;;  %v9456_v13 = vld [vmem:[%s12060_s12 + $0x52c] ss:$16 sps:$4 sm:$0xff]   ;;  %v9451_v14 = vld [vmem:[%s12060_s12 + $0x520] ss:$16 sps:$4 sm:$0xff]  }
 0x210   : > { %6831 = vmatpush1.bf16.msra.mxu0 %v9367_v15  ;;  %7364 = vmatpush1.bf16.msra.mxu1 %v9370_v16  ;;  %v9454_v15 = vld [vmem:[%s12060_s12 + $0x528] ss:$16 sps:$4 sm:$0xff]   ;;  %v9459_v16 = vld [vmem:[%s12060_s12 + $0x544] ss:$16 sps:$4 sm:$0xff]  }
 0x211   : > { %6832 = vmatprep.subr.bf16.mxu0 %v9375_v17  ;;  %7365 = vmatprep.subr.bf16.mxu1 %v9378_v18  ;;  %v9462_v17 = vld [vmem:[%s12060_s12 + $0x54c] ss:$16 sps:$4 sm:$0xff]   ;;  %v9457_v18 = vld [vmem:[%s12060_s12 + $0x540] ss:$16 sps:$4 sm:$0xff]  }
 0x214   : > { %6833 = vmatpush1.bf16.msra.mxu0 %v9373_v21  ;;  %7366 = vmatpush1.bf16.msra.mxu1 %v9376_v22  ;;  %v9460_v21 = vld [vmem:[%s12060_s12 + $0x548] ss:$16 sps:$4 sm:$0xff]   ;;  %v9465_v22 = vld [vmem:[%s12060_s12 + $0x564] ss:$16 sps:$4 sm:$0xff]  }
 0x215   : > { %6834 = vmatprep.subr.bf16.mxu0 %v9381_v23  ;;  %7367 = vmatprep.subr.bf16.mxu1 %v9384_v25  ;;  %v9468_v23 = vld [vmem:[%s12060_s12 + $0x56c] ss:$16 sps:$4 sm:$0xff]   ;;  %v9463_v25 = vld [vmem:[%s12060_s12 + $0x560] ss:$16 sps:$4 sm:$0xff]  }
 0x218   : > { %6835 = vmatpush1.bf16.msra.mxu0 %v9379_v26  ;;  %7368 = vmatpush1.bf16.msra.mxu1 %v9382_v27  ;;  %v9466_v26 = vld [vmem:[%s12060_s12 + $0x568] ss:$16 sps:$4 sm:$0xff]   ;;  %v9471_v27 = vld [vmem:[%s12060_s12 + $0x584] ss:$16 sps:$4 sm:$0xff]  }
 0x219   : > { %6836 = vmatprep.subr.bf16.mxu0 %v9387_v30  ;;  %7369 = vmatprep.subr.bf16.mxu1 %v9390_v31  ;;  %v9474_v30 = vld [vmem:[%s12060_s12 + $0x58c] ss:$16 sps:$4 sm:$0xff]   ;;  %v9469_v31 = vld [vmem:[%s12060_s12 + $0x580] ss:$16 sps:$4 sm:$0xff]  }
 0x21c   : > { %6837 = vmatpush1.bf16.msra.mxu0 %v9385_v20  ;;  %7370 = vmatpush1.bf16.msra.mxu1 %v9388_v32  ;;  %v9472_v20 = vld [vmem:[%s12060_s12 + $0x588] ss:$16 sps:$4 sm:$0xff]   ;;  %v9477_v32 = vld [vmem:[%s12060_s12 + $0x5a4] ss:$16 sps:$4 sm:$0xff]  }
 0x21d   : > { %6838 = vmatprep.subr.bf16.mxu0 %v9393_v33  ;;  %7371 = vmatprep.subr.bf16.mxu1 %v9396_v34  ;;  %v9480_v33 = vld [vmem:[%s12060_s12 + $0x5ac] ss:$16 sps:$4 sm:$0xff]   ;;  %v9475_v34 = vld [vmem:[%s12060_s12 + $0x5a0] ss:$16 sps:$4 sm:$0xff]  }
 0x220   : > { %6839 = vmatpush1.bf16.msra.mxu0 %v9391_v35  ;;  %7372 = vmatpush1.bf16.msra.mxu1 %v9394_v36  ;;  %v9478_v35 = vld [vmem:[%s12060_s12 + $0x5a8] ss:$16 sps:$4 sm:$0xff]   ;;  %v9483_v36 = vld [vmem:[%s12060_s12 + $0x5c4] ss:$16 sps:$4 sm:$0xff]  }
 0x221   : > { %6849 = vmatprep.subr.bf16.mxu0 %v9399_v37  ;;  %7382 = vmatprep.subr.bf16.mxu1 %v9402_v38  ;;  %v9486_v37 = vld [vmem:[%s12060_s12 + $0x5cc] ss:$16 sps:$4 sm:$0xff]   ;;  %v1895_v38 = vcombine.high %v12217_v28, %v12217_v28  ;;  %v9490_v28 = vld [vmem:[%s12060_s12 + $0x5e8] ss:$16 sps:$4 sm:$0xff]  }
 0x223   : > { %6841 = vmatmul.mubr.bf16.vlgmr.msra.gmra.mrb[0].mxu0 %v2014_v41  ;;  %7374 = vmatmul.mubr.bf16.vlgmr.msra.gmra.mrb[0].mxu1 %v2014_v41  ;;  %v9489_v41 = vld [vmem:[%s12060_s12 + $0x5e4] ss:$16 sps:$4 sm:$0xff]  }
 0x224   : > { %6850 = vmatpush1.bf16.msra.mxu0 %v9397_v39  ;;  %7383 = vmatpush1.bf16.msra.mxu1 %v9400_v40  ;;  %v9481_v39 = vld [vmem:[%s12060_s12 + $0x5c0] ss:$16 sps:$4 sm:$0xff]   ;;  %v9484_v40 = vld [vmem:[%s12060_s12 + $0x5c8] ss:$16 sps:$4 sm:$0xff]  }
 0x225   : > { %6851 = vmatprep.subr.bf16.mxu0 %v9405_v42  ;;  %7384 = vmatprep.subr.bf16.mxu1 %v9408_v43  ;;  %v9492_v42 = vld [vmem:[%s12060_s12 + $0x5ec] ss:$16 sps:$4 sm:$0xff]   ;;  %v12286_v43 = vrot.slane %v1895_v38, %v12065_v24  ;;  %v9568_v38 = vld [vmem:[%s12060_s12 + $0x788] ss:$16 sps:$4 sm:$0xff]  }
 0x226   : > { %6881 = vmatprep.mubr.bf16.mxu0 %v2017_v49  ;;  %7414 = vmatprep.mubr.bf16.mxu1 %v2017_v49  ;;  %v2016_v49 = vpack.c.bf16 %v12223_v44, %v12223_v44  ;;  %v9502_v44 = vld [vmem:[%s12060_s12 + $0x628] ss:$16 sps:$4 sm:$0xff]  }
 0x228   : > { %6852 = vmatpush1.bf16.msra.mxu0 %v9403_v29  ;;  %7385 = vmatpush1.bf16.msra.mxu1 %v9406_v46  ;;  %v9487_v29 = vld [vmem:[%s12060_s12 + $0x5e0] ss:$16 sps:$4 sm:$0xff]   ;;  %v9498_v46 = vld [vmem:[%s12060_s12 + $0x60c] ss:$16 sps:$4 sm:$0xff]  }
 0x229   : > { %6853 = vmatprep.subr.bf16.mxu0 %v9411_v47  ;;  %7386 = vmatprep.subr.bf16.mxu1 %v9414_v48  ;;  %v1911_v47 = vcombine.high %v12286_v43, %v12286_v43  ;;  %v9493_v48 = vld [vmem:[%s12060_s12 + $0x600] ss:$16 sps:$4 sm:$0xff]  }
 0x22c   : > { %6854 = vmatpush1.bf16.msra.mxu0 %v9409_v50  ;;  %7387 = vmatpush1.bf16.msra.mxu1 %v9412_v51  ;;  %v9496_v50 = vld [vmem:[%s12060_s12 + $0x608] ss:$16 sps:$4 sm:$0xff]   ;;  %v9501_v51 = vld [vmem:[%s12060_s12 + $0x624] ss:$16 sps:$4 sm:$0xff]  }
 0x22d   : > { %6855 = vmatprep.subr.bf16.mxu0 %v9417_v52  ;;  %7388 = vmatprep.subr.bf16.mxu1 %v9420_v53  ;;  %v9504_v52 = vld [vmem:[%s12060_s12 + $0x62c] ss:$16 sps:$4 sm:$0xff]   ;;  %v2019_v53 = vpack.c.bf16 %v1911_v47, %v1911_v47  ;;  %v9580_v47 = vld [vmem:[%s12060_s12 + $0x7c8] ss:$16 sps:$4 sm:$0xff]  }
 0x230   : > { %6856 = vmatpush1.bf16.msra.mxu0 %v9415_v54  ;;  %7389 = vmatpush1.bf16.msra.mxu1 %v9418_v55  ;;  %v9499_v54 = vld [vmem:[%s12060_s12 + $0x620] ss:$16 sps:$4 sm:$0xff]   ;;  %v9507_v55 = vld [vmem:[%s12060_s12 + $0x644] ss:$16 sps:$4 sm:$0xff]  }
 0x231   : > { %6857 = vmatprep.subr.bf16.mxu0 %v9423_v56  ;;  %7390 = vmatprep.subr.bf16.mxu1 %v9426_v57  ;;  %v9510_v56 = vld [vmem:[%s12060_s12 + $0x64c] ss:$16 sps:$4 sm:$0xff]   ;;  %v9505_v57 = vld [vmem:[%s12060_s12 + $0x640] ss:$16 sps:$4 sm:$0xff]  }
 0x234   : > { %6858 = vmatpush1.bf16.msra.mxu0 %v9421_v58  ;;  %7391 = vmatpush1.bf16.msra.mxu1 %v9424_v59  ;;  %v9508_v58 = vld [vmem:[%s12060_s12 + $0x648] ss:$16 sps:$4 sm:$0xff]   ;;  %v9513_v59 = vld [vmem:[%s12060_s12 + $0x664] ss:$16 sps:$4 sm:$0xff]  }
 0x235   : > { %6859 = vmatprep.subr.bf16.mxu0 %v9429_v60  ;;  %7392 = vmatprep.subr.bf16.mxu1 %v9432_v61  ;;  %v9516_v60 = vld [vmem:[%s12060_s12 + $0x66c] ss:$16 sps:$4 sm:$0xff]   ;;  %v9511_v61 = vld [vmem:[%s12060_s12 + $0x660] ss:$16 sps:$4 sm:$0xff]  }
 0x238   : > { %6860 = vmatpush1.bf16.msra.mxu0 %v9427_v62  ;;  %7393 = vmatpush1.bf16.msra.mxu1 %v9430_v63  ;;  %v9514_v62 = vld [vmem:[%s12060_s12 + $0x668] ss:$16 sps:$4 sm:$0xff]   ;;  %v9519_v63 = vld [vmem:[%s12060_s12 + $0x684] ss:$16 sps:$4 sm:$0xff]  }
 0x239   : > { %6861 = vmatprep.subr.bf16.mxu0 %v9435_v0  ;;  %7394 = vmatprep.subr.bf16.mxu1 %v9438_v1  ;;  %v9522_v0 = vld [vmem:[%s12060_s12 + $0x68c] ss:$16 sps:$4 sm:$0xff]   ;;  %v9517_v1 = vld [vmem:[%s12060_s12 + $0x680] ss:$16 sps:$4 sm:$0xff]  }
 0x23c   : > { %6862 = vmatpush1.bf16.msra.mxu0 %v9433_v2  ;;  %7395 = vmatpush1.bf16.msra.mxu1 %v9436_v3  ;;  %v9520_v2 = vld [vmem:[%s12060_s12 + $0x688] ss:$16 sps:$4 sm:$0xff]   ;;  %v9525_v3 = vld [vmem:[%s12060_s12 + $0x6a4] ss:$16 sps:$4 sm:$0xff]  }
 0x23d   : > { %6863 = vmatprep.subr.bf16.mxu0 %v9441_v4  ;;  %7396 = vmatprep.subr.bf16.mxu1 %v9444_v5  ;;  %v9528_v4 = vld [vmem:[%s12060_s12 + $0x6ac] ss:$16 sps:$4 sm:$0xff]   ;;  %v9523_v5 = vld [vmem:[%s12060_s12 + $0x6a0] ss:$16 sps:$4 sm:$0xff]  }
 0x240   : > { %6864 = vmatpush1.bf16.msra.mxu0 %v9439_v6  ;;  %7397 = vmatpush1.bf16.msra.mxu1 %v9442_v7  ;;  %v9526_v6 = vld [vmem:[%s12060_s12 + $0x6a8] ss:$16 sps:$4 sm:$0xff]   ;;  %v9531_v7 = vld [vmem:[%s12060_s12 + $0x6c4] ss:$16 sps:$4 sm:$0xff]  }
 0x241   : > { %6865 = vmatprep.subr.bf16.mxu0 %v9447_v8  ;;  %7398 = vmatprep.subr.bf16.mxu1 %v9450_v9  ;;  %v9534_v8 = vld [vmem:[%s12060_s12 + $0x6cc] ss:$16 sps:$4 sm:$0xff]   ;;  %v9529_v9 = vld [vmem:[%s12060_s12 + $0x6c0] ss:$16 sps:$4 sm:$0xff]  }
 0x244   : > { %6866 = vmatpush1.bf16.msra.mxu0 %v9445_v10  ;;  %7399 = vmatpush1.bf16.msra.mxu1 %v9448_v11  ;;  %v9532_v10 = vld [vmem:[%s12060_s12 + $0x6c8] ss:$16 sps:$4 sm:$0xff]   ;;  %v9537_v11 = vld [vmem:[%s12060_s12 + $0x6e4] ss:$16 sps:$4 sm:$0xff]  }
 0x245   : > { %6867 = vmatprep.subr.bf16.mxu0 %v9453_v12  ;;  %7400 = vmatprep.subr.bf16.mxu1 %v9456_v13  ;;  %v9540_v12 = vld [vmem:[%s12060_s12 + $0x6ec] ss:$16 sps:$4 sm:$0xff]   ;;  %v9535_v13 = vld [vmem:[%s12060_s12 + $0x6e0] ss:$16 sps:$4 sm:$0xff]  }
 0x248   : > { %6868 = vmatpush1.bf16.msra.mxu0 %v9451_v14  ;;  %7401 = vmatpush1.bf16.msra.mxu1 %v9454_v15  ;;  %v9538_v14 = vld [vmem:[%s12060_s12 + $0x6e8] ss:$16 sps:$4 sm:$0xff]   ;;  %v9543_v15 = vld [vmem:[%s12060_s12 + $0x704] ss:$16 sps:$4 sm:$0xff]  }
 0x249   : > { %6869 = vmatprep.subr.bf16.mxu0 %v9459_v16  ;;  %7402 = vmatprep.subr.bf16.mxu1 %v9462_v17  ;;  %v9546_v16 = vld [vmem:[%s12060_s12 + $0x70c] ss:$16 sps:$4 sm:$0xff]   ;;  %v9541_v17 = vld [vmem:[%s12060_s12 + $0x700] ss:$16 sps:$4 sm:$0xff]  }
 0x24c   : > { %6870 = vmatpush1.bf16.msra.mxu0 %v9457_v18  ;;  %7403 = vmatpush1.bf16.msra.mxu1 %v9460_v21  ;;  %v9544_v18 = vld [vmem:[%s12060_s12 + $0x708] ss:$16 sps:$4 sm:$0xff]   ;;  %v9549_v21 = vld [vmem:[%s12060_s12 + $0x724] ss:$16 sps:$4 sm:$0xff]  }
 0x24d   : > { %6871 = vmatprep.subr.bf16.mxu0 %v9465_v22  ;;  %7404 = vmatprep.subr.bf16.mxu1 %v9468_v23  ;;  %v9552_v22 = vld [vmem:[%s12060_s12 + $0x72c] ss:$16 sps:$4 sm:$0xff]   ;;  %v9547_v23 = vld [vmem:[%s12060_s12 + $0x720] ss:$16 sps:$4 sm:$0xff]  }
 0x250   : > { %6872 = vmatpush1.bf16.msra.mxu0 %v9463_v25  ;;  %7405 = vmatpush1.bf16.msra.mxu1 %v9466_v26  ;;  %v9550_v25 = vld [vmem:[%s12060_s12 + $0x728] ss:$16 sps:$4 sm:$0xff]   ;;  %v9555_v26 = vld [vmem:[%s12060_s12 + $0x744] ss:$16 sps:$4 sm:$0xff]  }
 0x251   : > { %6873 = vmatprep.subr.bf16.mxu0 %v9471_v27  ;;  %7406 = vmatprep.subr.bf16.mxu1 %v9474_v30  ;;  %v9558_v27 = vld [vmem:[%s12060_s12 + $0x74c] ss:$16 sps:$4 sm:$0xff]   ;;  %v9553_v30 = vld [vmem:[%s12060_s12 + $0x740] ss:$16 sps:$4 sm:$0xff]  }
 0x254   : > { %6874 = vmatpush1.bf16.msra.mxu0 %v9469_v31  ;;  %7407 = vmatpush1.bf16.msra.mxu1 %v9472_v20  ;;  %v9556_v31 = vld [vmem:[%s12060_s12 + $0x748] ss:$16 sps:$4 sm:$0xff]   ;;  %v9561_v20 = vld [vmem:[%s12060_s12 + $0x764] ss:$16 sps:$4 sm:$0xff]  }
 0x255   : > { %6875 = vmatprep.subr.bf16.mxu0 %v9477_v32  ;;  %7408 = vmatprep.subr.bf16.mxu1 %v9480_v33  ;;  %v9564_v32 = vld [vmem:[%s12060_s12 + $0x76c] ss:$16 sps:$4 sm:$0xff]   ;;  %v9559_v33 = vld [vmem:[%s12060_s12 + $0x760] ss:$16 sps:$4 sm:$0xff]  }
 0x258   : > { %6876 = vmatpush1.bf16.msra.mxu0 %v9475_v34  ;;  %7409 = vmatpush1.bf16.msra.mxu1 %v9478_v35  ;;  %v9562_v34 = vld [vmem:[%s12060_s12 + $0x768] ss:$16 sps:$4 sm:$0xff]   ;;  %v9567_v35 = vld [vmem:[%s12060_s12 + $0x784] ss:$16 sps:$4 sm:$0xff]  }
 0x259   : > { %6877 = vmatprep.subr.bf16.mxu0 %v9483_v36  ;;  %7410 = vmatprep.subr.bf16.mxu1 %v9486_v37  ;;  %v9570_v36 = vld [vmem:[%s12060_s12 + $0x78c] ss:$16 sps:$4 sm:$0xff]   ;;  %v9565_v37 = vld [vmem:[%s12060_s12 + $0x780] ss:$16 sps:$4 sm:$0xff]  }
 0x25c   : > { %6878 = vmatpush1.bf16.msra.mxu0 %v9481_v39  ;;  %7411 = vmatpush1.bf16.msra.mxu1 %v9484_v40  ;;  %v9573_v39 = vld [vmem:[%s12060_s12 + $0x7a4] ss:$16 sps:$4 sm:$0xff]   ;;  %v9576_v40 = vld [vmem:[%s12060_s12 + $0x7ac] ss:$16 sps:$4 sm:$0xff]  }
 0x25d   : > { %6879 = vmatprep.subr.bf16.mxu0 %v9489_v41  ;;  %7412 = vmatprep.subr.bf16.mxu1 %v9492_v42  ;;  %v9571_v41 = vld [vmem:[%s12060_s12 + $0x7a0] ss:$16 sps:$4 sm:$0xff]   ;;  %v9574_v42 = vld [vmem:[%s12060_s12 + $0x7a8] ss:$16 sps:$4 sm:$0xff]  }
 0x260   : > { %6880 = vmatpush1.bf16.msra.mxu0 %v9487_v29  ;;  %7413 = vmatpush1.bf16.msra.mxu1 %v9490_v28  ;;  %v9579_v29 = vld [vmem:[%s12060_s12 + $0x7c4] ss:$16 sps:$4 sm:$0xff]   ;;  %v9582_v28 = vld [vmem:[%s12060_s12 + $0x7cc] ss:$16 sps:$4 sm:$0xff]  }
 0x261   : > { %6890 = vmatprep.subr.bf16.mxu0 %v9495_v45  ;;  %7423 = vmatprep.subr.bf16.mxu1 %v9498_v46  ;;  %v12355_v45 = vld [vmem:[%s13081_s0 + $0x10] sm:$0xff] }
 0x262   : > { %v9577_v46 = vld [vmem:[%s12060_s12 + $0x7c0] ss:$16 sps:$4 sm:$0xff]  }
 0x263   : > { %6882 = vmatmul.mubr.bf16.vlgmr.msra.gmra.mrb[0].mxu0 %v2016_v49  ;;  %7415 = vmatmul.mubr.bf16.vlgmr.msra.gmra.mrb[0].mxu1 %v2016_v49  ;;  %v9588_v49 = vld [vmem:[%s12060_s12 + $0x7ec] ss:$16 sps:$4 sm:$0xff]  }
 0x264   : > { %6891 = vmatpush1.bf16.msra.mxu0 %v9493_v48  ;;  %7424 = vmatpush1.bf16.msra.mxu1 %v9496_v50  ;;  %v9585_v48 = vld [vmem:[%s12060_s12 + $0x7e4] ss:$16 sps:$4 sm:$0xff]   ;;  %v12363_v50 = vrot.slane %v12355_v45, %v12065_v24 }
 0x265   : > { %6892 = vmatprep.subr.bf16.mxu0 %v9501_v51  ;;  %7425 = vmatprep.subr.bf16.mxu1 %v9504_v52  ;;  %v9583_v51 = vld [vmem:[%s12060_s12 + $0x7e0] ss:$16 sps:$4 sm:$0xff]   ;;  %v9586_v52 = vld [vmem:[%s12060_s12 + $0x7e8] ss:$16 sps:$4 sm:$0xff]  }
 0x266   : > { %6922 = vmatprep.mubr.bf16.mxu0 %v2019_v53  ;;  %7455 = vmatprep.mubr.bf16.mxu1 %v2019_v53  ;;  %v9592_v53 = vld [vmem:[%s12060_s12 + $0x804] ss:$16 sps:$4 sm:$0xff]  }
 0x268   : > { %6893 = vmatpush1.bf16.msra.mxu0 %v9499_v54  ;;  %7426 = vmatpush1.bf16.msra.mxu1 %v9502_v44  ;;  %v9595_v54 = vld [vmem:[%s12060_s12 + $0x80c] ss:$16 sps:$4 sm:$0xff]   ;;  %v1927_v44 = vcombine.high %v12363_v50, %v12363_v50 }
 0x269   : > { %6894 = vmatprep.subr.bf16.mxu0 %v9507_v55  ;;  %7427 = vmatprep.subr.bf16.mxu1 %v9510_v56  ;;  %v2018_v55 = vpack.c.bf16 %v12286_v43, %v12286_v43  ;;  %v9590_v56 = vld [vmem:[%s12060_s12 + $0x800] ss:$16 sps:$4 sm:$0xff]  }
 0x26a   : > { %v9596_v43 = vld [vmem:[%s12060_s12 + $0x820] ss:$16 sps:$4 sm:$0xff]  }
 0x26c   : > { %6895 = vmatpush1.bf16.msra.mxu0 %v9505_v57  ;;  %7428 = vmatpush1.bf16.msra.mxu1 %v9508_v58  ;;  %v9593_v57 = vld [vmem:[%s12060_s12 + $0x808] ss:$16 sps:$4 sm:$0xff]   ;;  %v9598_v58 = vld [vmem:[%s12060_s12 + $0x824] ss:$16 sps:$4 sm:$0xff]  }
 0x26d   : > { %6896 = vmatprep.subr.bf16.mxu0 %v9513_v59  ;;  %7429 = vmatprep.subr.bf16.mxu1 %v9516_v60  ;;  %v9601_v59 = vld [vmem:[%s12060_s12 + $0x82c] ss:$16 sps:$4 sm:$0xff]   ;;  %v2021_v60 = vpack.c.bf16 %v1927_v44, %v1927_v44  ;;  %v9674_v44 = vld [vmem:[%s12060_s12 + $0x9c0] ss:$16 sps:$4 sm:$0xff]  }
 0x270   : > { %6897 = vmatpush1.bf16.msra.mxu0 %v9511_v61  ;;  %7430 = vmatpush1.bf16.msra.mxu1 %v9514_v62  ;;  %v9599_v61 = vld [vmem:[%s12060_s12 + $0x828] ss:$16 sps:$4 sm:$0xff]   ;;  %v9604_v62 = vld [vmem:[%s12060_s12 + $0x844] ss:$16 sps:$4 sm:$0xff]  }
 0x271   : > { %6898 = vmatprep.subr.bf16.mxu0 %v9519_v63  ;;  %7431 = vmatprep.subr.bf16.mxu1 %v9522_v0  ;;  %v9607_v63 = vld [vmem:[%s12060_s12 + $0x84c] ss:$16 sps:$4 sm:$0xff]   ;;  %v9602_v0 = vld [vmem:[%s12060_s12 + $0x840] ss:$16 sps:$4 sm:$0xff]  }
 0x274   : > { %6899 = vmatpush1.bf16.msra.mxu0 %v9517_v1  ;;  %7432 = vmatpush1.bf16.msra.mxu1 %v9520_v2  ;;  %v9605_v1 = vld [vmem:[%s12060_s12 + $0x848] ss:$16 sps:$4 sm:$0xff]   ;;  %v9610_v2 = vld [vmem:[%s12060_s12 + $0x864] ss:$16 sps:$4 sm:$0xff]  }
 0x275   : > { %6900 = vmatprep.subr.bf16.mxu0 %v9525_v3  ;;  %7433 = vmatprep.subr.bf16.mxu1 %v9528_v4  ;;  %v9613_v3 = vld [vmem:[%s12060_s12 + $0x86c] ss:$16 sps:$4 sm:$0xff]   ;;  %v9608_v4 = vld [vmem:[%s12060_s12 + $0x860] ss:$16 sps:$4 sm:$0xff]  }
 0x278   : > { %6901 = vmatpush1.bf16.msra.mxu0 %v9523_v5  ;;  %7434 = vmatpush1.bf16.msra.mxu1 %v9526_v6  ;;  %v9611_v5 = vld [vmem:[%s12060_s12 + $0x868] ss:$16 sps:$4 sm:$0xff]   ;;  %v9616_v6 = vld [vmem:[%s12060_s12 + $0x884] ss:$16 sps:$4 sm:$0xff]  }
 0x279   : > { %6902 = vmatprep.subr.bf16.mxu0 %v9531_v7  ;;  %7435 = vmatprep.subr.bf16.mxu1 %v9534_v8  ;;  %v9619_v7 = vld [vmem:[%s12060_s12 + $0x88c] ss:$16 sps:$4 sm:$0xff]   ;;  %v9614_v8 = vld [vmem:[%s12060_s12 + $0x880] ss:$16 sps:$4 sm:$0xff]  }
 0x27c   : > { %6903 = vmatpush1.bf16.msra.mxu0 %v9529_v9  ;;  %7436 = vmatpush1.bf16.msra.mxu1 %v9532_v10  ;;  %v9617_v9 = vld [vmem:[%s12060_s12 + $0x888] ss:$16 sps:$4 sm:$0xff]   ;;  %v9622_v10 = vld [vmem:[%s12060_s12 + $0x8a4] ss:$16 sps:$4 sm:$0xff]  }
 0x27d   : > { %6904 = vmatprep.subr.bf16.mxu0 %v9537_v11  ;;  %7437 = vmatprep.subr.bf16.mxu1 %v9540_v12  ;;  %v9625_v11 = vld [vmem:[%s12060_s12 + $0x8ac] ss:$16 sps:$4 sm:$0xff]   ;;  %v9620_v12 = vld [vmem:[%s12060_s12 + $0x8a0] ss:$16 sps:$4 sm:$0xff]  }
 0x280   : > { %6905 = vmatpush1.bf16.msra.mxu0 %v9535_v13  ;;  %7438 = vmatpush1.bf16.msra.mxu1 %v9538_v14  ;;  %v9623_v13 = vld [vmem:[%s12060_s12 + $0x8a8] ss:$16 sps:$4 sm:$0xff]   ;;  %v9628_v14 = vld [vmem:[%s12060_s12 + $0x8c4] ss:$16 sps:$4 sm:$0xff]  }
 0x281   : > { %6906 = vmatprep.subr.bf16.mxu0 %v9543_v15  ;;  %7439 = vmatprep.subr.bf16.mxu1 %v9546_v16  ;;  %v9631_v15 = vld [vmem:[%s12060_s12 + $0x8cc] ss:$16 sps:$4 sm:$0xff]   ;;  %v9626_v16 = vld [vmem:[%s12060_s12 + $0x8c0] ss:$16 sps:$4 sm:$0xff]  }
 0x284   : > { %6907 = vmatpush1.bf16.msra.mxu0 %v9541_v17  ;;  %7440 = vmatpush1.bf16.msra.mxu1 %v9544_v18  ;;  %v9629_v17 = vld [vmem:[%s12060_s12 + $0x8c8] ss:$16 sps:$4 sm:$0xff]   ;;  %v9634_v18 = vld [vmem:[%s12060_s12 + $0x8e4] ss:$16 sps:$4 sm:$0xff]  }
 0x285   : > { %6908 = vmatprep.subr.bf16.mxu0 %v9549_v21  ;;  %7441 = vmatprep.subr.bf16.mxu1 %v9552_v22  ;;  %v9637_v21 = vld [vmem:[%s12060_s12 + $0x8ec] ss:$16 sps:$4 sm:$0xff]   ;;  %v9632_v22 = vld [vmem:[%s12060_s12 + $0x8e0] ss:$16 sps:$4 sm:$0xff]  }
 0x288   : > { %6909 = vmatpush1.bf16.msra.mxu0 %v9547_v23  ;;  %7442 = vmatpush1.bf16.msra.mxu1 %v9550_v25  ;;  %v9635_v23 = vld [vmem:[%s12060_s12 + $0x8e8] ss:$16 sps:$4 sm:$0xff]   ;;  %v9640_v25 = vld [vmem:[%s12060_s12 + $0x904] ss:$16 sps:$4 sm:$0xff]  }
 0x289   : > { %6910 = vmatprep.subr.bf16.mxu0 %v9555_v26  ;;  %7443 = vmatprep.subr.bf16.mxu1 %v9558_v27  ;;  %v9643_v26 = vld [vmem:[%s12060_s12 + $0x90c] ss:$16 sps:$4 sm:$0xff]   ;;  %v9638_v27 = vld [vmem:[%s12060_s12 + $0x900] ss:$16 sps:$4 sm:$0xff]  }
 0x28c   : > { %6911 = vmatpush1.bf16.msra.mxu0 %v9553_v30  ;;  %7444 = vmatpush1.bf16.msra.mxu1 %v9556_v31  ;;  %v9641_v30 = vld [vmem:[%s12060_s12 + $0x908] ss:$16 sps:$4 sm:$0xff]   ;;  %v9646_v31 = vld [vmem:[%s12060_s12 + $0x924] ss:$16 sps:$4 sm:$0xff]  }
 0x28d   : > { %6912 = vmatprep.subr.bf16.mxu0 %v9561_v20  ;;  %7445 = vmatprep.subr.bf16.mxu1 %v9564_v32  ;;  %v9649_v20 = vld [vmem:[%s12060_s12 + $0x92c] ss:$16 sps:$4 sm:$0xff]   ;;  %v9644_v32 = vld [vmem:[%s12060_s12 + $0x920] ss:$16 sps:$4 sm:$0xff]  }
 0x290   : > { %6913 = vmatpush1.bf16.msra.mxu0 %v9559_v33  ;;  %7446 = vmatpush1.bf16.msra.mxu1 %v9562_v34  ;;  %v9647_v33 = vld [vmem:[%s12060_s12 + $0x928] ss:$16 sps:$4 sm:$0xff]   ;;  %v9652_v34 = vld [vmem:[%s12060_s12 + $0x944] ss:$16 sps:$4 sm:$0xff]  }
 0x291   : > { %6914 = vmatprep.subr.bf16.mxu0 %v9567_v35  ;;  %7447 = vmatprep.subr.bf16.mxu1 %v9570_v36  ;;  %v9655_v35 = vld [vmem:[%s12060_s12 + $0x94c] ss:$16 sps:$4 sm:$0xff]   ;;  %v9650_v36 = vld [vmem:[%s12060_s12 + $0x940] ss:$16 sps:$4 sm:$0xff]  }
 0x294   : > { %6915 = vmatpush1.bf16.msra.mxu0 %v9565_v37  ;;  %7448 = vmatpush1.bf16.msra.mxu1 %v9568_v38  ;;  %v9653_v37 = vld [vmem:[%s12060_s12 + $0x948] ss:$16 sps:$4 sm:$0xff]   ;;  %v9658_v38 = vld [vmem:[%s12060_s12 + $0x964] ss:$16 sps:$4 sm:$0xff]  }
 0x295   : > { %6916 = vmatprep.subr.bf16.mxu0 %v9573_v39  ;;  %7449 = vmatprep.subr.bf16.mxu1 %v9576_v40  ;;  %v9661_v39 = vld [vmem:[%s12060_s12 + $0x96c] ss:$16 sps:$4 sm:$0xff]   ;;  %v9656_v40 = vld [vmem:[%s12060_s12 + $0x960] ss:$16 sps:$4 sm:$0xff]  }
 0x298   : > { %6917 = vmatpush1.bf16.msra.mxu0 %v9571_v41  ;;  %7450 = vmatpush1.bf16.msra.mxu1 %v9574_v42  ;;  %v9659_v41 = vld [vmem:[%s12060_s12 + $0x968] ss:$16 sps:$4 sm:$0xff]   ;;  %v9664_v42 = vld [vmem:[%s12060_s12 + $0x984] ss:$16 sps:$4 sm:$0xff]  }
 0x299   : > { %6918 = vmatprep.subr.bf16.mxu0 %v9579_v29  ;;  %7451 = vmatprep.subr.bf16.mxu1 %v9582_v28  ;;  %v9667_v29 = vld [vmem:[%s12060_s12 + $0x98c] ss:$16 sps:$4 sm:$0xff]   ;;  %v9662_v28 = vld [vmem:[%s12060_s12 + $0x980] ss:$16 sps:$4 sm:$0xff]  }
 0x29c   : > { %6919 = vmatpush1.bf16.msra.mxu0 %v9577_v46  ;;  %7452 = vmatpush1.bf16.msra.mxu1 %v9580_v47  ;;  %v9665_v46 = vld [vmem:[%s12060_s12 + $0x988] ss:$16 sps:$4 sm:$0xff]   ;;  %v9670_v47 = vld [vmem:[%s12060_s12 + $0x9a4] ss:$16 sps:$4 sm:$0xff]  }
 0x29d   : > { %6920 = vmatprep.subr.bf16.mxu0 %v9585_v48  ;;  %7453 = vmatprep.subr.bf16.mxu1 %v9588_v49  ;;  %v9673_v48 = vld [vmem:[%s12060_s12 + $0x9ac] ss:$16 sps:$4 sm:$0xff]   ;;  %v9668_v49 = vld [vmem:[%s12060_s12 + $0x9a0] ss:$16 sps:$4 sm:$0xff]  }
 0x2a0   : > { %6921 = vmatpush1.bf16.msra.mxu0 %v9583_v51  ;;  %7454 = vmatpush1.bf16.msra.mxu1 %v9586_v52  ;;  %v9671_v51 = vld [vmem:[%s12060_s12 + $0x9a8] ss:$16 sps:$4 sm:$0xff]   ;;  %v9676_v52 = vld [vmem:[%s12060_s12 + $0x9c4] ss:$16 sps:$4 sm:$0xff]  }
 0x2a1   : > { %6931 = vmatprep.subr.bf16.mxu0 %v9592_v53  ;;  %7464 = vmatprep.subr.bf16.mxu1 %v9595_v54  ;;  %v9679_v53 = vld [vmem:[%s12060_s12 + $0x9cc] ss:$16 sps:$4 sm:$0xff]   ;;  %v1912_v54 = vcombine.high %v12355_v45, %v12355_v45  ;;  %v9680_v45 = vld [vmem:[%s12060_s12 + $0x9e0] ss:$16 sps:$4 sm:$0xff]  }
 0x2a3   : > { %6923 = vmatmul.mubr.bf16.vlgmr.msra.gmra.mrb[0].mxu0 %v2018_v55  ;;  %7456 = vmatmul.mubr.bf16.vlgmr.msra.gmra.mrb[0].mxu1 %v2018_v55  ;;  %v9677_v55 = vld [vmem:[%s12060_s12 + $0x9c8] ss:$16 sps:$4 sm:$0xff]  }
 0x2a4   : > { %6932 = vmatpush1.bf16.msra.mxu0 %v9590_v56  ;;  %7465 = vmatpush1.bf16.msra.mxu1 %v9593_v57  ;;  %v9682_v56 = vld [vmem:[%s12060_s12 + $0x9e4] ss:$16 sps:$4 sm:$0xff]   ;;  %v9685_v57 = vld [vmem:[%s12060_s12 + $0x9ec] ss:$16 sps:$4 sm:$0xff]  }
 0x2a5   : > { %6933 = vmatprep.subr.bf16.mxu0 %v9598_v58  ;;  %7466 = vmatprep.subr.bf16.mxu1 %v9601_v59  ;;  %v12436_v58 = vrot.slane %v1912_v54, %v12065_v24  ;;  %v9683_v59 = vld [vmem:[%s12060_s12 + $0x9e8] ss:$16 sps:$4 sm:$0xff]  }
 0x2a6   : > { %6963 = vmatprep.mubr.bf16.mxu0 %v2021_v60  ;;  %7496 = vmatprep.mubr.bf16.mxu1 %v2021_v60  ;;  %v9688_v60 = vld [vmem:[%s12060_s12 + $0xa04] ss:$16 sps:$4 sm:$0xff]   ;;  %v9761_v54 = vld [vmem:[%s12060_s12 + $0xb88] ss:$16 sps:$4 sm:$0xff]  }
 0x2a8   : > { %6934 = vmatpush1.bf16.msra.mxu0 %v9596_v43  ;;  %7467 = vmatpush1.bf16.msra.mxu1 %v9599_v61  ;;  %v9691_v43 = vld [vmem:[%s12060_s12 + $0xa0c] ss:$16 sps:$4 sm:$0xff]   ;;  %v1928_v61 = vcombine.high %v12436_v58, %v12436_v58 }
 0x2a9   : > { %6935 = vmatprep.subr.bf16.mxu0 %v9604_v62  ;;  %7468 = vmatprep.subr.bf16.mxu1 %v9607_v63  ;;  %v2020_v62 = vpack.c.bf16 %v12363_v50, %v12363_v50  ;;  %v9686_v63 = vld [vmem:[%s12060_s12 + $0xa00] ss:$16 sps:$4 sm:$0xff]  }
 0x2aa   : > { %v9692_v50 = vld [vmem:[%s12060_s12 + $0xa20] ss:$16 sps:$4 sm:$0xff]  }
 0x2ac   : > { %6936 = vmatpush1.bf16.msra.mxu0 %v9602_v0  ;;  %7469 = vmatpush1.bf16.msra.mxu1 %v9605_v1  ;;  %v9689_v0 = vld [vmem:[%s12060_s12 + $0xa08] ss:$16 sps:$4 sm:$0xff]   ;;  %v9694_v1 = vld [vmem:[%s12060_s12 + $0xa24] ss:$16 sps:$4 sm:$0xff]  }
 0x2ad   : > { %6937 = vmatprep.subr.bf16.mxu0 %v9610_v2  ;;  %7470 = vmatprep.subr.bf16.mxu1 %v9613_v3  ;;  %v9697_v2 = vld [vmem:[%s12060_s12 + $0xa2c] ss:$16 sps:$4 sm:$0xff]   ;;  %v2023_v3 = vpack.c.bf16 %v1928_v61, %v1928_v61  ;;  %v9773_v61 = vld [vmem:[%s12060_s12 + $0xbc8] ss:$16 sps:$4 sm:$0xff]  }
 0x2b0   : > { %6938 = vmatpush1.bf16.msra.mxu0 %v9608_v4  ;;  %7471 = vmatpush1.bf16.msra.mxu1 %v9611_v5  ;;  %v9695_v4 = vld [vmem:[%s12060_s12 + $0xa28] ss:$16 sps:$4 sm:$0xff]   ;;  %v9700_v5 = vld [vmem:[%s12060_s12 + $0xa44] ss:$16 sps:$4 sm:$0xff]  }
 0x2b1   : > { %6939 = vmatprep.subr.bf16.mxu0 %v9616_v6  ;;  %7472 = vmatprep.subr.bf16.mxu1 %v9619_v7  ;;  %v9703_v6 = vld [vmem:[%s12060_s12 + $0xa4c] ss:$16 sps:$4 sm:$0xff]   ;;  %v9698_v7 = vld [vmem:[%s12060_s12 + $0xa40] ss:$16 sps:$4 sm:$0xff]  }
 0x2b4   : > { %6940 = vmatpush1.bf16.msra.mxu0 %v9614_v8  ;;  %7473 = vmatpush1.bf16.msra.mxu1 %v9617_v9  ;;  %v9701_v8 = vld [vmem:[%s12060_s12 + $0xa48] ss:$16 sps:$4 sm:$0xff]   ;;  %v9706_v9 = vld [vmem:[%s12060_s12 + $0xa64] ss:$16 sps:$4 sm:$0xff]  }
 0x2b5   : > { %6941 = vmatprep.subr.bf16.mxu0 %v9622_v10  ;;  %7474 = vmatprep.subr.bf16.mxu1 %v9625_v11  ;;  %v9709_v10 = vld [vmem:[%s12060_s12 + $0xa6c] ss:$16 sps:$4 sm:$0xff]   ;;  %v9704_v11 = vld [vmem:[%s12060_s12 + $0xa60] ss:$16 sps:$4 sm:$0xff]  }
 0x2b8   : > { %6942 = vmatpush1.bf16.msra.mxu0 %v9620_v12  ;;  %7475 = vmatpush1.bf16.msra.mxu1 %v9623_v13  ;;  %v9707_v12 = vld [vmem:[%s12060_s12 + $0xa68] ss:$16 sps:$4 sm:$0xff]   ;;  %v9712_v13 = vld [vmem:[%s12060_s12 + $0xa84] ss:$16 sps:$4 sm:$0xff]  }
 0x2b9   : > { %6943 = vmatprep.subr.bf16.mxu0 %v9628_v14  ;;  %7476 = vmatprep.subr.bf16.mxu1 %v9631_v15  ;;  %v9715_v14 = vld [vmem:[%s12060_s12 + $0xa8c] ss:$16 sps:$4 sm:$0xff]   ;;  %v9710_v15 = vld [vmem:[%s12060_s12 + $0xa80] ss:$16 sps:$4 sm:$0xff]  }
 0x2bc   : > { %6944 = vmatpush1.bf16.msra.mxu0 %v9626_v16  ;;  %7477 = vmatpush1.bf16.msra.mxu1 %v9629_v17  ;;  %v9713_v16 = vld [vmem:[%s12060_s12 + $0xa88] ss:$16 sps:$4 sm:$0xff]   ;;  %v9718_v17 = vld [vmem:[%s12060_s12 + $0xaa4] ss:$16 sps:$4 sm:$0xff]  }
 0x2bd   : > { %6945 = vmatprep.subr.bf16.mxu0 %v9634_v18  ;;  %7478 = vmatprep.subr.bf16.mxu1 %v9637_v21  ;;  %v9721_v18 = vld [vmem:[%s12060_s12 + $0xaac] ss:$16 sps:$4 sm:$0xff]   ;;  %v9716_v21 = vld [vmem:[%s12060_s12 + $0xaa0] ss:$16 sps:$4 sm:$0xff]  }
 0x2c0   : > { %6946 = vmatpush1.bf16.msra.mxu0 %v9632_v22  ;;  %7479 = vmatpush1.bf16.msra.mxu1 %v9635_v23  ;;  %v9719_v22 = vld [vmem:[%s12060_s12 + $0xaa8] ss:$16 sps:$4 sm:$0xff]   ;;  %v9724_v23 = vld [vmem:[%s12060_s12 + $0xac4] ss:$16 sps:$4 sm:$0xff]  }
 0x2c1   : > { %6947 = vmatprep.subr.bf16.mxu0 %v9640_v25  ;;  %7480 = vmatprep.subr.bf16.mxu1 %v9643_v26  ;;  %v9727_v25 = vld [vmem:[%s12060_s12 + $0xacc] ss:$16 sps:$4 sm:$0xff]   ;;  %v9722_v26 = vld [vmem:[%s12060_s12 + $0xac0] ss:$16 sps:$4 sm:$0xff]  }
 0x2c4   : > { %6948 = vmatpush1.bf16.msra.mxu0 %v9638_v27  ;;  %7481 = vmatpush1.bf16.msra.mxu1 %v9641_v30  ;;  %v9725_v27 = vld [vmem:[%s12060_s12 + $0xac8] ss:$16 sps:$4 sm:$0xff]   ;;  %v9730_v30 = vld [vmem:[%s12060_s12 + $0xae4] ss:$16 sps:$4 sm:$0xff]  }
 0x2c5   : > { %6949 = vmatprep.subr.bf16.mxu0 %v9646_v31  ;;  %7482 = vmatprep.subr.bf16.mxu1 %v9649_v20  ;;  %v9733_v31 = vld [vmem:[%s12060_s12 + $0xaec] ss:$16 sps:$4 sm:$0xff]   ;;  %v9728_v20 = vld [vmem:[%s12060_s12 + $0xae0] ss:$16 sps:$4 sm:$0xff]  }
 0x2c8   : > { %6950 = vmatpush1.bf16.msra.mxu0 %v9644_v32  ;;  %7483 = vmatpush1.bf16.msra.mxu1 %v9647_v33  ;;  %v9731_v32 = vld [vmem:[%s12060_s12 + $0xae8] ss:$16 sps:$4 sm:$0xff]   ;;  %v9736_v33 = vld [vmem:[%s12060_s12 + $0xb04] ss:$16 sps:$4 sm:$0xff]  }
 0x2c9   : > { %6951 = vmatprep.subr.bf16.mxu0 %v9652_v34  ;;  %7484 = vmatprep.subr.bf16.mxu1 %v9655_v35  ;;  %v9739_v34 = vld [vmem:[%s12060_s12 + $0xb0c] ss:$16 sps:$4 sm:$0xff]   ;;  %v9734_v35 = vld [vmem:[%s12060_s12 + $0xb00] ss:$16 sps:$4 sm:$0xff]  }
 0x2cc   : > { %6952 = vmatpush1.bf16.msra.mxu0 %v9650_v36  ;;  %7485 = vmatpush1.bf16.msra.mxu1 %v9653_v37  ;;  %v9737_v36 = vld [vmem:[%s12060_s12 + $0xb08] ss:$16 sps:$4 sm:$0xff]   ;;  %v9742_v37 = vld [vmem:[%s12060_s12 + $0xb24] ss:$16 sps:$4 sm:$0xff]  }
 0x2cd   : > { %6953 = vmatprep.subr.bf16.mxu0 %v9658_v38  ;;  %7486 = vmatprep.subr.bf16.mxu1 %v9661_v39  ;;  %v9745_v38 = vld [vmem:[%s12060_s12 + $0xb2c] ss:$16 sps:$4 sm:$0xff]   ;;  %v9740_v39 = vld [vmem:[%s12060_s12 + $0xb20] ss:$16 sps:$4 sm:$0xff]  }
 0x2d0   : > { %6954 = vmatpush1.bf16.msra.mxu0 %v9656_v40  ;;  %7487 = vmatpush1.bf16.msra.mxu1 %v9659_v41  ;;  %v9743_v40 = vld [vmem:[%s12060_s12 + $0xb28] ss:$16 sps:$4 sm:$0xff]   ;;  %v9748_v41 = vld [vmem:[%s12060_s12 + $0xb44] ss:$16 sps:$4 sm:$0xff]  }
 0x2d1   : > { %6955 = vmatprep.subr.bf16.mxu0 %v9664_v42  ;;  %7488 = vmatprep.subr.bf16.mxu1 %v9667_v29  ;;  %v9751_v42 = vld [vmem:[%s12060_s12 + $0xb4c] ss:$16 sps:$4 sm:$0xff]   ;;  %v9746_v29 = vld [vmem:[%s12060_s12 + $0xb40] ss:$16 sps:$4 sm:$0xff]  }
 0x2d4   : > { %6956 = vmatpush1.bf16.msra.mxu0 %v9662_v28  ;;  %7489 = vmatpush1.bf16.msra.mxu1 %v9665_v46  ;;  %v9749_v28 = vld [vmem:[%s12060_s12 + $0xb48] ss:$16 sps:$4 sm:$0xff]   ;;  %v9754_v46 = vld [vmem:[%s12060_s12 + $0xb64] ss:$16 sps:$4 sm:$0xff]  }
 0x2d5   : > { %6957 = vmatprep.subr.bf16.mxu0 %v9670_v47  ;;  %7490 = vmatprep.subr.bf16.mxu1 %v9673_v48  ;;  %v9757_v47 = vld [vmem:[%s12060_s12 + $0xb6c] ss:$16 sps:$4 sm:$0xff]   ;;  %v9752_v48 = vld [vmem:[%s12060_s12 + $0xb60] ss:$16 sps:$4 sm:$0xff]  }
 0x2d8   : > { %6958 = vmatpush1.bf16.msra.mxu0 %v9668_v49  ;;  %7491 = vmatpush1.bf16.msra.mxu1 %v9671_v51  ;;  %v9755_v49 = vld [vmem:[%s12060_s12 + $0xb68] ss:$16 sps:$4 sm:$0xff]   ;;  %v9760_v51 = vld [vmem:[%s12060_s12 + $0xb84] ss:$16 sps:$4 sm:$0xff]  }
 0x2d9   : > { %6959 = vmatprep.subr.bf16.mxu0 %v9676_v52  ;;  %7492 = vmatprep.subr.bf16.mxu1 %v9679_v53  ;;  %v9763_v52 = vld [vmem:[%s12060_s12 + $0xb8c] ss:$16 sps:$4 sm:$0xff]   ;;  %v9758_v53 = vld [vmem:[%s12060_s12 + $0xb80] ss:$16 sps:$4 sm:$0xff]  }
 0x2dc   : > { %6960 = vmatpush1.bf16.msra.mxu0 %v9674_v44  ;;  %7493 = vmatpush1.bf16.msra.mxu1 %v9677_v55  ;;  %v9766_v44 = vld [vmem:[%s12060_s12 + $0xba4] ss:$16 sps:$4 sm:$0xff]   ;;  %v9769_v55 = vld [vmem:[%s12060_s12 + $0xbac] ss:$16 sps:$4 sm:$0xff]  }
 0x2dd   : > { %6961 = vmatprep.subr.bf16.mxu0 %v9682_v56  ;;  %7494 = vmatprep.subr.bf16.mxu1 %v9685_v57  ;;  %v9764_v56 = vld [vmem:[%s12060_s12 + $0xba0] ss:$16 sps:$4 sm:$0xff]   ;;  %v9767_v57 = vld [vmem:[%s12060_s12 + $0xba8] ss:$16 sps:$4 sm:$0xff]  }
 0x2e0   : > { %6962 = vmatpush1.bf16.msra.mxu0 %v9680_v45  ;;  %7495 = vmatpush1.bf16.msra.mxu1 %v9683_v59  ;;  %v9772_v45 = vld [vmem:[%s12060_s12 + $0xbc4] ss:$16 sps:$4 sm:$0xff]   ;;  %v9775_v59 = vld [vmem:[%s12060_s12 + $0xbcc] ss:$16 sps:$4 sm:$0xff]  }
 0x2e1   : > { %6972 = vmatprep.subr.bf16.mxu0 %v9688_v60  ;;  %7505 = vmatprep.subr.bf16.mxu1 %v9691_v43  ;;  %v12505_v60 = vld [vmem:[%s13081_s0 + $0x18] sm:$0xff]  ;;  %v9770_v43 = vld [vmem:[%s12060_s12 + $0xbc0] ss:$16 sps:$4 sm:$0xff]  }
 0x2e3   : > { %6964 = vmatmul.mubr.bf16.vlgmr.msra.gmra.mrb[0].mxu0 %v2020_v62  ;;  %7497 = vmatmul.mubr.bf16.vlgmr.msra.gmra.mrb[0].mxu1 %v2020_v62  ;;  %v9778_v62 = vld [vmem:[%s12060_s12 + $0xbe4] ss:$16 sps:$4 sm:$0xff]  }
 0x2e4   : > { %6973 = vmatpush1.bf16.msra.mxu0 %v9686_v63  ;;  %7506 = vmatpush1.bf16.msra.mxu1 %v9689_v0  ;;  %v9781_v63 = vld [vmem:[%s12060_s12 + $0xbec] ss:$16 sps:$4 sm:$0xff]   ;;  %v12513_v0 = vrot.slane %v12505_v60, %v12065_v24 }
 0x2e5   : > { %6974 = vmatprep.subr.bf16.mxu0 %v9694_v1  ;;  %7507 = vmatprep.subr.bf16.mxu1 %v9697_v2  ;;  %v9776_v1 = vld [vmem:[%s12060_s12 + $0xbe0] ss:$16 sps:$4 sm:$0xff]   ;;  %v9779_v2 = vld [vmem:[%s12060_s12 + $0xbe8] ss:$16 sps:$4 sm:$0xff]  }
 0x2e6   : > { %7004 = vmatprep.mubr.bf16.mxu0 %v2023_v3  ;;  %7537 = vmatprep.mubr.bf16.mxu1 %v2023_v3  ;;  %v9785_v3 = vld [vmem:[%s12060_s12 + $0xc04] ss:$16 sps:$4 sm:$0xff]  }
 0x2e8   : > { %6975 = vmatpush1.bf16.msra.mxu0 %v9692_v50  ;;  %7508 = vmatpush1.bf16.msra.mxu1 %v9695_v4  ;;  %v9788_v50 = vld [vmem:[%s12060_s12 + $0xc0c] ss:$16 sps:$4 sm:$0xff]   ;;  %v1944_v4 = vcombine.high %v12513_v0, %v12513_v0 }
 0x2e9   : > { %6976 = vmatprep.subr.bf16.mxu0 %v9700_v5  ;;  %7509 = vmatprep.subr.bf16.mxu1 %v9703_v6  ;;  %v2022_v5 = vpack.c.bf16 %v12436_v58, %v12436_v58  ;;  %v9783_v6 = vld [vmem:[%s12060_s12 + $0xc00] ss:$16 sps:$4 sm:$0xff]  }
 0x2ea   : > { %v9789_v58 = vld [vmem:[%s12060_s12 + $0xc20] ss:$16 sps:$4 sm:$0xff]  }
 0x2ec   : > { %6977 = vmatpush1.bf16.msra.mxu0 %v9698_v7  ;;  %7510 = vmatpush1.bf16.msra.mxu1 %v9701_v8  ;;  %v9786_v7 = vld [vmem:[%s12060_s12 + $0xc08] ss:$16 sps:$4 sm:$0xff]   ;;  %v9791_v8 = vld [vmem:[%s12060_s12 + $0xc24] ss:$16 sps:$4 sm:$0xff]  }
 0x2ed   : > { %6978 = vmatprep.subr.bf16.mxu0 %v9706_v9  ;;  %7511 = vmatprep.subr.bf16.mxu1 %v9709_v10  ;;  %v9794_v9 = vld [vmem:[%s12060_s12 + $0xc2c] ss:$16 sps:$4 sm:$0xff]   ;;  %v2025_v10 = vpack.c.bf16 %v1944_v4, %v1944_v4  ;;  %v9867_v4 = vld [vmem:[%s12060_s12 + $0xdc0] ss:$16 sps:$4 sm:$0xff]  }
 0x2f0   : > { %6979 = vmatpush1.bf16.msra.mxu0 %v9704_v11  ;;  %7512 = vmatpush1.bf16.msra.mxu1 %v9707_v12  ;;  %v9792_v11 = vld [vmem:[%s12060_s12 + $0xc28] ss:$16 sps:$4 sm:$0xff]   ;;  %v9797_v12 = vld [vmem:[%s12060_s12 + $0xc44] ss:$16 sps:$4 sm:$0xff]  }
 0x2f1   : > { %6980 = vmatprep.subr.bf16.mxu0 %v9712_v13  ;;  %7513 = vmatprep.subr.bf16.mxu1 %v9715_v14  ;;  %v9800_v13 = vld [vmem:[%s12060_s12 + $0xc4c] ss:$16 sps:$4 sm:$0xff]   ;;  %v9795_v14 = vld [vmem:[%s12060_s12 + $0xc40] ss:$16 sps:$4 sm:$0xff]  }
 0x2f4   : > { %6981 = vmatpush1.bf16.msra.mxu0 %v9710_v15  ;;  %7514 = vmatpush1.bf16.msra.mxu1 %v9713_v16  ;;  %v9798_v15 = vld [vmem:[%s12060_s12 + $0xc48] ss:$16 sps:$4 sm:$0xff]   ;;  %v9803_v16 = vld [vmem:[%s12060_s12 + $0xc64] ss:$16 sps:$4 sm:$0xff]  }
 0x2f5   : > { %6982 = vmatprep.subr.bf16.mxu0 %v9718_v17  ;;  %7515 = vmatprep.subr.bf16.mxu1 %v9721_v18  ;;  %v9806_v17 = vld [vmem:[%s12060_s12 + $0xc6c] ss:$16 sps:$4 sm:$0xff]   ;;  %v9801_v18 = vld [vmem:[%s12060_s12 + $0xc60] ss:$16 sps:$4 sm:$0xff]  }
 0x2f8   : > { %6983 = vmatpush1.bf16.msra.mxu0 %v9716_v21  ;;  %7516 = vmatpush1.bf16.msra.mxu1 %v9719_v22  ;;  %v9804_v21 = vld [vmem:[%s12060_s12 + $0xc68] ss:$16 sps:$4 sm:$0xff]   ;;  %v9809_v22 = vld [vmem:[%s12060_s12 + $0xc84] ss:$16 sps:$4 sm:$0xff]  }
 0x2f9   : > { %6984 = vmatprep.subr.bf16.mxu0 %v9724_v23  ;;  %7517 = vmatprep.subr.bf16.mxu1 %v9727_v25  ;;  %v9812_v23 = vld [vmem:[%s12060_s12 + $0xc8c] ss:$16 sps:$4 sm:$0xff]   ;;  %v9807_v25 = vld [vmem:[%s12060_s12 + $0xc80] ss:$16 sps:$4 sm:$0xff]  }
 0x2fc   : > { %6985 = vmatpush1.bf16.msra.mxu0 %v9722_v26  ;;  %7518 = vmatpush1.bf16.msra.mxu1 %v9725_v27  ;;  %v9810_v26 = vld [vmem:[%s12060_s12 + $0xc88] ss:$16 sps:$4 sm:$0xff]   ;;  %v9815_v27 = vld [vmem:[%s12060_s12 + $0xca4] ss:$16 sps:$4 sm:$0xff]  }
 0x2fd   : > { %6986 = vmatprep.subr.bf16.mxu0 %v9730_v30  ;;  %7519 = vmatprep.subr.bf16.mxu1 %v9733_v31  ;;  %v9818_v30 = vld [vmem:[%s12060_s12 + $0xcac] ss:$16 sps:$4 sm:$0xff]   ;;  %v9813_v31 = vld [vmem:[%s12060_s12 + $0xca0] ss:$16 sps:$4 sm:$0xff]  }
 0x300   : > { %6987 = vmatpush1.bf16.msra.mxu0 %v9728_v20  ;;  %7520 = vmatpush1.bf16.msra.mxu1 %v9731_v32  ;;  %v9816_v20 = vld [vmem:[%s12060_s12 + $0xca8] ss:$16 sps:$4 sm:$0xff]   ;;  %v9821_v32 = vld [vmem:[%s12060_s12 + $0xcc4] ss:$16 sps:$4 sm:$0xff]  }
 0x301   : > { %6988 = vmatprep.subr.bf16.mxu0 %v9736_v33  ;;  %7521 = vmatprep.subr.bf16.mxu1 %v9739_v34  ;;  %v9824_v33 = vld [vmem:[%s12060_s12 + $0xccc] ss:$16 sps:$4 sm:$0xff]   ;;  %v9819_v34 = vld [vmem:[%s12060_s12 + $0xcc0] ss:$16 sps:$4 sm:$0xff]  }
 0x304   : > { %6989 = vmatpush1.bf16.msra.mxu0 %v9734_v35  ;;  %7522 = vmatpush1.bf16.msra.mxu1 %v9737_v36  ;;  %v9822_v35 = vld [vmem:[%s12060_s12 + $0xcc8] ss:$16 sps:$4 sm:$0xff]   ;;  %v9827_v36 = vld [vmem:[%s12060_s12 + $0xce4] ss:$16 sps:$4 sm:$0xff]  }
 0x305   : > { %6990 = vmatprep.subr.bf16.mxu0 %v9742_v37  ;;  %7523 = vmatprep.subr.bf16.mxu1 %v9745_v38  ;;  %v9830_v37 = vld [vmem:[%s12060_s12 + $0xcec] ss:$16 sps:$4 sm:$0xff]   ;;  %v9825_v38 = vld [vmem:[%s12060_s12 + $0xce0] ss:$16 sps:$4 sm:$0xff]  }
 0x308   : > { %6991 = vmatpush1.bf16.msra.mxu0 %v9740_v39  ;;  %7524 = vmatpush1.bf16.msra.mxu1 %v9743_v40  ;;  %v9828_v39 = vld [vmem:[%s12060_s12 + $0xce8] ss:$16 sps:$4 sm:$0xff]   ;;  %v9833_v40 = vld [vmem:[%s12060_s12 + $0xd04] ss:$16 sps:$4 sm:$0xff]  }
 0x309   : > { %6992 = vmatprep.subr.bf16.mxu0 %v9748_v41  ;;  %7525 = vmatprep.subr.bf16.mxu1 %v9751_v42  ;;  %v9836_v41 = vld [vmem:[%s12060_s12 + $0xd0c] ss:$16 sps:$4 sm:$0xff]   ;;  %v9831_v42 = vld [vmem:[%s12060_s12 + $0xd00] ss:$16 sps:$4 sm:$0xff]  }
 0x30c   : > { %6993 = vmatpush1.bf16.msra.mxu0 %v9746_v29  ;;  %7526 = vmatpush1.bf16.msra.mxu1 %v9749_v28  ;;  %v9834_v29 = vld [vmem:[%s12060_s12 + $0xd08] ss:$16 sps:$4 sm:$0xff]   ;;  %v9839_v28 = vld [vmem:[%s12060_s12 + $0xd24] ss:$16 sps:$4 sm:$0xff]  }
 0x30d   : > { %6994 = vmatprep.subr.bf16.mxu0 %v9754_v46  ;;  %7527 = vmatprep.subr.bf16.mxu1 %v9757_v47  ;;  %v9842_v46 = vld [vmem:[%s12060_s12 + $0xd2c] ss:$16 sps:$4 sm:$0xff]   ;;  %v9837_v47 = vld [vmem:[%s12060_s12 + $0xd20] ss:$16 sps:$4 sm:$0xff]  }
 0x310   : > { %6995 = vmatpush1.bf16.msra.mxu0 %v9752_v48  ;;  %7528 = vmatpush1.bf16.msra.mxu1 %v9755_v49  ;;  %v9840_v48 = vld [vmem:[%s12060_s12 + $0xd28] ss:$16 sps:$4 sm:$0xff]   ;;  %v9845_v49 = vld [vmem:[%s12060_s12 + $0xd44] ss:$16 sps:$4 sm:$0xff]  }
 0x311   : > { %6996 = vmatprep.subr.bf16.mxu0 %v9760_v51  ;;  %7529 = vmatprep.subr.bf16.mxu1 %v9763_v52  ;;  %v9848_v51 = vld [vmem:[%s12060_s12 + $0xd4c] ss:$16 sps:$4 sm:$0xff]   ;;  %v9843_v52 = vld [vmem:[%s12060_s12 + $0xd40] ss:$16 sps:$4 sm:$0xff]  }
 0x314   : > { %6997 = vmatpush1.bf16.msra.mxu0 %v9758_v53  ;;  %7530 = vmatpush1.bf16.msra.mxu1 %v9761_v54  ;;  %v9846_v53 = vld [vmem:[%s12060_s12 + $0xd48] ss:$16 sps:$4 sm:$0xff]   ;;  %v9851_v54 = vld [vmem:[%s12060_s12 + $0xd64] ss:$16 sps:$4 sm:$0xff]  }
 0x315   : > { %6998 = vmatprep.subr.bf16.mxu0 %v9766_v44  ;;  %7531 = vmatprep.subr.bf16.mxu1 %v9769_v55  ;;  %v9854_v44 = vld [vmem:[%s12060_s12 + $0xd6c] ss:$16 sps:$4 sm:$0xff]   ;;  %v9849_v55 = vld [vmem:[%s12060_s12 + $0xd60] ss:$16 sps:$4 sm:$0xff]  }
 0x318   : > { %6999 = vmatpush1.bf16.msra.mxu0 %v9764_v56  ;;  %7532 = vmatpush1.bf16.msra.mxu1 %v9767_v57  ;;  %v9852_v56 = vld [vmem:[%s12060_s12 + $0xd68] ss:$16 sps:$4 sm:$0xff]   ;;  %v9857_v57 = vld [vmem:[%s12060_s12 + $0xd84] ss:$16 sps:$4 sm:$0xff]  }
 0x319   : > { %7000 = vmatprep.subr.bf16.mxu0 %v9772_v45  ;;  %7533 = vmatprep.subr.bf16.mxu1 %v9775_v59  ;;  %v9860_v45 = vld [vmem:[%s12060_s12 + $0xd8c] ss:$16 sps:$4 sm:$0xff]   ;;  %v9855_v59 = vld [vmem:[%s12060_s12 + $0xd80] ss:$16 sps:$4 sm:$0xff]  }
 0x31c   : > { %7001 = vmatpush1.bf16.msra.mxu0 %v9770_v43  ;;  %7534 = vmatpush1.bf16.msra.mxu1 %v9773_v61  ;;  %v9858_v43 = vld [vmem:[%s12060_s12 + $0xd88] ss:$16 sps:$4 sm:$0xff]   ;;  %v9863_v61 = vld [vmem:[%s12060_s12 + $0xda4] ss:$16 sps:$4 sm:$0xff]  }
 0x31d   : > { %7002 = vmatprep.subr.bf16.mxu0 %v9778_v62  ;;  %7535 = vmatprep.subr.bf16.mxu1 %v9781_v63  ;;  %v9866_v62 = vld [vmem:[%s12060_s12 + $0xdac] ss:$16 sps:$4 sm:$0xff]   ;;  %v9861_v63 = vld [vmem:[%s12060_s12 + $0xda0] ss:$16 sps:$4 sm:$0xff]  }
 0x320   : > { %7003 = vmatpush1.bf16.msra.mxu0 %v9776_v1  ;;  %7536 = vmatpush1.bf16.msra.mxu1 %v9779_v2  ;;  %v9864_v1 = vld [vmem:[%s12060_s12 + $0xda8] ss:$16 sps:$4 sm:$0xff]   ;;  %v9869_v2 = vld [vmem:[%s12060_s12 + $0xdc4] ss:$16 sps:$4 sm:$0xff]  }
 0x321   : > { %7013 = vmatprep.subr.bf16.mxu0 %v9785_v3  ;;  %7546 = vmatprep.subr.bf16.mxu1 %v9788_v50  ;;  %v9872_v3 = vld [vmem:[%s12060_s12 + $0xdcc] ss:$16 sps:$4 sm:$0xff]   ;;  %v1929_v50 = vcombine.high %v12505_v60, %v12505_v60  ;;  %v9873_v60 = vld [vmem:[%s12060_s12 + $0xde0] ss:$16 sps:$4 sm:$0xff]  }
 0x323   : > { %7005 = vmatmul.mubr.bf16.vlgmr.msra.gmra.mrb[0].mxu0 %v2022_v5  ;;  %7538 = vmatmul.mubr.bf16.vlgmr.msra.gmra.mrb[0].mxu1 %v2022_v5  ;;  %v9870_v5 = vld [vmem:[%s12060_s12 + $0xdc8] ss:$16 sps:$4 sm:$0xff]  }
 0x324   : > { %7014 = vmatpush1.bf16.msra.mxu0 %v9783_v6  ;;  %7547 = vmatpush1.bf16.msra.mxu1 %v9786_v7  ;;  %v9875_v6 = vld [vmem:[%s12060_s12 + $0xde4] ss:$16 sps:$4 sm:$0xff]   ;;  %v9878_v7 = vld [vmem:[%s12060_s12 + $0xdec] ss:$16 sps:$4 sm:$0xff]  }
 0x325   : > { %7015 = vmatprep.subr.bf16.mxu0 %v9791_v8  ;;  %7548 = vmatprep.subr.bf16.mxu1 %v9794_v9  ;;  %v12586_v8 = vrot.slane %v1929_v50, %v12065_v24  ;;  %v9876_v9 = vld [vmem:[%s12060_s12 + $0xde8] ss:$16 sps:$4 sm:$0xff]  }
 0x326   : > { %7045 = vmatprep.mubr.bf16.mxu0 %v2025_v10  ;;  %7578 = vmatprep.mubr.bf16.mxu1 %v2025_v10  ;;  %v9881_v10 = vld [vmem:[%s12060_s12 + $0xe04] ss:$16 sps:$4 sm:$0xff]   ;;  %v9954_v50 = vld [vmem:[%s12060_s12 + $0xf88] ss:$16 sps:$4 sm:$0xff]  }
 0x328   : > { %7016 = vmatpush1.bf16.msra.mxu0 %v9789_v58  ;;  %7549 = vmatpush1.bf16.msra.mxu1 %v9792_v11  ;;  %v9884_v58 = vld [vmem:[%s12060_s12 + $0xe0c] ss:$16 sps:$4 sm:$0xff]   ;;  %v1945_v11 = vcombine.high %v12586_v8, %v12586_v8 }
 0x329   : > { %7017 = vmatprep.subr.bf16.mxu0 %v9797_v12  ;;  %7550 = vmatprep.subr.bf16.mxu1 %v9800_v13  ;;  %v2024_v12 = vpack.c.bf16 %v12513_v0, %v12513_v0  ;;  %v9879_v13 = vld [vmem:[%s12060_s12 + $0xe00] ss:$16 sps:$4 sm:$0xff]  }
 0x32a   : > { %v9885_v0 = vld [vmem:[%s12060_s12 + $0xe20] ss:$16 sps:$4 sm:$0xff]  }
 0x32c   : > { %7018 = vmatpush1.bf16.msra.mxu0 %v9795_v14  ;;  %7551 = vmatpush1.bf16.msra.mxu1 %v9798_v15  ;;  %v9882_v14 = vld [vmem:[%s12060_s12 + $0xe08] ss:$16 sps:$4 sm:$0xff]   ;;  %v9887_v15 = vld [vmem:[%s12060_s12 + $0xe24] ss:$16 sps:$4 sm:$0xff]  }
 0x32d   : > { %7019 = vmatprep.subr.bf16.mxu0 %v9803_v16  ;;  %7552 = vmatprep.subr.bf16.mxu1 %v9806_v17  ;;  %v9890_v16 = vld [vmem:[%s12060_s12 + $0xe2c] ss:$16 sps:$4 sm:$0xff]   ;;  %v2027_v17 = vpack.c.bf16 %v1945_v11, %v1945_v11  ;;  %v9966_v11 = vld [vmem:[%s12060_s12 + $0xfc8] ss:$16 sps:$4 sm:$0xff]  }
 0x330   : > { %7020 = vmatpush1.bf16.msra.mxu0 %v9801_v18  ;;  %7553 = vmatpush1.bf16.msra.mxu1 %v9804_v21  ;;  %v9888_v18 = vld [vmem:[%s12060_s12 + $0xe28] ss:$16 sps:$4 sm:$0xff]   ;;  %v9893_v21 = vld [vmem:[%s12060_s12 + $0xe44] ss:$16 sps:$4 sm:$0xff]  }
 0x331   : > { %7021 = vmatprep.subr.bf16.mxu0 %v9809_v22  ;;  %7554 = vmatprep.subr.bf16.mxu1 %v9812_v23  ;;  %v9896_v22 = vld [vmem:[%s12060_s12 + $0xe4c] ss:$16 sps:$4 sm:$0xff]   ;;  %v9891_v23 = vld [vmem:[%s12060_s12 + $0xe40] ss:$16 sps:$4 sm:$0xff]  }
 0x334   : > { %7022 = vmatpush1.bf16.msra.mxu0 %v9807_v25  ;;  %7555 = vmatpush1.bf16.msra.mxu1 %v9810_v26  ;;  %v9894_v25 = vld [vmem:[%s12060_s12 + $0xe48] ss:$16 sps:$4 sm:$0xff]   ;;  %v9899_v26 = vld [vmem:[%s12060_s12 + $0xe64] ss:$16 sps:$4 sm:$0xff]  }
 0x335   : > { %7023 = vmatprep.subr.bf16.mxu0 %v9815_v27  ;;  %7556 = vmatprep.subr.bf16.mxu1 %v9818_v30  ;;  %v9902_v27 = vld [vmem:[%s12060_s12 + $0xe6c] ss:$16 sps:$4 sm:$0xff]   ;;  %v9897_v30 = vld [vmem:[%s12060_s12 + $0xe60] ss:$16 sps:$4 sm:$0xff]  }
 0x338   : > { %7024 = vmatpush1.bf16.msra.mxu0 %v9813_v31  ;;  %7557 = vmatpush1.bf16.msra.mxu1 %v9816_v20  ;;  %v9900_v31 = vld [vmem:[%s12060_s12 + $0xe68] ss:$16 sps:$4 sm:$0xff]   ;;  %v9905_v20 = vld [vmem:[%s12060_s12 + $0xe84] ss:$16 sps:$4 sm:$0xff]  }
 0x339   : > { %7025 = vmatprep.subr.bf16.mxu0 %v9821_v32  ;;  %7558 = vmatprep.subr.bf16.mxu1 %v9824_v33  ;;  %v9908_v32 = vld [vmem:[%s12060_s12 + $0xe8c] ss:$16 sps:$4 sm:$0xff]   ;;  %v9903_v33 = vld [vmem:[%s12060_s12 + $0xe80] ss:$16 sps:$4 sm:$0xff]  }
 0x33c   : > { %7026 = vmatpush1.bf16.msra.mxu0 %v9819_v34  ;;  %7559 = vmatpush1.bf16.msra.mxu1 %v9822_v35  ;;  %v9906_v34 = vld [vmem:[%s12060_s12 + $0xe88] ss:$16 sps:$4 sm:$0xff]   ;;  %v9911_v35 = vld [vmem:[%s12060_s12 + $0xea4] ss:$16 sps:$4 sm:$0xff]  }
 0x33d   : > { %7027 = vmatprep.subr.bf16.mxu0 %v9827_v36  ;;  %7560 = vmatprep.subr.bf16.mxu1 %v9830_v37  ;;  %v9914_v36 = vld [vmem:[%s12060_s12 + $0xeac] ss:$16 sps:$4 sm:$0xff]   ;;  %v9909_v37 = vld [vmem:[%s12060_s12 + $0xea0] ss:$16 sps:$4 sm:$0xff]  }
 0x340   : > { %7028 = vmatpush1.bf16.msra.mxu0 %v9825_v38  ;;  %7561 = vmatpush1.bf16.msra.mxu1 %v9828_v39  ;;  %v9912_v38 = vld [vmem:[%s12060_s12 + $0xea8] ss:$16 sps:$4 sm:$0xff]   ;;  %v9917_v39 = vld [vmem:[%s12060_s12 + $0xec4] ss:$16 sps:$4 sm:$0xff]  }
 0x341   : > { %7029 = vmatprep.subr.bf16.mxu0 %v9833_v40  ;;  %7562 = vmatprep.subr.bf16.mxu1 %v9836_v41  ;;  %v9920_v40 = vld [vmem:[%s12060_s12 + $0xecc] ss:$16 sps:$4 sm:$0xff]   ;;  %v9915_v41 = vld [vmem:[%s12060_s12 + $0xec0] ss:$16 sps:$4 sm:$0xff]  }
 0x344   : > { %7030 = vmatpush1.bf16.msra.mxu0 %v9831_v42  ;;  %7563 = vmatpush1.bf16.msra.mxu1 %v9834_v29  ;;  %v9918_v42 = vld [vmem:[%s12060_s12 + $0xec8] ss:$16 sps:$4 sm:$0xff]   ;;  %v9923_v29 = vld [vmem:[%s12060_s12 + $0xee4] ss:$16 sps:$4 sm:$0xff]  }
 0x345   : > { %7031 = vmatprep.subr.bf16.mxu0 %v9839_v28  ;;  %7564 = vmatprep.subr.bf16.mxu1 %v9842_v46  ;;  %v9926_v28 = vld [vmem:[%s12060_s12 + $0xeec] ss:$16 sps:$4 sm:$0xff]   ;;  %v9921_v46 = vld [vmem:[%s12060_s12 + $0xee0] ss:$16 sps:$4 sm:$0xff]  }
 0x348   : > { %7032 = vmatpush1.bf16.msra.mxu0 %v9837_v47  ;;  %7565 = vmatpush1.bf16.msra.mxu1 %v9840_v48  ;;  %v9924_v47 = vld [vmem:[%s12060_s12 + $0xee8] ss:$16 sps:$4 sm:$0xff]   ;;  %v9929_v48 = vld [vmem:[%s12060_s12 + $0xf04] ss:$16 sps:$4 sm:$0xff]  }
 0x349   : > { %7033 = vmatprep.subr.bf16.mxu0 %v9845_v49  ;;  %7566 = vmatprep.subr.bf16.mxu1 %v9848_v51  ;;  %v9932_v49 = vld [vmem:[%s12060_s12 + $0xf0c] ss:$16 sps:$4 sm:$0xff]   ;;  %v9927_v51 = vld [vmem:[%s12060_s12 + $0xf00] ss:$16 sps:$4 sm:$0xff]  }
 0x34c   : > { %7034 = vmatpush1.bf16.msra.mxu0 %v9843_v52  ;;  %7567 = vmatpush1.bf16.msra.mxu1 %v9846_v53  ;;  %v9930_v52 = vld [vmem:[%s12060_s12 + $0xf08] ss:$16 sps:$4 sm:$0xff]   ;;  %v9935_v53 = vld [vmem:[%s12060_s12 + $0xf24] ss:$16 sps:$4 sm:$0xff]  }
 0x34d   : > { %7035 = vmatprep.subr.bf16.mxu0 %v9851_v54  ;;  %7568 = vmatprep.subr.bf16.mxu1 %v9854_v44  ;;  %v9938_v54 = vld [vmem:[%s12060_s12 + $0xf2c] ss:$16 sps:$4 sm:$0xff]   ;;  %v9933_v44 = vld [vmem:[%s12060_s12 + $0xf20] ss:$16 sps:$4 sm:$0xff]  }
 0x350   : > { %7036 = vmatpush1.bf16.msra.mxu0 %v9849_v55  ;;  %7569 = vmatpush1.bf16.msra.mxu1 %v9852_v56  ;;  %v9936_v55 = vld [vmem:[%s12060_s12 + $0xf28] ss:$16 sps:$4 sm:$0xff]   ;;  %v9941_v56 = vld [vmem:[%s12060_s12 + $0xf44] ss:$16 sps:$4 sm:$0xff]  }
 0x351   : > { %7037 = vmatprep.subr.bf16.mxu0 %v9857_v57  ;;  %7570 = vmatprep.subr.bf16.mxu1 %v9860_v45  ;;  %v9944_v57 = vld [vmem:[%s12060_s12 + $0xf4c] ss:$16 sps:$4 sm:$0xff]   ;;  %v9939_v45 = vld [vmem:[%s12060_s12 + $0xf40] ss:$16 sps:$4 sm:$0xff]  }
 0x354   : > { %7038 = vmatpush1.bf16.msra.mxu0 %v9855_v59  ;;  %7571 = vmatpush1.bf16.msra.mxu1 %v9858_v43  ;;  %v9942_v59 = vld [vmem:[%s12060_s12 + $0xf48] ss:$16 sps:$4 sm:$0xff]   ;;  %v9947_v43 = vld [vmem:[%s12060_s12 + $0xf64] ss:$16 sps:$4 sm:$0xff]  }
 0x355   : > { %7039 = vmatprep.subr.bf16.mxu0 %v9863_v61  ;;  %7572 = vmatprep.subr.bf16.mxu1 %v9866_v62  ;;  %v9950_v61 = vld [vmem:[%s12060_s12 + $0xf6c] ss:$16 sps:$4 sm:$0xff]   ;;  %v9945_v62 = vld [vmem:[%s12060_s12 + $0xf60] ss:$16 sps:$4 sm:$0xff]  }
 0x358   : > { %7040 = vmatpush1.bf16.msra.mxu0 %v9861_v63  ;;  %7573 = vmatpush1.bf16.msra.mxu1 %v9864_v1  ;;  %v9948_v63 = vld [vmem:[%s12060_s12 + $0xf68] ss:$16 sps:$4 sm:$0xff]   ;;  %v9953_v1 = vld [vmem:[%s12060_s12 + $0xf84] ss:$16 sps:$4 sm:$0xff]  }
 0x359   : > { %7041 = vmatprep.subr.bf16.mxu0 %v9869_v2  ;;  %7574 = vmatprep.subr.bf16.mxu1 %v9872_v3  ;;  %v9956_v2 = vld [vmem:[%s12060_s12 + $0xf8c] ss:$16 sps:$4 sm:$0xff]   ;;  %v9951_v3 = vld [vmem:[%s12060_s12 + $0xf80] ss:$16 sps:$4 sm:$0xff]  }
 0x35c   : > { %7042 = vmatpush1.bf16.msra.mxu0 %v9867_v4  ;;  %7575 = vmatpush1.bf16.msra.mxu1 %v9870_v5  ;;  %v9959_v4 = vld [vmem:[%s12060_s12 + $0xfa4] ss:$16 sps:$4 sm:$0xff]   ;;  %v9962_v5 = vld [vmem:[%s12060_s12 + $0xfac] ss:$16 sps:$4 sm:$0xff]  }
 0x35d   : > { %7043 = vmatprep.subr.bf16.mxu0 %v9875_v6  ;;  %7576 = vmatprep.subr.bf16.mxu1 %v9878_v7  ;;  %v9957_v6 = vld [vmem:[%s12060_s12 + $0xfa0] ss:$16 sps:$4 sm:$0xff]   ;;  %v9960_v7 = vld [vmem:[%s12060_s12 + $0xfa8] ss:$16 sps:$4 sm:$0xff]  }
 0x360   : > { %7044 = vmatpush1.bf16.msra.mxu0 %v9873_v60  ;;  %7577 = vmatpush1.bf16.msra.mxu1 %v9876_v9  ;;  %v9965_v60 = vld [vmem:[%s12060_s12 + $0xfc4] ss:$16 sps:$4 sm:$0xff]   ;;  %v9968_v9 = vld [vmem:[%s12060_s12 + $0xfcc] ss:$16 sps:$4 sm:$0xff]  }
 0x361   : > { %7054 = vmatprep.subr.bf16.mxu0 %v9881_v10  ;;  %7587 = vmatprep.subr.bf16.mxu1 %v9884_v58  ;;  %v12655_v10 = vld [vmem:[%s13081_s0 + $0x20] sm:$0xff] }
 0x362   : > { %v9963_v58 = vld [vmem:[%s12060_s12 + $0xfc0] ss:$16 sps:$4 sm:$0xff]  }
 0x363   : > { %7046 = vmatmul.mubr.bf16.vlgmr.msra.gmra.mrb[0].mxu0 %v2024_v12  ;;  %7579 = vmatmul.mubr.bf16.vlgmr.msra.gmra.mrb[0].mxu1 %v2024_v12  ;;  %v9971_v12 = vld [vmem:[%s12060_s12 + $0xfe4] ss:$16 sps:$4 sm:$0xff]  }
 0x364   : > { %7055 = vmatpush1.bf16.msra.mxu0 %v9879_v13  ;;  %7588 = vmatpush1.bf16.msra.mxu1 %v9882_v14  ;;  %v9974_v13 = vld [vmem:[%s12060_s12 + $0xfec] ss:$16 sps:$4 sm:$0xff]   ;;  %v12663_v14 = vrot.slane %v12655_v10, %v12065_v24 }
 0x365   : > { %7056 = vmatprep.subr.bf16.mxu0 %v9887_v15  ;;  %7589 = vmatprep.subr.bf16.mxu1 %v9890_v16  ;;  %v9969_v15 = vld [vmem:[%s12060_s12 + $0xfe0] ss:$16 sps:$4 sm:$0xff]   ;;  %v9972_v16 = vld [vmem:[%s12060_s12 + $0xfe8] ss:$16 sps:$4 sm:$0xff]  }
 0x366   : > { %7086 = vmatprep.mubr.bf16.mxu0 %v2027_v17  ;;  %7619 = vmatprep.mubr.bf16.mxu1 %v2027_v17  ;;  %v9978_v17 = vld [vmem:[%s12060_s12 + $0x1004] ss:$16 sps:$4 sm:$0xff]  }
 0x368   : > { %7057 = vmatpush1.bf16.msra.mxu0 %v9885_v0  ;;  %7590 = vmatpush1.bf16.msra.mxu1 %v9888_v18  ;;  %v9981_v0 = vld [vmem:[%s12060_s12 + $0x100c] ss:$16 sps:$4 sm:$0xff]   ;;  %v1961_v18 = vcombine.high %v12663_v14, %v12663_v14 }
 0x369   : > { %7058 = vmatprep.subr.bf16.mxu0 %v9893_v21  ;;  %7591 = vmatprep.subr.bf16.mxu1 %v9896_v22  ;;  %v2026_v21 = vpack.c.bf16 %v12586_v8, %v12586_v8  ;;  %v9976_v22 = vld [vmem:[%s12060_s12 + $0x1000] ss:$16 sps:$4 sm:$0xff]  }
 0x36a   : > { %v9982_v8 = vld [vmem:[%s12060_s12 + $0x1020] ss:$16 sps:$4 sm:$0xff]  }
 0x36c   : > { %7059 = vmatpush1.bf16.msra.mxu0 %v9891_v23  ;;  %7592 = vmatpush1.bf16.msra.mxu1 %v9894_v25  ;;  %v9979_v23 = vld [vmem:[%s12060_s12 + $0x1008] ss:$16 sps:$4 sm:$0xff]   ;;  %v9984_v25 = vld [vmem:[%s12060_s12 + $0x1024] ss:$16 sps:$4 sm:$0xff]  }
 0x36d   : > { %7060 = vmatprep.subr.bf16.mxu0 %v9899_v26  ;;  %7593 = vmatprep.subr.bf16.mxu1 %v9902_v27  ;;  %v9987_v26 = vld [vmem:[%s12060_s12 + $0x102c] ss:$16 sps:$4 sm:$0xff]   ;;  %v2029_v27 = vpack.c.bf16 %v1961_v18, %v1961_v18  ;;  %v10060_v18 = vld [vmem:[%s12060_s12 + $0x11c0] ss:$16 sps:$4 sm:$0xff]  }
 0x370   : > { %7061 = vmatpush1.bf16.msra.mxu0 %v9897_v30  ;;  %7594 = vmatpush1.bf16.msra.mxu1 %v9900_v31  ;;  %v9985_v30 = vld [vmem:[%s12060_s12 + $0x1028] ss:$16 sps:$4 sm:$0xff]   ;;  %v9990_v31 = vld [vmem:[%s12060_s12 + $0x1044] ss:$16 sps:$4 sm:$0xff]  }
 0x371   : > { %7062 = vmatprep.subr.bf16.mxu0 %v9905_v20  ;;  %7595 = vmatprep.subr.bf16.mxu1 %v9908_v32  ;;  %v9993_v20 = vld [vmem:[%s12060_s12 + $0x104c] ss:$16 sps:$4 sm:$0xff]   ;;  %v9988_v32 = vld [vmem:[%s12060_s12 + $0x1040] ss:$16 sps:$4 sm:$0xff]  }
 0x374   : > { %7063 = vmatpush1.bf16.msra.mxu0 %v9903_v33  ;;  %7596 = vmatpush1.bf16.msra.mxu1 %v9906_v34  ;;  %v9991_v33 = vld [vmem:[%s12060_s12 + $0x1048] ss:$16 sps:$4 sm:$0xff]   ;;  %v9996_v34 = vld [vmem:[%s12060_s12 + $0x1064] ss:$16 sps:$4 sm:$0xff]  }
 0x375   : > { %7064 = vmatprep.subr.bf16.mxu0 %v9911_v35  ;;  %7597 = vmatprep.subr.bf16.mxu1 %v9914_v36  ;;  %v9999_v35 = vld [vmem:[%s12060_s12 + $0x106c] ss:$16 sps:$4 sm:$0xff]   ;;  %v9994_v36 = vld [vmem:[%s12060_s12 + $0x1060] ss:$16 sps:$4 sm:$0xff]  }
 0x378   : > { %7065 = vmatpush1.bf16.msra.mxu0 %v9909_v37  ;;  %7598 = vmatpush1.bf16.msra.mxu1 %v9912_v38  ;;  %v9997_v37 = vld [vmem:[%s12060_s12 + $0x1068] ss:$16 sps:$4 sm:$0xff]   ;;  %v10002_v38 = vld [vmem:[%s12060_s12 + $0x1084] ss:$16 sps:$4 sm:$0xff]  }
 0x379   : > { %7066 = vmatprep.subr.bf16.mxu0 %v9917_v39  ;;  %7599 = vmatprep.subr.bf16.mxu1 %v9920_v40  ;;  %v10005_v39 = vld [vmem:[%s12060_s12 + $0x108c] ss:$16 sps:$4 sm:$0xff]   ;;  %v10000_v40 = vld [vmem:[%s12060_s12 + $0x1080] ss:$16 sps:$4 sm:$0xff]  }
 0x37c   : > { %7067 = vmatpush1.bf16.msra.mxu0 %v9915_v41  ;;  %7600 = vmatpush1.bf16.msra.mxu1 %v9918_v42  ;;  %v10003_v41 = vld [vmem:[%s12060_s12 + $0x1088] ss:$16 sps:$4 sm:$0xff]   ;;  %v10008_v42 = vld [vmem:[%s12060_s12 + $0x10a4] ss:$16 sps:$4 sm:$0xff]  }
 0x37d   : > { %7068 = vmatprep.subr.bf16.mxu0 %v9923_v29  ;;  %7601 = vmatprep.subr.bf16.mxu1 %v9926_v28  ;;  %v10011_v29 = vld [vmem:[%s12060_s12 + $0x10ac] ss:$16 sps:$4 sm:$0xff]   ;;  %v10006_v28 = vld [vmem:[%s12060_s12 + $0x10a0] ss:$16 sps:$4 sm:$0xff]  }
 0x380   : > { %7069 = vmatpush1.bf16.msra.mxu0 %v9921_v46  ;;  %7602 = vmatpush1.bf16.msra.mxu1 %v9924_v47  ;;  %v10009_v46 = vld [vmem:[%s12060_s12 + $0x10a8] ss:$16 sps:$4 sm:$0xff]   ;;  %v10014_v47 = vld [vmem:[%s12060_s12 + $0x10c4] ss:$16 sps:$4 sm:$0xff]  }
 0x381   : > { %7070 = vmatprep.subr.bf16.mxu0 %v9929_v48  ;;  %7603 = vmatprep.subr.bf16.mxu1 %v9932_v49  ;;  %v10017_v48 = vld [vmem:[%s12060_s12 + $0x10cc] ss:$16 sps:$4 sm:$0xff]   ;;  %v10012_v49 = vld [vmem:[%s12060_s12 + $0x10c0] ss:$16 sps:$4 sm:$0xff]  }
 0x384   : > { %7071 = vmatpush1.bf16.msra.mxu0 %v9927_v51  ;;  %7604 = vmatpush1.bf16.msra.mxu1 %v9930_v52  ;;  %v10015_v51 = vld [vmem:[%s12060_s12 + $0x10c8] ss:$16 sps:$4 sm:$0xff]   ;;  %v10020_v52 = vld [vmem:[%s12060_s12 + $0x10e4] ss:$16 sps:$4 sm:$0xff]  }
 0x385   : > { %7072 = vmatprep.subr.bf16.mxu0 %v9935_v53  ;;  %7605 = vmatprep.subr.bf16.mxu1 %v9938_v54  ;;  %v10023_v53 = vld [vmem:[%s12060_s12 + $0x10ec] ss:$16 sps:$4 sm:$0xff]   ;;  %v10018_v54 = vld [vmem:[%s12060_s12 + $0x10e0] ss:$16 sps:$4 sm:$0xff]  }
 0x388   : > { %7073 = vmatpush1.bf16.msra.mxu0 %v9933_v44  ;;  %7606 = vmatpush1.bf16.msra.mxu1 %v9936_v55  ;;  %v10021_v44 = vld [vmem:[%s12060_s12 + $0x10e8] ss:$16 sps:$4 sm:$0xff]   ;;  %v10026_v55 = vld [vmem:[%s12060_s12 + $0x1104] ss:$16 sps:$4 sm:$0xff]  }
 0x389   : > { %7074 = vmatprep.subr.bf16.mxu0 %v9941_v56  ;;  %7607 = vmatprep.subr.bf16.mxu1 %v9944_v57  ;;  %v10029_v56 = vld [vmem:[%s12060_s12 + $0x110c] ss:$16 sps:$4 sm:$0xff]   ;;  %v10024_v57 = vld [vmem:[%s12060_s12 + $0x1100] ss:$16 sps:$4 sm:$0xff]  }
 0x38c   : > { %7075 = vmatpush1.bf16.msra.mxu0 %v9939_v45  ;;  %7608 = vmatpush1.bf16.msra.mxu1 %v9942_v59  ;;  %v10027_v45 = vld [vmem:[%s12060_s12 + $0x1108] ss:$16 sps:$4 sm:$0xff]   ;;  %v10032_v59 = vld [vmem:[%s12060_s12 + $0x1124] ss:$16 sps:$4 sm:$0xff]  }
 0x38d   : > { %7076 = vmatprep.subr.bf16.mxu0 %v9947_v43  ;;  %7609 = vmatprep.subr.bf16.mxu1 %v9950_v61  ;;  %v10035_v43 = vld [vmem:[%s12060_s12 + $0x112c] ss:$16 sps:$4 sm:$0xff]   ;;  %v10030_v61 = vld [vmem:[%s12060_s12 + $0x1120] ss:$16 sps:$4 sm:$0xff]  }
 0x390   : > { %7077 = vmatpush1.bf16.msra.mxu0 %v9945_v62  ;;  %7610 = vmatpush1.bf16.msra.mxu1 %v9948_v63  ;;  %v10033_v62 = vld [vmem:[%s12060_s12 + $0x1128] ss:$16 sps:$4 sm:$0xff]   ;;  %v10038_v63 = vld [vmem:[%s12060_s12 + $0x1144] ss:$16 sps:$4 sm:$0xff]  }
 0x391   : > { %7078 = vmatprep.subr.bf16.mxu0 %v9953_v1  ;;  %7611 = vmatprep.subr.bf16.mxu1 %v9956_v2  ;;  %v10041_v1 = vld [vmem:[%s12060_s12 + $0x114c] ss:$16 sps:$4 sm:$0xff]   ;;  %v10036_v2 = vld [vmem:[%s12060_s12 + $0x1140] ss:$16 sps:$4 sm:$0xff]  }
 0x394   : > { %7079 = vmatpush1.bf16.msra.mxu0 %v9951_v3  ;;  %7612 = vmatpush1.bf16.msra.mxu1 %v9954_v50  ;;  %v10039_v3 = vld [vmem:[%s12060_s12 + $0x1148] ss:$16 sps:$4 sm:$0xff]   ;;  %v10044_v50 = vld [vmem:[%s12060_s12 + $0x1164] ss:$16 sps:$4 sm:$0xff]  }
 0x395   : > { %7080 = vmatprep.subr.bf16.mxu0 %v9959_v4  ;;  %7613 = vmatprep.subr.bf16.mxu1 %v9962_v5  ;;  %v10047_v4 = vld [vmem:[%s12060_s12 + $0x116c] ss:$16 sps:$4 sm:$0xff]   ;;  %v10042_v5 = vld [vmem:[%s12060_s12 + $0x1160] ss:$16 sps:$4 sm:$0xff]  }
 0x398   : > { %7081 = vmatpush1.bf16.msra.mxu0 %v9957_v6  ;;  %7614 = vmatpush1.bf16.msra.mxu1 %v9960_v7  ;;  %v10045_v6 = vld [vmem:[%s12060_s12 + $0x1168] ss:$16 sps:$4 sm:$0xff]   ;;  %v10050_v7 = vld [vmem:[%s12060_s12 + $0x1184] ss:$16 sps:$4 sm:$0xff]  }
 0x399   : > { %7082 = vmatprep.subr.bf16.mxu0 %v9965_v60  ;;  %7615 = vmatprep.subr.bf16.mxu1 %v9968_v9  ;;  %v10053_v60 = vld [vmem:[%s12060_s12 + $0x118c] ss:$16 sps:$4 sm:$0xff]   ;;  %v10048_v9 = vld [vmem:[%s12060_s12 + $0x1180] ss:$16 sps:$4 sm:$0xff]  }
 0x39c   : > { %7083 = vmatpush1.bf16.msra.mxu0 %v9963_v58  ;;  %7616 = vmatpush1.bf16.msra.mxu1 %v9966_v11  ;;  %v10051_v58 = vld [vmem:[%s12060_s12 + $0x1188] ss:$16 sps:$4 sm:$0xff]   ;;  %v10056_v11 = vld [vmem:[%s12060_s12 + $0x11a4] ss:$16 sps:$4 sm:$0xff]  }
 0x39d   : > { %7084 = vmatprep.subr.bf16.mxu0 %v9971_v12  ;;  %7617 = vmatprep.subr.bf16.mxu1 %v9974_v13  ;;  %v10059_v12 = vld [vmem:[%s12060_s12 + $0x11ac] ss:$16 sps:$4 sm:$0xff]   ;;  %v10054_v13 = vld [vmem:[%s12060_s12 + $0x11a0] ss:$16 sps:$4 sm:$0xff]  }
 0x3a0   : > { %7085 = vmatpush1.bf16.msra.mxu0 %v9969_v15  ;;  %7618 = vmatpush1.bf16.msra.mxu1 %v9972_v16  ;;  %v10057_v15 = vld [vmem:[%s12060_s12 + $0x11a8] ss:$16 sps:$4 sm:$0xff]   ;;  %v10062_v16 = vld [vmem:[%s12060_s12 + $0x11c4] ss:$16 sps:$4 sm:$0xff]  }
 0x3a1   : > { %7095 = vmatprep.subr.bf16.mxu0 %v9978_v17  ;;  %7628 = vmatprep.subr.bf16.mxu1 %v9981_v0  ;;  %v10065_v17 = vld [vmem:[%s12060_s12 + $0x11cc] ss:$16 sps:$4 sm:$0xff]   ;;  %v1946_v0 = vcombine.high %v12655_v10, %v12655_v10  ;;  %v10066_v10 = vld [vmem:[%s12060_s12 + $0x11e0] ss:$16 sps:$4 sm:$0xff]  }
 0x3a3   : > { %7087 = vmatmul.mubr.bf16.vlgmr.msra.gmra.mrb[0].mxu0 %v2026_v21  ;;  %7620 = vmatmul.mubr.bf16.vlgmr.msra.gmra.mrb[0].mxu1 %v2026_v21  ;;  %v10063_v21 = vld [vmem:[%s12060_s12 + $0x11c8] ss:$16 sps:$4 sm:$0xff]  }
 0x3a4   : > { %7096 = vmatpush1.bf16.msra.mxu0 %v9976_v22  ;;  %7629 = vmatpush1.bf16.msra.mxu1 %v9979_v23  ;;  %v10068_v22 = vld [vmem:[%s12060_s12 + $0x11e4] ss:$16 sps:$4 sm:$0xff]   ;;  %v10071_v23 = vld [vmem:[%s12060_s12 + $0x11ec] ss:$16 sps:$4 sm:$0xff]  }
 0x3a5   : > { %7097 = vmatprep.subr.bf16.mxu0 %v9984_v25  ;;  %7630 = vmatprep.subr.bf16.mxu1 %v9987_v26  ;;  %v12736_v25 = vrot.slane %v1946_v0, %v12065_v24  ;;  %v10069_v26 = vld [vmem:[%s12060_s12 + $0x11e8] ss:$16 sps:$4 sm:$0xff]  }
 0x3a6   : > { %7127 = vmatprep.mubr.bf16.mxu0 %v2029_v27  ;;  %7660 = vmatprep.mubr.bf16.mxu1 %v2029_v27  ;;  %v10074_v27 = vld [vmem:[%s12060_s12 + $0x1204] ss:$16 sps:$4 sm:$0xff]   ;;  %v10147_v0 = vld [vmem:[%s12060_s12 + $0x1388] ss:$16 sps:$4 sm:$0xff]  }
 0x3a8   : > { %7098 = vmatpush1.bf16.msra.mxu0 %v9982_v8  ;;  %7631 = vmatpush1.bf16.msra.mxu1 %v9985_v30  ;;  %v10077_v8 = vld [vmem:[%s12060_s12 + $0x120c] ss:$16 sps:$4 sm:$0xff]   ;;  %v1962_v30 = vcombine.high %v12736_v25, %v12736_v25 }
 0x3a9   : > { %7099 = vmatprep.subr.bf16.mxu0 %v9990_v31  ;;  %7632 = vmatprep.subr.bf16.mxu1 %v9993_v20  ;;  %v2028_v31 = vpack.c.bf16 %v12663_v14, %v12663_v14  ;;  %v10072_v20 = vld [vmem:[%s12060_s12 + $0x1200] ss:$16 sps:$4 sm:$0xff]  }
 0x3aa   : > { %v10078_v14 = vld [vmem:[%s12060_s12 + $0x1220] ss:$16 sps:$4 sm:$0xff]  }
 0x3ac   : > { %7100 = vmatpush1.bf16.msra.mxu0 %v9988_v32  ;;  %7633 = vmatpush1.bf16.msra.mxu1 %v9991_v33  ;;  %v10075_v32 = vld [vmem:[%s12060_s12 + $0x1208] ss:$16 sps:$4 sm:$0xff]   ;;  %v10080_v33 = vld [vmem:[%s12060_s12 + $0x1224] ss:$16 sps:$4 sm:$0xff]  }
 0x3ad   : > { %7101 = vmatprep.subr.bf16.mxu0 %v9996_v34  ;;  %7634 = vmatprep.subr.bf16.mxu1 %v9999_v35  ;;  %v10083_v34 = vld [vmem:[%s12060_s12 + $0x122c] ss:$16 sps:$4 sm:$0xff]   ;;  %v2031_v35 = vpack.c.bf16 %v1962_v30, %v1962_v30  ;;  %v10159_v30 = vld [vmem:[%s12060_s12 + $0x13c8] ss:$16 sps:$4 sm:$0xff]  }
 0x3b0   : > { %7102 = vmatpush1.bf16.msra.mxu0 %v9994_v36  ;;  %7635 = vmatpush1.bf16.msra.mxu1 %v9997_v37  ;;  %v10081_v36 = vld [vmem:[%s12060_s12 + $0x1228] ss:$16 sps:$4 sm:$0xff]   ;;  %v10086_v37 = vld [vmem:[%s12060_s12 + $0x1244] ss:$16 sps:$4 sm:$0xff]  }
 0x3b1   : > { %7103 = vmatprep.subr.bf16.mxu0 %v10002_v38  ;;  %7636 = vmatprep.subr.bf16.mxu1 %v10005_v39  ;;  %v10089_v38 = vld [vmem:[%s12060_s12 + $0x124c] ss:$16 sps:$4 sm:$0xff]   ;;  %v10084_v39 = vld [vmem:[%s12060_s12 + $0x1240] ss:$16 sps:$4 sm:$0xff]  }
 0x3b4   : > { %7104 = vmatpush1.bf16.msra.mxu0 %v10000_v40  ;;  %7637 = vmatpush1.bf16.msra.mxu1 %v10003_v41  ;;  %v10087_v40 = vld [vmem:[%s12060_s12 + $0x1248] ss:$16 sps:$4 sm:$0xff]   ;;  %v10092_v41 = vld [vmem:[%s12060_s12 + $0x1264] ss:$16 sps:$4 sm:$0xff]  }
 0x3b5   : > { %7105 = vmatprep.subr.bf16.mxu0 %v10008_v42  ;;  %7638 = vmatprep.subr.bf16.mxu1 %v10011_v29  ;;  %v10095_v42 = vld [vmem:[%s12060_s12 + $0x126c] ss:$16 sps:$4 sm:$0xff]   ;;  %v10090_v29 = vld [vmem:[%s12060_s12 + $0x1260] ss:$16 sps:$4 sm:$0xff]  }
 0x3b8   : > { %7106 = vmatpush1.bf16.msra.mxu0 %v10006_v28  ;;  %7639 = vmatpush1.bf16.msra.mxu1 %v10009_v46  ;;  %v10093_v28 = vld [vmem:[%s12060_s12 + $0x1268] ss:$16 sps:$4 sm:$0xff]   ;;  %v10098_v46 = vld [vmem:[%s12060_s12 + $0x1284] ss:$16 sps:$4 sm:$0xff]  }
 0x3b9   : > { %7107 = vmatprep.subr.bf16.mxu0 %v10014_v47  ;;  %7640 = vmatprep.subr.bf16.mxu1 %v10017_v48  ;;  %v10101_v47 = vld [vmem:[%s12060_s12 + $0x128c] ss:$16 sps:$4 sm:$0xff]   ;;  %v10096_v48 = vld [vmem:[%s12060_s12 + $0x1280] ss:$16 sps:$4 sm:$0xff]  }
 0x3bc   : > { %7108 = vmatpush1.bf16.msra.mxu0 %v10012_v49  ;;  %7641 = vmatpush1.bf16.msra.mxu1 %v10015_v51  ;;  %v10099_v49 = vld [vmem:[%s12060_s12 + $0x1288] ss:$16 sps:$4 sm:$0xff]   ;;  %v10104_v51 = vld [vmem:[%s12060_s12 + $0x12a4] ss:$16 sps:$4 sm:$0xff]  }
 0x3bd   : > { %7109 = vmatprep.subr.bf16.mxu0 %v10020_v52  ;;  %7642 = vmatprep.subr.bf16.mxu1 %v10023_v53  ;;  %v10107_v52 = vld [vmem:[%s12060_s12 + $0x12ac] ss:$16 sps:$4 sm:$0xff]   ;;  %v10102_v53 = vld [vmem:[%s12060_s12 + $0x12a0] ss:$16 sps:$4 sm:$0xff]  }
 0x3c0   : > { %7110 = vmatpush1.bf16.msra.mxu0 %v10018_v54  ;;  %7643 = vmatpush1.bf16.msra.mxu1 %v10021_v44  ;;  %v10105_v54 = vld [vmem:[%s12060_s12 + $0x12a8] ss:$16 sps:$4 sm:$0xff]   ;;  %v10110_v44 = vld [vmem:[%s12060_s12 + $0x12c4] ss:$16 sps:$4 sm:$0xff]  }
 0x3c1   : > { %7111 = vmatprep.subr.bf16.mxu0 %v10026_v55  ;;  %7644 = vmatprep.subr.bf16.mxu1 %v10029_v56  ;;  %v10113_v55 = vld [vmem:[%s12060_s12 + $0x12cc] ss:$16 sps:$4 sm:$0xff]   ;;  %v10108_v56 = vld [vmem:[%s12060_s12 + $0x12c0] ss:$16 sps:$4 sm:$0xff]  }
 0x3c4   : > { %7112 = vmatpush1.bf16.msra.mxu0 %v10024_v57  ;;  %7645 = vmatpush1.bf16.msra.mxu1 %v10027_v45  ;;  %v10111_v57 = vld [vmem:[%s12060_s12 + $0x12c8] ss:$16 sps:$4 sm:$0xff]   ;;  %v10116_v45 = vld [vmem:[%s12060_s12 + $0x12e4] ss:$16 sps:$4 sm:$0xff]  }
 0x3c5   : > { %7113 = vmatprep.subr.bf16.mxu0 %v10032_v59  ;;  %7646 = vmatprep.subr.bf16.mxu1 %v10035_v43  ;;  %v10119_v59 = vld [vmem:[%s12060_s12 + $0x12ec] ss:$16 sps:$4 sm:$0xff]   ;;  %v10114_v43 = vld [vmem:[%s12060_s12 + $0x12e0] ss:$16 sps:$4 sm:$0xff]  }
 0x3c8   : > { %7114 = vmatpush1.bf16.msra.mxu0 %v10030_v61  ;;  %7647 = vmatpush1.bf16.msra.mxu1 %v10033_v62  ;;  %v10117_v61 = vld [vmem:[%s12060_s12 + $0x12e8] ss:$16 sps:$4 sm:$0xff]   ;;  %v10122_v62 = vld [vmem:[%s12060_s12 + $0x1304] ss:$16 sps:$4 sm:$0xff]  }
 0x3c9   : > { %7115 = vmatprep.subr.bf16.mxu0 %v10038_v63  ;;  %7648 = vmatprep.subr.bf16.mxu1 %v10041_v1  ;;  %v10125_v63 = vld [vmem:[%s12060_s12 + $0x130c] ss:$16 sps:$4 sm:$0xff]   ;;  %v10120_v1 = vld [vmem:[%s12060_s12 + $0x1300] ss:$16 sps:$4 sm:$0xff]  }
 0x3cc   : > { %7116 = vmatpush1.bf16.msra.mxu0 %v10036_v2  ;;  %7649 = vmatpush1.bf16.msra.mxu1 %v10039_v3  ;;  %v10123_v2 = vld [vmem:[%s12060_s12 + $0x1308] ss:$16 sps:$4 sm:$0xff]   ;;  %v10128_v3 = vld [vmem:[%s12060_s12 + $0x1324] ss:$16 sps:$4 sm:$0xff]  }
 0x3cd   : > { %7117 = vmatprep.subr.bf16.mxu0 %v10044_v50  ;;  %7650 = vmatprep.subr.bf16.mxu1 %v10047_v4  ;;  %v10131_v50 = vld [vmem:[%s12060_s12 + $0x132c] ss:$16 sps:$4 sm:$0xff]   ;;  %v10126_v4 = vld [vmem:[%s12060_s12 + $0x1320] ss:$16 sps:$4 sm:$0xff]  }
 0x3d0   : > { %7118 = vmatpush1.bf16.msra.mxu0 %v10042_v5  ;;  %7651 = vmatpush1.bf16.msra.mxu1 %v10045_v6  ;;  %v10129_v5 = vld [vmem:[%s12060_s12 + $0x1328] ss:$16 sps:$4 sm:$0xff]   ;;  %v10134_v6 = vld [vmem:[%s12060_s12 + $0x1344] ss:$16 sps:$4 sm:$0xff]  }
 0x3d1   : > { %7119 = vmatprep.subr.bf16.mxu0 %v10050_v7  ;;  %7652 = vmatprep.subr.bf16.mxu1 %v10053_v60  ;;  %v10137_v7 = vld [vmem:[%s12060_s12 + $0x134c] ss:$16 sps:$4 sm:$0xff]   ;;  %v10132_v60 = vld [vmem:[%s12060_s12 + $0x1340] ss:$16 sps:$4 sm:$0xff]  }
 0x3d4   : > { %7120 = vmatpush1.bf16.msra.mxu0 %v10048_v9  ;;  %7653 = vmatpush1.bf16.msra.mxu1 %v10051_v58  ;;  %v10135_v9 = vld [vmem:[%s12060_s12 + $0x1348] ss:$16 sps:$4 sm:$0xff]   ;;  %v10140_v58 = vld [vmem:[%s12060_s12 + $0x1364] ss:$16 sps:$4 sm:$0xff]  }
 0x3d5   : > { %7121 = vmatprep.subr.bf16.mxu0 %v10056_v11  ;;  %7654 = vmatprep.subr.bf16.mxu1 %v10059_v12  ;;  %v10143_v11 = vld [vmem:[%s12060_s12 + $0x136c] ss:$16 sps:$4 sm:$0xff]   ;;  %v10138_v12 = vld [vmem:[%s12060_s12 + $0x1360] ss:$16 sps:$4 sm:$0xff]  }
 0x3d8   : > { %7122 = vmatpush1.bf16.msra.mxu0 %v10054_v13  ;;  %7655 = vmatpush1.bf16.msra.mxu1 %v10057_v15  ;;  %v10141_v13 = vld [vmem:[%s12060_s12 + $0x1368] ss:$16 sps:$4 sm:$0xff]   ;;  %v10146_v15 = vld [vmem:[%s12060_s12 + $0x1384] ss:$16 sps:$4 sm:$0xff]  }
 0x3d9   : > { %7123 = vmatprep.subr.bf16.mxu0 %v10062_v16  ;;  %7656 = vmatprep.subr.bf16.mxu1 %v10065_v17  ;;  %v10149_v16 = vld [vmem:[%s12060_s12 + $0x138c] ss:$16 sps:$4 sm:$0xff]   ;;  %v10144_v17 = vld [vmem:[%s12060_s12 + $0x1380] ss:$16 sps:$4 sm:$0xff]  }
 0x3dc   : > { %7124 = vmatpush1.bf16.msra.mxu0 %v10060_v18  ;;  %7657 = vmatpush1.bf16.msra.mxu1 %v10063_v21  ;;  %v10152_v18 = vld [vmem:[%s12060_s12 + $0x13a4] ss:$16 sps:$4 sm:$0xff]   ;;  %v10155_v21 = vld [vmem:[%s12060_s12 + $0x13ac] ss:$16 sps:$4 sm:$0xff]  }
 0x3dd   : > { %7125 = vmatprep.subr.bf16.mxu0 %v10068_v22  ;;  %7658 = vmatprep.subr.bf16.mxu1 %v10071_v23  ;;  %v10150_v22 = vld [vmem:[%s12060_s12 + $0x13a0] ss:$16 sps:$4 sm:$0xff]   ;;  %v10153_v23 = vld [vmem:[%s12060_s12 + $0x13a8] ss:$16 sps:$4 sm:$0xff]  }
 0x3e0   : > { %7126 = vmatpush1.bf16.msra.mxu0 %v10066_v10  ;;  %7659 = vmatpush1.bf16.msra.mxu1 %v10069_v26  ;;  %v10158_v10 = vld [vmem:[%s12060_s12 + $0x13c4] ss:$16 sps:$4 sm:$0xff]   ;;  %v10161_v26 = vld [vmem:[%s12060_s12 + $0x13cc] ss:$16 sps:$4 sm:$0xff]  }
 0x3e1   : > { %7136 = vmatprep.subr.bf16.mxu0 %v10074_v27  ;;  %7669 = vmatprep.subr.bf16.mxu1 %v10077_v8  ;;  %v12805_v27 = vld [vmem:[%s13081_s0 + $0x28] sm:$0xff]  ;;  %v10156_v8 = vld [vmem:[%s12060_s12 + $0x13c0] ss:$16 sps:$4 sm:$0xff]  }
 0x3e3   : > { %7128 = vmatmul.mubr.bf16.vlgmr.msra.gmra.mrb[0].mxu0 %v2028_v31  ;;  %7661 = vmatmul.mubr.bf16.vlgmr.msra.gmra.mrb[0].mxu1 %v2028_v31  ;;  %v10164_v31 = vld [vmem:[%s12060_s12 + $0x13e4] ss:$16 sps:$4 sm:$0xff]  }
 0x3e4   : > { %7137 = vmatpush1.bf16.msra.mxu0 %v10072_v20  ;;  %7670 = vmatpush1.bf16.msra.mxu1 %v10075_v32  ;;  %v10167_v20 = vld [vmem:[%s12060_s12 + $0x13ec] ss:$16 sps:$4 sm:$0xff]   ;;  %v12813_v32 = vrot.slane %v12805_v27, %v12065_v24 }
 0x3e5   : > { %7138 = vmatprep.subr.bf16.mxu0 %v10080_v33  ;;  %7671 = vmatprep.subr.bf16.mxu1 %v10083_v34  ;;  %v10162_v33 = vld [vmem:[%s12060_s12 + $0x13e0] ss:$16 sps:$4 sm:$0xff]   ;;  %v10165_v34 = vld [vmem:[%s12060_s12 + $0x13e8] ss:$16 sps:$4 sm:$0xff]  }
 0x3e6   : > { %7168 = vmatprep.mubr.bf16.mxu0 %v2031_v35  ;;  %7701 = vmatprep.mubr.bf16.mxu1 %v2031_v35  ;;  %v10171_v35 = vld [vmem:[%s12060_s12 + $0x1404] ss:$16 sps:$4 sm:$0xff]  }
 0x3e8   : > { %7139 = vmatpush1.bf16.msra.mxu0 %v10078_v14  ;;  %7672 = vmatpush1.bf16.msra.mxu1 %v10081_v36  ;;  %v10174_v14 = vld [vmem:[%s12060_s12 + $0x140c] ss:$16 sps:$4 sm:$0xff]   ;;  %v1978_v36 = vcombine.high %v12813_v32, %v12813_v32 }
 0x3e9   : > { %7140 = vmatprep.subr.bf16.mxu0 %v10086_v37  ;;  %7673 = vmatprep.subr.bf16.mxu1 %v10089_v38  ;;  %v2030_v37 = vpack.c.bf16 %v12736_v25, %v12736_v25  ;;  %v10169_v38 = vld [vmem:[%s12060_s12 + $0x1400] ss:$16 sps:$4 sm:$0xff]  }
 0x3ea   : > { %v10175_v25 = vld [vmem:[%s12060_s12 + $0x1420] ss:$16 sps:$4 sm:$0xff]  }
 0x3ec   : > { %7141 = vmatpush1.bf16.msra.mxu0 %v10084_v39  ;;  %7674 = vmatpush1.bf16.msra.mxu1 %v10087_v40  ;;  %v10172_v39 = vld [vmem:[%s12060_s12 + $0x1408] ss:$16 sps:$4 sm:$0xff]   ;;  %v10177_v40 = vld [vmem:[%s12060_s12 + $0x1424] ss:$16 sps:$4 sm:$0xff]  }
 0x3ed   : > { %7142 = vmatprep.subr.bf16.mxu0 %v10092_v41  ;;  %7675 = vmatprep.subr.bf16.mxu1 %v10095_v42  ;;  %v10180_v41 = vld [vmem:[%s12060_s12 + $0x142c] ss:$16 sps:$4 sm:$0xff]   ;;  %v2033_v42 = vpack.c.bf16 %v1978_v36, %v1978_v36  ;;  %v10253_v36 = vld [vmem:[%s12060_s12 + $0x15c0] ss:$16 sps:$4 sm:$0xff]  }
 0x3f0   : > { %7143 = vmatpush1.bf16.msra.mxu0 %v10090_v29  ;;  %7676 = vmatpush1.bf16.msra.mxu1 %v10093_v28  ;;  %v10178_v29 = vld [vmem:[%s12060_s12 + $0x1428] ss:$16 sps:$4 sm:$0xff]   ;;  %v10183_v28 = vld [vmem:[%s12060_s12 + $0x1444] ss:$16 sps:$4 sm:$0xff]  }
 0x3f1   : > { %7144 = vmatprep.subr.bf16.mxu0 %v10098_v46  ;;  %7677 = vmatprep.subr.bf16.mxu1 %v10101_v47  ;;  %v10186_v46 = vld [vmem:[%s12060_s12 + $0x144c] ss:$16 sps:$4 sm:$0xff]   ;;  %v10181_v47 = vld [vmem:[%s12060_s12 + $0x1440] ss:$16 sps:$4 sm:$0xff]  }
 0x3f4   : > { %7145 = vmatpush1.bf16.msra.mxu0 %v10096_v48  ;;  %7678 = vmatpush1.bf16.msra.mxu1 %v10099_v49  ;;  %v10184_v48 = vld [vmem:[%s12060_s12 + $0x1448] ss:$16 sps:$4 sm:$0xff]   ;;  %v10189_v49 = vld [vmem:[%s12060_s12 + $0x1464] ss:$16 sps:$4 sm:$0xff]  }
 0x3f5   : > { %7146 = vmatprep.subr.bf16.mxu0 %v10104_v51  ;;  %7679 = vmatprep.subr.bf16.mxu1 %v10107_v52  ;;  %v10192_v51 = vld [vmem:[%s12060_s12 + $0x146c] ss:$16 sps:$4 sm:$0xff]   ;;  %v10187_v52 = vld [vmem:[%s12060_s12 + $0x1460] ss:$16 sps:$4 sm:$0xff]  }
 0x3f8   : > { %7147 = vmatpush1.bf16.msra.mxu0 %v10102_v53  ;;  %7680 = vmatpush1.bf16.msra.mxu1 %v10105_v54  ;;  %v10190_v53 = vld [vmem:[%s12060_s12 + $0x1468] ss:$16 sps:$4 sm:$0xff]   ;;  %v10195_v54 = vld [vmem:[%s12060_s12 + $0x1484] ss:$16 sps:$4 sm:$0xff]  }
 0x3f9   : > { %7148 = vmatprep.subr.bf16.mxu0 %v10110_v44  ;;  %7681 = vmatprep.subr.bf16.mxu1 %v10113_v55  ;;  %v10198_v44 = vld [vmem:[%s12060_s12 + $0x148c] ss:$16 sps:$4 sm:$0xff]   ;;  %v10193_v55 = vld [vmem:[%s12060_s12 + $0x1480] ss:$16 sps:$4 sm:$0xff]  }
 0x3fc   : > { %7149 = vmatpush1.bf16.msra.mxu0 %v10108_v56  ;;  %7682 = vmatpush1.bf16.msra.mxu1 %v10111_v57  ;;  %v10196_v56 = vld [vmem:[%s12060_s12 + $0x1488] ss:$16 sps:$4 sm:$0xff]   ;;  %v10201_v57 = vld [vmem:[%s12060_s12 + $0x14a4] ss:$16 sps:$4 sm:$0xff]  }
 0x3fd   : > { %7150 = vmatprep.subr.bf16.mxu0 %v10116_v45  ;;  %7683 = vmatprep.subr.bf16.mxu1 %v10119_v59  ;;  %v10204_v45 = vld [vmem:[%s12060_s12 + $0x14ac] ss:$16 sps:$4 sm:$0xff]   ;;  %v10199_v59 = vld [vmem:[%s12060_s12 + $0x14a0] ss:$16 sps:$4 sm:$0xff]  }
 0x400   : > { %7151 = vmatpush1.bf16.msra.mxu0 %v10114_v43  ;;  %7684 = vmatpush1.bf16.msra.mxu1 %v10117_v61  ;;  %v10202_v43 = vld [vmem:[%s12060_s12 + $0x14a8] ss:$16 sps:$4 sm:$0xff]   ;;  %v10207_v61 = vld [vmem:[%s12060_s12 + $0x14c4] ss:$16 sps:$4 sm:$0xff]  }
 0x401   : > { %7152 = vmatprep.subr.bf16.mxu0 %v10122_v62  ;;  %7685 = vmatprep.subr.bf16.mxu1 %v10125_v63  ;;  %v10210_v62 = vld [vmem:[%s12060_s12 + $0x14cc] ss:$16 sps:$4 sm:$0xff]   ;;  %v10205_v63 = vld [vmem:[%s12060_s12 + $0x14c0] ss:$16 sps:$4 sm:$0xff]  }
 0x404   : > { %7153 = vmatpush1.bf16.msra.mxu0 %v10120_v1  ;;  %7686 = vmatpush1.bf16.msra.mxu1 %v10123_v2  ;;  %v10208_v1 = vld [vmem:[%s12060_s12 + $0x14c8] ss:$16 sps:$4 sm:$0xff]   ;;  %v10213_v2 = vld [vmem:[%s12060_s12 + $0x14e4] ss:$16 sps:$4 sm:$0xff]  }
 0x405   : > { %7154 = vmatprep.subr.bf16.mxu0 %v10128_v3  ;;  %7687 = vmatprep.subr.bf16.mxu1 %v10131_v50  ;;  %v10216_v3 = vld [vmem:[%s12060_s12 + $0x14ec] ss:$16 sps:$4 sm:$0xff]   ;;  %v10211_v50 = vld [vmem:[%s12060_s12 + $0x14e0] ss:$16 sps:$4 sm:$0xff]  }
 0x408   : > { %7155 = vmatpush1.bf16.msra.mxu0 %v10126_v4  ;;  %7688 = vmatpush1.bf16.msra.mxu1 %v10129_v5  ;;  %v10214_v4 = vld [vmem:[%s12060_s12 + $0x14e8] ss:$16 sps:$4 sm:$0xff]   ;;  %v10219_v5 = vld [vmem:[%s12060_s12 + $0x1504] ss:$16 sps:$4 sm:$0xff]  }
 0x409   : > { %7156 = vmatprep.subr.bf16.mxu0 %v10134_v6  ;;  %7689 = vmatprep.subr.bf16.mxu1 %v10137_v7  ;;  %v10222_v6 = vld [vmem:[%s12060_s12 + $0x150c] ss:$16 sps:$4 sm:$0xff]   ;;  %v10217_v7 = vld [vmem:[%s12060_s12 + $0x1500] ss:$16 sps:$4 sm:$0xff]  }
 0x40c   : > { %7157 = vmatpush1.bf16.msra.mxu0 %v10132_v60  ;;  %7690 = vmatpush1.bf16.msra.mxu1 %v10135_v9  ;;  %v10220_v60 = vld [vmem:[%s12060_s12 + $0x1508] ss:$16 sps:$4 sm:$0xff]   ;;  %v10225_v9 = vld [vmem:[%s12060_s12 + $0x1524] ss:$16 sps:$4 sm:$0xff]  }
 0x40d   : > { %7158 = vmatprep.subr.bf16.mxu0 %v10140_v58  ;;  %7691 = vmatprep.subr.bf16.mxu1 %v10143_v11  ;;  %v10228_v58 = vld [vmem:[%s12060_s12 + $0x152c] ss:$16 sps:$4 sm:$0xff]   ;;  %v10223_v11 = vld [vmem:[%s12060_s12 + $0x1520] ss:$16 sps:$4 sm:$0xff]  }
 0x410   : > { %7159 = vmatpush1.bf16.msra.mxu0 %v10138_v12  ;;  %7692 = vmatpush1.bf16.msra.mxu1 %v10141_v13  ;;  %v10226_v12 = vld [vmem:[%s12060_s12 + $0x1528] ss:$16 sps:$4 sm:$0xff]   ;;  %v10231_v13 = vld [vmem:[%s12060_s12 + $0x1544] ss:$16 sps:$4 sm:$0xff]  }
 0x411   : > { %7160 = vmatprep.subr.bf16.mxu0 %v10146_v15  ;;  %7693 = vmatprep.subr.bf16.mxu1 %v10149_v16  ;;  %v10234_v15 = vld [vmem:[%s12060_s12 + $0x154c] ss:$16 sps:$4 sm:$0xff]   ;;  %v10229_v16 = vld [vmem:[%s12060_s12 + $0x1540] ss:$16 sps:$4 sm:$0xff]  }
 0x414   : > { %7161 = vmatpush1.bf16.msra.mxu0 %v10144_v17  ;;  %7694 = vmatpush1.bf16.msra.mxu1 %v10147_v0  ;;  %v10232_v17 = vld [vmem:[%s12060_s12 + $0x1548] ss:$16 sps:$4 sm:$0xff]   ;;  %v10237_v0 = vld [vmem:[%s12060_s12 + $0x1564] ss:$16 sps:$4 sm:$0xff]  }
 0x415   : > { %7162 = vmatprep.subr.bf16.mxu0 %v10152_v18  ;;  %7695 = vmatprep.subr.bf16.mxu1 %v10155_v21  ;;  %v10240_v18 = vld [vmem:[%s12060_s12 + $0x156c] ss:$16 sps:$4 sm:$0xff]   ;;  %v10235_v21 = vld [vmem:[%s12060_s12 + $0x1560] ss:$16 sps:$4 sm:$0xff]  }
 0x418   : > { %7163 = vmatpush1.bf16.msra.mxu0 %v10150_v22  ;;  %7696 = vmatpush1.bf16.msra.mxu1 %v10153_v23  ;;  %v10238_v22 = vld [vmem:[%s12060_s12 + $0x1568] ss:$16 sps:$4 sm:$0xff]   ;;  %v10243_v23 = vld [vmem:[%s12060_s12 + $0x1584] ss:$16 sps:$4 sm:$0xff]  }
 0x419   : > { %7164 = vmatprep.subr.bf16.mxu0 %v10158_v10  ;;  %7697 = vmatprep.subr.bf16.mxu1 %v10161_v26  ;;  %v10246_v10 = vld [vmem:[%s12060_s12 + $0x158c] ss:$16 sps:$4 sm:$0xff]   ;;  %v10241_v26 = vld [vmem:[%s12060_s12 + $0x1580] ss:$16 sps:$4 sm:$0xff]  }
 0x41c   : > { %7165 = vmatpush1.bf16.msra.mxu0 %v10156_v8  ;;  %7698 = vmatpush1.bf16.msra.mxu1 %v10159_v30  ;;  %v10244_v8 = vld [vmem:[%s12060_s12 + $0x1588] ss:$16 sps:$4 sm:$0xff]   ;;  %v10249_v30 = vld [vmem:[%s12060_s12 + $0x15a4] ss:$16 sps:$4 sm:$0xff]  }
 0x41d   : > { %7166 = vmatprep.subr.bf16.mxu0 %v10164_v31  ;;  %7699 = vmatprep.subr.bf16.mxu1 %v10167_v20  ;;  %v10252_v31 = vld [vmem:[%s12060_s12 + $0x15ac] ss:$16 sps:$4 sm:$0xff]   ;;  %v10247_v20 = vld [vmem:[%s12060_s12 + $0x15a0] ss:$16 sps:$4 sm:$0xff]  }
 0x420   : > { %7167 = vmatpush1.bf16.msra.mxu0 %v10162_v33  ;;  %7700 = vmatpush1.bf16.msra.mxu1 %v10165_v34  ;;  %v10250_v33 = vld [vmem:[%s12060_s12 + $0x15a8] ss:$16 sps:$4 sm:$0xff]   ;;  %v10255_v34 = vld [vmem:[%s12060_s12 + $0x15c4] ss:$16 sps:$4 sm:$0xff]  }
 0x421   : > { %7177 = vmatprep.subr.bf16.mxu0 %v10171_v35  ;;  %7710 = vmatprep.subr.bf16.mxu1 %v10174_v14  ;;  %v10258_v35 = vld [vmem:[%s12060_s12 + $0x15cc] ss:$16 sps:$4 sm:$0xff]   ;;  %v1963_v14 = vcombine.high %v12805_v27, %v12805_v27  ;;  %v10259_v27 = vld [vmem:[%s12060_s12 + $0x15e0] ss:$16 sps:$4 sm:$0xff]  }
 0x423   : > { %7169 = vmatmul.mubr.bf16.vlgmr.msra.gmra.mrb[0].mxu0 %v2030_v37  ;;  %7702 = vmatmul.mubr.bf16.vlgmr.msra.gmra.mrb[0].mxu1 %v2030_v37  ;;  %v10256_v37 = vld [vmem:[%s12060_s12 + $0x15c8] ss:$16 sps:$4 sm:$0xff]  }
 0x424   : > { %7178 = vmatpush1.bf16.msra.mxu0 %v10169_v38  ;;  %7711 = vmatpush1.bf16.msra.mxu1 %v10172_v39  ;;  %v10261_v38 = vld [vmem:[%s12060_s12 + $0x15e4] ss:$16 sps:$4 sm:$0xff]   ;;  %v10264_v39 = vld [vmem:[%s12060_s12 + $0x15ec] ss:$16 sps:$4 sm:$0xff]  }
 0x425   : > { %7179 = vmatprep.subr.bf16.mxu0 %v10177_v40  ;;  %7712 = vmatprep.subr.bf16.mxu1 %v10180_v41  ;;  %v12886_v40 = vrot.slane %v1963_v14, %v12065_v24  ;;  %v10262_v41 = vld [vmem:[%s12060_s12 + $0x15e8] ss:$16 sps:$4 sm:$0xff]   ;;  %v10265_v24 = vld [vmem:[%s12060_s12 + $0x1600] ss:$16 sps:$4 sm:$0xff]   ;;  %v10345_v14 = vld [vmem:[%s12060_s12 + $0x17a4] ss:$16 sps:$4 sm:$0xff]  }
 0x426   : > { %7209 = vmatprep.mubr.bf16.mxu0 %v2033_v42  ;;  %7742 = vmatprep.mubr.bf16.mxu1 %v2033_v42  ;;  %v10267_v42 = vld [vmem:[%s12060_s12 + $0x1604] ss:$16 sps:$4 sm:$0xff]  }
 0x428   : > { %7180 = vmatpush1.bf16.msra.mxu0 %v10175_v25  ;;  %7713 = vmatpush1.bf16.msra.mxu1 %v10178_v29  ;;  %v10270_v25 = vld [vmem:[%s12060_s12 + $0x160c] ss:$16 sps:$4 sm:$0xff]   ;;  %v1979_v29 = vcombine.high %v12886_v40, %v12886_v40 }
 0x429   : > { %7181 = vmatprep.subr.bf16.mxu0 %v10183_v28  ;;  %7714 = vmatprep.subr.bf16.mxu1 %v10186_v46  ;;  %v2032_v28 = vpack.c.bf16 %v12813_v32, %v12813_v32  ;;  %v10268_v46 = vld [vmem:[%s12060_s12 + $0x1608] ss:$16 sps:$4 sm:$0xff]   ;;  %v10271_v32 = vld [vmem:[%s12060_s12 + $0x1620] ss:$16 sps:$4 sm:$0xff]  }
 0x42c   : > { %7182 = vmatpush1.bf16.msra.mxu0 %v10181_v47  ;;  %7715 = vmatpush1.bf16.msra.mxu1 %v10184_v48  ;;  %v10273_v47 = vld [vmem:[%s12060_s12 + $0x1624] ss:$16 sps:$4 sm:$0xff]   ;;  %v10276_v48 = vld [vmem:[%s12060_s12 + $0x162c] ss:$16 sps:$4 sm:$0xff]  }
 0x42d   : > { %7183 = vmatprep.subr.bf16.mxu0 %v10189_v49  ;;  %7716 = vmatprep.subr.bf16.mxu1 %v10192_v51  ;;  %v2035_v49 = vpack.c.bf16 %v1979_v29, %v1979_v29  ;;  %v10274_v51 = vld [vmem:[%s12060_s12 + $0x1628] ss:$16 sps:$4 sm:$0xff]   ;;  %v10360_v29 = vld [vmem:[%s12060_s12 + $0x17ec] ss:$16 sps:$4 sm:$0xff]  }
 0x430   : > { %7184 = vmatpush1.bf16.msra.mxu0 %v10187_v52  ;;  %7717 = vmatpush1.bf16.msra.mxu1 %v10190_v53  ;;  %v10279_v52 = vld [vmem:[%s12060_s12 + $0x1644] ss:$16 sps:$4 sm:$0xff]   ;;  %v10282_v53 = vld [vmem:[%s12060_s12 + $0x164c] ss:$16 sps:$4 sm:$0xff]  }
 0x431   : > { %7185 = vmatprep.subr.bf16.mxu0 %v10195_v54  ;;  %7718 = vmatprep.subr.bf16.mxu1 %v10198_v44  ;;  %v10277_v54 = vld [vmem:[%s12060_s12 + $0x1640] ss:$16 sps:$4 sm:$0xff]   ;;  %v10280_v44 = vld [vmem:[%s12060_s12 + $0x1648] ss:$16 sps:$4 sm:$0xff]  }
 0x434   : > { %7186 = vmatpush1.bf16.msra.mxu0 %v10193_v55  ;;  %7719 = vmatpush1.bf16.msra.mxu1 %v10196_v56  ;;  %v10285_v55 = vld [vmem:[%s12060_s12 + $0x1664] ss:$16 sps:$4 sm:$0xff]   ;;  %v10288_v56 = vld [vmem:[%s12060_s12 + $0x166c] ss:$16 sps:$4 sm:$0xff]  }
 0x435   : > { %7187 = vmatprep.subr.bf16.mxu0 %v10201_v57  ;;  %7720 = vmatprep.subr.bf16.mxu1 %v10204_v45  ;;  %v10283_v57 = vld [vmem:[%s12060_s12 + $0x1660] ss:$16 sps:$4 sm:$0xff]   ;;  %v10286_v45 = vld [vmem:[%s12060_s12 + $0x1668] ss:$16 sps:$4 sm:$0xff]  }
 0x438   : > { %7188 = vmatpush1.bf16.msra.mxu0 %v10199_v59  ;;  %7721 = vmatpush1.bf16.msra.mxu1 %v10202_v43  ;;  %v10291_v59 = vld [vmem:[%s12060_s12 + $0x1684] ss:$16 sps:$4 sm:$0xff]   ;;  %v10294_v43 = vld [vmem:[%s12060_s12 + $0x168c] ss:$16 sps:$4 sm:$0xff]  }
 0x439   : > { %7189 = vmatprep.subr.bf16.mxu0 %v10207_v61  ;;  %7722 = vmatprep.subr.bf16.mxu1 %v10210_v62  ;;  %v10289_v61 = vld [vmem:[%s12060_s12 + $0x1680] ss:$16 sps:$4 sm:$0xff]   ;;  %v10292_v62 = vld [vmem:[%s12060_s12 + $0x1688] ss:$16 sps:$4 sm:$0xff]  }
 0x43c   : > { %7190 = vmatpush1.bf16.msra.mxu0 %v10205_v63  ;;  %7723 = vmatpush1.bf16.msra.mxu1 %v10208_v1  ;;  %v10297_v63 = vld [vmem:[%s12060_s12 + $0x16a4] ss:$16 sps:$4 sm:$0xff]   ;;  %v10300_v1 = vld [vmem:[%s12060_s12 + $0x16ac] ss:$16 sps:$4 sm:$0xff]  }
 0x43d   : > { %7191 = vmatprep.subr.bf16.mxu0 %v10213_v2  ;;  %7724 = vmatprep.subr.bf16.mxu1 %v10216_v3  ;;  %v10295_v2 = vld [vmem:[%s12060_s12 + $0x16a0] ss:$16 sps:$4 sm:$0xff]   ;;  %v10298_v3 = vld [vmem:[%s12060_s12 + $0x16a8] ss:$16 sps:$4 sm:$0xff]  }
 0x440   : > { %7192 = vmatpush1.bf16.msra.mxu0 %v10211_v50  ;;  %7725 = vmatpush1.bf16.msra.mxu1 %v10214_v4  ;;  %v10303_v50 = vld [vmem:[%s12060_s12 + $0x16c4] ss:$16 sps:$4 sm:$0xff]   ;;  %v10306_v4 = vld [vmem:[%s12060_s12 + $0x16cc] ss:$16 sps:$4 sm:$0xff]  }
 0x441   : > { %7193 = vmatprep.subr.bf16.mxu0 %v10219_v5  ;;  %7726 = vmatprep.subr.bf16.mxu1 %v10222_v6  ;;  %v10301_v5 = vld [vmem:[%s12060_s12 + $0x16c0] ss:$16 sps:$4 sm:$0xff]   ;;  %v10304_v6 = vld [vmem:[%s12060_s12 + $0x16c8] ss:$16 sps:$4 sm:$0xff]  }
 0x444   : > { %7194 = vmatpush1.bf16.msra.mxu0 %v10217_v7  ;;  %7727 = vmatpush1.bf16.msra.mxu1 %v10220_v60  ;;  %v10309_v7 = vld [vmem:[%s12060_s12 + $0x16e4] ss:$16 sps:$4 sm:$0xff]   ;;  %v10312_v60 = vld [vmem:[%s12060_s12 + $0x16ec] ss:$16 sps:$4 sm:$0xff]  }
 0x445   : > { %7195 = vmatprep.subr.bf16.mxu0 %v10225_v9  ;;  %7728 = vmatprep.subr.bf16.mxu1 %v10228_v58  ;;  %v10307_v9 = vld [vmem:[%s12060_s12 + $0x16e0] ss:$16 sps:$4 sm:$0xff]   ;;  %v10310_v58 = vld [vmem:[%s12060_s12 + $0x16e8] ss:$16 sps:$4 sm:$0xff]  }
 0x448   : > { %7196 = vmatpush1.bf16.msra.mxu0 %v10223_v11  ;;  %7729 = vmatpush1.bf16.msra.mxu1 %v10226_v12  ;;  %v10315_v11 = vld [vmem:[%s12060_s12 + $0x1704] ss:$16 sps:$4 sm:$0xff]   ;;  %v10318_v12 = vld [vmem:[%s12060_s12 + $0x170c] ss:$16 sps:$4 sm:$0xff]  }
 0x449   : > { %7197 = vmatprep.subr.bf16.mxu0 %v10231_v13  ;;  %7730 = vmatprep.subr.bf16.mxu1 %v10234_v15  ;;  %v10313_v13 = vld [vmem:[%s12060_s12 + $0x1700] ss:$16 sps:$4 sm:$0xff]   ;;  %v10316_v15 = vld [vmem:[%s12060_s12 + $0x1708] ss:$16 sps:$4 sm:$0xff]  }
 0x44c   : > { %7198 = vmatpush1.bf16.msra.mxu0 %v10229_v16  ;;  %7731 = vmatpush1.bf16.msra.mxu1 %v10232_v17  ;;  %v10321_v16 = vld [vmem:[%s12060_s12 + $0x1724] ss:$16 sps:$4 sm:$0xff]   ;;  %v10324_v17 = vld [vmem:[%s12060_s12 + $0x172c] ss:$16 sps:$4 sm:$0xff]  }
 0x44d   : > { %7199 = vmatprep.subr.bf16.mxu0 %v10237_v0  ;;  %7732 = vmatprep.subr.bf16.mxu1 %v10240_v18  ;;  %v10319_v0 = vld [vmem:[%s12060_s12 + $0x1720] ss:$16 sps:$4 sm:$0xff]   ;;  %v10322_v18 = vld [vmem:[%s12060_s12 + $0x1728] ss:$16 sps:$4 sm:$0xff]  }
 0x450   : > { %7200 = vmatpush1.bf16.msra.mxu0 %v10235_v21  ;;  %7733 = vmatpush1.bf16.msra.mxu1 %v10238_v22  ;;  %v10327_v21 = vld [vmem:[%s12060_s12 + $0x1744] ss:$16 sps:$4 sm:$0xff]   ;;  %v10330_v22 = vld [vmem:[%s12060_s12 + $0x174c] ss:$16 sps:$4 sm:$0xff]  }
 0x451   : > { %7201 = vmatprep.subr.bf16.mxu0 %v10243_v23  ;;  %7734 = vmatprep.subr.bf16.mxu1 %v10246_v10  ;;  %v10325_v23 = vld [vmem:[%s12060_s12 + $0x1740] ss:$16 sps:$4 sm:$0xff]   ;;  %v10328_v10 = vld [vmem:[%s12060_s12 + $0x1748] ss:$16 sps:$4 sm:$0xff]  }
 0x454   : > { %7202 = vmatpush1.bf16.msra.mxu0 %v10241_v26  ;;  %7735 = vmatpush1.bf16.msra.mxu1 %v10244_v8  ;;  %v10333_v26 = vld [vmem:[%s12060_s12 + $0x1764] ss:$16 sps:$4 sm:$0xff]   ;;  %v10336_v8 = vld [vmem:[%s12060_s12 + $0x176c] ss:$16 sps:$4 sm:$0xff]  }
 0x455   : > { %7203 = vmatprep.subr.bf16.mxu0 %v10249_v30  ;;  %7736 = vmatprep.subr.bf16.mxu1 %v10252_v31  ;;  %v10331_v30 = vld [vmem:[%s12060_s12 + $0x1760] ss:$16 sps:$4 sm:$0xff]   ;;  %v10334_v31 = vld [vmem:[%s12060_s12 + $0x1768] ss:$16 sps:$4 sm:$0xff]  }
 0x458   : > { %7204 = vmatpush1.bf16.msra.mxu0 %v10247_v20  ;;  %7737 = vmatpush1.bf16.msra.mxu1 %v10250_v33  ;;  %v10339_v20 = vld [vmem:[%s12060_s12 + $0x1784] ss:$16 sps:$4 sm:$0xff]   ;;  %v10342_v33 = vld [vmem:[%s12060_s12 + $0x178c] ss:$16 sps:$4 sm:$0xff]  }
 0x459   : > { %7205 = vmatprep.subr.bf16.mxu0 %v10255_v34  ;;  %7738 = vmatprep.subr.bf16.mxu1 %v10258_v35  ;;  %v10337_v34 = vld [vmem:[%s12060_s12 + $0x1780] ss:$16 sps:$4 sm:$0xff]   ;;  %v10340_v35 = vld [vmem:[%s12060_s12 + $0x1788] ss:$16 sps:$4 sm:$0xff]  }
 0x45c   : > { %7206 = vmatpush1.bf16.msra.mxu0 %v10253_v36  ;;  %7739 = vmatpush1.bf16.msra.mxu1 %v10256_v37  ;;  %v10348_v36 = vld [vmem:[%s12060_s12 + $0x17ac] ss:$16 sps:$4 sm:$0xff]   ;;  %v10343_v37 = vld [vmem:[%s12060_s12 + $0x17a0] ss:$16 sps:$4 sm:$0xff]  }
 0x45d   : > { %7207 = vmatprep.subr.bf16.mxu0 %v10261_v38  ;;  %7740 = vmatprep.subr.bf16.mxu1 %v10264_v39  ;;  %v10346_v38 = vld [vmem:[%s12060_s12 + $0x17a8] ss:$16 sps:$4 sm:$0xff]   ;;  %v10351_v39 = vld [vmem:[%s12060_s12 + $0x17c4] ss:$16 sps:$4 sm:$0xff]  }
 0x460   : > { %7208 = vmatpush1.bf16.msra.mxu0 %v10259_v27  ;;  %7741 = vmatpush1.bf16.msra.mxu1 %v10262_v41  ;;  %v10354_v27 = vld [vmem:[%s12060_s12 + $0x17cc] ss:$16 sps:$4 sm:$0xff]   ;;  %v10349_v41 = vld [vmem:[%s12060_s12 + $0x17c0] ss:$16 sps:$4 sm:$0xff]  }
 0x461   : > { %7218 = vmatprep.subr.bf16.mxu0 %v10267_v42  ;;  %7751 = vmatprep.subr.bf16.mxu1 %v10270_v25  ;;  %v10352_v42 = vld [vmem:[%s12060_s12 + $0x17c8] ss:$16 sps:$4 sm:$0xff]   ;;  %v10357_v25 = vld [vmem:[%s12060_s12 + $0x17e4] ss:$16 sps:$4 sm:$0xff]  }
 0x463   : > { %7210 = vmatmul.mubr.bf16.vlgmr.msra.gmra.mrb[0].mxu0 %v2032_v28  ;;  %7743 = vmatmul.mubr.bf16.vlgmr.msra.gmra.mrb[0].mxu1 %v2032_v28  ;;  %v10355_v28 = vld [vmem:[%s12060_s12 + $0x17e0] ss:$16 sps:$4 sm:$0xff]  }
 0x464   : > { %7219 = vmatpush1.bf16.msra.mxu0 %v10265_v24  ;;  %7752 = vmatpush1.bf16.msra.mxu1 %v10268_v46  ;;  %v10358_v24 = vld [vmem:[%s12060_s12 + $0x17e8] ss:$16 sps:$4 sm:$0xff]   ;;  %v10364_v46 = vld [vmem:[%s12060_s12 + $0x1804] ss:$16 sps:$4 sm:$0xff]  }
 0x465   : > { %7220 = vmatprep.subr.bf16.mxu0 %v10273_v47  ;;  %7753 = vmatprep.subr.bf16.mxu1 %v10276_v48  ;;  %v10367_v47 = vld [vmem:[%s12060_s12 + $0x180c] ss:$16 sps:$4 sm:$0xff]   ;;  %v2034_v48 = vpack.c.bf16 %v12886_v40, %v12886_v40  ;;  %v10368_v40 = vld [vmem:[%s12060_s12 + $0x1820] ss:$16 sps:$4 sm:$0xff]  }
 0x466   : > { %7250 = vmatprep.mubr.bf16.mxu0 %v2035_v49  ;;  %7783 = vmatprep.mubr.bf16.mxu1 %v2035_v49  ;;  %v10362_v49 = vld [vmem:[%s12060_s12 + $0x1800] ss:$16 sps:$4 sm:$0xff]  }
 0x468   : > { %7221 = vmatpush1.bf16.msra.mxu0 %v10271_v32  ;;  %7754 = vmatpush1.bf16.msra.mxu1 %v10274_v51  ;;  %v10365_v32 = vld [vmem:[%s12060_s12 + $0x1808] ss:$16 sps:$4 sm:$0xff]   ;;  %v10370_v51 = vld [vmem:[%s12060_s12 + $0x1824] ss:$16 sps:$4 sm:$0xff]  }
 0x469   : > { %7222 = vmatprep.subr.bf16.mxu0 %v10279_v52  ;;  %7755 = vmatprep.subr.bf16.mxu1 %v10282_v53  ;;  %v10373_v52 = vld [vmem:[%s12060_s12 + $0x182c] ss:$16 sps:$4 sm:$0xff]   ;;  %v10371_v53 = vld [vmem:[%s12060_s12 + $0x1828] ss:$16 sps:$4 sm:$0xff]  }
 0x46c   : > { %7223 = vmatpush1.bf16.msra.mxu0 %v10277_v54  ;;  %7756 = vmatpush1.bf16.msra.mxu1 %v10280_v44  ;;  %v10376_v54 = vld [vmem:[%s12060_s12 + $0x1844] ss:$16 sps:$4 sm:$0xff]   ;;  %v10379_v44 = vld [vmem:[%s12060_s12 + $0x184c] ss:$16 sps:$4 sm:$0xff]  }
 0x46d   : > { %7224 = vmatprep.subr.bf16.mxu0 %v10285_v55  ;;  %7757 = vmatprep.subr.bf16.mxu1 %v10288_v56  ;;  %v10411_v55 = vmov 0   ;;  %v10374_v56 = vld [vmem:[%s12060_s12 + $0x1840] ss:$16 sps:$4 sm:$0xff]  }
 0x470   : > { %7225 = vmatpush1.bf16.msra.mxu0 %v10283_v57  ;;  %7758 = vmatpush1.bf16.msra.mxu1 %v10286_v45  ;;  %v10377_v57 = vld [vmem:[%s12060_s12 + $0x1848] ss:$16 sps:$4 sm:$0xff]   ;;  %v10382_v45 = vld [vmem:[%s12060_s12 + $0x1864] ss:$16 sps:$4 sm:$0xff]  }
 0x471   : > { %7226 = vmatprep.subr.bf16.mxu0 %v10291_v59  ;;  %7759 = vmatprep.subr.bf16.mxu1 %v10294_v43  ;;  %v10385_v59 = vld [vmem:[%s12060_s12 + $0x186c] ss:$16 sps:$4 sm:$0xff]   ;;  %v7853_v43 = vld [vmem:[%s12978_s6 + $0x80] sm:$0xff] }
 0x474   : > { %7227 = vmatpush1.bf16.msra.mxu0 %v10289_v61  ;;  %7760 = vmatpush1.bf16.msra.mxu1 %v10292_v62  ;;  %v7854_v61 = vld [vmem:[%s12978_s6 + $0x88] sm:$0xff]  ;;  %v7885_v62 = vld [vmem:[%s12978_s6 + $0x180] sm:$0xff] }
 0x475   : > { %7228 = vmatprep.subr.bf16.mxu0 %v10297_v63  ;;  %7761 = vmatprep.subr.bf16.mxu1 %v10300_v1  ;;  %v7886_v63 = vld [vmem:[%s12978_s6 + $0x188] sm:$0xff]  ;;  %v10380_v1 = vld [vmem:[%s12060_s12 + $0x1860] ss:$16 sps:$4 sm:$0xff]  }
 0x478   : > { %7229 = vmatpush1.bf16.msra.mxu0 %v10295_v2  ;;  %7762 = vmatpush1.bf16.msra.mxu1 %v10298_v3  ;;  %v10383_v2 = vld [vmem:[%s12060_s12 + $0x1868] ss:$16 sps:$4 sm:$0xff]   ;;  %v8150_v3 = vld.sshfl [vmem:[%s13081_s0 + $0x30] sm:$0x3 pattern:$0x76325410]  ;;  %s1849_s12 = scalar_lea.vmem %s13083_s2, %s13091_s9 }
 0x479   : > { %7230 = vmatprep.subr.bf16.mxu0 %v10303_v50  ;;  %7763 = vmatprep.subr.bf16.mxu1 %v10306_v4  ;;  %v7837_v50 = vld [vmem:[%s12978_s6] sm:$0xff]  ;;  %v7838_v4 = vld [vmem:[%s12978_s6 + $0x8] sm:$0xff] }
 0x47c   : > { %7231 = vmatpush1.bf16.msra.mxu0 %v10301_v5  ;;  %7764 = vmatpush1.bf16.msra.mxu1 %v10304_v6  ;;  %v9012_v5 = vpack.c.bf16 %v7854_v61, %v7853_v43  ;;  %v9044_v6 = vpack.c.bf16 %v7886_v63, %v7885_v62  ;;  %v7864_v43 = vld [vmem:[%s12978_s6 + $0xd8] sm:$0xff]  ;;  %v7895_v61 = vld [vmem:[%s12978_s6 + $0x1d0] sm:$0xff] }
 0x47d   : > { %7232 = vmatprep.subr.bf16.mxu0 %v10309_v7  ;;  %7765 = vmatprep.subr.bf16.mxu1 %v10312_v60  ;;  %v7869_v7 = vld [vmem:[%s12978_s6 + $0x100] sm:$0xff]  ;;  %v7870_v60 = vld [vmem:[%s12978_s6 + $0x108] sm:$0xff]  ;;  %v7896_v62 = vld [vmem:[%s12978_s6 + $0x1d8] sm:$0xff] }
 0x480   : > { %7233 = vmatpush1.bf16.msra.mxu0 %v10307_v9  ;;  %7766 = vmatpush1.bf16.msra.mxu1 %v10310_v58  ;;  %v7855_v9 = vld [vmem:[%s12978_s6 + $0x90] sm:$0xff]  ;;  %v7856_v58 = vld [vmem:[%s12978_s6 + $0x98] sm:$0xff] }
 0x481   : > { %7234 = vmatprep.subr.bf16.mxu0 %v10315_v11  ;;  %7767 = vmatprep.subr.bf16.mxu1 %v10318_v12  ;;  %v7887_v11 = vld [vmem:[%s12978_s6 + $0x190] sm:$0xff]  ;;  %v7888_v12 = vld [vmem:[%s12978_s6 + $0x198] sm:$0xff] }
 0x484   : > { %7235 = vmatpush1.bf16.msra.mxu0 %v10313_v13  ;;  %7768 = vmatpush1.bf16.msra.mxu1 %v10316_v15  ;;  %v2036_v13 = vpack.c.bf16 %v8150_v3, %v8150_v3  ;;  %v9014_v15 = vpack.c.bf16 %v7838_v4, %v7837_v50  ;;  %v7848_v3 = vld [vmem:[%s12978_s6 + $0x58] sm:$0xff]  ;;  %v9064_v4 = vpack.c.bf16 %v7896_v62, %v7895_v61 }
 0x485   : > { %7236 = vmatprep.subr.bf16.mxu0 %v10321_v16  ;;  %7769 = vmatprep.subr.bf16.mxu1 %v10324_v17  ;;  %v9046_v16 = vpack.c.bf16 %v7870_v60, %v7869_v7  ;;  %v7839_v17 = vld [vmem:[%s12978_s6 + $0x10] sm:$0xff]  ;;  %v7865_v7 = vld [vmem:[%s12978_s6 + $0xe0] sm:$0xff]  ;;  %v7866_v60 = vld [vmem:[%s12978_s6 + $0xe8] sm:$0xff] }
 0x488   : > { %7237 = vmatpush1.bf16.msra.mxu0 %v10319_v0  ;;  %7770 = vmatpush1.bf16.msra.mxu1 %v10322_v18  ;;  %v7840_v0 = vld [vmem:[%s12978_s6 + $0x18] sm:$0xff]  ;;  %v9016_v18 = vpack.c.bf16 %v7856_v58, %v7855_v9  ;;  %v7897_v9 = vld [vmem:[%s12978_s6 + $0x1e0] sm:$0xff]  ;;  %v7898_v58 = vld [vmem:[%s12978_s6 + $0x1e8] sm:$0xff] }
 0x489   : > { %7238 = vmatprep.subr.bf16.mxu0 %v10327_v21  ;;  %7771 = vmatprep.subr.bf16.mxu1 %v10330_v22  ;;  %v9048_v21 = vpack.c.bf16 %v7888_v12, %v7887_v11  ;;  %v7871_v22 = vld [vmem:[%s12978_s6 + $0x110] sm:$0xff] }
 0x48c   : > { %7239 = vmatpush1.bf16.msra.mxu0 %v10325_v23  ;;  %7772 = vmatpush1.bf16.msra.mxu1 %v10328_v10  ;;  %v7872_v23 = vld [vmem:[%s12978_s6 + $0x118] sm:$0xff]  ;;  %v7857_v10 = vld [vmem:[%s12978_s6 + $0xa0] sm:$0xff] }
 0x48d   : > { %7240 = vmatprep.subr.bf16.mxu0 %v10333_v26  ;;  %7773 = vmatprep.subr.bf16.mxu1 %v10336_v8  ;;  %v7858_v26 = vld [vmem:[%s12978_s6 + $0xa8] sm:$0xff]  ;;  %v7889_v8 = vld [vmem:[%s12978_s6 + $0x1a0] sm:$0xff] }
 0x490   : > { %7241 = vmatpush1.bf16.msra.mxu0 %v10331_v30  ;;  %7774 = vmatpush1.bf16.msra.mxu1 %v10334_v31  ;;  %v7890_v30 = vld [vmem:[%s12978_s6 + $0x1a8] sm:$0xff]  ;;  %v9018_v31 = vpack.c.bf16 %v7840_v0, %v7839_v17  ;;  %v7881_v0 = vld [vmem:[%s12978_s6 + $0x160] sm:$0xff] }
 0x491   : > { %7242 = vmatprep.subr.bf16.mxu0 %v10339_v20  ;;  %7775 = vmatprep.subr.bf16.mxu1 %v10342_v33  ;;  %v9050_v20 = vpack.c.bf16 %v7872_v23, %v7871_v22  ;;  %v7841_v33 = vld [vmem:[%s12978_s6 + $0x20] sm:$0xff]  ;;  %v7850_v17 = vld [vmem:[%s12978_s6 + $0x68] sm:$0xff]  ;;  %v7867_v23 = vld [vmem:[%s12978_s6 + $0xf0] sm:$0xff] }
 0x494   : > { %7243 = vmatpush1.bf16.msra.mxu0 %v10337_v34  ;;  %7776 = vmatpush1.bf16.msra.mxu1 %v10340_v35  ;;  %v7842_v34 = vld [vmem:[%s12978_s6 + $0x28] sm:$0xff]  ;;  %v9020_v35 = vpack.c.bf16 %v7858_v26, %v7857_v10  ;;  %v7868_v10 = vld [vmem:[%s12978_s6 + $0xf8] sm:$0xff]  ;;  %v7899_v26 = vld [vmem:[%s12978_s6 + $0x1f0] sm:$0xff] }
 0x495   : > { %7244 = vmatprep.subr.bf16.mxu0 %v10345_v14  ;;  %7777 = vmatprep.subr.bf16.mxu1 %v10348_v36  ;;  %v9052_v14 = vpack.c.bf16 %v7890_v30, %v7889_v8  ;;  %v7873_v36 = vld [vmem:[%s12978_s6 + $0x120] sm:$0xff]  ;;  %v9040_v8 = vpack.c.bf16 %v7868_v10, %v7867_v23  ;;  %v7900_v30 = vld [vmem:[%s12978_s6 + $0x1f8] sm:$0xff] }
 0x498   : > { %7245 = vmatpush1.bf16.msra.mxu0 %v10343_v37  ;;  %7778 = vmatpush1.bf16.msra.mxu1 %v10346_v38  ;;  %v7874_v37 = vld [vmem:[%s12978_s6 + $0x128] sm:$0xff]  ;;  %v7859_v38 = vld [vmem:[%s12978_s6 + $0xb0] sm:$0xff] }
 0x499   : > { %7246 = vmatprep.subr.bf16.mxu0 %v10351_v39  ;;  %7779 = vmatprep.subr.bf16.mxu1 %v10354_v27  ;;  %v7860_v39 = vld [vmem:[%s12978_s6 + $0xb8] sm:$0xff]  ;;  %v7891_v27 = vld [vmem:[%s12978_s6 + $0x1b0] sm:$0xff] }
 0x49c   : > { %7247 = vmatpush1.bf16.msra.mxu0 %v10349_v41  ;;  %7780 = vmatpush1.bf16.msra.mxu1 %v10352_v42  ;;  %v7892_v41 = vld [vmem:[%s12978_s6 + $0x1b8] sm:$0xff]  ;;  %v9022_v42 = vpack.c.bf16 %v7842_v34, %v7841_v33  ;;  %v9072_v33 = vpack.c.bf16 %v7900_v30, %v7899_v26 }
 0x49d   : > { %7248 = vmatprep.subr.bf16.mxu0 %v10357_v25  ;;  %7781 = vmatprep.subr.bf16.mxu1 %v10360_v29  ;;  %v9054_v25 = vpack.c.bf16 %v7874_v37, %v7873_v36  ;;  %v7843_v29 = vld [vmem:[%s12978_s6 + $0x30] sm:$0xff]  ;;  %v2825_v37 = vsub.s32 0, %v12053_v19 }
 0x4a0   : > { %7249 = vmatpush1.bf16.msra.mxu0 %v10355_v28  ;;  %7782 = vmatpush1.bf16.msra.mxu1 %v10358_v24  ;;  %v7844_v28 = vld [vmem:[%s12978_s6 + $0x38] sm:$0xff]  ;;  %v9024_v24 = vpack.c.bf16 %v7860_v39, %v7859_v38  ;;  %v2833_v38 = vsub.s32 2, %v12053_v19  ;;  %v2821_v39 = vld [vmem:[%s1849_s12] sm:$0xf] }
 0x4a1   : > { %7259 = vmatprep.subr.bf16.mxu0 %v10364_v46  ;;  %7792 = vmatprep.subr.bf16.mxu1 %v10367_v47  ;;  %v9056_v46 = vpack.c.bf16 %v7892_v41, %v7891_v27  ;;  %v7875_v47 = vld [vmem:[%s12978_s6 + $0x130] sm:$0xff]  ;;  %v2829_v27 = vsub.s32 1, %v12053_v19  ;;  %v2837_v41 = vsub.s32 3, %v12053_v19 }
 0x4a3   : > { %7251 = vmatmul.mubr.bf16.vlgmr.msra.gmra.mrb[0].mxu0 %v2034_v48  ;;  %7784 = vmatmul.mubr.bf16.vlgmr.msra.gmra.mrb[0].mxu1 %v2034_v48  ;;  %v7876_v48 = vld [vmem:[%s12978_s6 + $0x138] sm:$0xff] }
 0x4a4   : > { %7260 = vmatpush1.bf16.msra.mxu0 %v10362_v49  ;;  %7793 = vmatpush1.bf16.msra.mxu1 %v10365_v32  ;;  %v7861_v49 = vld [vmem:[%s12978_s6 + $0xc0] sm:$0xff]  ;;  %v7862_v32 = vld [vmem:[%s12978_s6 + $0xc8] sm:$0xff] }
 0x4a5   : > { %7261 = vmatprep.subr.bf16.mxu0 %v10370_v51  ;;  %7794 = vmatprep.subr.bf16.mxu1 %v10373_v52  ;;  %v7893_v51 = vld [vmem:[%s12978_s6 + $0x1c0] sm:$0xff]  ;;  %v7894_v52 = vld [vmem:[%s12978_s6 + $0x1c8] sm:$0xff] }
 0x4a6   : > { %7291 = vmatprep.mubr.bf16.mxu0 %v10411_v55  ;;  %7824 = vmatprep.mubr.bf16.mxu1 %v10411_v55  ;;  %v9028_v55 = vpack.c.bf16 %v7862_v32, %v7861_v49 }
 0x4a8   : > { %7262 = vmatpush1.bf16.msra.mxu0 %v10368_v40  ;;  %7795 = vmatpush1.bf16.msra.mxu1 %v10371_v53  ;;  %v9026_v40 = vpack.c.bf16 %v7844_v28, %v7843_v29  ;;  %v9058_v53 = vpack.c.bf16 %v7876_v48, %v7875_v47  ;;  %v2830_v29 = vrot.slane %v2821_v39, %v2829_v27 }
 0x4a9   : > { %7263 = vmatprep.subr.bf16.mxu0 %v10376_v54  ;;  %7796 = vmatprep.subr.bf16.mxu1 %v10379_v44  ;;  %v7845_v54 = vld [vmem:[%s12978_s6 + $0x40] sm:$0xff]  ;;  %v7846_v44 = vld [vmem:[%s12978_s6 + $0x48] sm:$0xff]  ;;  %v2838_v28 = vrot.slane %v2821_v39, %v2837_v41 }
 0x4aa   : > { %v9030_v63 = vpack.c.bf16 %v7846_v44, %v7845_v54 }
 0x4ac   : > { %7264 = vmatpush1.bf16.msra.mxu0 %v10374_v56  ;;  %7797 = vmatpush1.bf16.msra.mxu1 %v10377_v57  ;;  %v9060_v56 = vpack.c.bf16 %v7894_v52, %v7893_v51  ;;  %v7877_v57 = vld [vmem:[%s12978_s6 + $0x140] sm:$0xff] }
 0x4ad   : > { %7265 = vmatprep.subr.bf16.mxu0 %v10382_v45  ;;  %7798 = vmatprep.subr.bf16.mxu1 %v10385_v59  ;;  %v7878_v45 = vld [vmem:[%s12978_s6 + $0x148] sm:$0xff]  ;;  %v7863_v59 = vld [vmem:[%s12978_s6 + $0xd0] sm:$0xff] }
 0x4ae   : > { %v9032_v50 = vpack.c.bf16 %v7864_v43, %v7863_v59  ;;  %v8937_v43 = vld [vmem:[%s1858_s14] ss:$0 sm:$0xff] }
 0x4b0   : > { %7266 = vmatpush1.bf16.msra.mxu0 %v10380_v1  ;;  %7799 = vmatpush1.bf16.msra.mxu1 %v10383_v2  ;;  %v9062_v1 = vpack.c.bf16 %v7878_v45, %v7877_v57  ;;  %v7847_v2 = vld [vmem:[%s12978_s6 + $0x50] sm:$0xff] }
 0x4b1   : > { %9013 = vmatprep.subr.bf16.mxu0 %v9012_v5  ;;  %9045 = vmatprep.subr.bf16.mxu1 %v9044_v6  ;;  %v7879_v5 = vld [vmem:[%s12978_s6 + $0x150] sm:$0xff]  ;;  %v7880_v6 = vld [vmem:[%s12978_s6 + $0x158] sm:$0xff]  ;;  %v9034_v11 = vpack.c.bf16 %v7848_v3, %v7847_v2 }
 0x4b2   : > { %v9066_v12 = vpack.c.bf16 %v7880_v6, %v7879_v5 }
 0x4b3   : > { %8935 = vmatmul.mubr.msk.bf16.vlgmr.msra.gmra.mrb[0].mxu0 %vm6763_vm0, %v2036_v13  ;;  %8936 = vmatmul.mubr.msk.bf16.vlgmr.msra.gmra.mrb[0].mxu1 %vm6763_vm0, %v2036_v13  ;;  %v9036_v13 = vpack.c.bf16 %v7866_v60, %v7865_v7 }
 0x4b4   : > { %9015 = vmatpush3.bf16.msra.mxu0 %v9014_v15  ;;  %9047 = vmatpush3.bf16.msra.mxu1 %v9046_v16  ;;  %v9068_v15 = vpack.c.bf16 %v7898_v58, %v7897_v9  ;;  %v7849_v16 = vld [vmem:[%s12978_s6 + $0x60] sm:$0xff] }
 0x4b5   : > { %9017 = vmatprep.subr.bf16.mxu0 %v9016_v18  ;;  %9049 = vmatprep.subr.bf16.mxu1 %v9048_v21  ;;  %v9038_v18 = vpack.c.bf16 %v7850_v17, %v7849_v16  ;;  %v7882_v21 = vld [vmem:[%s12978_s6 + $0x168] sm:$0xff] }
 0x4b6   : > { %v9070_v22 = vpack.c.bf16 %v7882_v21, %v7881_v0 }
 0x4b8   : > { %9019 = vmatpush3.bf16.msra.mxu0 %v9018_v31  ;;  %9051 = vmatpush3.bf16.msra.mxu1 %v9050_v20  ;;  %v7851_v31 = vld [vmem:[%s12978_s6 + $0x70] sm:$0xff]  ;;  %v7852_v20 = vld [vmem:[%s12978_s6 + $0x78] sm:$0xff] }
 0x4b9   : > { %9021 = vmatprep.subr.bf16.mxu0 %v9020_v35  ;;  %9053 = vmatprep.subr.bf16.mxu1 %v9052_v14  ;;  %v9042_v34 = vpack.c.bf16 %v7852_v20, %v7851_v31  ;;  %v7883_v35 = vld [vmem:[%s12978_s6 + $0x170] sm:$0xff]  ;;  %v7884_v14 = vld [vmem:[%s12978_s6 + $0x178] sm:$0xff] }
 0x4ba   : > { %v9074_v36 = vpack.c.bf16 %v7884_v14, %v7883_v35 }
 0x4bc   : > { %9023 = vmatpush3.bf16.msra.mxu0 %v9022_v42  ;;  %9055 = vmatpush3.bf16.msra.mxu1 %v9054_v25  ;;  %v2826_v42 = vrot.slane %v2821_v39, %v2825_v37  ;;  %v2834_v25 = vrot.slane %v2821_v39, %v2833_v38 }
 0x4bd   : > { %9025 = vmatprep.subr.bf16.mxu0 %v9024_v24  ;;  %9057 = vmatprep.subr.bf16.mxu1 %v9056_v46 }
 0x4c0   : > { %9027 = vmatpush3.bf16.msra.mxu0 %v9026_v40  ;;  %9059 = vmatpush3.bf16.msra.mxu1 %v9058_v53 }
 0x4c1   : > { %9029 = vmatprep.subr.bf16.mxu0 %v9028_v55  ;;  %9061 = vmatprep.subr.bf16.mxu1 %v9060_v56 }
 0x4c4   : > { %9031 = vmatpush3.bf16.msra.mxu0 %v9030_v63  ;;  %9063 = vmatpush3.bf16.msra.mxu1 %v9062_v1 }
 0x4c5   : > { %9033 = vmatprep.subr.bf16.mxu0 %v9032_v50  ;;  %9065 = vmatprep.subr.bf16.mxu1 %v9064_v4 }
 0x4c8   : > { %9035 = vmatpush3.bf16.msra.mxu0 %v9034_v11  ;;  %9067 = vmatpush3.bf16.msra.mxu1 %v9066_v12 }
 0x4c9   : > { %9037 = vmatprep.subr.bf16.mxu0 %v9036_v13  ;;  %9069 = vmatprep.subr.bf16.mxu1 %v9068_v15 }
 0x4cc   : > { %9039 = vmatpush3.bf16.msra.mxu0 %v9038_v18  ;;  %9071 = vmatpush3.bf16.msra.mxu1 %v9070_v22 }
 0x4cd   : > { %9041 = vmatprep.subr.bf16.mxu0 %v9040_v8  ;;  %9073 = vmatprep.subr.bf16.mxu1 %v9072_v33 }
 0x4d0   : > { %9043 = vmatpush3.bf16.msra.mxu0 %v9042_v34  ;;  %9075 = vmatpush3.bf16.msra.mxu1 %v9074_v36 }
 0x586   : > { %v7293_v24 = vpop.f32.mrb[0].mxu0  ;;  %v7826_v46 = vpop.f32.mrb[0].mxu1 }
 0x587   : > { %v9076_v47 = vadd.f32 %v7293_v24, %v2826_v42  ;;  %v9078_v48 = vadd.f32 %v7826_v46, %v2834_v25  ;;  %v7295_v49 = vpop.f32.mrb[1].mxu0  ;;  %v7828_v32 = vpop.f32.mrb[1].mxu1 }
 0x588   : > { %v9077_v51 = vadd.f32 %v7295_v49, %v2830_v29  ;;  %v9079_v52 = vadd.f32 %v7828_v32, %v2838_v28  ;;  %v7297_v40 = vpop.f32.mrb[2].mxu0  ;;  %v7830_v53 = vpop.f32.mrb[2].mxu1 }
 0x589   : > { %v7298_v54 = vpop.f32.mrb[3].mxu0  ;;  %v7831_v44 = vpop.f32.mrb[3].mxu1  ;;  %v7833_v56 = vmax.f32 %v9076_v47, 0.0  ;;  %v7835_v57 = vmax.f32 %v9078_v48, 0.0 }
 0x58a   : > { %v7834_v55 = vmax.f32 %v9077_v51, 0.0  ;;  %v7836_v19 = vmax.f32 %v9079_v52, 0.0 }
 0x58c   : > { %7972 = vmatprep.mubr.f32.mxu0 %v7834_v55  ;;  %8042 = vmatprep.mubr.f32.mxu1 %v7836_v19 }
 0x58d   : > { %7973 = vmatmul.mubr.f32.vlgmr.msra.gmra.mrb[4].mxu0 %v7833_v56  ;;  %8043 = vmatmul.mubr.f32.vlgmr.msra.gmra.mrb[4].mxu1 %v7835_v57 }
 0x660   : > { %v8974_v45 = vpop.f32.mrb[4].mxu0  ;;  %v9009_v59 = vpop.f32.mrb[4].mxu1 }
 0x661   : > { %v8975_v61 = vpop.f32.mrb[5].mxu0  ;;  %v9010_v62 = vpop.f32.mrb[5].mxu1 }
 0x662   : > { %v8976_v63 = vadd.f32 %v8975_v61, %v8974_v45  ;;  %v9011_v1 = vadd.f32 %v9010_v62, %v9009_v59 }
 0x664   : > { %v7975_v2 = vadd.f32 %v8976_v63, %v8937_v43 }
 0x666   : > { %v8045_v3 = vadd.f32 %v9011_v1, %v7975_v2 }
 0x668   : > { %8049 = vst.msk [vmem:[%s1862_s18] sm:$0x3] %vm8048_vm1, %v8045_v3 }
 0x669 PF: > { %p12_p10 = scmp.ge.s32.totalorder %s10461_s22, 4   ;;  %s13087_s18 = smov %s10404_s19 }
 0x66a   : > { %s13088_s19 = smov %s10470_s25  ;;  %s13089_s20 = smov %s10461_s22 }
 0x66b   :  { %14 = sbr.rel (!%p12_p10) target bundleno = 2 (0x2), region = 107 }

</bundles_post_ra>
